<compile_context>
chip_gen: v5e
topology: v5e:2x2
jax: 0.10.0
libtpu: 0.0.40
codegen_flags: <defaults>
</compile_context>

<pallas_src>
import math
import functools
import numpy as np
import jax
import jax.numpy as jnp
from jax.experimental import pallas as pl
from jax.experimental.pallas import tpu as pltpu


# ----------------------------- config (ModelArgs analogue, small shapes) -----------------------------
class Args:
    nb_classes = 5
    dim = 64
    inter_dim = 128
    moe_inter_dim = 128
    n_layers = 2
    n_dense_layers = 1
    n_heads = 4
    n_routed_experts = 4
    n_shared_experts = 1
    n_activated_experts = 2
    score_func = "softmax"
    route_scale = 1.0
    q_lora_rank = 0
    kv_lora_rank = 16
    qk_nope_head_dim = 16
    qk_rope_head_dim = 16
    v_head_dim = 16
    original_seq_len = 16
    max_seq_len = 64
    rope_theta = 1000.0
    rope_factor = 40.0
    beta_fast = 32
    beta_slow = 1
    mscale = 1.0


PATCH = 4
IN_CHANS = 4
IMG = 16
NUM_PATCHES = (IMG // PATCH) ** 2      # 16
SEQ_REAL = NUM_PATCHES + 1             # 17 (cls + patches)
SEQ_PAD = 24                           # padded to a multiple of 8 sublanes


# ----------------------------- in-kernel helpers (pure value math) -----------------------------
def _rms(x, w, eps=1e-6):
    # x: (T, D) fp32, w: (1, D) fp32
    ms = jnp.mean(x * x, axis=-1, keepdims=True)
    return x * jax.lax.rsqrt(ms + eps) * w


def _silu(x):
    return x * jax.nn.sigmoid(x)


def _mla_attention(x, cos, sin, anorm_w, wqa, kvnorm_w, wkvb, wo,
                   *, H, nope, rope, vhd, kvr, scale):
    """MLA ('naive' attn_impl) for one batch element; x: (Sp, D) fp32.

    wqa = [wq | wkv_a] pre-transposed to (D, H*(nope+rope) + kvr + rope) with the
    RoPE output columns pre-deinterleaved ([re..., im...] per head) so rotation
    needs only contiguous half-slices (score dot-products are invariant to the
    consistent permutation of q_pe / k_pe)."""
    Sp = x.shape[0]
    qk_hd = nope + rope
    half = rope // 2

    hn = _rms(x, anorm_w)
    qkv = jnp.dot(hn.astype(jnp.bfloat16), wqa,
                  preferred_element_type=jnp.float32)            # (Sp, H*qk_hd + kvr + rope)
    qdim = H * qk_hd
    kv_c = qkv[:, qdim:qdim + kvr]                               # (Sp, kvr)
    k_pe = qkv[:, qdim + kvr:qdim + kvr + rope]                  # (Sp, rope) deinterleaved

    kr, ki = k_pe[:, :half], k_pe[:, half:]
    k_pe_rot = jnp.concatenate([kr * cos - ki * sin, kr * sin + ki * cos], axis=-1)

    kvb = jnp.dot(_rms(kv_c, kvnorm_w).astype(jnp.bfloat16), wkvb,
                  preferred_element_type=jnp.float32)            # (Sp, H*(nope+vhd))

    rows = jax.lax.broadcasted_iota(jnp.int32, (Sp, Sp), 0)
    cols = jax.lax.broadcasted_iota(jnp.int32, (Sp, Sp), 1)
    causal = jnp.where(cols <= rows, 0.0, -1e30).astype(jnp.float32)

    head_outs = []
    for h in range(H):
        q_h = qkv[:, h * qk_hd:(h + 1) * qk_hd]
        q_nope = q_h[:, :nope]
        q_pe = q_h[:, nope:]
        qr, qi = q_pe[:, :half], q_pe[:, half:]
        q_rot = jnp.concatenate([qr * cos - qi * sin, qr * sin + qi * cos], axis=-1)
        q_full = jnp.concatenate([q_nope, q_rot], axis=-1).astype(jnp.bfloat16)

        base = h * (nope + vhd)
        k_nope = kvb[:, base:base + nope]
        v_h = kvb[:, base + nope:base + nope + vhd]
        k_full = jnp.concatenate([k_nope, k_pe_rot], axis=-1).astype(jnp.bfloat16)

        # q @ k^T via dot_general contracting the last dims (no explicit transpose)
        s = jax.lax.dot_general(q_full, k_full, (((1,), (1,)), ((), ())),
                                preferred_element_type=jnp.float32)
        s = s * scale + causal
        m = jnp.max(s, axis=-1, keepdims=True)
        p = jnp.exp(s - m)
        p = p * pl.reciprocal(jnp.sum(p, axis=-1, keepdims=True), approx=True)
        head_outs.append(jnp.dot(p.astype(jnp.bfloat16), v_h.astype(jnp.bfloat16),
                                 preferred_element_type=jnp.float32))

    o = jnp.concatenate(head_outs, axis=-1).astype(jnp.bfloat16)  # (Sp, H*vhd)
    return jnp.dot(o, wo, preferred_element_type=jnp.float32)     # (Sp, D)


# ----------------------------- fused block kernels -----------------------------
def _block_dense_kernel(x_ref, cos_ref, sin_ref, anorm_ref, wqa_ref, kvnorm_ref,
                        wkvb_ref, wo_ref, fnorm_ref, w13_ref, w2_ref, o_ref,
                        *, H, nope, rope, vhd, kvr, scale, inter):
    x = x_ref[0]                                                  # (Sp, D) fp32
    attn = _mla_attention(x, cos_ref[...], sin_ref[...], anorm_ref[...], wqa_ref[...],
                          kvnorm_ref[...], wkvb_ref[...], wo_ref[...],
                          H=H, nope=nope, rope=rope, vhd=vhd, kvr=kvr, scale=scale)
    h = x + attn
    hnb = _rms(h, fnorm_ref[...]).astype(jnp.bfloat16)
    h13 = jnp.dot(hnb, w13_ref[...], preferred_element_type=jnp.float32)   # (Sp, 2I)
    act = _silu(h13[:, :inter]) * h13[:, inter:]
    y = jnp.dot(act.astype(jnp.bfloat16), w2_ref[...],
                preferred_element_type=jnp.float32)
    o_ref[0] = h + y


def _block_moe_kernel(x_ref, cos_ref, sin_ref, anorm_ref, wqa_ref, kvnorm_ref,
                      wkvb_ref, wo_ref, fnorm_ref, gate_ref, w13_ref, w2_ref, o_ref,
                      *, H, nope, rope, vhd, kvr, scale,
                      n_experts, topk, route_scale, moe_inter, shared_inter):
    x = x_ref[0]                                                  # (Sp, D) fp32
    attn = _mla_attention(x, cos_ref[...], sin_ref[...], anorm_ref[...], wqa_ref[...],
                          kvnorm_ref[...], wkvb_ref[...], wo_ref[...],
                          H=H, nope=nope, rope=rope, vhd=vhd, kvr=kvr, scale=scale)
    h = x + attn
    hn = _rms(h, fnorm_ref[...])
    hnb = hn.astype(jnp.bfloat16)
    Sp = x.shape[0]
    E = n_experts

    # Gate: softmax scores + top-k selection (lower index wins ties), no renorm
    # (score_func == 'softmax'), route_scale applied -> identical to torch Gate.
    logits = jnp.dot(hnb, gate_ref[...], preferred_element_type=jnp.float32)   # (Sp, E)
    logits = logits - jnp.max(logits, axis=-1, keepdims=True)
    ex = jnp.exp(logits)
    scores = ex / jnp.sum(ex, axis=-1, keepdims=True)
    eidx = jax.lax.broadcasted_iota(jnp.int32, (Sp, E), 1)
    rank = jnp.zeros((Sp, E), jnp.float32)
    for j in range(E):
        sj = scores[:, j:j + 1]
        beats = (sj > scores) | ((sj == scores) & (eidx > j))
        rank = rank + beats.astype(jnp.float32)
    gate_w = scores * (rank < topk).astype(jnp.float32) * route_scale          # (Sp, E)

    # Routed + shared experts: one fused up-projection and one fused down-projection.
    # Tokens not routed to an expert get weight 0 -> exactly equivalent to the
    # reference's sparse dispatch.
    h13 = jnp.dot(hnb, w13_ref[...], preferred_element_type=jnp.float32)       # (Sp, E*2I + 2Is)
    acts = []
    for e in range(E):
        a = h13[:, e * 2 * moe_inter: e * 2 * moe_inter + moe_inter]
        g = h13[:, e * 2 * moe_inter + moe_inter: (e + 1) * 2 * moe_inter]
        acts.append(_silu(a) * g * gate_w[:, e:e + 1])
    off = E * 2 * moe_inter
    a = h13[:, off: off + shared_inter]
    g = h13[:, off + shared_inter: off + 2 * shared_inter]
    acts.append(_silu(a) * g)
    act_cat = jnp.concatenate(acts, axis=-1).astype(jnp.bfloat16)              # (Sp, E*I + Is)
    y = jnp.dot(act_cat, w2_ref[...], preferred_element_type=jnp.float32)
    o_ref[0] = h + y + 0.0


# ----------------------------- embed / head kernels -----------------------------
def _embed_kernel(x_ref, w_ref, b_ref, g_ref, beta_ref, o_ref):
    # conv(k=stride=patch) as matmul + bias, then LayerNorm (eps=1e-5)
    y = jnp.dot(x_ref[...].astype(jnp.bfloat16), w_ref[...],
                preferred_element_type=jnp.float32) + b_ref[...]
    mu = jnp.mean(y, axis=-1, keepdims=True)
    var = jnp.mean((y - mu) * (y - mu), axis=-1, keepdims=True)
    o_ref[...] = (y - mu) * jax.lax.rsqrt(var + 1e-5) * g_ref[...] + beta_ref[...]


def _head_kernel(x_ref, nrm_ref, w_ref, o_ref):
    h = _rms(x_ref[...], nrm_ref[...])
    o_ref[...] = jnp.dot(h.astype(jnp.bfloat16), w_ref[...],
                         preferred_element_type=jnp.float32)


# ----------------------------- pallas_call wrappers -----------------------------
def _full_spec(a):
    nd = a.ndim
    return pl.BlockSpec(a.shape, lambda i, _nd=nd: (0,) * _nd)


def run_embed(patches, ep):
    T, _ = patches.shape
    D = ep["w"].shape[1]
    ins = [patches, ep["w"], ep["b"], ep["g"], ep["beta"]]
    return pl.pallas_call(
        _embed_kernel,
        out_shape=jax.ShapeDtypeStruct((T, D), jnp.float32),
        grid=(1,),
        in_specs=[_full_spec(a) for a in ins],
        out_specs=pl.BlockSpec((T, D), lambda i: (0, 0)),
    )(*ins)


def run_head(x_last, norm_w, head_w):
    B, _ = x_last.shape
    N = head_w.shape[1]
    ins = [x_last, norm_w, head_w]
    return pl.pallas_call(
        _head_kernel,
        out_shape=jax.ShapeDtypeStruct((B, N), jnp.float32),
        grid=(1,),
        in_specs=[_full_spec(a) for a in ins],
        out_specs=pl.BlockSpec((B, N), lambda i: (0, 0)),
    )(*ins)


def run_block(x, cos, sin, lp, args, layer_id):
    B, Sp, D = x.shape
    H = args.n_heads
    nope, rope, vhd, kvr = (args.qk_nope_head_dim, args.qk_rope_head_dim,
                            args.v_head_dim, args.kv_lora_rank)
    scale = (nope + rope) ** (-0.5)
    if args.max_seq_len > args.original_seq_len:
        msc = 0.1 * args.mscale * math.log(args.rope_factor) + 1.0
        scale = scale * msc * msc
    common = dict(H=H, nope=nope, rope=rope, vhd=vhd, kvr=kvr, scale=scale)

    base_ins = [cos, sin, lp["attn_norm"], lp["wqa"], lp["kv_norm"],
                lp["wkv_b"], lp["wo"], lp["ffn_norm"]]
    if layer_id < args.n_dense_layers:
        kern = functools.partial(_block_dense_kernel, inter=args.inter_dim, **common)
        extra = [lp["ffn"]["w13"], lp["ffn"]["w2"]]
    else:
        kern = functools.partial(
            _block_moe_kernel,
            n_experts=args.n_routed_experts, topk=args.n_activated_experts,
            route_scale=args.route_scale, moe_inter=args.moe_inter_dim,
            shared_inter=args.n_shared_experts * args.moe_inter_dim, **common)
        extra = [lp["ffn"]["gate"], lp["ffn"]["w13"], lp["ffn"]["w2"]]

    ins = [x] + base_ins + extra
    in_specs = ([pl.BlockSpec((1, Sp, D), lambda b: (b, 0, 0))]
                + [_full_spec(a) for a in base_ins + extra])
    # NOTE(v7x): with bigger configs keep the weight-resident working set under the
    # 64 MiB physical / 32 MiB scoped VMEM and raise vmem_limit_bytes via
    # pltpu.CompilerParams if needed; at these sizes (<1 MB/layer) it is trivial.
    return pl.pallas_call(
        kern,
        out_shape=jax.ShapeDtypeStruct((B, Sp, D), jnp.float32),
        grid=(B,),
        in_specs=in_specs,
        out_specs=pl.BlockSpec((1, Sp, D), lambda b: (b, 0, 0)),
        compiler_params=pltpu.CompilerParams(
            dimension_semantics=("parallel",)),   # v7x: batch splits across 2 TCs
    )(*ins)


# ----------------------------- forward -----------------------------
def vit_moe_forward(tokens, prep, args):
    B = tokens.shape[0]
    ps = PATCH
    # patchify (layout op only): NCHW -> (B*NP, C*ps*ps)
    x = tokens.reshape(B, IN_CHANS, IMG // ps, ps, IMG // ps, ps)
    x = jnp.transpose(x, (0, 2, 4, 1, 3, 5)).reshape(B * NUM_PATCHES, IN_CHANS * ps * ps)

    emb = run_embed(x, prep["embed"])                         # (B*NP, D)
    xx = emb.reshape(B, NUM_PATCHES, args.dim)
    # prepend cls slot, pad to SEQ_PAD, add precomputed (cls_token + pos_embed)
    xx = jnp.pad(xx, ((0, 0), (1, SEQ_PAD - 1 - NUM_PATCHES), (0, 0))) + prep["tok_add"]

    for lid, lp in enumerate(prep["layers"]):
        xx = run_block(xx, prep["cos"], prep["sin"], lp, args, lid)

    x_last = xx[:, SEQ_REAL - 1]                              # real last token (index 16)
    return run_head(x_last, prep["norm_w"], prep["head_w"])   # (B, nb_classes)


# ----------------------------- RoPE tables -----------------------------
def precompute_freqs_cis(args):
    dim = args.qk_rope_head_dim
    seqlen = args.max_seq_len
    base = args.rope_theta
    factor = args.rope_factor
    freqs = 1.0 / (base ** (np.arange(0, dim, 2, dtype=np.float32) / dim))
    if seqlen > args.original_seq_len:
        def find_correction_dim(num_rot):
            return dim * math.log(args.original_seq_len / (num_rot * 2 * math.pi)) / (2 * math.log(base))
        low = max(math.floor(find_correction_dim(args.beta_fast)), 0)
        high = min(math.ceil(find_correction_dim(args.beta_slow)), dim - 1)
        hi = high + 0.001 if low == high else high
        ramp = np.clip((np.arange(dim // 2, dtype=np.float32) - low) / (hi - low), 0.0, 1.0)
        smooth = 1.0 - ramp
        freqs = freqs / factor * (1 - smooth) + freqs * smooth
    t = np.arange(seqlen, dtype=np.float32)
    f = np.outer(t, freqs)
    return jnp.asarray(np.cos(f), jnp.float32), jnp.asarray(np.sin(f), jnp.float32)


# ----------------------------- deterministic torch-layout init -----------------------------
def init_params(key, args):
    keys = iter(jax.random.split(key, 256))

    def w(shape, s=0.02):
        return s * jax.random.normal(next(keys), shape, jnp.float32)

    D, H = args.dim, args.n_heads
    qk_hd = args.qk_nope_head_dim + args.qk_rope_head_dim

    def mlp_p(inter):
        return {"w1": w((inter, D)), "w2": w((D, inter)), "w3": w((inter, D))}

    layers = []
    for lid in range(args.n_layers):
        attn = {
            "wq": w((H * qk_hd, D)),
            "wkv_a": w((args.kv_lora_rank + args.qk_rope_head_dim, D)),
            "kv_norm": jnp.ones((args.kv_lora_rank,), jnp.float32),
            "wkv_b": w((H * (args.qk_nope_head_dim + args.v_head_dim), args.kv_lora_rank)),
            "wo": w((D, H * args.v_head_dim)),
        }
        if lid < args.n_dense_layers:
            ffn = mlp_p(args.inter_dim)
        else:
            ffn = {
                "gate_w": w((args.n_routed_experts, D)),
                "experts": [mlp_p(args.moe_inter_dim) for _ in range(args.n_routed_experts)],
                "shared": mlp_p(args.n_shared_experts * args.moe_inter_dim),
            }
        layers.append({
            "attn": attn, "ffn": ffn,
            "attn_norm": jnp.ones((D,), jnp.float32),
            "ffn_norm": jnp.ones((D,), jnp.float32),
        })

    cos, sin = precompute_freqs_cis(args)
    return {
        "embed": {"proj_w": w((D, IN_CHANS, PATCH, PATCH)),
                  "proj_b": jnp.zeros((D,), jnp.float32),
                  "ln_g": jnp.ones((D,), jnp.float32),
                  "ln_b": jnp.zeros((D,), jnp.float32)},
        "cls_token": jnp.zeros((1, 1, D), jnp.float32),                  # torch init: zeros
        "pos_embed": jnp.zeros((1, NUM_PATCHES + 1, D), jnp.float32),    # torch init: zeros
        "layers": layers,
        "norm_w": jnp.ones((D,), jnp.float32),
        "head_w": w((args.nb_classes, D)),
        "freqs_cos": cos,
        "freqs_sin": sin,
    }


# ----------------------------- one-time parameter prep (layout + bf16) -----------------------------
def prepare_params(params, args):
    D = args.dim
    H = args.n_heads
    nope, rope, vhd = args.qk_nope_head_dim, args.qk_rope_head_dim, args.v_head_dim
    qk_hd = nope + rope
    kvr = args.kv_lora_rank
    bf = jnp.bfloat16

    def t_bf16(wt):   # torch (out, in) -> (in, out) bf16
        return wt.T.astype(bf)

    # deinterleave permutation for RoPE columns: [r0,i0,r1,i1,...] -> [r0..r7, i0..i7]
    dp = np.concatenate([np.arange(0, rope, 2), np.arange(1, rope, 2)])

    prep = {}
    # --- patch embed ---
    e = params["embed"]
    prep["embed"] = {
        "w": e["proj_w"].reshape(D, -1).T.astype(bf),      # (C*ps*ps, D)
        "b": e["proj_b"].reshape(1, D),
        "g": e["ln_g"].reshape(1, D),
        "beta": e["ln_b"].reshape(1, D),
    }

    # --- layers ---
    layers = []
    for lid in range(args.n_layers):
        lp = params["layers"][lid]
        ap = lp["attn"]
        perm_q = np.arange(H * qk_hd)
        for h in range(H):
            base = h * qk_hd + nope
            perm_q[base:base + rope] = base + dp
        wq_t = ap["wq"].T[:, perm_q]                       # (D, H*qk_hd), rope cols deinterleaved
        perm_kva = np.arange(kvr + rope)
        perm_kva[kvr:] = kvr + dp
        wkva_t = ap["wkv_a"].T[:, perm_kva]                # (D, kvr+rope)
        wqa = jnp.concatenate([wq_t, wkva_t], axis=1).astype(bf)   # (D, 160)

        lprep = {
            "attn_norm": lp["attn_norm"].reshape(1, D),
            "wqa": wqa,
            "kv_norm": ap["kv_norm"].reshape(1, kvr),
            "wkv_b": t_bf16(ap["wkv_b"]),                  # (kvr, H*(nope+vhd))
            "wo": t_bf16(ap["wo"]),                        # (H*vhd, D)
            "ffn_norm": lp["ffn_norm"].reshape(1, D),
        }
        f = lp["ffn"]
        if lid < args.n_dense_layers:
            lprep["ffn"] = {
                "w13": jnp.concatenate([f["w1"].T, f["w3"].T], axis=1).astype(bf),  # (D, 2I)
                "w2": t_bf16(f["w2"]),                                              # (I, D)
            }
        else:
            blocks13 = [jnp.concatenate([ex["w1"].T, ex["w3"].T], axis=1) for ex in f["experts"]]
            blocks13.append(jnp.concatenate([f["shared"]["w1"].T, f["shared"]["w3"].T], axis=1))
            blocks2 = [ex["w2"].T for ex in f["experts"]] + [f["shared"]["w2"].T]
            lprep["ffn"] = {
                "gate": t_bf16(f["gate_w"]),                                        # (D, E)
                "w13": jnp.concatenate(blocks13, axis=1).astype(bf),                # (D, E*2I+2Is)
                "w2": jnp.concatenate(blocks2, axis=0).astype(bf),                  # (E*I+Is, D)
            }
        layers.append(lprep)
    prep["layers"] = layers

    # --- head / final norm ---
    prep["norm_w"] = params["norm_w"].reshape(1, D)
    prep["head_w"] = t_bf16(params["head_w"])              # (D, nb_classes)

    # --- RoPE tables sliced to padded seq len ---
    prep["cos"] = params["freqs_cos"][:SEQ_PAD]            # (Sp, rope/2)
    prep["sin"] = params["freqs_sin"][:SEQ_PAD]

    # --- cls + pos add tensor (padded) ---
    cls_pos = params["cls_token"][0] + params["pos_embed"][0, :1]          # (1, D)
    rest = params["pos_embed"][0, 1:]                                      # (NP, D)
    zpad = jnp.zeros((SEQ_PAD - 1 - NUM_PATCHES, D), jnp.float32)
    prep["tok_add"] = jnp.concatenate([cls_pos, rest, zpad], axis=0)[None]  # (1, Sp, D)
    return prep


# ----------------------------- main -----------------------------
if __name__ == "__main__":
    args = Args()
    key = jax.random.PRNGKey(0)
    pkey, xkey = jax.random.split(key)
    params = init_params(pkey, args)
    prep = prepare_params(params, args)
    tokens = jax.random.normal(xkey, (2, IN_CHANS, IMG, IMG), jnp.float32)

    fwd = jax.jit(functools.partial(vit_moe_forward, args=args))
    logits = fwd(tokens, prep)
    logits = jax.block_until_ready(logits)

    assert logits.shape == (2, args.nb_classes), logits.shape
    assert bool(jnp.all(jnp.isfinite(logits)))
    print("KERNEL_OK")
</pallas_src>

<mosaic_0001>
module attributes {stable_mosaic.version = 11 : i64} {
  func.func @_embed_kernel(%arg0: i32, %arg1: memref<32x64xf32, #tpu.memory_space<vmem>>, %arg2: memref<64x64xbf16, #tpu.memory_space<vmem>>, %arg3: memref<1x64xf32, #tpu.memory_space<vmem>>, %arg4: memref<1x64xf32, #tpu.memory_space<vmem>>, %arg5: memref<1x64xf32, #tpu.memory_space<vmem>>, %arg6: memref<32x64xf32, #tpu.memory_space<vmem>>) attributes {dimension_semantics = [#tpu.dimension_semantics<arbitrary>], iteration_bounds = array<i64: 1>, scalar_prefetch = 0 : i64, scratch_operands = 0 : i64, tpu.core_type = #tpu.core_type<tc>, window_params = [{pipeline_mode = #tpu.pipeline_mode<synchronous>, transform_indices = @transform_0, window_bounds = array<i64: 32, 64>}, {pipeline_mode = #tpu.pipeline_mode<synchronous>, transform_indices = @transform_1, window_bounds = array<i64: 64, 64>}, {pipeline_mode = #tpu.pipeline_mode<synchronous>, transform_indices = @transform_2, window_bounds = array<i64: 1, 64>}, {pipeline_mode = #tpu.pipeline_mode<synchronous>, transform_indices = @transform_3, window_bounds = array<i64: 1, 64>}, {pipeline_mode = #tpu.pipeline_mode<synchronous>, transform_indices = @transform_4, window_bounds = array<i64: 1, 64>}, {pipeline_mode = #tpu.pipeline_mode<synchronous>, transform_indices = @transform_5, window_bounds = array<i64: 32, 64>}]} {
    %c0 = arith.constant 0 : index
    %c0_0 = arith.constant 0 : index
    %0 = vector.load %arg1[%c0, %c0_0] : memref<32x64xf32, #tpu.memory_space<vmem>>, vector<32x64xf32>
    %1 = arith.truncf %0 : vector<32x64xf32> to vector<32x64xbf16>
    %c0_1 = arith.constant 0 : index
    %c0_2 = arith.constant 0 : index
    %2 = vector.load %arg2[%c0_1, %c0_2] : memref<64x64xbf16, #tpu.memory_space<vmem>>, vector<64x64xbf16>
    %cst = arith.constant dense<0.000000e+00> : vector<32x64xf32>
    %3 = tpu.matmul %1, %2, %cst {dimension_numbers = #tpu.dot_dimension_numbers<[1], [0], [0], [1], [0, 0, 1, 1], [], []>} : vector<32x64xbf16>, vector<64x64xbf16>, vector<32x64xf32> -> vector<32x64xf32>
    %c0_3 = arith.constant 0 : index
    %c0_4 = arith.constant 0 : index
    %4 = vector.load %arg3[%c0_3, %c0_4] : memref<1x64xf32, #tpu.memory_space<vmem>>, vector<1x64xf32>
    %5 = vector.broadcast %4 : vector<1x64xf32> to vector<32x64xf32>
    %6 = arith.addf %3, %5 : vector<32x64xf32>
    %cst_5 = arith.constant dense<0.000000e+00> : vector<32xf32>
    %7 = vector.multi_reduction <add>, %6, %cst_5 [1] : vector<32x64xf32> to vector<32xf32>
    %8 = vector.shape_cast %7 : vector<32xf32> to vector<32x1xf32>
    %cst_6 = arith.constant 6.400000e+01 : f32
    %9 = vector.broadcast %cst_6 : f32 to vector<32x1xf32>
    %10 = arith.divf %8, %9 : vector<32x1xf32>
    %11 = vector.broadcast %10 : vector<32x1xf32> to vector<32x64xf32>
    %12 = arith.subf %6, %11 : vector<32x64xf32>
    %13 = vector.broadcast %10 : vector<32x1xf32> to vector<32x64xf32>
    %14 = arith.subf %6, %13 : vector<32x64xf32>
    %15 = arith.mulf %12, %14 : vector<32x64xf32>
    %cst_7 = arith.constant dense<0.000000e+00> : vector<32xf32>
    %16 = vector.multi_reduction <add>, %15, %cst_7 [1] : vector<32x64xf32> to vector<32xf32>
    %17 = vector.shape_cast %16 : vector<32xf32> to vector<32x1xf32>
    %cst_8 = arith.constant 6.400000e+01 : f32
    %18 = vector.broadcast %cst_8 : f32 to vector<32x1xf32>
    %19 = arith.divf %17, %18 : vector<32x1xf32>
    %20 = vector.broadcast %10 : vector<32x1xf32> to vector<32x64xf32>
    %21 = arith.subf %6, %20 : vector<32x64xf32>
    %cst_9 = arith.constant 9.99999974E-6 : f32
    %22 = vector.broadcast %cst_9 : f32 to vector<32x1xf32>
    %23 = arith.addf %19, %22 : vector<32x1xf32>
    %24 = math.rsqrt %23 : vector<32x1xf32>
    %25 = vector.broadcast %24 : vector<32x1xf32> to vector<32x64xf32>
    %26 = arith.mulf %21, %25 : vector<32x64xf32>
    %c0_10 = arith.constant 0 : index
    %c0_11 = arith.constant 0 : index
    %27 = vector.load %arg4[%c0_10, %c0_11] : memref<1x64xf32, #tpu.memory_space<vmem>>, vector<1x64xf32>
    %28 = vector.broadcast %27 : vector<1x64xf32> to vector<32x64xf32>
    %29 = arith.mulf %26, %28 : vector<32x64xf32>
    %c0_12 = arith.constant 0 : index
    %c0_13 = arith.constant 0 : index
    %30 = vector.load %arg5[%c0_12, %c0_13] : memref<1x64xf32, #tpu.memory_space<vmem>>, vector<1x64xf32>
    %31 = vector.broadcast %30 : vector<1x64xf32> to vector<32x64xf32>
    %32 = arith.addf %29, %31 : vector<32x64xf32>
    %c0_14 = arith.constant 0 : index
    %c0_15 = arith.constant 0 : index
    %33 = vector.load %arg6[%c0_14, %c0_15] : memref<32x64xf32, #tpu.memory_space<vmem>>, vector<32x64xf32>
    tpu.vector_store %arg6[%c0_14, %c0_15], %32 {strides = array<i32>} : memref<32x64xf32, #tpu.memory_space<vmem>>, vector<32x64xf32>,
    return
  }
  func.func @transform_0(%arg0: i32) -> (i32, i32) {
    %c0_i32 = arith.constant 0 : i32
    %c0_i32_0 = arith.constant 0 : i32
    %c0_i32_1 = arith.constant 0 : i32
    return %c0_i32, %c0_i32_0 : i32, i32
  }
  func.func @transform_1(%arg0: i32) -> (i32, i32) {
    %c0_i32 = arith.constant 0 : i32
    %c0_i32_0 = arith.constant 0 : i32
    %c0_i32_1 = arith.constant 0 : i32
    return %c0_i32, %c0_i32_0 : i32, i32
  }
  func.func @transform_2(%arg0: i32) -> (i32, i32) {
    %c0_i32 = arith.constant 0 : i32
    %c0_i32_0 = arith.constant 0 : i32
    %c0_i32_1 = arith.constant 0 : i32
    return %c0_i32, %c0_i32_0 : i32, i32
  }
  func.func @transform_3(%arg0: i32) -> (i32, i32) {
    %c0_i32 = arith.constant 0 : i32
    %c0_i32_0 = arith.constant 0 : i32
    %c0_i32_1 = arith.constant 0 : i32
    return %c0_i32, %c0_i32_0 : i32, i32
  }
  func.func @transform_4(%arg0: i32) -> (i32, i32) {
    %c0_i32 = arith.constant 0 : i32
    %c0_i32_0 = arith.constant 0 : i32
    %c0_i32_1 = arith.constant 0 : i32
    return %c0_i32, %c0_i32_0 : i32, i32
  }
  func.func @transform_5(%arg0: i32) -> (i32, i32) {
    %c0_i32 = arith.constant 0 : i32
    %c0_i32_0 = arith.constant 0 : i32
    %c0_i32_1 = arith.constant 0 : i32
    return %c0_i32, %c0_i32_0 : i32, i32
  }
}

module attributes {stable_mosaic.version = 11 : i64} {
  func.func @_block_dense_kernel(%arg0: i32, %arg1: memref<1x24x64xf32, #tpu.memory_space<vmem>>, %arg2: memref<24x8xf32, #tpu.memory_space<vmem>>, %arg3: memref<24x8xf32, #tpu.memory_space<vmem>>, %arg4: memref<1x64xf32, #tpu.memory_space<vmem>>, %arg5: memref<64x160xbf16, #tpu.memory_space<vmem>>, %arg6: memref<1x16xf32, #tpu.memory_space<vmem>>, %arg7: memref<16x128xbf16, #tpu.memory_space<vmem>>, %arg8: memref<64x64xbf16, #tpu.memory_space<vmem>>, %arg9: memref<1x64xf32, #tpu.memory_space<vmem>>, %arg10: memref<64x256xbf16, #tpu.memory_space<vmem>>, %arg11: memref<128x64xbf16, #tpu.memory_space<vmem>>, %arg12: memref<1x24x64xf32, #tpu.memory_space<vmem>>) attributes {dimension_semantics = [#tpu.dimension_semantics<parallel>], iteration_bounds = array<i64: 2>, scalar_prefetch = 0 : i64, scratch_operands = 0 : i64, tpu.core_type = #tpu.core_type<tc>, window_params = [{transform_indices = @transform_0, window_bounds = array<i64: 1, 24, 64>}, {pipeline_mode = #tpu.pipeline_mode<synchronous>, transform_indices = @transform_1, window_bounds = array<i64: 24, 8>}, {pipeline_mode = #tpu.pipeline_mode<synchronous>, transform_indices = @transform_2, window_bounds = array<i64: 24, 8>}, {pipeline_mode = #tpu.pipeline_mode<synchronous>, transform_indices = @transform_3, window_bounds = array<i64: 1, 64>}, {pipeline_mode = #tpu.pipeline_mode<synchronous>, transform_indices = @transform_4, window_bounds = array<i64: 64, 160>}, {pipeline_mode = #tpu.pipeline_mode<synchronous>, transform_indices = @transform_5, window_bounds = array<i64: 1, 16>}, {pipeline_mode = #tpu.pipeline_mode<synchronous>, transform_indices = @transform_6, window_bounds = array<i64: 16, 128>}, {pipeline_mode = #tpu.pipeline_mode<synchronous>, transform_indices = @transform_7, window_bounds = array<i64: 64, 64>}, {pipeline_mode = #tpu.pipeline_mode<synchronous>, transform_indices = @transform_8, window_bounds = array<i64: 1, 64>}, {pipeline_mode = #tpu.pipeline_mode<synchronous>, transform_indices = @transform_9, window_bounds = array<i64: 64, 256>}, {pipeline_mode = #tpu.pipeline_mode<synchronous>, transform_indices = @transform_10, window_bounds = array<i64: 128, 64>}, {transform_indices = @transform_11, window_bounds = array<i64: 1, 24, 64>}]} {
    %c0 = arith.constant 0 : index
    %c0_0 = arith.constant 0 : index
    %c0_1 = arith.constant 0 : index
    %0 = vector.load %arg1[%c0, %c0_0, %c0_1] : memref<1x24x64xf32, #tpu.memory_space<vmem>>, vector<1x24x64xf32>
    %1 = vector.shape_cast %0 : vector<1x24x64xf32> to vector<24x64xf32>
    %c0_2 = arith.constant 0 : index
    %c0_3 = arith.constant 0 : index
    %2 = vector.load %arg2[%c0_2, %c0_3] : memref<24x8xf32, #tpu.memory_space<vmem>>, vector<24x8xf32>
    %c0_4 = arith.constant 0 : index
    %c0_5 = arith.constant 0 : index
    %3 = vector.load %arg3[%c0_4, %c0_5] : memref<24x8xf32, #tpu.memory_space<vmem>>, vector<24x8xf32>
    %c0_6 = arith.constant 0 : index
    %c0_7 = arith.constant 0 : index
    %4 = vector.load %arg4[%c0_6, %c0_7] : memref<1x64xf32, #tpu.memory_space<vmem>>, vector<1x64xf32>
    %c0_8 = arith.constant 0 : index
    %c0_9 = arith.constant 0 : index
    %5 = vector.load %arg5[%c0_8, %c0_9] : memref<64x160xbf16, #tpu.memory_space<vmem>>, vector<64x160xbf16>
    %c0_10 = arith.constant 0 : index
    %c0_11 = arith.constant 0 : index
    %6 = vector.load %arg6[%c0_10, %c0_11] : memref<1x16xf32, #tpu.memory_space<vmem>>, vector<1x16xf32>
    %c0_12 = arith.constant 0 : index
    %c0_13 = arith.constant 0 : index
    %7 = vector.load %arg7[%c0_12, %c0_13] : memref<16x128xbf16, #tpu.memory_space<vmem>>, vector<16x128xbf16>
    %c0_14 = arith.constant 0 : index
    %c0_15 = arith.constant 0 : index
    %8 = vector.load %arg8[%c0_14, %c0_15] : memref<64x64xbf16, #tpu.memory_space<vmem>>, vector<64x64xbf16>
    %9 = arith.mulf %1, %1 : vector<24x64xf32>
    %cst = arith.constant dense<0.000000e+00> : vector<24xf32>
    %10 = vector.multi_reduction <add>, %9, %cst [1] : vector<24x64xf32> to vector<24xf32>
    %11 = vector.shape_cast %10 : vector<24xf32> to vector<24x1xf32>
    %cst_16 = arith.constant 6.400000e+01 : f32
    %12 = vector.broadcast %cst_16 : f32 to vector<24x1xf32>
    %13 = arith.divf %11, %12 : vector<24x1xf32>
    %cst_17 = arith.constant 9.99999997E-7 : f32
    %14 = vector.broadcast %cst_17 : f32 to vector<24x1xf32>
    %15 = arith.addf %13, %14 : vector<24x1xf32>
    %16 = math.rsqrt %15 : vector<24x1xf32>
    %17 = vector.broadcast %16 : vector<24x1xf32> to vector<24x64xf32>
    %18 = arith.mulf %1, %17 : vector<24x64xf32>
    %19 = vector.broadcast %4 : vector<1x64xf32> to vector<24x64xf32>
    %20 = arith.mulf %18, %19 : vector<24x64xf32>
    %21 = arith.truncf %20 : vector<24x64xf32> to vector<24x64xbf16>
    %cst_18 = arith.constant dense<0.000000e+00> : vector<24x160xf32>
    %22 = tpu.matmul %21, %5, %cst_18 {dimension_numbers = #tpu.dot_dimension_numbers<[1], [0], [0], [1], [0, 0, 1, 1], [], []>} : vector<24x64xbf16>, vector<64x160xbf16>, vector<24x160xf32> -> vector<24x160xf32>
    %23 = vector.extract_strided_slice %22 {offsets = [0, 128], sizes = [24, 16], strides = [1, 1]} : vector<24x160xf32> to vector<24x16xf32>
    %24 = vector.extract_strided_slice %22 {offsets = [0, 144], sizes = [24, 16], strides = [1, 1]} : vector<24x160xf32> to vector<24x16xf32>
    %25 = vector.extract_strided_slice %24 {offsets = [0, 0], sizes = [24, 8], strides = [1, 1]} : vector<24x16xf32> to vector<24x8xf32>
    %26 = vector.extract_strided_slice %24 {offsets = [0, 8], sizes = [24, 8], strides = [1, 1]} : vector<24x16xf32> to vector<24x8xf32>
    %27 = arith.mulf %25, %2 : vector<24x8xf32>
    %28 = arith.mulf %26, %3 : vector<24x8xf32>
    %29 = arith.subf %27, %28 : vector<24x8xf32>
    %30 = arith.mulf %25, %3 : vector<24x8xf32>
    %31 = arith.mulf %26, %2 : vector<24x8xf32>
    %32 = arith.addf %30, %31 : vector<24x8xf32>
    %33 = tpu.concatenate %29, %32 in 1 : vector<24x8xf32>, vector<24x8xf32> -> vector<24x16xf32>
    %34 = arith.mulf %23, %23 : vector<24x16xf32>
    %cst_19 = arith.constant dense<0.000000e+00> : vector<24xf32>
    %35 = vector.multi_reduction <add>, %34, %cst_19 [1] : vector<24x16xf32> to vector<24xf32>
    %36 = vector.shape_cast %35 : vector<24xf32> to vector<24x1xf32>
    %cst_20 = arith.constant 1.600000e+01 : f32
    %37 = vector.broadcast %cst_20 : f32 to vector<24x1xf32>
    %38 = arith.divf %36, %37 : vector<24x1xf32>
    %cst_21 = arith.constant 9.99999997E-7 : f32
    %39 = vector.broadcast %cst_21 : f32 to vector<24x1xf32>
    %40 = arith.addf %38, %39 : vector<24x1xf32>
    %41 = math.rsqrt %40 : vector<24x1xf32>
    %42 = vector.broadcast %41 : vector<24x1xf32> to vector<24x16xf32>
    %43 = arith.mulf %23, %42 : vector<24x16xf32>
    %44 = vector.broadcast %6 : vector<1x16xf32> to vector<24x16xf32>
    %45 = arith.mulf %43, %44 : vector<24x16xf32>
    %46 = arith.truncf %45 : vector<24x16xf32> to vector<24x16xbf16>
    %cst_22 = arith.constant dense<0.000000e+00> : vector<24x128xf32>
    %47 = tpu.matmul %46, %7, %cst_22 {dimension_numbers = #tpu.dot_dimension_numbers<[1], [0], [0], [1], [0, 0, 1, 1], [], []>} : vector<24x16xbf16>, vector<16x128xbf16>, vector<24x128xf32> -> vector<24x128xf32>
    %48 = tpu.iota {dimensions = array<i32: 0>} : vector<24x24xi32>
    %49 = tpu.iota {dimensions = array<i32: 1>} : vector<24x24xi32>
    %50 = arith.cmpi sle, %49, %48 : vector<24x24xi32>
    %cst_23 = arith.constant 0.000000e+00 : f32
    %cst_24 = arith.constant -1.000000e+30 : f32
    %51 = vector.broadcast %cst_23 : f32 to vector<24x24xf32>
    %52 = vector.broadcast %cst_24 : f32 to vector<24x24xf32>
    %53 = arith.select %50, %51, %52 : vector<24x24xi1>, vector<24x24xf32>
    %54 = vector.extract_strided_slice %22 {offsets = [0, 0], sizes = [24, 32], strides = [1, 1]} : vector<24x160xf32> to vector<24x32xf32>
    %55 = vector.extract_strided_slice %54 {offsets = [0, 0], sizes = [24, 16], strides = [1, 1]} : vector<24x32xf32> to vector<24x16xf32>
    %56 = vector.extract_strided_slice %54 {offsets = [0, 16], sizes = [24, 16], strides = [1, 1]} : vector<24x32xf32> to vector<24x16xf32>
    %57 = vector.extract_strided_slice %56 {offsets = [0, 0], sizes = [24, 8], strides = [1, 1]} : vector<24x16xf32> to vector<24x8xf32>
    %58 = vector.extract_strided_slice %56 {offsets = [0, 8], sizes = [24, 8], strides = [1, 1]} : vector<24x16xf32> to vector<24x8xf32>
    %59 = arith.mulf %57, %2 : vector<24x8xf32>
    %60 = arith.mulf %58, %3 : vector<24x8xf32>
    %61 = arith.subf %59, %60 : vector<24x8xf32>
    %62 = arith.mulf %57, %3 : vector<24x8xf32>
    %63 = arith.mulf %58, %2 : vector<24x8xf32>
    %64 = arith.addf %62, %63 : vector<24x8xf32>
    %65 = tpu.concatenate %61, %64 in 1 : vector<24x8xf32>, vector<24x8xf32> -> vector<24x16xf32>
    %66 = tpu.concatenate %55, %65 in 1 : vector<24x16xf32>, vector<24x16xf32> -> vector<24x32xf32>
    %67 = arith.truncf %66 : vector<24x32xf32> to vector<24x32xbf16>
    %68 = vector.extract_strided_slice %47 {offsets = [0, 0], sizes = [24, 16], strides = [1, 1]} : vector<24x128xf32> to vector<24x16xf32>
    %69 = vector.extract_strided_slice %47 {offsets = [0, 16], sizes = [24, 16], strides = [1, 1]} : vector<24x128xf32> to vector<24x16xf32>
    %70 = tpu.concatenate %68, %33 in 1 : vector<24x16xf32>, vector<24x16xf32> -> vector<24x32xf32>
    %71 = arith.truncf %70 : vector<24x32xf32> to vector<24x32xbf16>
    %cst_25 = arith.constant dense<0.000000e+00> : vector<24x24xf32>
    %72 = tpu.matmul %67, %71, %cst_25 {dimension_numbers = #tpu.dot_dimension_numbers<[1], [1], [0], [0], [0, 0, 1, 0], [], []>} : vector<24x32xbf16>, vector<24x32xbf16>, vector<24x24xf32> -> vector<24x24xf32>
    %cst_26 = arith.constant 0.331253767 : f32
    %73 = vector.broadcast %cst_26 : f32 to vector<24x24xf32>
    %74 = arith.mulf %72, %73 : vector<24x24xf32>
    %75 = arith.addf %74, %53 : vector<24x24xf32>
    %cst_27 = arith.constant dense<0xFF800000> : vector<24xf32>
    %76 = vector.multi_reduction <maximumf>, %75, %cst_27 [1] : vector<24x24xf32> to vector<24xf32>
    %77 = vector.shape_cast %76 : vector<24xf32> to vector<24x1xf32>
    %78 = vector.broadcast %77 : vector<24x1xf32> to vector<24x24xf32>
    %79 = arith.subf %75, %78 : vector<24x24xf32>
    %80 = math.exp %79 : vector<24x24xf32>
    %cst_28 = arith.constant dense<0.000000e+00> : vector<24xf32>
    %81 = vector.multi_reduction <add>, %80, %cst_28 [1] : vector<24x24xf32> to vector<24xf32>
    %82 = vector.shape_cast %81 : vector<24xf32> to vector<24x1xf32>
    %83 = tpu.reciprocal %82 {approx = true} : vector<24x1xf32> -> vector<24x1xf32>
    %84 = vector.broadcast %83 : vector<24x1xf32> to vector<24x24xf32>
    %85 = arith.mulf %80, %84 : vector<24x24xf32>
    %86 = arith.truncf %85 : vector<24x24xf32> to vector<24x24xbf16>
    %87 = arith.truncf %69 : vector<24x16xf32> to vector<24x16xbf16>
    %cst_29 = arith.constant dense<0.000000e+00> : vector<24x16xf32>
    %88 = tpu.matmul %86, %87, %cst_29 {dimension_numbers = #tpu.dot_dimension_numbers<[1], [0], [0], [1], [0, 0, 1, 1], [], []>} : vector<24x24xbf16>, vector<24x16xbf16>, vector<24x16xf32> -> vector<24x16xf32>
    %89 = vector.extract_strided_slice %22 {offsets = [0, 32], sizes = [24, 32], strides = [1, 1]} : vector<24x160xf32> to vector<24x32xf32>
    %90 = vector.extract_strided_slice %89 {offsets = [0, 0], sizes = [24, 16], strides = [1, 1]} : vector<24x32xf32> to vector<24x16xf32>
    %91 = vector.extract_strided_slice %89 {offsets = [0, 16], sizes = [24, 16], strides = [1, 1]} : vector<24x32xf32> to vector<24x16xf32>
    %92 = vector.extract_strided_slice %91 {offsets = [0, 0], sizes = [24, 8], strides = [1, 1]} : vector<24x16xf32> to vector<24x8xf32>
    %93 = vector.extract_strided_slice %91 {offsets = [0, 8], sizes = [24, 8], strides = [1, 1]} : vector<24x16xf32> to vector<24x8xf32>
    %94 = arith.mulf %92, %2 : vector<24x8xf32>
    %95 = arith.mulf %93, %3 : vector<24x8xf32>
    %96 = arith.subf %94, %95 : vector<24x8xf32>
    %97 = arith.mulf %92, %3 : vector<24x8xf32>
    %98 = arith.mulf %93, %2 : vector<24x8xf32>
    %99 = arith.addf %97, %98 : vector<24x8xf32>
    %100 = tpu.concatenate %96, %99 in 1 : vector<24x8xf32>, vector<24x8xf32> -> vector<24x16xf32>
    %101 = tpu.concatenate %90, %100 in 1 : vector<24x16xf32>, vector<24x16xf32> -> vector<24x32xf32>
    %102 = arith.truncf %101 : vector<24x32xf32> to vector<24x32xbf16>
    %103 = vector.extract_strided_slice %47 {offsets = [0, 32], sizes = [24, 16], strides = [1, 1]} : vector<24x128xf32> to vector<24x16xf32>
    %104 = vector.extract_strided_slice %47 {offsets = [0, 48], sizes = [24, 16], strides = [1, 1]} : vector<24x128xf32> to vector<24x16xf32>
    %105 = tpu.concatenate %103, %33 in 1 : vector<24x16xf32>, vector<24x16xf32> -> vector<24x32xf32>
    %106 = arith.truncf %105 : vector<24x32xf32> to vector<24x32xbf16>
    %cst_30 = arith.constant dense<0.000000e+00> : vector<24x24xf32>
    %107 = tpu.matmul %102, %106, %cst_30 {dimension_numbers = #tpu.dot_dimension_numbers<[1], [1], [0], [0], [0, 0, 1, 0], [], []>} : vector<24x32xbf16>, vector<24x32xbf16>, vector<24x24xf32> -> vector<24x24xf32>
    %cst_31 = arith.constant 0.331253767 : f32
    %108 = vector.broadcast %cst_31 : f32 to vector<24x24xf32>
    %109 = arith.mulf %107, %108 : vector<24x24xf32>
    %110 = arith.addf %109, %53 : vector<24x24xf32>
    %cst_32 = arith.constant dense<0xFF800000> : vector<24xf32>
    %111 = vector.multi_reduction <maximumf>, %110, %cst_32 [1] : vector<24x24xf32> to vector<24xf32>
    %112 = vector.shape_cast %111 : vector<24xf32> to vector<24x1xf32>
    %113 = vector.broadcast %112 : vector<24x1xf32> to vector<24x24xf32>
    %114 = arith.subf %110, %113 : vector<24x24xf32>
    %115 = math.exp %114 : vector<24x24xf32>
    %cst_33 = arith.constant dense<0.000000e+00> : vector<24xf32>
    %116 = vector.multi_reduction <add>, %115, %cst_33 [1] : vector<24x24xf32> to vector<24xf32>
    %117 = vector.shape_cast %116 : vector<24xf32> to vector<24x1xf32>
    %118 = tpu.reciprocal %117 {approx = true} : vector<24x1xf32> -> vector<24x1xf32>
    %119 = vector.broadcast %118 : vector<24x1xf32> to vector<24x24xf32>
    %120 = arith.mulf %115, %119 : vector<24x24xf32>
    %121 = arith.truncf %120 : vector<24x24xf32> to vector<24x24xbf16>
    %122 = arith.truncf %104 : vector<24x16xf32> to vector<24x16xbf16>
    %cst_34 = arith.constant dense<0.000000e+00> : vector<24x16xf32>
    %123 = tpu.matmul %121, %122, %cst_34 {dimension_numbers = #tpu.dot_dimension_numbers<[1], [0], [0], [1], [0, 0, 1, 1], [], []>} : vector<24x24xbf16>, vector<24x16xbf16>, vector<24x16xf32> -> vector<24x16xf32>
    %124 = vector.extract_strided_slice %22 {offsets = [0, 64], sizes = [24, 32], strides = [1, 1]} : vector<24x160xf32> to vector<24x32xf32>
    %125 = vector.extract_strided_slice %124 {offsets = [0, 0], sizes = [24, 16], strides = [1, 1]} : vector<24x32xf32> to vector<24x16xf32>
    %126 = vector.extract_strided_slice %124 {offsets = [0, 16], sizes = [24, 16], strides = [1, 1]} : vector<24x32xf32> to vector<24x16xf32>
    %127 = vector.extract_strided_slice %126 {offsets = [0, 0], sizes = [24, 8], strides = [1, 1]} : vector<24x16xf32> to vector<24x8xf32>
    %128 = vector.extract_strided_slice %126 {offsets = [0, 8], sizes = [24, 8], strides = [1, 1]} : vector<24x16xf32> to vector<24x8xf32>
    %129 = arith.mulf %127, %2 : vector<24x8xf32>
    %130 = arith.mulf %128, %3 : vector<24x8xf32>
    %131 = arith.subf %129, %130 : vector<24x8xf32>
    %132 = arith.mulf %127, %3 : vector<24x8xf32>
    %133 = arith.mulf %128, %2 : vector<24x8xf32>
    %134 = arith.addf %132, %133 : vector<24x8xf32>
    %135 = tpu.concatenate %131, %134 in 1 : vector<24x8xf32>, vector<24x8xf32> -> vector<24x16xf32>
    %136 = tpu.concatenate %125, %135 in 1 : vector<24x16xf32>, vector<24x16xf32> -> vector<24x32xf32>
    %137 = arith.truncf %136 : vector<24x32xf32> to vector<24x32xbf16>
    %138 = vector.extract_strided_slice %47 {offsets = [0, 64], sizes = [24, 16], strides = [1, 1]} : vector<24x128xf32> to vector<24x16xf32>
    %139 = vector.extract_strided_slice %47 {offsets = [0, 80], sizes = [24, 16], strides = [1, 1]} : vector<24x128xf32> to vector<24x16xf32>
    %140 = tpu.concatenate %138, %33 in 1 : vector<24x16xf32>, vector<24x16xf32> -> vector<24x32xf32>
    %141 = arith.truncf %140 : vector<24x32xf32> to vector<24x32xbf16>
    %cst_35 = arith.constant dense<0.000000e+00> : vector<24x24xf32>
    %142 = tpu.matmul %137, %141, %cst_35 {dimension_numbers = #tpu.dot_dimension_numbers<[1], [1], [0], [0], [0, 0, 1, 0], [], []>} : vector<24x32xbf16>, vector<24x32xbf16>, vector<24x24xf32> -> vector<24x24xf32>
    %cst_36 = arith.constant 0.331253767 : f32
    %143 = vector.broadcast %cst_36 : f32 to vector<24x24xf32>
    %144 = arith.mulf %142, %143 : vector<24x24xf32>
    %145 = arith.addf %144, %53 : vector<24x24xf32>
    %cst_37 = arith.constant dense<0xFF800000> : vector<24xf32>
    %146 = vector.multi_reduction <maximumf>, %145, %cst_37 [1] : vector<24x24xf32> to vector<24xf32>
    %147 = vector.shape_cast %146 : vector<24xf32> to vector<24x1xf32>
    %148 = vector.broadcast %147 : vector<24x1xf32> to vector<24x24xf32>
    %149 = arith.subf %145, %148 : vector<24x24xf32>
    %150 = math.exp %149 : vector<24x24xf32>
    %cst_38 = arith.constant dense<0.000000e+00> : vector<24xf32>
    %151 = vector.multi_reduction <add>, %150, %cst_38 [1] : vector<24x24xf32> to vector<24xf32>
    %152 = vector.shape_cast %151 : vector<24xf32> to vector<24x1xf32>
    %153 = tpu.reciprocal %152 {approx = true} : vector<24x1xf32> -> vector<24x1xf32>
    %154 = vector.broadcast %153 : vector<24x1xf32> to vector<24x24xf32>
    %155 = arith.mulf %150, %154 : vector<24x24xf32>
    %156 = arith.truncf %155 : vector<24x24xf32> to vector<24x24xbf16>
    %157 = arith.truncf %139 : vector<24x16xf32> to vector<24x16xbf16>
    %cst_39 = arith.constant dense<0.000000e+00> : vector<24x16xf32>
    %158 = tpu.matmul %156, %157, %cst_39 {dimension_numbers = #tpu.dot_dimension_numbers<[1], [0], [0], [1], [0, 0, 1, 1], [], []>} : vector<24x24xbf16>, vector<24x16xbf16>, vector<24x16xf32> -> vector<24x16xf32>
    %159 = vector.extract_strided_slice %22 {offsets = [0, 96], sizes = [24, 32], strides = [1, 1]} : vector<24x160xf32> to vector<24x32xf32>
    %160 = vector.extract_strided_slice %159 {offsets = [0, 0], sizes = [24, 16], strides = [1, 1]} : vector<24x32xf32> to vector<24x16xf32>
    %161 = vector.extract_strided_slice %159 {offsets = [0, 16], sizes = [24, 16], strides = [1, 1]} : vector<24x32xf32> to vector<24x16xf32>
    %162 = vector.extract_strided_slice %161 {offsets = [0, 0], sizes = [24, 8], strides = [1, 1]} : vector<24x16xf32> to vector<24x8xf32>
    %163 = vector.extract_strided_slice %161 {offsets = [0, 8], sizes = [24, 8], strides = [1, 1]} : vector<24x16xf32> to vector<24x8xf32>
    %164 = arith.mulf %162, %2 : vector<24x8xf32>
    %165 = arith.mulf %163, %3 : vector<24x8xf32>
    %166 = arith.subf %164, %165 : vector<24x8xf32>
    %167 = arith.mulf %162, %3 : vector<24x8xf32>
    %168 = arith.mulf %163, %2 : vector<24x8xf32>
    %169 = arith.addf %167, %168 : vector<24x8xf32>
    %170 = tpu.concatenate %166, %169 in 1 : vector<24x8xf32>, vector<24x8xf32> -> vector<24x16xf32>
    %171 = tpu.concatenate %160, %170 in 1 : vector<24x16xf32>, vector<24x16xf32> -> vector<24x32xf32>
    %172 = arith.truncf %171 : vector<24x32xf32> to vector<24x32xbf16>
    %173 = vector.extract_strided_slice %47 {offsets = [0, 96], sizes = [24, 16], strides = [1, 1]} : vector<24x128xf32> to vector<24x16xf32>
    %174 = vector.extract_strided_slice %47 {offsets = [0, 112], sizes = [24, 16], strides = [1, 1]} : vector<24x128xf32> to vector<24x16xf32>
    %175 = tpu.concatenate %173, %33 in 1 : vector<24x16xf32>, vector<24x16xf32> -> vector<24x32xf32>
    %176 = arith.truncf %175 : vector<24x32xf32> to vector<24x32xbf16>
    %cst_40 = arith.constant dense<0.000000e+00> : vector<24x24xf32>
    %177 = tpu.matmul %172, %176, %cst_40 {dimension_numbers = #tpu.dot_dimension_numbers<[1], [1], [0], [0], [0, 0, 1, 0], [], []>} : vector<24x32xbf16>, vector<24x32xbf16>, vector<24x24xf32> -> vector<24x24xf32>
    %cst_41 = arith.constant 0.331253767 : f32
    %178 = vector.broadcast %cst_41 : f32 to vector<24x24xf32>
    %179 = arith.mulf %177, %178 : vector<24x24xf32>
    %180 = arith.addf %179, %53 : vector<24x24xf32>
    %cst_42 = arith.constant dense<0xFF800000> : vector<24xf32>
    %181 = vector.multi_reduction <maximumf>, %180, %cst_42 [1] : vector<24x24xf32> to vector<24xf32>
    %182 = vector.shape_cast %181 : vector<24xf32> to vector<24x1xf32>
    %183 = vector.broadcast %182 : vector<24x1xf32> to vector<24x24xf32>
    %184 = arith.subf %180, %183 : vector<24x24xf32>
    %185 = math.exp %184 : vector<24x24xf32>
    %cst_43 = arith.constant dense<0.000000e+00> : vector<24xf32>
    %186 = vector.multi_reduction <add>, %185, %cst_43 [1] : vector<24x24xf32> to vector<24xf32>
    %187 = vector.shape_cast %186 : vector<24xf32> to vector<24x1xf32>
    %188 = tpu.reciprocal %187 {approx = true} : vector<24x1xf32> -> vector<24x1xf32>
    %189 = vector.broadcast %188 : vector<24x1xf32> to vector<24x24xf32>
    %190 = arith.mulf %185, %189 : vector<24x24xf32>
    %191 = arith.truncf %190 : vector<24x24xf32> to vector<24x24xbf16>
    %192 = arith.truncf %174 : vector<24x16xf32> to vector<24x16xbf16>
    %cst_44 = arith.constant dense<0.000000e+00> : vector<24x16xf32>
    %193 = tpu.matmul %191, %192, %cst_44 {dimension_numbers = #tpu.dot_dimension_numbers<[1], [0], [0], [1], [0, 0, 1, 1], [], []>} : vector<24x24xbf16>, vector<24x16xbf16>, vector<24x16xf32> -> vector<24x16xf32>
    %194 = tpu.concatenate %88, %123, %158, %193 in 1 : vector<24x16xf32>, vector<24x16xf32>, vector<24x16xf32>, vector<24x16xf32> -> vector<24x64xf32>
    %195 = arith.truncf %194 : vector<24x64xf32> to vector<24x64xbf16>
    %cst_45 = arith.constant dense<0.000000e+00> : vector<24x64xf32>
    %196 = tpu.matmul %195, %8, %cst_45 {dimension_numbers = #tpu.dot_dimension_numbers<[1], [0], [0], [1], [0, 0, 1, 1], [], []>} : vector<24x64xbf16>, vector<64x64xbf16>, vector<24x64xf32> -> vector<24x64xf32>
    %197 = arith.addf %1, %196 : vector<24x64xf32>
    %c0_46 = arith.constant 0 : index
    %c0_47 = arith.constant 0 : index
    %198 = vector.load %arg9[%c0_46, %c0_47] : memref<1x64xf32, #tpu.memory_space<vmem>>, vector<1x64xf32>
    %199 = arith.mulf %197, %197 : vector<24x64xf32>
    %cst_48 = arith.constant dense<0.000000e+00> : vector<24xf32>
    %200 = vector.multi_reduction <add>, %199, %cst_48 [1] : vector<24x64xf32> to vector<24xf32>
    %201 = vector.shape_cast %200 : vector<24xf32> to vector<24x1xf32>
    %cst_49 = arith.constant 6.400000e+01 : f32
    %202 = vector.broadcast %cst_49 : f32 to vector<24x1xf32>
    %203 = arith.divf %201, %202 : vector<24x1xf32>
    %cst_50 = arith.constant 9.99999997E-7 : f32
    %204 = vector.broadcast %cst_50 : f32 to vector<24x1xf32>
    %205 = arith.addf %203, %204 : vector<24x1xf32>
    %206 = math.rsqrt %205 : vector<24x1xf32>
    %207 = vector.broadcast %206 : vector<24x1xf32> to vector<24x64xf32>
    %208 = arith.mulf %197, %207 : vector<24x64xf32>
    %209 = vector.broadcast %198 : vector<1x64xf32> to vector<24x64xf32>
    %210 = arith.mulf %208, %209 : vector<24x64xf32>
    %211 = arith.truncf %210 : vector<24x64xf32> to vector<24x64xbf16>
    %c0_51 = arith.constant 0 : index
    %c0_52 = arith.constant 0 : index
    %212 = vector.load %arg10[%c0_51, %c0_52] : memref<64x256xbf16, #tpu.memory_space<vmem>>, vector<64x256xbf16>
    %cst_53 = arith.constant dense<0.000000e+00> : vector<24x256xf32>
    %213 = tpu.matmul %211, %212, %cst_53 {dimension_numbers = #tpu.dot_dimension_numbers<[1], [0], [0], [1], [0, 0, 1, 1], [], []>} : vector<24x64xbf16>, vector<64x256xbf16>, vector<24x256xf32> -> vector<24x256xf32>
    %214 = vector.extract_strided_slice %213 {offsets = [0, 0], sizes = [24, 128], strides = [1, 1]} : vector<24x256xf32> to vector<24x128xf32>
    %215 = arith.negf %214 : vector<24x128xf32>
    %216 = math.exp %215 : vector<24x128xf32>
    %cst_54 = arith.constant 1.000000e+00 : f32
    %217 = vector.broadcast %cst_54 : f32 to vector<24x128xf32>
    %218 = arith.addf %217, %216 : vector<24x128xf32>
    %219 = arith.divf %217, %218 : vector<24x128xf32>
    %220 = arith.mulf %214, %219 : vector<24x128xf32>
    %221 = vector.extract_strided_slice %213 {offsets = [0, 128], sizes = [24, 128], strides = [1, 1]} : vector<24x256xf32> to vector<24x128xf32>
    %222 = arith.mulf %220, %221 : vector<24x128xf32>
    %223 = arith.truncf %222 : vector<24x128xf32> to vector<24x128xbf16>
    %c0_55 = arith.constant 0 : index
    %c0_56 = arith.constant 0 : index
    %224 = vector.load %arg11[%c0_55, %c0_56] : memref<128x64xbf16, #tpu.memory_space<vmem>>, vector<128x64xbf16>
    %cst_57 = arith.constant dense<0.000000e+00> : vector<24x64xf32>
    %225 = tpu.matmul %223, %224, %cst_57 {dimension_numbers = #tpu.dot_dimension_numbers<[1], [0], [0], [1], [0, 0, 1, 1], [], []>} : vector<24x128xbf16>, vector<128x64xbf16>, vector<24x64xf32> -> vector<24x64xf32>
    %226 = arith.addf %197, %225 : vector<24x64xf32>
    %c0_58 = arith.constant 0 : index
    %c0_59 = arith.constant 0 : index
    %c0_60 = arith.constant 0 : index
    %227 = vector.load %arg12[%c0_58, %c0_59, %c0_60] : memref<1x24x64xf32, #tpu.memory_space<vmem>>, vector<1x24x64xf32>
    %228 = vector.shape_cast %227 : vector<1x24x64xf32> to vector<24x64xf32>
    %229 = vector.shape_cast %226 : vector<24x64xf32> to vector<1x24x64xf32>
    tpu.vector_store %arg12[%c0_58, %c0_59, %c0_60], %229 {strides = array<i32>} : memref<1x24x64xf32, #tpu.memory_space<vmem>>, vector<1x24x64xf32>,
    return
  }
  func.func @transform_0(%arg0: i32) -> (i32, i32, i32) {
    %c0_i32 = arith.constant 0 : i32
    %c0_i32_0 = arith.constant 0 : i32
    %c0_i32_1 = arith.constant 0 : i32
    return %arg0, %c0_i32, %c0_i32_0 : i32, i32, i32
  }
  func.func @transform_1(%arg0: i32) -> (i32, i32) {
    %c0_i32 = arith.constant 0 : i32
    %c0_i32_0 = arith.constant 0 : i32
    %c0_i32_1 = arith.constant 0 : i32
    return %c0_i32, %c0_i32_0 : i32, i32
  }
  func.func @transform_2(%arg0: i32) -> (i32, i32) {
    %c0_i32 = arith.constant 0 : i32
    %c0_i32_0 = arith.constant 0 : i32
    %c0_i32_1 = arith.constant 0 : i32
    return %c0_i32, %c0_i32_0 : i32, i32
  }
  func.func @transform_3(%arg0: i32) -> (i32, i32) {
    %c0_i32 = arith.constant 0 : i32
    %c0_i32_0 = arith.constant 0 : i32
    %c0_i32_1 = arith.constant 0 : i32
    return %c0_i32, %c0_i32_0 : i32, i32
  }
  func.func @transform_4(%arg0: i32) -> (i32, i32) {
    %c0_i32 = arith.constant 0 : i32
    %c0_i32_0 = arith.constant 0 : i32
    %c0_i32_1 = arith.constant 0 : i32
    return %c0_i32, %c0_i32_0 : i32, i32
  }
  func.func @transform_5(%arg0: i32) -> (i32, i32) {
    %c0_i32 = arith.constant 0 : i32
    %c0_i32_0 = arith.constant 0 : i32
    %c0_i32_1 = arith.constant 0 : i32
    return %c0_i32, %c0_i32_0 : i32, i32
  }
  func.func @transform_6(%arg0: i32) -> (i32, i32) {
    %c0_i32 = arith.constant 0 : i32
    %c0_i32_0 = arith.constant 0 : i32
    %c0_i32_1 = arith.constant 0 : i32
    return %c0_i32, %c0_i32_0 : i32, i32
  }
  func.func @transform_7(%arg0: i32) -> (i32, i32) {
    %c0_i32 = arith.constant 0 : i32
    %c0_i32_0 = arith.constant 0 : i32
    %c0_i32_1 = arith.constant 0 : i32
    return %c0_i32, %c0_i32_0 : i32, i32
  }
  func.func @transform_8(%arg0: i32) -> (i32, i32) {
    %c0_i32 = arith.constant 0 : i32
    %c0_i32_0 = arith.constant 0 : i32
    %c0_i32_1 = arith.constant 0 : i32
    return %c0_i32, %c0_i32_0 : i32, i32
  }
  func.func @transform_9(%arg0: i32) -> (i32, i32) {
    %c0_i32 = arith.constant 0 : i32
    %c0_i32_0 = arith.constant 0 : i32
    %c0_i32_1 = arith.constant 0 : i32
    return %c0_i32, %c0_i32_0 : i32, i32
  }
  func.func @transform_10(%arg0: i32) -> (i32, i32) {
    %c0_i32 = arith.constant 0 : i32
    %c0_i32_0 = arith.constant 0 : i32
    %c0_i32_1 = arith.constant 0 : i32
    return %c0_i32, %c0_i32_0 : i32, i32
  }
  func.func @transform_11(%arg0: i32) -> (i32, i32, i32) {
    %c0_i32 = arith.constant 0 : i32
    %c0_i32_0 = arith.constant 0 : i32
    %c0_i32_1 = arith.constant 0 : i32
    return %arg0, %c0_i32, %c0_i32_0 : i32, i32, i32
  }
}

module attributes {stable_mosaic.version = 11 : i64} {
  func.func @_block_moe_kernel(%arg0: i32, %arg1: memref<1x24x64xf32, #tpu.memory_space<vmem>>, %arg2: memref<24x8xf32, #tpu.memory_space<vmem>>, %arg3: memref<24x8xf32, #tpu.memory_space<vmem>>, %arg4: memref<1x64xf32, #tpu.memory_space<vmem>>, %arg5: memref<64x160xbf16, #tpu.memory_space<vmem>>, %arg6: memref<1x16xf32, #tpu.memory_space<vmem>>, %arg7: memref<16x128xbf16, #tpu.memory_space<vmem>>, %arg8: memref<64x64xbf16, #tpu.memory_space<vmem>>, %arg9: memref<1x64xf32, #tpu.memory_space<vmem>>, %arg10: memref<64x4xbf16, #tpu.memory_space<vmem>>, %arg11: memref<64x1280xbf16, #tpu.memory_space<vmem>>, %arg12: memref<640x64xbf16, #tpu.memory_space<vmem>>, %arg13: memref<1x24x64xf32, #tpu.memory_space<vmem>>) attributes {dimension_semantics = [#tpu.dimension_semantics<parallel>], iteration_bounds = array<i64: 2>, scalar_prefetch = 0 : i64, scratch_operands = 0 : i64, tpu.core_type = #tpu.core_type<tc>, window_params = [{transform_indices = @transform_0, window_bounds = array<i64: 1, 24, 64>}, {pipeline_mode = #tpu.pipeline_mode<synchronous>, transform_indices = @transform_1, window_bounds = array<i64: 24, 8>}, {pipeline_mode = #tpu.pipeline_mode<synchronous>, transform_indices = @transform_2, window_bounds = array<i64: 24, 8>}, {pipeline_mode = #tpu.pipeline_mode<synchronous>, transform_indices = @transform_3, window_bounds = array<i64: 1, 64>}, {pipeline_mode = #tpu.pipeline_mode<synchronous>, transform_indices = @transform_4, window_bounds = array<i64: 64, 160>}, {pipeline_mode = #tpu.pipeline_mode<synchronous>, transform_indices = @transform_5, window_bounds = array<i64: 1, 16>}, {pipeline_mode = #tpu.pipeline_mode<synchronous>, transform_indices = @transform_6, window_bounds = array<i64: 16, 128>}, {pipeline_mode = #tpu.pipeline_mode<synchronous>, transform_indices = @transform_7, window_bounds = array<i64: 64, 64>}, {pipeline_mode = #tpu.pipeline_mode<synchronous>, transform_indices = @transform_8, window_bounds = array<i64: 1, 64>}, {pipeline_mode = #tpu.pipeline_mode<synchronous>, transform_indices = @transform_9, window_bounds = array<i64: 64, 4>}, {pipeline_mode = #tpu.pipeline_mode<synchronous>, transform_indices = @transform_10, window_bounds = array<i64: 64, 1280>}, {pipeline_mode = #tpu.pipeline_mode<synchronous>, transform_indices = @transform_11, window_bounds = array<i64: 640, 64>}, {transform_indices = @transform_12, window_bounds = array<i64: 1, 24, 64>}]} {
    %c0 = arith.constant 0 : index
    %c0_0 = arith.constant 0 : index
    %c0_1 = arith.constant 0 : index
    %0 = vector.load %arg1[%c0, %c0_0, %c0_1] : memref<1x24x64xf32, #tpu.memory_space<vmem>>, vector<1x24x64xf32>
    %1 = vector.shape_cast %0 : vector<1x24x64xf32> to vector<24x64xf32>
    %c0_2 = arith.constant 0 : index
    %c0_3 = arith.constant 0 : index
    %2 = vector.load %arg2[%c0_2, %c0_3] : memref<24x8xf32, #tpu.memory_space<vmem>>, vector<24x8xf32>
    %c0_4 = arith.constant 0 : index
    %c0_5 = arith.constant 0 : index
    %3 = vector.load %arg3[%c0_4, %c0_5] : memref<24x8xf32, #tpu.memory_space<vmem>>, vector<24x8xf32>
    %c0_6 = arith.constant 0 : index
    %c0_7 = arith.constant 0 : index
    %4 = vector.load %arg4[%c0_6, %c0_7] : memref<1x64xf32, #tpu.memory_space<vmem>>, vector<1x64xf32>
    %c0_8 = arith.constant 0 : index
    %c0_9 = arith.constant 0 : index
    %5 = vector.load %arg5[%c0_8, %c0_9] : memref<64x160xbf16, #tpu.memory_space<vmem>>, vector<64x160xbf16>
    %c0_10 = arith.constant 0 : index
    %c0_11 = arith.constant 0 : index
    %6 = vector.load %arg6[%c0_10, %c0_11] : memref<1x16xf32, #tpu.memory_space<vmem>>, vector<1x16xf32>
    %c0_12 = arith.constant 0 : index
    %c0_13 = arith.constant 0 : index
    %7 = vector.load %arg7[%c0_12, %c0_13] : memref<16x128xbf16, #tpu.memory_space<vmem>>, vector<16x128xbf16>
    %c0_14 = arith.constant 0 : index
    %c0_15 = arith.constant 0 : index
    %8 = vector.load %arg8[%c0_14, %c0_15] : memref<64x64xbf16, #tpu.memory_space<vmem>>, vector<64x64xbf16>
    %9 = arith.mulf %1, %1 : vector<24x64xf32>
    %cst = arith.constant dense<0.000000e+00> : vector<24xf32>
    %10 = vector.multi_reduction <add>, %9, %cst [1] : vector<24x64xf32> to vector<24xf32>
    %11 = vector.shape_cast %10 : vector<24xf32> to vector<24x1xf32>
    %cst_16 = arith.constant 6.400000e+01 : f32
    %12 = vector.broadcast %cst_16 : f32 to vector<24x1xf32>
    %13 = arith.divf %11, %12 : vector<24x1xf32>
    %cst_17 = arith.constant 9.99999997E-7 : f32
    %14 = vector.broadcast %cst_17 : f32 to vector<24x1xf32>
    %15 = arith.addf %13, %14 : vector<24x1xf32>
    %16 = math.rsqrt %15 : vector<24x1xf32>
    %17 = vector.broadcast %16 : vector<24x1xf32> to vector<24x64xf32>
    %18 = arith.mulf %1, %17 : vector<24x64xf32>
    %19 = vector.broadcast %4 : vector<1x64xf32> to vector<24x64xf32>
    %20 = arith.mulf %18, %19 : vector<24x64xf32>
    %21 = arith.truncf %20 : vector<24x64xf32> to vector<24x64xbf16>
    %cst_18 = arith.constant dense<0.000000e+00> : vector<24x160xf32>
    %22 = tpu.matmul %21, %5, %cst_18 {dimension_numbers = #tpu.dot_dimension_numbers<[1], [0], [0], [1], [0, 0, 1, 1], [], []>} : vector<24x64xbf16>, vector<64x160xbf16>, vector<24x160xf32> -> vector<24x160xf32>
    %23 = vector.extract_strided_slice %22 {offsets = [0, 128], sizes = [24, 16], strides = [1, 1]} : vector<24x160xf32> to vector<24x16xf32>
    %24 = vector.extract_strided_slice %22 {offsets = [0, 144], sizes = [24, 16], strides = [1, 1]} : vector<24x160xf32> to vector<24x16xf32>
    %25 = vector.extract_strided_slice %24 {offsets = [0, 0], sizes = [24, 8], strides = [1, 1]} : vector<24x16xf32> to vector<24x8xf32>
    %26 = vector.extract_strided_slice %24 {offsets = [0, 8], sizes = [24, 8], strides = [1, 1]} : vector<24x16xf32> to vector<24x8xf32>
    %27 = arith.mulf %25, %2 : vector<24x8xf32>
    %28 = arith.mulf %26, %3 : vector<24x8xf32>
    %29 = arith.subf %27, %28 : vector<24x8xf32>
    %30 = arith.mulf %25, %3 : vector<24x8xf32>
    %31 = arith.mulf %26, %2 : vector<24x8xf32>
    %32 = arith.addf %30, %31 : vector<24x8xf32>
    %33 = tpu.concatenate %29, %32 in 1 : vector<24x8xf32>, vector<24x8xf32> -> vector<24x16xf32>
    %34 = arith.mulf %23, %23 : vector<24x16xf32>
    %cst_19 = arith.constant dense<0.000000e+00> : vector<24xf32>
    %35 = vector.multi_reduction <add>, %34, %cst_19 [1] : vector<24x16xf32> to vector<24xf32>
    %36 = vector.shape_cast %35 : vector<24xf32> to vector<24x1xf32>
    %cst_20 = arith.constant 1.600000e+01 : f32
    %37 = vector.broadcast %cst_20 : f32 to vector<24x1xf32>
    %38 = arith.divf %36, %37 : vector<24x1xf32>
    %cst_21 = arith.constant 9.99999997E-7 : f32
    %39 = vector.broadcast %cst_21 : f32 to vector<24x1xf32>
    %40 = arith.addf %38, %39 : vector<24x1xf32>
    %41 = math.rsqrt %40 : vector<24x1xf32>
    %42 = vector.broadcast %41 : vector<24x1xf32> to vector<24x16xf32>
    %43 = arith.mulf %23, %42 : vector<24x16xf32>
    %44 = vector.broadcast %6 : vector<1x16xf32> to vector<24x16xf32>
    %45 = arith.mulf %43, %44 : vector<24x16xf32>
    %46 = arith.truncf %45 : vector<24x16xf32> to vector<24x16xbf16>
    %cst_22 = arith.constant dense<0.000000e+00> : vector<24x128xf32>
    %47 = tpu.matmul %46, %7, %cst_22 {dimension_numbers = #tpu.dot_dimension_numbers<[1], [0], [0], [1], [0, 0, 1, 1], [], []>} : vector<24x16xbf16>, vector<16x128xbf16>, vector<24x128xf32> -> vector<24x128xf32>
    %48 = tpu.iota {dimensions = array<i32: 0>} : vector<24x24xi32>
    %49 = tpu.iota {dimensions = array<i32: 1>} : vector<24x24xi32>
    %50 = arith.cmpi sle, %49, %48 : vector<24x24xi32>
    %cst_23 = arith.constant 0.000000e+00 : f32
    %cst_24 = arith.constant -1.000000e+30 : f32
    %51 = vector.broadcast %cst_23 : f32 to vector<24x24xf32>
    %52 = vector.broadcast %cst_24 : f32 to vector<24x24xf32>
    %53 = arith.select %50, %51, %52 : vector<24x24xi1>, vector<24x24xf32>
    %54 = vector.extract_strided_slice %22 {offsets = [0, 0], sizes = [24, 32], strides = [1, 1]} : vector<24x160xf32> to vector<24x32xf32>
    %55 = vector.extract_strided_slice %54 {offsets = [0, 0], sizes = [24, 16], strides = [1, 1]} : vector<24x32xf32> to vector<24x16xf32>
    %56 = vector.extract_strided_slice %54 {offsets = [0, 16], sizes = [24, 16], strides = [1, 1]} : vector<24x32xf32> to vector<24x16xf32>
    %57 = vector.extract_strided_slice %56 {offsets = [0, 0], sizes = [24, 8], strides = [1, 1]} : vector<24x16xf32> to vector<24x8xf32>
    %58 = vector.extract_strided_slice %56 {offsets = [0, 8], sizes = [24, 8], strides = [1, 1]} : vector<24x16xf32> to vector<24x8xf32>
    %59 = arith.mulf %57, %2 : vector<24x8xf32>
    %60 = arith.mulf %58, %3 : vector<24x8xf32>
    %61 = arith.subf %59, %60 : vector<24x8xf32>
    %62 = arith.mulf %57, %3 : vector<24x8xf32>
    %63 = arith.mulf %58, %2 : vector<24x8xf32>
    %64 = arith.addf %62, %63 : vector<24x8xf32>
    %65 = tpu.concatenate %61, %64 in 1 : vector<24x8xf32>, vector<24x8xf32> -> vector<24x16xf32>
    %66 = tpu.concatenate %55, %65 in 1 : vector<24x16xf32>, vector<24x16xf32> -> vector<24x32xf32>
    %67 = arith.truncf %66 : vector<24x32xf32> to vector<24x32xbf16>
    %68 = vector.extract_strided_slice %47 {offsets = [0, 0], sizes = [24, 16], strides = [1, 1]} : vector<24x128xf32> to vector<24x16xf32>
    %69 = vector.extract_strided_slice %47 {offsets = [0, 16], sizes = [24, 16], strides = [1, 1]} : vector<24x128xf32> to vector<24x16xf32>
    %70 = tpu.concatenate %68, %33 in 1 : vector<24x16xf32>, vector<24x16xf32> -> vector<24x32xf32>
    %71 = arith.truncf %70 : vector<24x32xf32> to vector<24x32xbf16>
    %cst_25 = arith.constant dense<0.000000e+00> : vector<24x24xf32>
    %72 = tpu.matmul %67, %71, %cst_25 {dimension_numbers = #tpu.dot_dimension_numbers<[1], [1], [0], [0], [0, 0, 1, 0], [], []>} : vector<24x32xbf16>, vector<24x32xbf16>, vector<24x24xf32> -> vector<24x24xf32>
    %cst_26 = arith.constant 0.331253767 : f32
    %73 = vector.broadcast %cst_26 : f32 to vector<24x24xf32>
    %74 = arith.mulf %72, %73 : vector<24x24xf32>
    %75 = arith.addf %74, %53 : vector<24x24xf32>
    %cst_27 = arith.constant dense<0xFF800000> : vector<24xf32>
    %76 = vector.multi_reduction <maximumf>, %75, %cst_27 [1] : vector<24x24xf32> to vector<24xf32>
    %77 = vector.shape_cast %76 : vector<24xf32> to vector<24x1xf32>
    %78 = vector.broadcast %77 : vector<24x1xf32> to vector<24x24xf32>
    %79 = arith.subf %75, %78 : vector<24x24xf32>
    %80 = math.exp %79 : vector<24x24xf32>
    %cst_28 = arith.constant dense<0.000000e+00> : vector<24xf32>
    %81 = vector.multi_reduction <add>, %80, %cst_28 [1] : vector<24x24xf32> to vector<24xf32>
    %82 = vector.shape_cast %81 : vector<24xf32> to vector<24x1xf32>
    %83 = tpu.reciprocal %82 {approx = true} : vector<24x1xf32> -> vector<24x1xf32>
    %84 = vector.broadcast %83 : vector<24x1xf32> to vector<24x24xf32>
    %85 = arith.mulf %80, %84 : vector<24x24xf32>
    %86 = arith.truncf %85 : vector<24x24xf32> to vector<24x24xbf16>
    %87 = arith.truncf %69 : vector<24x16xf32> to vector<24x16xbf16>
    %cst_29 = arith.constant dense<0.000000e+00> : vector<24x16xf32>
    %88 = tpu.matmul %86, %87, %cst_29 {dimension_numbers = #tpu.dot_dimension_numbers<[1], [0], [0], [1], [0, 0, 1, 1], [], []>} : vector<24x24xbf16>, vector<24x16xbf16>, vector<24x16xf32> -> vector<24x16xf32>
    %89 = vector.extract_strided_slice %22 {offsets = [0, 32], sizes = [24, 32], strides = [1, 1]} : vector<24x160xf32> to vector<24x32xf32>
    %90 = vector.extract_strided_slice %89 {offsets = [0, 0], sizes = [24, 16], strides = [1, 1]} : vector<24x32xf32> to vector<24x16xf32>
    %91 = vector.extract_strided_slice %89 {offsets = [0, 16], sizes = [24, 16], strides = [1, 1]} : vector<24x32xf32> to vector<24x16xf32>
    %92 = vector.extract_strided_slice %91 {offsets = [0, 0], sizes = [24, 8], strides = [1, 1]} : vector<24x16xf32> to vector<24x8xf32>
    %93 = vector.extract_strided_slice %91 {offsets = [0, 8], sizes = [24, 8], strides = [1, 1]} : vector<24x16xf32> to vector<24x8xf32>
    %94 = arith.mulf %92, %2 : vector<24x8xf32>
    %95 = arith.mulf %93, %3 : vector<24x8xf32>
    %96 = arith.subf %94, %95 : vector<24x8xf32>
    %97 = arith.mulf %92, %3 : vector<24x8xf32>
    %98 = arith.mulf %93, %2 : vector<24x8xf32>
    %99 = arith.addf %97, %98 : vector<24x8xf32>
    %100 = tpu.concatenate %96, %99 in 1 : vector<24x8xf32>, vector<24x8xf32> -> vector<24x16xf32>
    %101 = tpu.concatenate %90, %100 in 1 : vector<24x16xf32>, vector<24x16xf32> -> vector<24x32xf32>
    %102 = arith.truncf %101 : vector<24x32xf32> to vector<24x32xbf16>
    %103 = vector.extract_strided_slice %47 {offsets = [0, 32], sizes = [24, 16], strides = [1, 1]} : vector<24x128xf32> to vector<24x16xf32>
    %104 = vector.extract_strided_slice %47 {offsets = [0, 48], sizes = [24, 16], strides = [1, 1]} : vector<24x128xf32> to vector<24x16xf32>
    %105 = tpu.concatenate %103, %33 in 1 : vector<24x16xf32>, vector<24x16xf32> -> vector<24x32xf32>
    %106 = arith.truncf %105 : vector<24x32xf32> to vector<24x32xbf16>
    %cst_30 = arith.constant dense<0.000000e+00> : vector<24x24xf32>
    %107 = tpu.matmul %102, %106, %cst_30 {dimension_numbers = #tpu.dot_dimension_numbers<[1], [1], [0], [0], [0, 0, 1, 0], [], []>} : vector<24x32xbf16>, vector<24x32xbf16>, vector<24x24xf32> -> vector<24x24xf32>
    %cst_31 = arith.constant 0.331253767 : f32
    %108 = vector.broadcast %cst_31 : f32 to vector<24x24xf32>
    %109 = arith.mulf %107, %108 : vector<24x24xf32>
    %110 = arith.addf %109, %53 : vector<24x24xf32>
    %cst_32 = arith.constant dense<0xFF800000> : vector<24xf32>
    %111 = vector.multi_reduction <maximumf>, %110, %cst_32 [1] : vector<24x24xf32> to vector<24xf32>
    %112 = vector.shape_cast %111 : vector<24xf32> to vector<24x1xf32>
    %113 = vector.broadcast %112 : vector<24x1xf32> to vector<24x24xf32>
    %114 = arith.subf %110, %113 : vector<24x24xf32>
    %115 = math.exp %114 : vector<24x24xf32>
    %cst_33 = arith.constant dense<0.000000e+00> : vector<24xf32>
    %116 = vector.multi_reduction <add>, %115, %cst_33 [1] : vector<24x24xf32> to vector<24xf32>
    %117 = vector.shape_cast %116 : vector<24xf32> to vector<24x1xf32>
    %118 = tpu.reciprocal %117 {approx = true} : vector<24x1xf32> -> vector<24x1xf32>
    %119 = vector.broadcast %118 : vector<24x1xf32> to vector<24x24xf32>
    %120 = arith.mulf %115, %119 : vector<24x24xf32>
    %121 = arith.truncf %120 : vector<24x24xf32> to vector<24x24xbf16>
    %122 = arith.truncf %104 : vector<24x16xf32> to vector<24x16xbf16>
    %cst_34 = arith.constant dense<0.000000e+00> : vector<24x16xf32>
    %123 = tpu.matmul %121, %122, %cst_34 {dimension_numbers = #tpu.dot_dimension_numbers<[1], [0], [0], [1], [0, 0, 1, 1], [], []>} : vector<24x24xbf16>, vector<24x16xbf16>, vector<24x16xf32> -> vector<24x16xf32>
    %124 = vector.extract_strided_slice %22 {offsets = [0, 64], sizes = [24, 32], strides = [1, 1]} : vector<24x160xf32> to vector<24x32xf32>
    %125 = vector.extract_strided_slice %124 {offsets = [0, 0], sizes = [24, 16], strides = [1, 1]} : vector<24x32xf32> to vector<24x16xf32>
    %126 = vector.extract_strided_slice %124 {offsets = [0, 16], sizes = [24, 16], strides = [1, 1]} : vector<24x32xf32> to vector<24x16xf32>
    %127 = vector.extract_strided_slice %126 {offsets = [0, 0], sizes = [24, 8], strides = [1, 1]} : vector<24x16xf32> to vector<24x8xf32>
    %128 = vector.extract_strided_slice %126 {offsets = [0, 8], sizes = [24, 8], strides = [1, 1]} : vector<24x16xf32> to vector<24x8xf32>
    %129 = arith.mulf %127, %2 : vector<24x8xf32>
    %130 = arith.mulf %128, %3 : vector<24x8xf32>
    %131 = arith.subf %129, %130 : vector<24x8xf32>
    %132 = arith.mulf %127, %3 : vector<24x8xf32>
    %133 = arith.mulf %128, %2 : vector<24x8xf32>
    %134 = arith.addf %132, %133 : vector<24x8xf32>
    %135 = tpu.concatenate %131, %134 in 1 : vector<24x8xf32>, vector<24x8xf32> -> vector<24x16xf32>
    %136 = tpu.concatenate %125, %135 in 1 : vector<24x16xf32>, vector<24x16xf32> -> vector<24x32xf32>
    %137 = arith.truncf %136 : vector<24x32xf32> to vector<24x32xbf16>
    %138 = vector.extract_strided_slice %47 {offsets = [0, 64], sizes = [24, 16], strides = [1, 1]} : vector<24x128xf32> to vector<24x16xf32>
    %139 = vector.extract_strided_slice %47 {offsets = [0, 80], sizes = [24, 16], strides = [1, 1]} : vector<24x128xf32> to vector<24x16xf32>
    %140 = tpu.concatenate %138, %33 in 1 : vector<24x16xf32>, vector<24x16xf32> -> vector<24x32xf32>
    %141 = arith.truncf %140 : vector<24x32xf32> to vector<24x32xbf16>
    %cst_35 = arith.constant dense<0.000000e+00> : vector<24x24xf32>
    %142 = tpu.matmul %137, %141, %cst_35 {dimension_numbers = #tpu.dot_dimension_numbers<[1], [1], [0], [0], [0, 0, 1, 0], [], []>} : vector<24x32xbf16>, vector<24x32xbf16>, vector<24x24xf32> -> vector<24x24xf32>
    %cst_36 = arith.constant 0.331253767 : f32
    %143 = vector.broadcast %cst_36 : f32 to vector<24x24xf32>
    %144 = arith.mulf %142, %143 : vector<24x24xf32>
    %145 = arith.addf %144, %53 : vector<24x24xf32>
    %cst_37 = arith.constant dense<0xFF800000> : vector<24xf32>
    %146 = vector.multi_reduction <maximumf>, %145, %cst_37 [1] : vector<24x24xf32> to vector<24xf32>
    %147 = vector.shape_cast %146 : vector<24xf32> to vector<24x1xf32>
    %148 = vector.broadcast %147 : vector<24x1xf32> to vector<24x24xf32>
    %149 = arith.subf %145, %148 : vector<24x24xf32>
    %150 = math.exp %149 : vector<24x24xf32>
    %cst_38 = arith.constant dense<0.000000e+00> : vector<24xf32>
    %151 = vector.multi_reduction <add>, %150, %cst_38 [1] : vector<24x24xf32> to vector<24xf32>
    %152 = vector.shape_cast %151 : vector<24xf32> to vector<24x1xf32>
    %153 = tpu.reciprocal %152 {approx = true} : vector<24x1xf32> -> vector<24x1xf32>
    %154 = vector.broadcast %153 : vector<24x1xf32> to vector<24x24xf32>
    %155 = arith.mulf %150, %154 : vector<24x24xf32>
    %156 = arith.truncf %155 : vector<24x24xf32> to vector<24x24xbf16>
    %157 = arith.truncf %139 : vector<24x16xf32> to vector<24x16xbf16>
    %cst_39 = arith.constant dense<0.000000e+00> : vector<24x16xf32>
    %158 = tpu.matmul %156, %157, %cst_39 {dimension_numbers = #tpu.dot_dimension_numbers<[1], [0], [0], [1], [0, 0, 1, 1], [], []>} : vector<24x24xbf16>, vector<24x16xbf16>, vector<24x16xf32> -> vector<24x16xf32>
    %159 = vector.extract_strided_slice %22 {offsets = [0, 96], sizes = [24, 32], strides = [1, 1]} : vector<24x160xf32> to vector<24x32xf32>
    %160 = vector.extract_strided_slice %159 {offsets = [0, 0], sizes = [24, 16], strides = [1, 1]} : vector<24x32xf32> to vector<24x16xf32>
    %161 = vector.extract_strided_slice %159 {offsets = [0, 16], sizes = [24, 16], strides = [1, 1]} : vector<24x32xf32> to vector<24x16xf32>
    %162 = vector.extract_strided_slice %161 {offsets = [0, 0], sizes = [24, 8], strides = [1, 1]} : vector<24x16xf32> to vector<24x8xf32>
    %163 = vector.extract_strided_slice %161 {offsets = [0, 8], sizes = [24, 8], strides = [1, 1]} : vector<24x16xf32> to vector<24x8xf32>
    %164 = arith.mulf %162, %2 : vector<24x8xf32>
    %165 = arith.mulf %163, %3 : vector<24x8xf32>
    %166 = arith.subf %164, %165 : vector<24x8xf32>
    %167 = arith.mulf %162, %3 : vector<24x8xf32>
    %168 = arith.mulf %163, %2 : vector<24x8xf32>
    %169 = arith.addf %167, %168 : vector<24x8xf32>
    %170 = tpu.concatenate %166, %169 in 1 : vector<24x8xf32>, vector<24x8xf32> -> vector<24x16xf32>
    %171 = tpu.concatenate %160, %170 in 1 : vector<24x16xf32>, vector<24x16xf32> -> vector<24x32xf32>
    %172 = arith.truncf %171 : vector<24x32xf32> to vector<24x32xbf16>
    %173 = vector.extract_strided_slice %47 {offsets = [0, 96], sizes = [24, 16], strides = [1, 1]} : vector<24x128xf32> to vector<24x16xf32>
    %174 = vector.extract_strided_slice %47 {offsets = [0, 112], sizes = [24, 16], strides = [1, 1]} : vector<24x128xf32> to vector<24x16xf32>
    %175 = tpu.concatenate %173, %33 in 1 : vector<24x16xf32>, vector<24x16xf32> -> vector<24x32xf32>
    %176 = arith.truncf %175 : vector<24x32xf32> to vector<24x32xbf16>
    %cst_40 = arith.constant dense<0.000000e+00> : vector<24x24xf32>
    %177 = tpu.matmul %172, %176, %cst_40 {dimension_numbers = #tpu.dot_dimension_numbers<[1], [1], [0], [0], [0, 0, 1, 0], [], []>} : vector<24x32xbf16>, vector<24x32xbf16>, vector<24x24xf32> -> vector<24x24xf32>
    %cst_41 = arith.constant 0.331253767 : f32
    %178 = vector.broadcast %cst_41 : f32 to vector<24x24xf32>
    %179 = arith.mulf %177, %178 : vector<24x24xf32>
    %180 = arith.addf %179, %53 : vector<24x24xf32>
    %cst_42 = arith.constant dense<0xFF800000> : vector<24xf32>
    %181 = vector.multi_reduction <maximumf>, %180, %cst_42 [1] : vector<24x24xf32> to vector<24xf32>
    %182 = vector.shape_cast %181 : vector<24xf32> to vector<24x1xf32>
    %183 = vector.broadcast %182 : vector<24x1xf32> to vector<24x24xf32>
    %184 = arith.subf %180, %183 : vector<24x24xf32>
    %185 = math.exp %184 : vector<24x24xf32>
    %cst_43 = arith.constant dense<0.000000e+00> : vector<24xf32>
    %186 = vector.multi_reduction <add>, %185, %cst_43 [1] : vector<24x24xf32> to vector<24xf32>
    %187 = vector.shape_cast %186 : vector<24xf32> to vector<24x1xf32>
    %188 = tpu.reciprocal %187 {approx = true} : vector<24x1xf32> -> vector<24x1xf32>
    %189 = vector.broadcast %188 : vector<24x1xf32> to vector<24x24xf32>
    %190 = arith.mulf %185, %189 : vector<24x24xf32>
    %191 = arith.truncf %190 : vector<24x24xf32> to vector<24x24xbf16>
    %192 = arith.truncf %174 : vector<24x16xf32> to vector<24x16xbf16>
    %cst_44 = arith.constant dense<0.000000e+00> : vector<24x16xf32>
    %193 = tpu.matmul %191, %192, %cst_44 {dimension_numbers = #tpu.dot_dimension_numbers<[1], [0], [0], [1], [0, 0, 1, 1], [], []>} : vector<24x24xbf16>, vector<24x16xbf16>, vector<24x16xf32> -> vector<24x16xf32>
    %194 = tpu.concatenate %88, %123, %158, %193 in 1 : vector<24x16xf32>, vector<24x16xf32>, vector<24x16xf32>, vector<24x16xf32> -> vector<24x64xf32>
    %195 = arith.truncf %194 : vector<24x64xf32> to vector<24x64xbf16>
    %cst_45 = arith.constant dense<0.000000e+00> : vector<24x64xf32>
    %196 = tpu.matmul %195, %8, %cst_45 {dimension_numbers = #tpu.dot_dimension_numbers<[1], [0], [0], [1], [0, 0, 1, 1], [], []>} : vector<24x64xbf16>, vector<64x64xbf16>, vector<24x64xf32> -> vector<24x64xf32>
    %197 = arith.addf %1, %196 : vector<24x64xf32>
    %c0_46 = arith.constant 0 : index
    %c0_47 = arith.constant 0 : index
    %198 = vector.load %arg9[%c0_46, %c0_47] : memref<1x64xf32, #tpu.memory_space<vmem>>, vector<1x64xf32>
    %199 = arith.mulf %197, %197 : vector<24x64xf32>
    %cst_48 = arith.constant dense<0.000000e+00> : vector<24xf32>
    %200 = vector.multi_reduction <add>, %199, %cst_48 [1] : vector<24x64xf32> to vector<24xf32>
    %201 = vector.shape_cast %200 : vector<24xf32> to vector<24x1xf32>
    %cst_49 = arith.constant 6.400000e+01 : f32
    %202 = vector.broadcast %cst_49 : f32 to vector<24x1xf32>
    %203 = arith.divf %201, %202 : vector<24x1xf32>
    %cst_50 = arith.constant 9.99999997E-7 : f32
    %204 = vector.broadcast %cst_50 : f32 to vector<24x1xf32>
    %205 = arith.addf %203, %204 : vector<24x1xf32>
    %206 = math.rsqrt %205 : vector<24x1xf32>
    %207 = vector.broadcast %206 : vector<24x1xf32> to vector<24x64xf32>
    %208 = arith.mulf %197, %207 : vector<24x64xf32>
    %209 = vector.broadcast %198 : vector<1x64xf32> to vector<24x64xf32>
    %210 = arith.mulf %208, %209 : vector<24x64xf32>
    %211 = arith.truncf %210 : vector<24x64xf32> to vector<24x64xbf16>
    %c0_51 = arith.constant 0 : index
    %c0_52 = arith.constant 0 : index
    %212 = vector.load %arg10[%c0_51, %c0_52] : memref<64x4xbf16, #tpu.memory_space<vmem>>, vector<64x4xbf16>
    %cst_53 = arith.constant dense<0.000000e+00> : vector<24x4xf32>
    %213 = tpu.matmul %211, %212, %cst_53 {dimension_numbers = #tpu.dot_dimension_numbers<[1], [0], [0], [1], [0, 0, 1, 1], [], []>} : vector<24x64xbf16>, vector<64x4xbf16>, vector<24x4xf32> -> vector<24x4xf32>
    %cst_54 = arith.constant dense<0xFF800000> : vector<24xf32>
    %214 = vector.multi_reduction <maximumf>, %213, %cst_54 [1] : vector<24x4xf32> to vector<24xf32>
    %215 = vector.shape_cast %214 : vector<24xf32> to vector<24x1xf32>
    %216 = vector.broadcast %215 : vector<24x1xf32> to vector<24x4xf32>
    %217 = arith.subf %213, %216 : vector<24x4xf32>
    %218 = math.exp %217 : vector<24x4xf32>
    %cst_55 = arith.constant dense<0.000000e+00> : vector<24xf32>
    %219 = vector.multi_reduction <add>, %218, %cst_55 [1] : vector<24x4xf32> to vector<24xf32>
    %220 = vector.shape_cast %219 : vector<24xf32> to vector<24x1xf32>
    %221 = vector.broadcast %220 : vector<24x1xf32> to vector<24x4xf32>
    %222 = arith.divf %218, %221 : vector<24x4xf32>
    %223 = tpu.iota {dimensions = array<i32: 1>} : vector<24x4xi32>
    %cst_56 = arith.constant 0.000000e+00 : f32
    %224 = vector.broadcast %cst_56 : f32 to vector<24x4xf32>
    %225 = vector.extract_strided_slice %222 {offsets = [0, 0], sizes = [24, 1], strides = [1, 1]} : vector<24x4xf32> to vector<24x1xf32>
    %226 = vector.broadcast %225 : vector<24x1xf32> to vector<24x4xf32>
    %227 = arith.cmpf ogt, %226, %222 : vector<24x4xf32>
    %228 = vector.broadcast %225 : vector<24x1xf32> to vector<24x4xf32>
    %229 = arith.cmpf oeq, %228, %222 : vector<24x4xf32>
    %c0_i32 = arith.constant 0 : i32
    %230 = vector.broadcast %c0_i32 : i32 to vector<24x4xi32>
    %231 = arith.cmpi sgt, %223, %230 : vector<24x4xi32>
    %232 = arith.andi %229, %231 : vector<24x4xi1>
    %233 = arith.ori %227, %232 : vector<24x4xi1>
    %234 = arith.extui %233 : vector<24x4xi1> to vector<24x4xi32>
    %235 = arith.sitofp %234 : vector<24x4xi32> to vector<24x4xf32>
    %236 = arith.addf %224, %235 : vector<24x4xf32>
    %237 = vector.extract_strided_slice %222 {offsets = [0, 1], sizes = [24, 1], strides = [1, 1]} : vector<24x4xf32> to vector<24x1xf32>
    %238 = vector.broadcast %237 : vector<24x1xf32> to vector<24x4xf32>
    %239 = arith.cmpf ogt, %238, %222 : vector<24x4xf32>
    %240 = vector.broadcast %237 : vector<24x1xf32> to vector<24x4xf32>
    %241 = arith.cmpf oeq, %240, %222 : vector<24x4xf32>
    %c1_i32 = arith.constant 1 : i32
    %242 = vector.broadcast %c1_i32 : i32 to vector<24x4xi32>
    %243 = arith.cmpi sgt, %223, %242 : vector<24x4xi32>
    %244 = arith.andi %241, %243 : vector<24x4xi1>
    %245 = arith.ori %239, %244 : vector<24x4xi1>
    %246 = arith.extui %245 : vector<24x4xi1> to vector<24x4xi32>
    %247 = arith.sitofp %246 : vector<24x4xi32> to vector<24x4xf32>
    %248 = arith.addf %236, %247 : vector<24x4xf32>
    %249 = vector.extract_strided_slice %222 {offsets = [0, 2], sizes = [24, 1], strides = [1, 1]} : vector<24x4xf32> to vector<24x1xf32>
    %250 = vector.broadcast %249 : vector<24x1xf32> to vector<24x4xf32>
    %251 = arith.cmpf ogt, %250, %222 : vector<24x4xf32>
    %252 = vector.broadcast %249 : vector<24x1xf32> to vector<24x4xf32>
    %253 = arith.cmpf oeq, %252, %222 : vector<24x4xf32>
    %c2_i32 = arith.constant 2 : i32
    %254 = vector.broadcast %c2_i32 : i32 to vector<24x4xi32>
    %255 = arith.cmpi sgt, %223, %254 : vector<24x4xi32>
    %256 = arith.andi %253, %255 : vector<24x4xi1>
    %257 = arith.ori %251, %256 : vector<24x4xi1>
    %258 = arith.extui %257 : vector<24x4xi1> to vector<24x4xi32>
    %259 = arith.sitofp %258 : vector<24x4xi32> to vector<24x4xf32>
    %260 = arith.addf %248, %259 : vector<24x4xf32>
    %261 = vector.extract_strided_slice %222 {offsets = [0, 3], sizes = [24, 1], strides = [1, 1]} : vector<24x4xf32> to vector<24x1xf32>
    %262 = vector.broadcast %261 : vector<24x1xf32> to vector<24x4xf32>
    %263 = arith.cmpf ogt, %262, %222 : vector<24x4xf32>
    %264 = vector.broadcast %261 : vector<24x1xf32> to vector<24x4xf32>
    %265 = arith.cmpf oeq, %264, %222 : vector<24x4xf32>
    %c3_i32 = arith.constant 3 : i32
    %266 = vector.broadcast %c3_i32 : i32 to vector<24x4xi32>
    %267 = arith.cmpi sgt, %223, %266 : vector<24x4xi32>
    %268 = arith.andi %265, %267 : vector<24x4xi1>
    %269 = arith.ori %263, %268 : vector<24x4xi1>
    %270 = arith.extui %269 : vector<24x4xi1> to vector<24x4xi32>
    %271 = arith.sitofp %270 : vector<24x4xi32> to vector<24x4xf32>
    %272 = arith.addf %260, %271 : vector<24x4xf32>
    %cst_57 = arith.constant 2.000000e+00 : f32
    %273 = vector.broadcast %cst_57 : f32 to vector<24x4xf32>
    %274 = arith.cmpf olt, %272, %273 : vector<24x4xf32>
    %275 = arith.extui %274 : vector<24x4xi1> to vector<24x4xi32>
    %276 = arith.sitofp %275 : vector<24x4xi32> to vector<24x4xf32>
    %277 = arith.mulf %222, %276 : vector<24x4xf32>
    %cst_58 = arith.constant 1.000000e+00 : f32
    %278 = vector.broadcast %cst_58 : f32 to vector<24x4xf32>
    %279 = arith.mulf %277, %278 : vector<24x4xf32>
    %c0_59 = arith.constant 0 : index
    %c0_60 = arith.constant 0 : index
    %280 = vector.load %arg11[%c0_59, %c0_60] : memref<64x1280xbf16, #tpu.memory_space<vmem>>, vector<64x1280xbf16>
    %cst_61 = arith.constant dense<0.000000e+00> : vector<24x1280xf32>
    %281 = tpu.matmul %211, %280, %cst_61 {dimension_numbers = #tpu.dot_dimension_numbers<[1], [0], [0], [1], [0, 0, 1, 1], [], []>} : vector<24x64xbf16>, vector<64x1280xbf16>, vector<24x1280xf32> -> vector<24x1280xf32>
    %282 = vector.extract_strided_slice %281 {offsets = [0, 0], sizes = [24, 128], strides = [1, 1]} : vector<24x1280xf32> to vector<24x128xf32>
    %283 = vector.extract_strided_slice %281 {offsets = [0, 128], sizes = [24, 128], strides = [1, 1]} : vector<24x1280xf32> to vector<24x128xf32>
    %284 = arith.negf %282 : vector<24x128xf32>
    %285 = math.exp %284 : vector<24x128xf32>
    %cst_62 = arith.constant 1.000000e+00 : f32
    %286 = vector.broadcast %cst_62 : f32 to vector<24x128xf32>
    %287 = arith.addf %286, %285 : vector<24x128xf32>
    %288 = arith.divf %286, %287 : vector<24x128xf32>
    %289 = arith.mulf %282, %288 : vector<24x128xf32>
    %290 = arith.mulf %289, %283 : vector<24x128xf32>
    %291 = vector.extract_strided_slice %279 {offsets = [0, 0], sizes = [24, 1], strides = [1, 1]} : vector<24x4xf32> to vector<24x1xf32>
    %292 = vector.broadcast %291 : vector<24x1xf32> to vector<24x128xf32>
    %293 = arith.mulf %290, %292 : vector<24x128xf32>
    %294 = vector.extract_strided_slice %281 {offsets = [0, 256], sizes = [24, 128], strides = [1, 1]} : vector<24x1280xf32> to vector<24x128xf32>
    %295 = vector.extract_strided_slice %281 {offsets = [0, 384], sizes = [24, 128], strides = [1, 1]} : vector<24x1280xf32> to vector<24x128xf32>
    %296 = arith.negf %294 : vector<24x128xf32>
    %297 = math.exp %296 : vector<24x128xf32>
    %cst_63 = arith.constant 1.000000e+00 : f32
    %298 = vector.broadcast %cst_63 : f32 to vector<24x128xf32>
    %299 = arith.addf %298, %297 : vector<24x128xf32>
    %300 = arith.divf %298, %299 : vector<24x128xf32>
    %301 = arith.mulf %294, %300 : vector<24x128xf32>
    %302 = arith.mulf %301, %295 : vector<24x128xf32>
    %303 = vector.extract_strided_slice %279 {offsets = [0, 1], sizes = [24, 1], strides = [1, 1]} : vector<24x4xf32> to vector<24x1xf32>
    %304 = vector.broadcast %303 : vector<24x1xf32> to vector<24x128xf32>
    %305 = arith.mulf %302, %304 : vector<24x128xf32>
    %306 = vector.extract_strided_slice %281 {offsets = [0, 512], sizes = [24, 128], strides = [1, 1]} : vector<24x1280xf32> to vector<24x128xf32>
    %307 = vector.extract_strided_slice %281 {offsets = [0, 640], sizes = [24, 128], strides = [1, 1]} : vector<24x1280xf32> to vector<24x128xf32>
    %308 = arith.negf %306 : vector<24x128xf32>
    %309 = math.exp %308 : vector<24x128xf32>
    %cst_64 = arith.constant 1.000000e+00 : f32
    %310 = vector.broadcast %cst_64 : f32 to vector<24x128xf32>
    %311 = arith.addf %310, %309 : vector<24x128xf32>
    %312 = arith.divf %310, %311 : vector<24x128xf32>
    %313 = arith.mulf %306, %312 : vector<24x128xf32>
    %314 = arith.mulf %313, %307 : vector<24x128xf32>
    %315 = vector.extract_strided_slice %279 {offsets = [0, 2], sizes = [24, 1], strides = [1, 1]} : vector<24x4xf32> to vector<24x1xf32>
    %316 = vector.broadcast %315 : vector<24x1xf32> to vector<24x128xf32>
    %317 = arith.mulf %314, %316 : vector<24x128xf32>
    %318 = vector.extract_strided_slice %281 {offsets = [0, 768], sizes = [24, 128], strides = [1, 1]} : vector<24x1280xf32> to vector<24x128xf32>
    %319 = vector.extract_strided_slice %281 {offsets = [0, 896], sizes = [24, 128], strides = [1, 1]} : vector<24x1280xf32> to vector<24x128xf32>
    %320 = arith.negf %318 : vector<24x128xf32>
    %321 = math.exp %320 : vector<24x128xf32>
    %cst_65 = arith.constant 1.000000e+00 : f32
    %322 = vector.broadcast %cst_65 : f32 to vector<24x128xf32>
    %323 = arith.addf %322, %321 : vector<24x128xf32>
    %324 = arith.divf %322, %323 : vector<24x128xf32>
    %325 = arith.mulf %318, %324 : vector<24x128xf32>
    %326 = arith.mulf %325, %319 : vector<24x128xf32>
    %327 = vector.extract_strided_slice %279 {offsets = [0, 3], sizes = [24, 1], strides = [1, 1]} : vector<24x4xf32> to vector<24x1xf32>
    %328 = vector.broadcast %327 : vector<24x1xf32> to vector<24x128xf32>
    %329 = arith.mulf %326, %328 : vector<24x128xf32>
    %330 = vector.extract_strided_slice %281 {offsets = [0, 1024], sizes = [24, 128], strides = [1, 1]} : vector<24x1280xf32> to vector<24x128xf32>
    %331 = vector.extract_strided_slice %281 {offsets = [0, 1152], sizes = [24, 128], strides = [1, 1]} : vector<24x1280xf32> to vector<24x128xf32>
    %332 = arith.negf %330 : vector<24x128xf32>
    %333 = math.exp %332 : vector<24x128xf32>
    %cst_66 = arith.constant 1.000000e+00 : f32
    %334 = vector.broadcast %cst_66 : f32 to vector<24x128xf32>
    %335 = arith.addf %334, %333 : vector<24x128xf32>
    %336 = arith.divf %334, %335 : vector<24x128xf32>
    %337 = arith.mulf %330, %336 : vector<24x128xf32>
    %338 = arith.mulf %337, %331 : vector<24x128xf32>
    %339 = tpu.concatenate %293, %305, %317, %329, %338 in 1 : vector<24x128xf32>, vector<24x128xf32>, vector<24x128xf32>, vector<24x128xf32>, vector<24x128xf32> -> vector<24x640xf32>
    %340 = arith.truncf %339 : vector<24x640xf32> to vector<24x640xbf16>
    %c0_67 = arith.constant 0 : index
    %c0_68 = arith.constant 0 : index
    %341 = vector.load %arg12[%c0_67, %c0_68] : memref<640x64xbf16, #tpu.memory_space<vmem>>, vector<640x64xbf16>
    %cst_69 = arith.constant dense<0.000000e+00> : vector<24x64xf32>
    %342 = tpu.matmul %340, %341, %cst_69 {dimension_numbers = #tpu.dot_dimension_numbers<[1], [0], [0], [1], [0, 0, 1, 1], [], []>} : vector<24x640xbf16>, vector<640x64xbf16>, vector<24x64xf32> -> vector<24x64xf32>
    %343 = arith.addf %197, %342 : vector<24x64xf32>
    %cst_70 = arith.constant 0.000000e+00 : f32
    %344 = vector.broadcast %cst_70 : f32 to vector<24x64xf32>
    %345 = arith.addf %343, %344 : vector<24x64xf32>
    %c0_71 = arith.constant 0 : index
    %c0_72 = arith.constant 0 : index
    %c0_73 = arith.constant 0 : index
    %346 = vector.load %arg13[%c0_71, %c0_72, %c0_73] : memref<1x24x64xf32, #tpu.memory_space<vmem>>, vector<1x24x64xf32>
    %347 = vector.shape_cast %346 : vector<1x24x64xf32> to vector<24x64xf32>
    %348 = vector.shape_cast %345 : vector<24x64xf32> to vector<1x24x64xf32>
    tpu.vector_store %arg13[%c0_71, %c0_72, %c0_73], %348 {strides = array<i32>} : memref<1x24x64xf32, #tpu.memory_space<vmem>>, vector<1x24x64xf32>,
    return
  }
  func.func @transform_0(%arg0: i32) -> (i32, i32, i32) {
    %c0_i32 = arith.constant 0 : i32
    %c0_i32_0 = arith.constant 0 : i32
    %c0_i32_1 = arith.constant 0 : i32
    return %arg0, %c0_i32, %c0_i32_0 : i32, i32, i32
  }
  func.func @transform_1(%arg0: i32) -> (i32, i32) {
    %c0_i32 = arith.constant 0 : i32
    %c0_i32_0 = arith.constant 0 : i32
    %c0_i32_1 = arith.constant 0 : i32
    return %c0_i32, %c0_i32_0 : i32, i32
  }
  func.func @transform_2(%arg0: i32) -> (i32, i32) {
    %c0_i32 = arith.constant 0 : i32
    %c0_i32_0 = arith.constant 0 : i32
    %c0_i32_1 = arith.constant 0 : i32
    return %c0_i32, %c0_i32_0 : i32, i32
  }
  func.func @transform_3(%arg0: i32) -> (i32, i32) {
    %c0_i32 = arith.constant 0 : i32
    %c0_i32_0 = arith.constant 0 : i32
    %c0_i32_1 = arith.constant 0 : i32
    return %c0_i32, %c0_i32_0 : i32, i32
  }
  func.func @transform_4(%arg0: i32) -> (i32, i32) {
    %c0_i32 = arith.constant 0 : i32
    %c0_i32_0 = arith.constant 0 : i32
    %c0_i32_1 = arith.constant 0 : i32
    return %c0_i32, %c0_i32_0 : i32, i32
  }
  func.func @transform_5(%arg0: i32) -> (i32, i32) {
    %c0_i32 = arith.constant 0 : i32
    %c0_i32_0 = arith.constant 0 : i32
    %c0_i32_1 = arith.constant 0 : i32
    return %c0_i32, %c0_i32_0 : i32, i32
  }
  func.func @transform_6(%arg0: i32) -> (i32, i32) {
    %c0_i32 = arith.constant 0 : i32
    %c0_i32_0 = arith.constant 0 : i32
    %c0_i32_1 = arith.constant 0 : i32
    return %c0_i32, %c0_i32_0 : i32, i32
  }
  func.func @transform_7(%arg0: i32) -> (i32, i32) {
    %c0_i32 = arith.constant 0 : i32
    %c0_i32_0 = arith.constant 0 : i32
    %c0_i32_1 = arith.constant 0 : i32
    return %c0_i32, %c0_i32_0 : i32, i32
  }
  func.func @transform_8(%arg0: i32) -> (i32, i32) {
    %c0_i32 = arith.constant 0 : i32
    %c0_i32_0 = arith.constant 0 : i32
    %c0_i32_1 = arith.constant 0 : i32
    return %c0_i32, %c0_i32_0 : i32, i32
  }
  func.func @transform_9(%arg0: i32) -> (i32, i32) {
    %c0_i32 = arith.constant 0 : i32
    %c0_i32_0 = arith.constant 0 : i32
    %c0_i32_1 = arith.constant 0 : i32
    return %c0_i32, %c0_i32_0 : i32, i32
  }
  func.func @transform_10(%arg0: i32) -> (i32, i32) {
    %c0_i32 = arith.constant 0 : i32
    %c0_i32_0 = arith.constant 0 : i32
    %c0_i32_1 = arith.constant 0 : i32
    return %c0_i32, %c0_i32_0 : i32, i32
  }
  func.func @transform_11(%arg0: i32) -> (i32, i32) {
    %c0_i32 = arith.constant 0 : i32
    %c0_i32_0 = arith.constant 0 : i32
    %c0_i32_1 = arith.constant 0 : i32
    return %c0_i32, %c0_i32_0 : i32, i32
  }
  func.func @transform_12(%arg0: i32) -> (i32, i32, i32) {
    %c0_i32 = arith.constant 0 : i32
    %c0_i32_0 = arith.constant 0 : i32
    %c0_i32_1 = arith.constant 0 : i32
    return %arg0, %c0_i32, %c0_i32_0 : i32, i32, i32
  }
}

module attributes {stable_mosaic.version = 11 : i64} {
  func.func @_head_kernel(%arg0: i32, %arg1: memref<2x64xf32, #tpu.memory_space<vmem>>, %arg2: memref<1x64xf32, #tpu.memory_space<vmem>>, %arg3: memref<64x5xbf16, #tpu.memory_space<vmem>>, %arg4: memref<2x5xf32, #tpu.memory_space<vmem>>) attributes {dimension_semantics = [#tpu.dimension_semantics<arbitrary>], iteration_bounds = array<i64: 1>, scalar_prefetch = 0 : i64, scratch_operands = 0 : i64, tpu.core_type = #tpu.core_type<tc>, window_params = [{pipeline_mode = #tpu.pipeline_mode<synchronous>, transform_indices = @transform_0, window_bounds = array<i64: 2, 64>}, {pipeline_mode = #tpu.pipeline_mode<synchronous>, transform_indices = @transform_1, window_bounds = array<i64: 1, 64>}, {pipeline_mode = #tpu.pipeline_mode<synchronous>, transform_indices = @transform_2, window_bounds = array<i64: 64, 5>}, {pipeline_mode = #tpu.pipeline_mode<synchronous>, transform_indices = @transform_3, window_bounds = array<i64: 2, 5>}]} {
    %c0 = arith.constant 0 : index
    %c0_0 = arith.constant 0 : index
    %0 = vector.load %arg1[%c0, %c0_0] : memref<2x64xf32, #tpu.memory_space<vmem>>, vector<2x64xf32>
    %c0_1 = arith.constant 0 : index
    %c0_2 = arith.constant 0 : index
    %1 = vector.load %arg2[%c0_1, %c0_2] : memref<1x64xf32, #tpu.memory_space<vmem>>, vector<1x64xf32>
    %2 = arith.mulf %0, %0 : vector<2x64xf32>
    %cst = arith.constant dense<0.000000e+00> : vector<2xf32>
    %3 = vector.multi_reduction <add>, %2, %cst [1] : vector<2x64xf32> to vector<2xf32>
    %4 = vector.shape_cast %3 : vector<2xf32> to vector<2x1xf32>
    %cst_3 = arith.constant 6.400000e+01 : f32
    %5 = vector.broadcast %cst_3 : f32 to vector<2x1xf32>
    %6 = arith.divf %4, %5 : vector<2x1xf32>
    %cst_4 = arith.constant 9.99999997E-7 : f32
    %7 = vector.broadcast %cst_4 : f32 to vector<2x1xf32>
    %8 = arith.addf %6, %7 : vector<2x1xf32>
    %9 = math.rsqrt %8 : vector<2x1xf32>
    %10 = vector.broadcast %9 : vector<2x1xf32> to vector<2x64xf32>
    %11 = arith.mulf %0, %10 : vector<2x64xf32>
    %12 = vector.broadcast %1 : vector<1x64xf32> to vector<2x64xf32>
    %13 = arith.mulf %11, %12 : vector<2x64xf32>
    %14 = arith.truncf %13 : vector<2x64xf32> to vector<2x64xbf16>
    %c0_5 = arith.constant 0 : index
    %c0_6 = arith.constant 0 : index
    %15 = vector.load %arg3[%c0_5, %c0_6] : memref<64x5xbf16, #tpu.memory_space<vmem>>, vector<64x5xbf16>
    %cst_7 = arith.constant dense<0.000000e+00> : vector<2x5xf32>
    %16 = tpu.matmul %14, %15, %cst_7 {dimension_numbers = #tpu.dot_dimension_numbers<[1], [0], [0], [1], [0, 0, 1, 1], [], []>} : vector<2x64xbf16>, vector<64x5xbf16>, vector<2x5xf32> -> vector<2x5xf32>
    %c0_8 = arith.constant 0 : index
    %c0_9 = arith.constant 0 : index
    %17 = vector.load %arg4[%c0_8, %c0_9] : memref<2x5xf32, #tpu.memory_space<vmem>>, vector<2x5xf32>
    tpu.vector_store %arg4[%c0_8, %c0_9], %16 {strides = array<i32>} : memref<2x5xf32, #tpu.memory_space<vmem>>, vector<2x5xf32>,
    return
  }
  func.func @transform_0(%arg0: i32) -> (i32, i32) {
    %c0_i32 = arith.constant 0 : i32
    %c0_i32_0 = arith.constant 0 : i32
    %c0_i32_1 = arith.constant 0 : i32
    return %c0_i32, %c0_i32_0 : i32, i32
  }
  func.func @transform_1(%arg0: i32) -> (i32, i32) {
    %c0_i32 = arith.constant 0 : i32
    %c0_i32_0 = arith.constant 0 : i32
    %c0_i32_1 = arith.constant 0 : i32
    return %c0_i32, %c0_i32_0 : i32, i32
  }
  func.func @transform_2(%arg0: i32) -> (i32, i32) {
    %c0_i32 = arith.constant 0 : i32
    %c0_i32_0 = arith.constant 0 : i32
    %c0_i32_1 = arith.constant 0 : i32
    return %c0_i32, %c0_i32_0 : i32, i32
  }
  func.func @transform_3(%arg0: i32) -> (i32, i32) {
    %c0_i32 = arith.constant 0 : i32
    %c0_i32_0 = arith.constant 0 : i32
    %c0_i32_1 = arith.constant 0 : i32
    return %c0_i32, %c0_i32_0 : i32, i32
  }
}

</mosaic_0001>

<bundles_post_ra>
// kernel: vit_moe_forward.4
= control target key start
LH: loop header
LB: loop body
LE: loop exit
PB: predicated region body
PF: predicated region fallthrough
CT: control target
= control target key end

     0   :  { %vm63_vm0 = vcmask 523264   ;;  %v248_v23 = vmov 64.0   ;;  %s353_s1 = inlined_call_operand.vmem [shape: bf16[64,64], index: 1, kind: input, shape index: {}]   ;;  %s354_s2 = inlined_call_operand.vmem [shape: f32[1,64], index: 2, kind: input, shape index: {}]   ;;  %s355_s0 = inlined_call_operand.vmem [shape: f32[32,64], index: 0, kind: input, shape index: {}]   ;;  %s356_s3 = inlined_call_operand.vmem [shape: f32[1,64], index: 3, kind: input, shape index: {}]   ;;  %s357_s4 = inlined_call_operand.vmem [shape: f32[1,64], index: 4, kind: input, shape index: {}]   ;;  %s358_s5 = inlined_call_operand.vmem [shape: f32[32,64], index: 5, kind: output, shape index: {}]  }
   0x1   :  { %v229_v0 = vld [vmem:[%s353_s1 + $0x18] sm:$0xff]  ;;  %v228_v1 = vld [vmem:[%s353_s1 + $0x10] sm:$0xff]  ;;  %v227_v2 = vld [vmem:[%s353_s1 + $0x8] sm:$0xff]  ;;  %238 = vrcp.f32 %v248_v23 }
   0x2   :  { %74 = vmatpush.bf16.msra.mxu0 %v229_v0  ;;  %230 = vmatpush.bf16.msra.mxu1 %v229_v0  ;;  %v226_v3 = vld [vmem:[%s353_s1] sm:$0xff]  ;;  %v22_v5 = vld [vmem:[%s355_s0 + $0x8] sm:$0xff]  ;;  %v23_v6 = vld [vmem:[%s355_s0 + $0x10] sm:$0xff] }
   0x3   :  { %v21_v4 = vld [vmem:[%s355_s0] sm:$0xff]  ;;  %v24_v7 = vld [vmem:[%s355_s0 + $0x18] sm:$0xff] }
   0x4   :  { %v25_v8 = vpack.c.bf16 %v22_v5, %v21_v4  ;;  %v26_v9 = vpack.c.bf16 %v24_v7, %v23_v6  ;;  %v235_v10 = vld [vmem:[%s354_s2] ss:$0 sm:$0xff] }
   0x6   :  { %75 = vmatpush.bf16.msra.mxu0 %v228_v1  ;;  %231 = vmatpush.bf16.msra.mxu1 %v228_v1 }
   0x7   :  { %v239_v24 = vpop.eup %238 }
   0x8   :  { %v102_v25 = vmul.f32 64.0, %v239_v24  ;;  %vm106_vm1 = vweird.f32 %v239_v24 }
   0xa   :  { %76 = vmatpush.bf16.msra.mxu0 %v227_v2  ;;  %232 = vmatpush.bf16.msra.mxu1 %v227_v2  ;;  %v103_v26 = vsub.f32 1.0, %v102_v25 }
   0xc   :  { %v104_v27 = vmul.f32 %v239_v24, %v103_v26 }
   0xe   :  { %77 = vmatpush.bf16.msra.mxu0 %v226_v3  ;;  %233 = vmatpush.bf16.msra.mxu1 %v226_v3  ;;  %v105_v28 = vadd.f32 %v239_v24, %v104_v27 }
  0x10   :  { %v107_v29 = vsel %vm106_vm1, %v239_v24, %v105_v28 }
  0x11   :  { %224 = vmatmul.msk.bf16.vlgmr.msra.gmra.mxu0 %vm63_vm0, %v25_v8  ;;  %225 = vmatmul.msk.bf16.vlgmr.msra.gmra.mxu1 %vm63_vm0, %v26_v9 }
  0x8e   :  { %v79_v11 = vpop.f32.mrf.mxu0  ;;  %v84_v12 = vpop.f32.mrf.mxu1 }
  0x8f   :  { %v80_v13 = vadd.f32 %v235_v10, %v79_v11  ;;  %v85_v14 = vadd.f32 %v235_v10, %v84_v12  ;;  %v236_v12 = vld [vmem:[%s356_s3] ss:$0 sm:$0xff] }
  0x91   :  { %v95_v15 = vsel %vm63_vm0, %v85_v14, 0.0  ;;  %v89_v16 = vsel %vm63_vm0, %v80_v13, 0.0 }
  0x92   :  { %96 = vadd.xlane.f32.xlu1 %v95_v15  ;;  %90 = vadd.xlane.f32.xlu0 %v89_v16 }
  0x96   :  { %v81_v17 = vpop.f32.mrf.mxu0  ;;  %v86_v18 = vpop.f32.mrf.mxu1 }
  0x97   :  { %v82_v19 = vadd.f32 %v235_v10, %v81_v17  ;;  %v87_v20 = vadd.f32 %v235_v10, %v86_v18  ;;  %v237_v17 = vld [vmem:[%s357_s4] ss:$0 sm:$0xff] }
  0x99   :  { %v98_v21 = vsel %vm63_vm0, %v87_v20, 0.0  ;;  %v92_v22 = vsel %vm63_vm0, %v82_v19, 0.0 }
  0x9a   :  { %99 = vadd.xlane.f32.xlu1 %v98_v21  ;;  %93 = vadd.xlane.f32.xlu0 %v92_v22 }
 0x105   :  { %v97_v30 = vpop.xlane.xlu1 %96  ;;  %v91_v31 = vpop.xlane.xlu0 %90 }
 0x106   :  { %v110_v32 = vmul.f32 %v107_v29, %v97_v30  ;;  %v108_v33 = vmul.f32 %v107_v29, %v91_v31 }
 0x108   :  { %v312_v34 = vsub.f32 %v85_v14, %v110_v32  ;;  %v112_v35 = vsub.f32 %v80_v13, %v108_v33 }
 0x10a   :  { %v118_v36 = vmul.f32 %v312_v34, %v312_v34  ;;  %v116_v37 = vmul.f32 %v112_v35, %v112_v35 }
 0x10c   :  { %v126_v38 = vsel %vm63_vm0, %v118_v36, 0.0  ;;  %v120_v39 = vsel %vm63_vm0, %v116_v37, 0.0 }
 0x10d   :  { %v100_v40 = vpop.xlane.xlu1 %99  ;;  %127 = vadd.xlane.f32.xlu0 %v126_v38  ;;  %121 = vadd.xlane.f32.xlu2 %v120_v39  ;;  %v94_v41 = vpop.xlane.xlu0 %93 }
 0x10e   :  { %v111_v42 = vmul.f32 %v107_v29, %v100_v40  ;;  %v109_v43 = vmul.f32 %v107_v29, %v94_v41 }
 0x110   :  { %v318_v44 = vsub.f32 %v87_v20, %v111_v42  ;;  %v320_v45 = vsub.f32 %v82_v19, %v109_v43 }
 0x112   :  { %v119_v46 = vmul.f32 %v318_v44, %v318_v44  ;;  %v117_v47 = vmul.f32 %v320_v45, %v320_v45 }
 0x114   :  { %v129_v48 = vsel %vm63_vm0, %v119_v46, 0.0  ;;  %v123_v49 = vsel %vm63_vm0, %v117_v47, 0.0 }
 0x115   :  { %130 = vadd.xlane.f32.xlu1 %v129_v48  ;;  %124 = vadd.xlane.f32.xlu2 %v123_v49 }
 0x180   :  { %v122_v50 = vpop.xlane.xlu2 %121  ;;  %v128_v51 = vpop.xlane.xlu0 %127 }
 0x181   :  { %v132_v52 = vmul.f32 %v122_v50, %v107_v29  ;;  %v134_v53 = vmul.f32 %v128_v51, %v107_v29 }
 0x183   :  { %v136_v54 = vadd.f32 1e-05, %v132_v52  ;;  %v138_v55 = vadd.f32 1e-05, %v134_v53 }
 0x185   :  { %240 = vrsqrt.f32 %v136_v54  ;;  %vm146_vm4 = vweird.f32 %v136_v54  ;;  %vm166_vm6 = vweird.f32 %v138_v55 }
 0x186   :  { %242 = vrsqrt.f32 %v138_v55 }
 0x188   :  { %v131_v56 = vpop.xlane.xlu1 %130  ;;  %v125_v57 = vpop.xlane.xlu2 %124 }
 0x189   :  { %v135_v58 = vmul.f32 %v131_v56, %v107_v29  ;;  %v133_v59 = vmul.f32 %v125_v57, %v107_v29 }
 0x18b   :  { %v241_v60 = vpop.eup %240  ;;  %v139_v61 = vadd.f32 1e-05, %v135_v58  ;;  %v137_v62 = vadd.f32 1e-05, %v133_v59 }
 0x18c   :  { %v243_v63 = vpop.eup %242  ;;  %v141_v0 = vmul.f32 %v241_v60, %v136_v54  ;;  %vm147_vm2 = vweird.f32 %v241_v60 }
 0x18d   :  { %v161_v1 = vmul.f32 %v243_v63, %v138_v55  ;;  %244 = vrsqrt.f32 %v139_v61  ;;  %vm167_vm3 = vweird.f32 %v243_v63  ;;  %vm148_vm5 = vmor %vm146_vm4, %vm147_vm2  ;;  %vm176_vm10 = vweird.f32 %v139_v61 }
 0x18e   :  { %v142_v2 = vmul.f32 %v241_v60, %v141_v0  ;;  %246 = vrsqrt.f32 %v137_v62  ;;  %vm168_vm7 = vmor %vm166_vm6, %vm167_vm3  ;;  %vm156_vm12 = vweird.f32 %v137_v62 }
 0x18f   :  { %v162_v3 = vmul.f32 %v243_v63, %v161_v1 }
 0x190   :  { %v143_v4 = vmul.f32 0.5, %v142_v2 }
 0x191   :  { %v163_v5 = vmul.f32 0.5, %v162_v3 }
 0x192   :  { %v144_v6 = vsub.f32 1.5, %v143_v4 }
 0x193   :  { %v245_v7 = vpop.eup %244  ;;  %v164_v8 = vsub.f32 1.5, %v163_v5 }
 0x194   :  { %v247_v9 = vpop.eup %246  ;;  %v145_v10 = vmul.f32 %v241_v60, %v144_v6  ;;  %v171_v11 = vmul.f32 %v245_v7, %v139_v61  ;;  %vm177_vm8 = vweird.f32 %v245_v7 }
 0x195   :  { %v165_v13 = vmul.f32 %v243_v63, %v164_v8  ;;  %v151_v14 = vmul.f32 %v247_v9, %v137_v62  ;;  %vm157_vm9 = vweird.f32 %v247_v9  ;;  %vm178_vm11 = vmor %vm176_vm10, %vm177_vm8 }
 0x196   :  { %v149_v15 = vsel %vm148_vm5, %v241_v60, %v145_v10  ;;  %v172_v16 = vmul.f32 %v245_v7, %v171_v11  ;;  %vm158_vm13 = vmor %vm156_vm12, %vm157_vm9 }
 0x197   :  { %v180_v18 = vmul.f32 %v149_v15, %v112_v35  ;;  %v169_v19 = vsel %vm168_vm7, %v243_v63, %v165_v13  ;;  %v152_v20 = vmul.f32 %v247_v9, %v151_v14 }
 0x198   :  { %v182_v21 = vmul.f32 %v169_v19, %v312_v34  ;;  %v173_v22 = vmul.f32 0.5, %v172_v16 }
 0x199   :  { %v188_v23 = vmul.f32 %v236_v12, %v180_v18  ;;  %v153_v24 = vmul.f32 0.5, %v152_v20 }
 0x19a   :  { %v190_v25 = vmul.f32 %v236_v12, %v182_v21  ;;  %v174_v26 = vsub.f32 1.5, %v173_v22 }
 0x19b   :  { %v196_v27 = vadd.f32 %v237_v17, %v188_v23  ;;  %v154_v28 = vsub.f32 1.5, %v153_v24 }
 0x19c   :  { %v198_v29 = vadd.f32 %v237_v17, %v190_v25  ;;  %v175_v30 = vmul.f32 %v245_v7, %v174_v26 }
 0x19d   :  { %200 = vst.msk [vmem:[%s358_s5] sm:$0xff] %vm63_vm0, %v196_v27  ;;  %v155_v31 = vmul.f32 %v247_v9, %v154_v28 }
 0x19e   :  { %202 = vst.msk [vmem:[%s358_s5 + $0x10] sm:$0xff] %vm63_vm0, %v198_v29  ;;  %v179_v32 = vsel %vm178_vm11, %v245_v7, %v175_v30 }
 0x19f   :  { %v183_v33 = vmul.f32 %v179_v32, %v318_v44  ;;  %v159_v34 = vsel %vm158_vm13, %v247_v9, %v155_v31 }
 0x1a0   :  { %v181_v35 = vmul.f32 %v159_v34, %v320_v45 }
 0x1a1   :  { %v191_v36 = vmul.f32 %v236_v12, %v183_v33 }
 0x1a2   :  { %v189_v37 = vmul.f32 %v236_v12, %v181_v35 }
 0x1a3   :  { %v199_v38 = vadd.f32 %v237_v17, %v191_v36 }
 0x1a4   :  { %v197_v39 = vadd.f32 %v237_v17, %v189_v37 }
 0x1a5   :  { %203 = vst.msk [vmem:[%s358_s5 + $0x18] sm:$0xff] %vm63_vm0, %v199_v38 }
 0x1a6   :  { %201 = vst.msk [vmem:[%s358_s5 + $0x8] sm:$0xff] %vm63_vm0, %v197_v39 }

// kernel: vit_moe_forward.7
= control target key start
LH: loop header
LB: loop body
LE: loop exit
PB: predicated region body
PF: predicated region fallthrough
CT: control target
= control target key end

     0   :  { %vm19_vm0 = vcmask 517120   ;;  %s212_s0 = inlined_call_operand.vmem [shape: f32[2,64], index: 0, kind: input, shape index: {}]   ;;  %s213_s1 = inlined_call_operand.vmem [shape: f32[1,64], index: 1, kind: input, shape index: {}]   ;;  %s214_s2 = inlined_call_operand.vmem [shape: bf16[64,5], index: 2, kind: input, shape index: {}]   ;;  %s215_s3 = inlined_call_operand.hbm [shape: f32[2,5], index: 3, kind: output, shape index: {}]  }
   0x1   :  { %v16_v0 = vld [vmem:[%s212_s0] sm:$0x3] }
   0x2   :  { %v18_v1 = vmul.f32 %v16_v0, %v16_v0 }
   0x3   :  { %8 = vsyncpa [#allocation3], 0  ;;  %v169_v3 = vmov 64.0   ;;  %v135_v5 = vld [vmem:[%s214_s2 + $0x18] sm:$0xff]  ;;  %v134_v7 = vld [vmem:[%s214_s2 + $0x10] sm:$0xff]  ;;  %vm80_vm5 = vcmask 523264  }
   0x4   :  { %v20_v2 = vsel %vm19_vm0, %v18_v1, 0.0  ;;  %139 = vrcp.f32 %v169_v3  ;;  %88 = vmatpush.bf16.msra.mxu0 %v135_v5  ;;  %v133_v9 = vld [vmem:[%s214_s2 + $0x8] sm:$0xff]  ;;  %v132_v11 = vld [vmem:[%s214_s2] sm:$0xff]  ;;  %s170_s2 = smov [#allocation2]   ;;  %s106_s26 = sshll.u32 %s215_s3, 4  ;;  %vm97_vm6 = vcmask 33792   ;;  %s107_s26 = int_to_ptr.hbm [resolvable:$true] %s106_s26 }
   0x5   :  { %21 = vadd.xlane.f32.xlu0 %v20_v2  ;;  %v138_v23 = vld [vmem:[%s213_s1] ss:$0 sm:$0xff]  ;;  %s104_s23 = sshll.u32 %s170_s2, 4  ;;  %s105_s23 = int_to_ptr.vmem [resolvable:$true] %s104_s23 }
   0x8   :  { %89 = vmatpush.bf16.msra.mxu0 %v134_v7 }
   0xa   :  { %v140_v4 = vpop.eup %139 }
   0xb   :  { %v24_v6 = vmul.f32 64.0, %v140_v4  ;;  %vm28_vm1 = vweird.f32 %v140_v4 }
   0xc   :  { %90 = vmatpush.bf16.msra.mxu0 %v133_v9 }
   0xd   :  { %v25_v8 = vsub.f32 1.0, %v24_v6 }
   0xf   :  { %v26_v10 = vmul.f32 %v140_v4, %v25_v8 }
  0x10   :  { %91 = vmatpush.bf16.msra.mxu0 %v132_v11 }
  0x11   :  { %v27_v12 = vadd.f32 %v140_v4, %v26_v10 }
  0x13   :  { %v29_v13 = vsel %vm28_vm1, %v140_v4, %v27_v12 }
  0x78   :  { %v22_v14 = vpop.xlane.xlu0 %21 }
  0x79   :  { %v30_v15 = vmul.f32 %v29_v13, %v22_v14 }
  0x7b   :  { %v31_v16 = vadd.f32 1e-06, %v30_v15 }
  0x7d   :  { %141 = vrsqrt.f32 %v31_v16  ;;  %vm38_vm3 = vweird.f32 %v31_v16 }
  0x83   :  { %v142_v17 = vpop.eup %141 }
  0x84   :  { %v33_v18 = vmul.f32 %v142_v17, %v31_v16  ;;  %vm39_vm2 = vweird.f32 %v142_v17 }
  0x85   :  { %vm40_vm4 = vmor %vm38_vm3, %vm39_vm2 }
  0x86   :  { %v34_v19 = vmul.f32 %v142_v17, %v33_v18 }
  0x88   :  { %v35_v20 = vmul.f32 0.5, %v34_v19 }
  0x8a   :  { %v36_v21 = vsub.f32 1.5, %v35_v20 }
  0x8c   :  { %v37_v22 = vmul.f32 %v142_v17, %v36_v21 }
  0x8e   :  { %v41_v24 = vsel %vm40_vm4, %v142_v17, %v37_v22 }
  0x8f   :  { %v42_v25 = vmul.f32 %v41_v24, %v16_v0 }
  0x91   :  { %v46_v26 = vmul.f32 %v138_v23, %v42_v25 }
  0x93   :  { %v47_v27 = vpack.c.bf16 %v46_v26, %v46_v26 }
  0x95   :  { %131 = vmatmul.msk.bf16.vlgmr.msra.gmra.mxu0 %vm80_vm5, %v47_v27 }
 0x112   :  { %v93_v28 = vpop.f32.mrf.mxu0 }
 0x113   :  { %98 = vst.msk [vmem:[#allocation2] sm:$0x3] %vm97_vm6, %v93_v28 }
 0x114   :  { %109 = dma.vmem_to_hbm [thread:$0]  %s105_s23, 32, %s107_s26, [#allocation3]  }
 0x11a   :  { %v95_v29 = vpop.f32.mrf.mxu0 }
 0x11b   :  { %167 = dma.done.wait [#allocation3], 32  }
 0x11c   :  { %168 = vsyncadd [#allocation3], 4294967264 }
 0x11d   :  { %114 = vsyncpa [#allocation3], 1 }

// kernel: vit_moe_forward.5
= control target key start
LH: loop header
LB: loop body
LE: loop exit
PB: predicated region body
PF: predicated region fallthrough
CT: control target
= control target key end

     0   :  { %s2729_s17 = smov 0   ;;  %s3603_s0 = inlined_call_operand.vmem [shape: f32[2,24,64], index: 0, kind: input, shape index: {}]   ;;  %s3604_s1 = inlined_call_operand.vmem [shape: f32[24,8], index: 1, kind: input, shape index: {}]   ;;  %s3605_s2 = inlined_call_operand.vmem [shape: f32[24,8], index: 2, kind: input, shape index: {}]   ;;  %s3606_s3 = inlined_call_operand.vmem [shape: f32[1,64], index: 3, kind: input, shape index: {}]   ;;  %s3607_s4 = inlined_call_operand.vmem [shape: bf16[64,160], index: 4, kind: input, shape index: {}]   ;;  %s3608_s5 = inlined_call_operand.vmem [shape: f32[1,16], index: 5, kind: input, shape index: {}]   ;;  %s3609_s6 = inlined_call_operand.vmem [shape: bf16[16,128], index: 6, kind: input, shape index: {}]   ;;  %s3610_s7 = inlined_call_operand.vmem [shape: bf16[64,64], index: 7, kind: input, shape index: {}]   ;;  %s3611_s8 = inlined_call_operand.vmem [shape: f32[1,64], index: 8, kind: input, shape index: {}]   ;;  %s3612_s9 = inlined_call_operand.vmem [shape: bf16[64,256], index: 9, kind: input, shape index: {}]   ;;  %s3613_s10 = inlined_call_operand.vmem [shape: bf16[128,64], index: 10, kind: input, shape index: {}]   ;;  %s3614_s11 = inlined_call_operand.vmem [shape: f32[2,24,64], index: 11, kind: output, shape index: {}]  }
   0x1 LB: > { %s2207_s18 = sadd.s32 4294967295, %s2653_s17   ;;  %p2211_p0 = scmp.ge.s32.totalorder %s2653_s17, 1  ;;  %s2653_s17 = sphi %s2729_s17, %s21_s17  }
   0x2   : > { %p337_p1 = scmp.lt.s32.totalorder %s2653_s17, 3 }
   0x4   : > { %p338_p2 = pnand %p2211_p0, %p337_p1 }
   0x5   : > { %p377_p3 = scmp.lt.s32.totalorder (!%p338_p2), %s2207_s18, 1  ;;  %s2655_s25 = smov (!%p338_p2), 24  }
   0x6   : > { %341 = sbr.rel (%p338_p2) target bundleno = 2250 (0x8ca), region = 64  ;;  %s2657_s23 = smov (!%p338_p2), 56  }
   0x7   : > { %s2658_s30 = smov (!%p338_p2), 16   ;;  %s2659_s12 = smov (!%p338_p2), 88  }
   0x8   : > { %s2660_s15 = smov (!%p338_p2), 120   ;;  %s2661_s16 = smov (!%p338_p2), 48  }
   0x9   : > { %s2662_s20 = smov (!%p338_p2), 80   ;;  %s2663_s21 = smov (!%p338_p2), 112  }
   0xa   : > { %s2665_s29 = smov (!%p338_p2), 96   ;;  %s2667_s13 = smov (!%p338_p2), 32  }
   0xb   : > { %s3616_s18 = smov (!%p377_p3, %s2207_s18), 1  ;;  %vm420_vm0 = vcmask 523264   ;;  %v2768_v9 = vld [vmem:[%s3604_s1 + $0x10] sm:$0xff]  ;;  %v2656_v10 = vmov 64.0   ;;  %v2775_v11 = vld [vmem:[%s3604_s1 + $0x8] sm:$0xff]  ;;  %v2795_v18 = vld [vmem:[%s3604_s1] sm:$0xff] }
   0xc   : > { %s2396_s19 = smul.u32 24, %s3616_s18  ;;  %2562 = vrcp.f32 %v2656_v10  ;;  %v2780_v12 = vld [vmem:[%s3605_s2 + $0x10] sm:$0xff]  ;;  %v2370_v15 = vld [vmem:[%s3607_s4 + $0x34] sm:$0xf0]  ;;  %v2800_v19 = vld [vmem:[%s3605_s2 + $0x8] sm:$0xff]  ;;  %vm681_vm11 = vcmask 130048  }
   0xd   : > { %v2240_v14 = vld [vmem:[%s3607_s4 + $0x30] sm:$0xf]  ;;  %v2232_v20 = vld [vmem:[%s3607_s4 + $0x20] sm:$0xf]  ;;  %v2368_v21 = vld [vmem:[%s3607_s4 + $0x24] sm:$0xf0] }
   0xe   : > { %s2745_s22 = scalar_lea.vmem %s3603_s0, %s2396_s19  ;;  %v2241_v17 = vor.u32 %v2370_v15, %v2240_v14  ;;  %v2233_v23 = vor.u32 %v2368_v21, %v2232_v20  ;;  %v2369_v24 = vld [vmem:[%s3607_s4 + $0x34] sm:$0xf]  ;;  %v2242_v25 = vld [vmem:[%s3607_s4 + $0x38] sm:$0xf0]  ;;  %v2224_v27 = vld [vmem:[%s3607_s4 + $0x10] sm:$0xf] }
   0xf   : > { %v2748_v0 = vld [vmem:[%s2745_s22] sm:$0xff]  ;;  %v2751_v1 = vld [vmem:[%s2745_s22 + $0x10] sm:$0xff]  ;;  %v2758_v4 = vld [vmem:[%s2745_s22 + $0x8] sm:$0xff]  ;;  %v2245_v26 = vor.u32 %v2369_v24, %v2242_v25 }
  0x10   : > { %v417_v2 = vmul.f32 %v2748_v0, %v2748_v0  ;;  %v419_v3 = vmul.f32 %v2751_v1, %v2751_v1  ;;  %v418_v7 = vmul.f32 %v2758_v4, %v2758_v4  ;;  %2392 = vmatpush.bf16.msra.mxu3 %v2241_v17  ;;  %534 = vmatpush.bf16.msra.mxu0 %v2241_v17  ;;  %v2366_v28 = vld [vmem:[%s3607_s4 + $0x14] sm:$0xf0]  ;;  %v2827_v31 = vld [vmem:[%s3605_s2] sm:$0xff]  ;;  %v2234_v33 = vld [vmem:[%s3607_s4 + $0x28] sm:$0xf0] }
  0x11   : > { %552 = vmatpush.bf16.msra.mxu1 %v2245_v26  ;;  %v2225_v30 = vor.u32 %v2366_v28, %v2224_v27  ;;  %v2367_v32 = vld [vmem:[%s3607_s4 + $0x24] sm:$0xf]  ;;  %584 = vrot.lane.b32.xlu2 %v2827_v31, %s2655_s25  ;;  %v2216_v35 = vld [vmem:[%s3607_s4] sm:$0xf]  ;;  %v2364_v36 = vld [vmem:[%s3607_s4 + $0x4] sm:$0xf0] }
  0x12   : > { %v421_v5 = vsel %vm420_vm0, %v417_v2, 0.0  ;;  %v427_v6 = vsel %vm420_vm0, %v419_v3, 0.0  ;;  %v424_v8 = vsel %vm420_vm0, %v418_v7, 0.0  ;;  %v2563_v13 = vpop.eup %2562  ;;  %v2237_v34 = vor.u32 %v2367_v32, %v2234_v33  ;;  %v2365_v39 = vld [vmem:[%s3607_s4 + $0x14] sm:$0xf] }
  0x13   : > { %422 = vadd.xlane.f32.xlu0 %v421_v5  ;;  %428 = vadd.xlane.f32.xlu1 %v427_v6  ;;  %v431_v16 = vmul.f32 64.0, %v2563_v13  ;;  %v2217_v38 = vor.u32 %v2364_v36, %v2216_v35  ;;  %vm435_vm1 = vweird.f32 %v2563_v13  ;;  %v2226_v40 = vld [vmem:[%s3607_s4 + $0x18] sm:$0xf0]  ;;  %v2363_v43 = vld [vmem:[%s3607_s4 + $0x4] sm:$0xf] }
  0x14   : > { %2393 = vmatpush.bf16.msra.mxu3 %v2233_v23  ;;  %535 = vmatpush.bf16.msra.mxu0 %v2233_v23  ;;  %v2229_v41 = vor.u32 %v2365_v39, %v2226_v40  ;;  %v2218_v44 = vld [vmem:[%s3607_s4 + $0x8] sm:$0xf0]  ;;  %v2559_v15 = vld [vmem:[%s3606_s3] ss:$0 sm:$0xff] }
  0x15   : > { %v432_v22 = vsub.f32 1.0, %v431_v16  ;;  %553 = vmatpush.bf16.msra.mxu1 %v2237_v34  ;;  %v2221_v45 = vor.u32 %v2363_v43, %v2218_v44 }
  0x17   : > { %v433_v29 = vmul.f32 %v2563_v13, %v432_v22 }
  0x18   : > { %2394 = vmatpush.bf16.msra.mxu3 %v2225_v30  ;;  %536 = vmatpush.bf16.msra.mxu0 %v2225_v30 }
  0x19   : > { %v434_v37 = vadd.f32 %v2563_v13, %v433_v29  ;;  %554 = vmatpush.bf16.msra.mxu1 %v2229_v41  ;;  %623 = vrot.lane.b32.xlu2 %v2795_v18, %s2655_s25 }
  0x1b   : > { %425 = vadd.xlane.f32.xlu0 %v424_v8  ;;  %v2853_v42 = vsel %vm435_vm1, %v2563_v13, %v434_v37 }
  0x1c   : > { %2395 = vmatpush.bf16.msra.mxu3 %v2217_v38  ;;  %537 = vmatpush.bf16.msra.mxu0 %v2217_v38 }
  0x1d   : > { %555 = vmatpush.bf16.msra.mxu1 %v2221_v45 }
  0x21   : > { %1014 = vrot.lane.b32.xlu2 %v2800_v19, %s2657_s23 }
  0x29   : > { %573 = vrot.lane.b32.xlu2 %v2768_v9, %s2658_s30 }
  0x2c   : > { %627 = vrot.lane.b32.xlu1 %v2768_v9, %s2655_s25 }
  0x2f   : > { %588 = vrot.lane.b32.xlu0 %v2780_v12, %s2655_s25 }
  0x31   : > { %569 = vrot.lane.b32.xlu2 %v2795_v18, %s2658_s30 }
  0x34   : > { %625 = vrot.lane.b32.xlu1 %v2775_v11, %s2655_s25 }
  0x37   : > { %586 = vrot.lane.b32.xlu0 %v2800_v19, %s2655_s25 }
  0x39   : > { %613 = vrot.lane.b32.xlu2 %v2800_v19, %s2658_s30 }
  0x3c   : > { %1051 = vrot.lane.b32.xlu1 %v2795_v18, %s2657_s23 }
  0x3f   : > { %1012 = vrot.lane.b32.xlu0 %v2827_v31, %s2657_s23 }
  0x41   : > { %1305 = vrot.lane.b32.xlu2 %v2795_v18, %s2659_s12 }
  0x44   : > { %615 = vrot.lane.b32.xlu1 %v2780_v12, %s2658_s30 }
  0x47   : > { %1053 = vrot.lane.b32.xlu0 %v2775_v11, %s2657_s23 }
  0x4c   : > { %1016 = vrot.lane.b32.xlu1 %v2780_v12, %s2657_s23 }
  0x4f   : > { %1055 = vrot.lane.b32.xlu0 %v2768_v9, %s2657_s23 }
  0x54   : > { %571 = vrot.lane.b32.xlu1 %v2775_v11, %s2658_s30 }
  0x57   : > { %611 = vrot.lane.b32.xlu0 %v2827_v31, %s2658_s30 }
  0x5c   : > { %1266 = vrot.lane.b32.xlu1 %v2827_v31, %s2659_s12 }
  0x5f   : > { %1268 = vrot.lane.b32.xlu0 %v2800_v19, %s2659_s12 }
  0x64   : > { %1307 = vrot.lane.b32.xlu1 %v2775_v11, %s2659_s12 }
  0x86   : > { %v423_v46 = vpop.xlane.xlu0 %422  ;;  %v429_v47 = vpop.xlane.xlu1 %428 }
  0x87   : > { %v437_v48 = vmul.f32 %v2853_v42, %v423_v46  ;;  %v439_v49 = vmul.f32 %v2853_v42, %v429_v47 }
  0x89   : > { %v440_v50 = vadd.f32 1e-06, %v437_v48  ;;  %v442_v51 = vadd.f32 1e-06, %v439_v49 }
  0x8b   : > { %2564 = vrsqrt.f32 %v440_v50  ;;  %vm469_vm2 = vweird.f32 %v442_v51  ;;  %vm449_vm6 = vweird.f32 %v440_v50 }
  0x8c   : > { %2566 = vrsqrt.f32 %v442_v51 }
  0x8e   : > { %v426_v52 = vpop.xlane.xlu0 %425 }
  0x8f   : > { %v438_v53 = vmul.f32 %v2853_v42, %v426_v52 }
  0x91   : > { %v2565_v54 = vpop.eup %2564  ;;  %v441_v55 = vadd.f32 1e-06, %v438_v53 }
  0x92   : > { %v2567_v56 = vpop.eup %2566  ;;  %v444_v57 = vmul.f32 %v2565_v54, %v440_v50  ;;  %vm450_vm5 = vweird.f32 %v2565_v54 }
  0x93   : > { %v464_v58 = vmul.f32 %v2567_v56, %v442_v51  ;;  %2568 = vrsqrt.f32 %v441_v55  ;;  %vm470_vm3 = vweird.f32 %v2567_v56  ;;  %vm451_vm7 = vmor %vm449_vm6, %vm450_vm5  ;;  %vm459_vm9 = vweird.f32 %v441_v55 }
  0x94   : > { %v445_v59 = vmul.f32 %v2565_v54, %v444_v57  ;;  %vm471_vm4 = vmor %vm469_vm2, %vm470_vm3 }
  0x95   : > { %v465_v60 = vmul.f32 %v2567_v56, %v464_v58 }
  0x96   : > { %v446_v61 = vmul.f32 0.5, %v445_v59 }
  0x97   : > { %v466_v62 = vmul.f32 0.5, %v465_v60 }
  0x98   : > { %v447_v63 = vsub.f32 1.5, %v446_v61 }
  0x99   : > { %v2569_v2 = vpop.eup %2568  ;;  %v467_v3 = vsub.f32 1.5, %v466_v62 }
  0x9a   : > { %v454_v5 = vmul.f32 %v2569_v2, %v441_v55  ;;  %v448_v7 = vmul.f32 %v2565_v54, %v447_v63  ;;  %vm460_vm8 = vweird.f32 %v2569_v2 }
  0x9b   : > { %v468_v6 = vmul.f32 %v2567_v56, %v467_v3  ;;  %vm461_vm10 = vmor %vm459_vm9, %vm460_vm8  ;;  %vm890_vm8 = vcmask 261120  }
  0x9c   : > { %v455_v8 = vmul.f32 %v2569_v2, %v454_v5  ;;  %v452_v20 = vsel %vm451_vm7, %v2565_v54, %v448_v7  ;;  %vm674_vm7 = vcmask 64512  }
  0x9d   : > { %v472_v10 = vsel %vm471_vm4, %v2567_v56, %v468_v6  ;;  %v473_v22 = vmul.f32 %v452_v20, %v2748_v0  ;;  %v585_v0 = vpop.permute.xlu2 %584 }
  0x9e   : > { %v456_v13 = vmul.f32 0.5, %v455_v8  ;;  %v475_v14 = vmul.f32 %v472_v10, %v2751_v1  ;;  %v628_v36 = vpop.permute.xlu1 %627 }
  0x9f   : > { %v479_v25 = vmul.f32 %v2559_v15, %v473_v22 }
  0xa0   : > { %v457_v16 = vsub.f32 1.5, %v456_v13  ;;  %v481_v17 = vmul.f32 %v2559_v15, %v475_v14 }
  0xa1   : > { %v589_v28 = vpop.permute.xlu0 %588 }
  0xa2   : > { %v458_v21 = vmul.f32 %v2569_v2, %v457_v16  ;;  %v483_v1 = vpack.c.bf16 %v481_v17, %v481_v17 }
  0xa4   : > { %2247 = vmatmul.msk.bf16.vlgmr.msra.gmra.mxu3 %vm420_vm0, %v483_v1  ;;  %v462_v23 = vsel %vm461_vm10, %v2569_v2, %v458_v21  ;;  %vm927_vm10 = vcmask 195584  }
  0xa5   : > { %v474_v24 = vmul.f32 %v462_v23, %v2758_v4  ;;  %v624_v37 = vpop.permute.xlu2 %623  ;;  %v2664_v23 = vmov 16.0  }
  0xa6   : > { %v2921_v44 = vpop.permute.xlu1 %625  ;;  %2570 = vrcp.f32 %v2664_v23 }
  0xa7   : > { %v480_v26 = vmul.f32 %v2559_v15, %v474_v24 }
  0xa9   : > { %v482_v27 = vpack.c.bf16 %v480_v26, %v479_v25  ;;  %v587_v39 = vpop.permute.xlu0 %586 }
  0xab   : > { %2246 = vmatmul.msk.bf16.vlgmr.msra.gmra.mxu0 %vm420_vm0, %v482_v27  ;;  %2248 = vmatmul.msk.bf16.vlgmr.msra.gmra.mxu1 %vm420_vm0, %v482_v27 }
  0xac   : > { %v2571_v27 = vpop.eup %2570 }
  0xad   : > { %v1015_v60 = vpop.permute.xlu2 %1014  ;;  %vm696_vm12 = vweird.f32 %v2571_v27 }
  0xae   : > { %v1052_v55 = vpop.permute.xlu1 %1051 }
  0xb1   : > { %v2947_v54 = vpop.permute.xlu0 %1012 }
  0xb5   : > { %v2987_v20 = vpop.permute.xlu2 %573 }
  0xb6   : > { %v2958_v59 = vpop.permute.xlu1 %615 }
  0xb9   : > { %v2956_v58 = vpop.permute.xlu0 %1053 }
  0xbb   : > { %2249 = vmatmul.msk.bf16.gmra.mxu1 %vm420_vm0, %v483_v1 }
  0xbd   : > { %v2996_v24 = vpop.permute.xlu2 %569 }
  0xbe   : > { %v1017_v2 = vpop.permute.xlu1 %1016 }
  0xc1   : > { %v1056_v62 = vpop.permute.xlu0 %1055 }
  0xc6   : > { %v2972_v8 = vpop.permute.xlu1 %571 }
  0xc9   : > { %v612_v6 = vpop.permute.xlu0 %611 }
  0xce   : > { %v1267_v13 = vpop.permute.xlu1 %1266 }
  0xd1   : > { %v1269_v10 = vpop.permute.xlu0 %1268 }
  0xd6   : > { %v1308_v16 = vpop.permute.xlu1 %1307 }
 0x127   : > { %v2902_v29 = vpop.f32.mrf.mxu3 }
 0x128   : > { %v2904_v4 = vpop.f32.mrf.mxu0  ;;  %v2906_v30 = vpop.f32.mrf.mxu1  ;;  %v813_v57 = vmul.f32 %v628_v36, %v2902_v29  ;;  %v792_v3 = vmul.f32 %v589_v28, %v2902_v29  ;;  %v1062_v5 = vmul.f32 %v1056_v62, %v2902_v29  ;;  %v1023_v7 = vmul.f32 %v1017_v2, %v2902_v29 }
 0x129   : > { %v593_v32 = vmul.f32 %v585_v0, %v2906_v30  ;;  %v790_v33 = vmul.f32 %v585_v0, %v2904_v4  ;;  %v678_v34 = vmul.f32 %v2906_v30, %v2906_v30  ;;  %v811_v41 = vmul.f32 %v624_v37, %v2904_v4 }
 0x12a   : > { %v632_v49 = vmul.f32 %v624_v37, %v2906_v30  ;;  %v1060_v56 = vmul.f32 %v1052_v55, %v2904_v4  ;;  %v1275_v15 = vmul.f32 %v1267_v13, %v2904_v4  ;;  %v808_v25 = vmul.f32 %v612_v6, %v2904_v4 }
 0x12b   : > { %599 = vrot.lane.b32.xlu0 %v593_v32, %s2660_s15  ;;  %796 = vrot.lane.b32.xlu2 %v790_v33, %s2660_s15  ;;  %v682_v35 = vsel %vm681_vm11, %v678_v34, 0.0  ;;  %v3005_v32 = vpop.permute.xlu2 %613 }
 0x12c   : > { %683 = vadd.xlane.f32.xlu1 %v682_v35 }
 0x12f   : > { %v546_v38 = vpop.f32.mrf.mxu3 }
 0x130   : > { %v2915_v40 = vpop.f32.mrf.mxu1  ;;  %v2932_v50 = vpop.f32.mrf.mxu0 }
 0x131   : > { %v594_v43 = vmul.f32 %v587_v39, %v2915_v40  ;;  %v633_v46 = vmul.f32 %v2921_v44, %v2915_v40  ;;  %v791_v51 = vmul.f32 %v587_v39, %v2932_v50  ;;  %v679_v52 = vmul.f32 %v2915_v40, %v2915_v40 }
 0x132   : > { %v1022_v61 = vmul.f32 %v1015_v60, %v2932_v50  ;;  %v1276_v14 = vmul.f32 %v1269_v10, %v2932_v50  ;;  %v1315_v17 = vmul.f32 %v1308_v16, %v2932_v50  ;;  %v621_v33 = vmul.f32 %v3005_v32, %v2915_v40 }
 0x133   : > { %817 = vrot.lane.b32.xlu0 %v811_v41, %s2660_s15  ;;  %601 = vrot.lane.b32.xlu2 %v594_v43, %s2660_s15  ;;  %v685_v53 = vsel %vm681_vm11, %v679_v52, 0.0  ;;  %v578_v41 = vmul.f32 %v2996_v24, %v2906_v30  ;;  %v620_v52 = vmul.f32 %v612_v6, %v2906_v30  ;;  %v1021_v6 = vmul.f32 %v2947_v54, %v2904_v4 }
 0x138   : > { %v2923_v45 = vpop.f32.mrf.mxu1 }
 0x139   : > { %v595_v48 = vmul.f32 %v589_v28, %v2923_v45  ;;  %v634_v63 = vmul.f32 %v628_v36, %v2923_v45  ;;  %v680_v21 = vmul.f32 %v2923_v45, %v2923_v45  ;;  %v692_v28 = vmul.f32 16.0, %v2571_v27 }
 0x13a   : > { %v580_v43 = vmul.f32 %v2987_v20, %v2923_v45 }
 0x13b   : > { %640 = vrot.lane.b32.xlu0 %v633_v46, %s2660_s15  ;;  %v688_v1 = vsel %vm681_vm11, %v680_v21, 0.0  ;;  %v693_v34 = vsub.f32 1.0, %v692_v28  ;;  %v3019_v46 = vpop.permute.xlu2 %1305 }
 0x13d   : > { %v694_v39 = vmul.f32 %v2571_v27, %v693_v34 }
 0x140   : > { %v564_v47 = vpop.f32.mrf.mxu1 }
 0x141   : > { %v695_v47 = vadd.f32 %v2571_v27, %v694_v39 }
 0x143   : > { %603 = vrot.lane.b32.xlu0 %v595_v48, %s2660_s15  ;;  %v3025_v55 = vsel %vm696_vm12, %v2571_v27, %v695_v47 }
 0x145   : > { %638 = vrot.lane.b32.xlu1 %v632_v49, %s2660_s15 }
 0x14b   : > { %1516 = vrot.lane.b32.xlu0 %v2800_v19, %s2660_s15 }
 0x14d   : > { %798 = vrot.lane.b32.xlu1 %v791_v51, %s2660_s15 }
 0x153   : > { %1000 = vrot.lane.b32.xlu0 %v2795_v18, %s2661_s16 }
 0x155   : > { %1514 = vrot.lane.b32.xlu1 %v2827_v31, %s2660_s15 }
 0x15b   : > { %1041 = vrot.lane.b32.xlu0 %v2800_v19, %s2661_s16 }
 0x15c   : > { %686 = vadd.xlane.f32.xlu2 %v685_v53 }
 0x15d   : > { %1555 = vrot.lane.b32.xlu1 %v2775_v11, %s2660_s15 }
 0x163   : > { %1066 = vrot.lane.b32.xlu0 %v1060_v56, %s2660_s15 }
 0x165   : > { %1039 = vrot.lane.b32.xlu1 %v2827_v31, %s2661_s16 }
 0x16b   : > { %821 = vrot.lane.b32.xlu0 %v813_v57, %s2660_s15 }
 0x16d   : > { %1029 = vrot.lane.b32.xlu1 %v1022_v61, %s2660_s15 }
 0x173   : > { %1004 = vrot.lane.b32.xlu0 %v2768_v9, %s2661_s16 }
 0x174   : > { %642 = vrot.lane.b32.xlu2 %v634_v63, %s2660_s15 }
 0x175   : > { %800 = vrot.lane.b32.xlu1 %v792_v3, %s2660_s15 }
 0x17b   : > { %1070 = vrot.lane.b32.xlu0 %v1062_v5, %s2660_s15  ;;  %v2371_v5 = vld [vmem:[%s3609_s6] sm:$0xff] }
 0x17c   : > { %764 = vmatpush.bf16.msra.mxu2 %v2371_v5 }
 0x17d   : > { %1031 = vrot.lane.b32.xlu1 %v1023_v7, %s2660_s15 }
 0x183   : > { %1293 = vrot.lane.b32.xlu0 %v2827_v31, %s2662_s20 }
 0x185   : > { %1256 = vrot.lane.b32.xlu1 %v2775_v11, %s2662_s20  ;;  %v3030_v60 = vpop.permute.xlu2 %796 }
 0x18b   : > { %1283 = vrot.lane.b32.xlu0 %v1276_v14, %s2660_s15 }
 0x18d   : > { %1281 = vrot.lane.b32.xlu1 %v1275_v15, %s2660_s15  ;;  %v3038_v2 = vpop.permute.xlu2 %601 }
 0x193   : > { %1309 = vrot.lane.b32.xlu0 %v2768_v9, %s2659_s12 }
 0x195   : > { %1322 = vrot.lane.b32.xlu1 %v1315_v17, %s2660_s15  ;;  %v1061_v17 = vmul.f32 %v2956_v58, %v2932_v50 }
 0x19b   : > { %1502 = vrot.lane.b32.xlu0 %v2795_v18, %s2663_s21 }
 0x19d   : > { %689 = vadd.xlane.f32.xlu2 %v688_v1  ;;  %v600_v22 = vpop.permute.xlu0 %599  ;;  %1270 = vrot.lane.b32.xlu1 %v2780_v12, %s2659_s12 }
 0x19e   : > { %v608_v49 = vsub.f32 %v578_v41, %v600_v22 }
 0x19f   : > { %v684_v37 = vpop.xlane.xlu1 %683 }
 0x1a0   : > { %v698_v57 = vmul.f32 %v3025_v55, %v684_v37 }
 0x1a2   : > { %v701_v63 = vadd.f32 1e-06, %v698_v57 }
 0x1a3   : > { %1543 = vrot.lane.b32.xlu0 %v2800_v19, %s2663_s21 }
 0x1a4   : > { %2572 = vrsqrt.f32 %v701_v63  ;;  %vm710_vm14 = vweird.f32 %v701_v63 }
 0x1a5   : > { %v818_v26 = vpop.permute.xlu0 %817  ;;  %1541 = vrot.lane.b32.xlu1 %v2827_v31, %s2663_s21  ;;  %v812_v31 = vmul.f32 %v2921_v44, %v2932_v50 }
 0x1a6   : > { %v3003_v0 = vadd.f32 %v818_v26, %v808_v25 }
 0x1aa   : > { %v2573_v3 = vpop.eup %2572 }
 0x1ab   : > { %v705_v7 = vmul.f32 %v2573_v3, %v701_v63  ;;  %vm711_vm13 = vweird.f32 %v2573_v3 }
 0x1ac   : > { %vm712_vm15 = vmor %vm710_vm14, %vm711_vm13  ;;  %vm978_vm14 = vcmask 1043456  }
 0x1ad   : > { %v641_v35 = vpop.permute.xlu0 %640  ;;  %v706_v14 = vmul.f32 %v2573_v3, %v705_v7 }
 0x1ae   : > { %v3009_v36 = vadd.f32 %v641_v35, %v621_v33  ;;  %v3056_v35 = vld [vmem:[%s3608_s5] ss:$0 sm:$0xff] }
 0x1af   : > { %v707_v21 = vmul.f32 0.5, %v706_v14 }
 0x1b0   : > { %v2424_v38 = vpack.i.bf16 %v3003_v0, %v3009_v36  ;;  %v810_v0 = vmul.f32 %v2958_v59, %v2902_v29  ;;  %v809_v36 = vmul.f32 %v3005_v32, %v2932_v50 }
 0x1b1   : > { %v708_v1 = vsub.f32 1.5, %v707_v21 }
 0x1b3   : > { %v709_v25 = vmul.f32 %v2573_v3, %v708_v1 }
 0x1b5   : > { %819 = vrot.lane.b32.xlu2 %v812_v31, %s2660_s15  ;;  %v604_v48 = vpop.permute.xlu0 %603  ;;  %v713_v28 = vsel %vm712_vm15, %v2573_v3, %v709_v25  ;;  %vm1792_vm15 = vcmask 392192  }
 0x1b6   : > { %v610_v51 = vsub.f32 %v580_v43, %v604_v48  ;;  %v734_v34 = vmul.f32 %v713_v28, %v2906_v30  ;;  %v1314_v48 = vmul.f32 %v3019_v46, %v2904_v4  ;;  %v789_v46 = vmul.f32 %v2987_v20, %v2902_v29 }
 0x1b7   : > { %v639_v44 = vpop.permute.xlu1 %638  ;;  %v787_v28 = vmul.f32 %v2996_v24, %v2904_v4 }
 0x1b8   : > { %v3023_v53 = vpack.i.bf16 %v608_v49, %v610_v51  ;;  %v3027_v56 = vadd.f32 %v639_v44, %v620_v52  ;;  %v740_v41 = vmul.f32 %v3056_v35, %v734_v34 }
 0x1bd   : > { %1553 = vrot.lane.b32.xlu2 %v2795_v18, %s2660_s15  ;;  %v1517_v61 = vpop.permute.xlu0 %1516 }
 0x1be   : > { %v1524_v62 = vmul.f32 %v1517_v61, %v2932_v50 }
 0x1bf   : > { %v799_v15 = vpop.permute.xlu1 %798 }
 0x1c0   : > { %1531 = vrot.lane.b32.xlu1 %v1524_v62, %s2660_s15 }
 0x1c5   : > { %1002 = vrot.lane.b32.xlu2 %v2775_v11, %s2661_s16 }
 0x1c7   : > { %v1515_v23 = vpop.permute.xlu1 %1514 }
 0x1c8   : > { %v1523_v52 = vmul.f32 %v1515_v23, %v2904_v4 }
 0x1cd   : > { %1027 = vrot.lane.b32.xlu2 %v1021_v6, %s2660_s15 }
 0x1cf   : > { %v687_v10 = vpop.xlane.xlu2 %686  ;;  %v1556_v39 = vpop.permute.xlu1 %1555 }
 0x1d0   : > { %v699_v13 = vmul.f32 %v3025_v55, %v687_v10 }
 0x1d2   : > { %v702_v16 = vadd.f32 1e-06, %v699_v13 }
 0x1d4   : > { %2574 = vrsqrt.f32 %v702_v16  ;;  %vm720_vm2 = vweird.f32 %v702_v16 }
 0x1d5   : > { %1068 = vrot.lane.b32.xlu2 %v1061_v17, %s2660_s15  ;;  %v622_v17 = vmul.f32 %v2958_v59, %v2923_v45 }
 0x1d7   : > { %v3066_v30 = vpop.permute.xlu1 %1039 }
 0x1da   : > { %v2575_v22 = vpop.eup %2574 }
 0x1db   : > { %v715_v54 = vmul.f32 %v2575_v22, %v702_v16  ;;  %vm721_vm1 = vweird.f32 %v2575_v22 }
 0x1dc   : > { %vm722_vm3 = vmor %vm720_vm2, %vm721_vm1 }
 0x1dd   : > { %v716_v26 = vmul.f32 %v2575_v22, %v715_v54  ;;  %1043 = vrot.lane.b32.xlu2 %v2780_v12, %s2661_s16 }
 0x1df   : > { %v717_v27 = vmul.f32 0.5, %v716_v26  ;;  %v3073_v49 = vpop.permute.xlu1 %1029  ;;  %v579_v26 = vmul.f32 %v2972_v8, %v2915_v40 }
 0x1e1   : > { %v718_v33 = vsub.f32 1.5, %v717_v27  ;;  %v1563_v27 = vmul.f32 %v1556_v39, %v2932_v50 }
 0x1e3   : > { %v719_v58 = vmul.f32 %v2575_v22, %v718_v33  ;;  %v609_v33 = vsub.f32 %v579_v26, %v3038_v2 }
 0x1e5   : > { %v723_v37 = vsel %vm722_vm3, %v2575_v22, %v719_v58  ;;  %1254 = vrot.lane.b32.xlu2 %v2795_v18, %s2662_s20  ;;  %v3071_v18 = vpop.permute.xlu0 %1000 }
 0x1e6   : > { %v735_v31 = vmul.f32 %v723_v37, %v2915_v40  ;;  %v805_v40 = vsub.f32 %v787_v28, %v3030_v60  ;;  %v1009_v60 = vmul.f32 %v3071_v18, %v2904_v4 }
 0x1e7   : > { %v801_v44 = vpop.permute.xlu1 %800 }
 0x1e8   : > { %v741_v43 = vmul.f32 %v3056_v35, %v735_v31  ;;  %v807_v62 = vsub.f32 %v789_v46, %v801_v44  ;;  %v2419_v34 = vpack.i.bf16 %v805_v40, %v609_v33 }
 0x1ea   : > { %v743_v47 = vpack.c.bf16 %v741_v43, %v740_v41 }
 0x1ec   : > { %2254 = vmatmul.msk.bf16.vlgmr.msra.gmra.mxu2 %vm681_vm11, %v743_v47 }
 0x1ed   : > { %1295 = vrot.lane.b32.xlu2 %v2800_v19, %s2662_s20  ;;  %v3077_v51 = vpop.permute.xlu0 %1041  ;;  %v643_v19 = vpop.permute.xlu2 %642 }
 0x1ee   : > { %v649_v1 = vadd.f32 %v643_v19, %v622_v17  ;;  %v1049_v44 = vmul.f32 %v3077_v51, %v2932_v50 }
 0x1ef   : > { %v3089_v61 = vpop.permute.xlu1 %1031 }
 0x1f0   : > { %v2444_v59 = vpack.i.bf16 %v3027_v56, %v649_v1 }
 0x1f5   : > { %1320 = vrot.lane.b32.xlu2 %v1314_v48, %s2660_s15  ;;  %v3081_v57 = vpop.permute.xlu0 %1066  ;;  %v1048_v48 = vmul.f32 %v3066_v30, %v2904_v4 }
 0x1f7   : > { %v1075_v18 = vadd.f32 %v3081_v57, %v1048_v48 }
 0x1fd   : > { %1504 = vrot.lane.b32.xlu2 %v2775_v11, %s2663_s21  ;;  %v788_v11 = vmul.f32 %v2972_v8, %v2932_v50  ;;  %v822_v20 = vpop.permute.xlu0 %821 }
 0x1fe   : > { %v828_v13 = vadd.f32 %v822_v20, %v810_v0 }
 0x1ff   : > { %v806_v3 = vsub.f32 %v788_v11, %v799_v15 }
 0x201   : > { %v2429_v6 = vpack.i.bf16 %v807_v62, %v806_v3 }
 0x205   : > { %1529 = vrot.lane.b32.xlu2 %v1523_v52, %s2660_s15  ;;  %v1005_v39 = vpop.permute.xlu0 %1004 }
 0x20d   : > { %2425 = vrot.lane.b32.xlu2 %v2424_v38, %s2660_s15  ;;  %v3099_v38 = vpop.permute.xlu1 %1256  ;;  %v1071_v47 = vpop.permute.xlu0 %1070 }
 0x210   : > { %v690_v63 = vpop.xlane.xlu2 %689 }
 0x211   : > { %v700_v5 = vmul.f32 %v3025_v55, %v690_v63 }
 0x213   : > { %v703_v7 = vadd.f32 1e-06, %v700_v5 }
 0x215   : > { %2576 = vrsqrt.f32 %v703_v7  ;;  %2430 = vrot.lane.b32.xlu2 %v2429_v6, %s2663_s21  ;;  %v1282_v23 = vpop.permute.xlu1 %1281  ;;  %vm730_vm5 = vweird.f32 %v703_v7  ;;  %v1294_v30 = vpop.permute.xlu0 %1293 }
 0x218   : > { %v820_v10 = vpop.permute.xlu2 %819 }
 0x219   : > { %v827_v14 = vadd.f32 %v820_v10, %v809_v36 }
 0x21b   : > { %v2577_v15 = vpop.eup %2576  ;;  %v2434_v16 = vpack.i.bf16 %v828_v13, %v827_v14  ;;  %v1302_v14 = vmul.f32 %v1294_v30, %v2904_v4 }
 0x21c   : > { %v725_v55 = vmul.f32 %v2577_v15, %v703_v7  ;;  %vm731_vm4 = vweird.f32 %v2577_v15  ;;  %v1264_v7 = vmul.f32 %v3099_v38, %v2932_v50 }
 0x21d   : > { %2440 = vrot.lane.b32.xlu2 %v3023_v53, %s2663_s21  ;;  %2435 = vrot.lane.b32.xlu1 %v2434_v16, %s2660_s15  ;;  %vm732_vm6 = vmor %vm730_vm5, %vm731_vm4  ;;  %v1323_v31 = vpop.permute.xlu1 %1322  ;;  %v1284_v57 = vpop.permute.xlu0 %1283 }
 0x21e   : > { %v726_v21 = vmul.f32 %v2577_v15, %v725_v55  ;;  %v1291_v20 = vsub.f32 %v1264_v7, %v1284_v57 }
 0x220   : > { %v727_v22 = vmul.f32 0.5, %v726_v21  ;;  %v1554_v32 = vpop.permute.xlu2 %1553 }
 0x221   : > { %v1562_v54 = vmul.f32 %v1554_v32, %v2904_v4 }
 0x222   : > { %v728_v25 = vsub.f32 1.5, %v727_v22 }
 0x223   : > { %1568 = vrot.lane.b32.xlu0 %v1562_v54, %s2660_s15 }
 0x224   : > { %v729_v53 = vmul.f32 %v2577_v15, %v728_v25 }
 0x225   : > { %1570 = vrot.lane.b32.xlu2 %v1563_v27, %s2660_s15  ;;  %2445 = vrot.lane.b32.xlu1 %v2444_v59, %s2660_s15  ;;  %v1271_v52 = vpop.permute.xlu1 %1270  ;;  %v1310_v17 = vpop.permute.xlu0 %1309 }
 0x226   : > { %v733_v58 = vsel %vm732_vm6, %v2577_v15, %v729_v53  ;;  %v1277_v46 = vmul.f32 %v1271_v52, %v2902_v29  ;;  %v1316_v21 = vmul.f32 %v1310_v17, %v2902_v29 }
 0x227   : > { %v736_v8 = vmul.f32 %v733_v58, %v2923_v45 }
 0x228   : > { %v1003_v56 = vpop.permute.xlu2 %1002 }
 0x229   : > { %v742_v37 = vmul.f32 %v3056_v35, %v736_v8  ;;  %v1010_v2 = vmul.f32 %v1003_v56, %v2932_v50 }
 0x22b   : > { %2420 = vrot.lane.b32.xlu0 %v2419_v34, %s2663_s21  ;;  %v744_v24 = vpack.c.bf16 %v742_v37, %v742_v37  ;;  %v1037_v41 = vsub.f32 %v1010_v2, %v3073_v49  ;;  %v1011_v49 = vmul.f32 %v1005_v39, %v2902_v29 }
 0x22d   : > { %2255 = vmatmul.msk.bf16.gmra.mxu2 %vm681_vm11, %v744_v24  ;;  %1518 = vrot.lane.b32.xlu1 %v2780_v12, %s2660_s15  ;;  %v1038_v62 = vsub.f32 %v1011_v49, %v3089_v61  ;;  %v1503_v25 = vpop.permute.xlu0 %1502 }
 0x22e   : > { %v1511_v39 = vmul.f32 %v1503_v25, %v2904_v4  ;;  %v2504_v25 = vpack.i.bf16 %v2902_v29, %v2932_v50 }
 0x230   : > { %v1028_v45 = vpop.permute.xlu2 %1027 }
 0x231   : > { %v1036_v43 = vsub.f32 %v1009_v60, %v1028_v45 }
 0x233   : > { %v2449_v35 = vpack.i.bf16 %v1037_v41, %v1036_v43  ;;  %1557 = vrot.lane.b32.xlu0 %v2768_v9, %s2660_s15 }
 0x235   : > { %2450 = vrot.lane.b32.xlu2 %v2449_v35, %s2662_s20  ;;  %v1544_v59 = vpop.permute.xlu0 %1543 }
 0x236   : > { %v1551_v33 = vmul.f32 %v1544_v59, %v2932_v50 }
 0x238   : > { %v1069_v19 = vpop.permute.xlu2 %1068 }
 0x239   : > { %v1076_v11 = vadd.f32 %v1069_v19, %v1049_v44 }
 0x23b   : > { %v2454_v63 = vpack.i.bf16 %v1076_v11, %v1075_v18  ;;  %1285 = vrot.lane.b32.xlu0 %v1277_v46, %s2660_s15 }
 0x23d   : > { %2455 = vrot.lane.b32.xlu1 %v2454_v63, %s2659_s12  ;;  %1085 = vrot.lane.b32.xlu2 %v1038_v62, %s2662_s20 }
 0x240   : > { %v1044_v3 = vpop.permute.xlu2 %1043 }
 0x241   : > { %v1050_v51 = vmul.f32 %v1044_v3, %v2902_v29 }
 0x243   : > { %v1077_v5 = vadd.f32 %v1071_v47, %v1050_v51 }
 0x245   : > { %1097 = vrot.lane.b32.xlu1 %v1077_v5, %s2659_s12  ;;  %s2666_s12 = smov 64  }
 0x248   : > { %v1255_v6 = vpop.permute.xlu2 %1254 }
 0x249   : > { %v1263_v61 = vmul.f32 %v1255_v6, %v2904_v4 }
 0x24b   : > { %v1290_v0 = vsub.f32 %v1263_v61, %v1282_v23  ;;  %v1542_v23 = vpop.permute.xlu1 %1541 }
 0x24c   : > { %v1550_v58 = vmul.f32 %v1542_v23, %v2904_v4 }
 0x24d   : > { %v2459_v36 = vpack.i.bf16 %v1291_v20, %v1290_v0 }
 0x24f   : > { %2460 = vrot.lane.b32.xlu2 %v2459_v36, %s2661_s16 }
 0x250   : > { %v1296_v10 = vpop.permute.xlu2 %1295 }
 0x251   : > { %v1303_v13 = vmul.f32 %v1296_v10, %v2932_v50 }
 0x253   : > { %v1330_v16 = vadd.f32 %v1323_v31, %v1303_v13  ;;  %v1532_v26 = vpop.permute.xlu1 %1531 }
 0x257   : > { %1258 = vrot.lane.b32.xlu2 %v2768_v9, %s2662_s20 }
 0x258   : > { %v1321_v15 = vpop.permute.xlu2 %1320 }
 0x259   : > { %v1329_v55 = vadd.f32 %v1321_v15, %v1302_v14 }
 0x25b   : > { %v2464_v38 = vpack.i.bf16 %v1330_v16, %v1329_v55 }
 0x25d   : > { %2465 = vrot.lane.b32.xlu1 %v2464_v38, %s2657_s23 }
 0x25f   : > { %1324 = vrot.lane.b32.xlu2 %v1316_v21, %s2660_s15 }
 0x260   : > { %v1505_v1 = vpop.permute.xlu2 %1504 }
 0x261   : > { %v1512_v6 = vmul.f32 %v1505_v1, %v2932_v50 }
 0x263   : > { %v1539_v16 = vsub.f32 %v1512_v6, %v1532_v26 }
 0x265   : > { %1297 = vrot.lane.b32.xlu1 %v2780_v12, %s2662_s20 }
 0x268   : > { %v1530_v22 = vpop.permute.xlu2 %1529 }
 0x269   : > { %v1538_v2 = vsub.f32 %v1511_v39, %v1530_v22 }
 0x26f   : > { %v3162_v41 = vpop.f32.mrf.mxu2 }
 0x270   : > { %v2426_v32 = vpop.permute.xlu2 %2425 }
 0x271   : > { %v2428_v43 = vunpack.i.h.bf16 %v2426_v32  ;;  %v2427_v35 = vunpack.i.l.bf16 %v2426_v32 }
 0x277   : > { %v3170_v51 = vpop.f32.mrf.mxu2 }
 0x278   : > { %v2431_v54 = vpop.permute.xlu2 %2430  ;;  %v2494_v55 = vpack.i.bf16 %v2904_v4, %v3170_v51 }
 0x279   : > { %v2432_v24 = vunpack.i.l.bf16 %v2431_v54  ;;  %v2433_v20 = vunpack.i.h.bf16 %v2431_v54 }
 0x280   : > { %v2441_v27 = vpop.permute.xlu2 %2440 }
 0x281   : > { %v2443_v11 = vunpack.i.h.bf16 %v2441_v27  ;;  %v2442_v62 = vunpack.i.l.bf16 %v2441_v27 }
 0x288   : > { %v1571_v28 = vpop.permute.xlu2 %1570 }
 0x289   : > { %v1578_v8 = vadd.f32 %v1571_v28, %v1551_v33 }
 0x28f   : > { %v2436_v53 = vpop.permute.xlu1 %2435 }
 0x290   : > { %v2437_v37 = vunpack.i.l.bf16 %v2436_v53  ;;  %v2451_v7 = vpop.permute.xlu2 %2450  ;;  %v2438_v61 = vunpack.i.h.bf16 %v2436_v53 }
 0x291   : > { %v2453_v36 = vunpack.i.h.bf16 %v2451_v7  ;;  %v2452_v10 = vunpack.i.l.bf16 %v2451_v7 }
 0x292   : > { %v854_v45 = vsel %vm674_vm7, %v2432_v24, %v2437_v37  ;;  %v855_v38 = vsel %vm674_vm7, %v2433_v20, %v2438_v61 }
 0x293   : > { %v2484_v52 = vpack.i.bf16 %v1538_v2, %v854_v45 }
 0x295   : > { %v1569_v40 = vpop.permute.xlu0 %1568 }
 0x296   : > { %v1577_v56 = vadd.f32 %v1569_v40, %v1550_v58 }
 0x297   : > { %v2446_v31 = vpop.permute.xlu1 %2445 }
 0x298   : > { %v2469_v34 = vpack.i.bf16 %v1578_v8, %v1577_v56  ;;  %v2448_v49 = vunpack.i.h.bf16 %v2446_v31  ;;  %v2447_v46 = vunpack.i.l.bf16 %v2446_v31  ;;  %v1086_v23 = vpop.permute.xlu2 %1085 }
 0x29a   : > { %2470 = vrot.lane.b32.xlu1 %v2469_v34, %s2655_s25  ;;  %v675_v30 = vsel %vm674_vm7, %v2443_v11, %v2448_v49  ;;  %v677_v3 = vsel %vm674_vm7, %v2442_v62, %v2447_v46 }
 0x29b   : > { %v2489_v57 = vpack.i.bf16 %v675_v30, %v677_v3 }
 0x29d   : > { %v2421_v60 = vpop.permute.xlu0 %2420 }
 0x29e   : > { %v2423_v47 = vunpack.i.h.bf16 %v2421_v60  ;;  %v2422_v48 = vunpack.i.l.bf16 %v2421_v60 }
 0x29f   : > { %v1519_v63 = vpop.permute.xlu1 %1518 }
 0x2a0   : > { %v676_v44 = vsel %vm674_vm7, %v2422_v48, %v2427_v35  ;;  %v853_v19 = vsel %vm674_vm7, %v2423_v47, %v2428_v43  ;;  %v1525_v5 = vmul.f32 %v1519_v63, %v2902_v29 }
 0x2a1   : > { %v2479_v18 = vpack.i.bf16 %v853_v19, %v676_v44 }
 0x2a2   : > { %2485 = vrot.lane.b32.xlu1 %v2484_v52, %s2658_s30 }
 0x2a3   : > { %2480 = vrot.lane.b32.xlu0 %v2479_v18, %s2658_s30 }
 0x2a5   : > { %v1558_v26 = vpop.permute.xlu0 %1557 }
 0x2a6   : > { %v1564_v59 = vmul.f32 %v1558_v26, %v2902_v29 }
 0x2a9   : > { %v2461_v53 = vpop.permute.xlu2 %2460 }
 0x2aa   : > { %1533 = vrot.lane.b32.xlu1 %v1525_v5, %s2660_s15  ;;  %v2463_v37 = vunpack.i.h.bf16 %v2461_v53 }
 0x2ab   : > { %2490 = vrot.lane.b32.xlu0 %v2489_v57, %s2658_s30 }
 0x2ad   : > { %v1286_v39 = vpop.permute.xlu0 %1285 }
 0x2af   : > { %v2456_v0 = vpop.permute.xlu1 %2455 }
 0x2b0   : > { %v2458_v13 = vunpack.i.h.bf16 %v2456_v0  ;;  %v2457_v14 = vunpack.i.l.bf16 %v2456_v0  ;;  %v3176_v15 = vpop.f32.mrf.mxu2 }
 0x2b1   : > { %v2499_v54 = vpack.i.bf16 %v3162_v41, %v3176_v15  ;;  %v1259_v8 = vpop.permute.xlu2 %1258 }
 0x2b2   : > { %v1102_v17 = vsel %vm674_vm7, %v2452_v10, %v2457_v14  ;;  %v1103_v21 = vsel %vm674_vm7, %v2453_v36, %v2458_v13  ;;  %v1265_v56 = vmul.f32 %v1259_v8, %v2902_v29 }
 0x2b3   : > { %2495 = vrot.lane.b32.xlu0 %v2494_v55, %s2665_s29  ;;  %v2474_v1 = vpack.i.bf16 %v1102_v17, %v1539_v16  ;;  %v2509_v22 = vpack.i.bf16 %v855_v38, %v1103_v21 }
 0x2b4   : > { %v1292_v24 = vsub.f32 %v1265_v56, %v1286_v39 }
 0x2b5   : > { %2475 = vrot.lane.b32.xlu2 %v2474_v1, %s2658_s30  ;;  %2510 = vrot.lane.b32.xlu1 %v2509_v22, %s2658_s30 }
 0x2b7   : > { %v1098_v27 = vpop.permute.xlu1 %1097 }
 0x2b8   : > { %v773_v32 = vpop.f32.mrf.mxu2  ;;  %v1104_v58 = vsel %vm674_vm7, %v1086_v23, %v1098_v27 }
 0x2b9   : > { %v1325_v45 = vpop.permute.xlu2 %1324 }
 0x2bb   : > { %2500 = vrot.lane.b32.xlu0 %v2499_v54, %s2665_s29 }
 0x2bd   : > { %1545 = vrot.lane.b32.xlu2 %v2780_v12, %s2663_s21  ;;  %v2462_v12 = vunpack.i.l.bf16 %v2461_v53 }
 0x2c3   : > { %1506 = vrot.lane.b32.xlu0 %v2768_v9, %s2663_s21 }
 0x2c5   : > { %2505 = vrot.lane.b32.xlu2 %v2504_v25, %s2665_s29  ;;  %s386_s29 = scalar_lea.vmem %s3614_s11, %s2396_s19 }
 0x2cb   : > { %1572 = vrot.lane.b32.xlu0 %v1564_v59, %s2660_s15 }
 0x2cd   : > { %2520 = vrot.lane.b32.xlu2 %v2494_v55, %s2666_s12 }
 0x2cf   : > { %v2466_v28 = vpop.permute.xlu1 %2465 }
 0x2d0   : > { %v2467_v33 = vunpack.i.l.bf16 %v2466_v28  ;;  %v2468_v34 = vunpack.i.h.bf16 %v2466_v28 }
 0x2d2   : > { %v1356_v9 = vsel %vm674_vm7, %v2462_v12, %v2467_v33  ;;  %v1357_v2 = vsel %vm674_vm7, %v2463_v37, %v2468_v34 }
 0x2d3   : > { %2515 = vrot.lane.b32.xlu0 %v2499_v54, %s2666_s12  ;;  %v2524_v40 = vpack.i.bf16 %v1356_v9, %v1104_v58 }
 0x2d5   : > { %1361 = vrot.lane.b32.xlu2 %v2932_v50, %s2666_s12  ;;  %2525 = vrot.lane.b32.xlu1 %v2524_v40, %s2658_s30 }
 0x2d7   : > { %v1298_v31 = vpop.permute.xlu1 %1297 }
 0x2d8   : > { %v1304_v60 = vmul.f32 %v1298_v31, %v2902_v29 }
 0x2da   : > { %v1331_v43 = vadd.f32 %v1325_v45, %v1304_v60 }
 0x2db   : > { %2530 = vrot.lane.b32.xlu0 %v2499_v54, %s2667_s13 }
 0x2dd   : > { %1373 = vrot.lane.b32.xlu1 %v1357_v2, %s2658_s30  ;;  %1339 = vrot.lane.b32.xlu2 %v1292_v24, %s2661_s16 }
 0x2e3   : > { %2535 = vrot.lane.b32.xlu0 %v2494_v55, %s2667_s13 }
 0x2e5   : > { %1351 = vrot.lane.b32.xlu1 %v1331_v43, %s2657_s23 }
 0x2eb   : > { %1609 = vrot.lane.b32.xlu0 %v2932_v50, %s2667_s13 }
 0x30c   : > { %v2471_v35 = vpop.permute.xlu1 %2470 }
 0x30d   : > { %v2473_v44 = vunpack.i.h.bf16 %v2471_v35  ;;  %v2472_v19 = vunpack.i.l.bf16 %v2471_v35 }
 0x30f   : > { %v3212_v47 = vpop.permute.xlu2 %2475 }
 0x310   : > { %v2477_v48 = vunpack.i.l.bf16 %v3212_v47  ;;  %v2478_v39 = vunpack.i.h.bf16 %v3212_v47 }
 0x312   : > { %v1605_v11 = vsel %vm674_vm7, %v2477_v48, %v2473_v44 }
 0x314   : > { %v2486_v52 = vpop.permute.xlu1 %2485 }
 0x315   : > { %v2488_v18 = vunpack.i.h.bf16 %v2486_v52  ;;  %v2481_v49 = vpop.permute.xlu0 %2480  ;;  %v2487_v10 = vunpack.i.l.bf16 %v2486_v52 }
 0x316   : > { %v3225_v6 = vunpack.i.l.bf16 %v2481_v49  ;;  %v2483_v13 = vunpack.i.h.bf16 %v2481_v49 }
 0x317   : > { %v1604_v46 = vsel %vm674_vm7, %v2488_v18, %v2472_v19  ;;  %v869_v55 = vsel %vm681_vm11, %v2932_v50, %v2487_v10  ;;  %v1546_v21 = vpop.permute.xlu2 %1545 }
 0x318   : > { %v2539_v62 = vpack.i.bf16 %v1605_v11, %v1604_v46  ;;  %v886_v0 = vsel %vm681_vm11, %v3170_v51, %v3225_v6  ;;  %v868_v17 = vsel %vm681_vm11, %v2904_v4, %v2483_v13  ;;  %v1552_v8 = vmul.f32 %v1546_v21, %v2902_v29 }
 0x319   : > { %v871_v54 = vpack.c.bf16 %v869_v55, %v868_v17 }
 0x31a   : > { %2540 = vrot.lane.b32.xlu2 %v2539_v62, %s2658_s30 }
 0x31c   : > { %v1534_v1 = vpop.permute.xlu1 %1533 }
 0x31d   : > { %v2491_v63 = vpop.permute.xlu0 %2490 }
 0x31e   : > { %v3218_v30 = vunpack.i.l.bf16 %v2491_v63  ;;  %v3220_v3 = vunpack.i.h.bf16 %v2491_v63 }
 0x31f   : > { %v2506_v33 = vpop.permute.xlu2 %2505 }
 0x320   : > { %v887_v5 = vsel %vm681_vm11, %v3176_v15, %v3218_v30  ;;  %v885_v61 = vsel %vm681_vm11, %v3162_v41, %v3220_v3  ;;  %v2507_v56 = vunpack.i.l.bf16 %v2506_v33  ;;  %v2508_v62 = vunpack.i.h.bf16 %v2506_v33 }
 0x321   : > { %v889_v57 = vpack.c.bf16 %v887_v5, %v887_v5  ;;  %v888_v36 = vpack.c.bf16 %v886_v0, %v885_v61 }
 0x322   : > { %1363 = vrot.lane.b32.xlu2 %v2902_v29, %s2666_s12 }
 0x323   : > { %v901_v7 = vsel %vm890_vm8, %v889_v57, 0  ;;  %v898_v14 = vsel %vm890_vm8, %v888_v36, 0 }
 0x324   : > { %909 = vmatpush.bf16.xpose.msrb.mxu3 %v901_v7 }
 0x325   : > { %v2496_v20 = vpop.permute.xlu0 %2495 }
 0x326   : > { %v2497_v25 = vunpack.i.l.bf16 %v2496_v20  ;;  %v2498_v34 = vunpack.i.h.bf16 %v2496_v20 }
 0x327   : > { %v2511_v53 = vpop.permute.xlu1 %2510  ;;  %v2521_v35 = vpop.permute.xlu2 %2520 }
 0x328   : > { %v1147_v59 = vsel %vm681_vm11, %v2497_v25, %v3225_v6  ;;  %v2513_v58 = vunpack.i.h.bf16 %v2511_v53  ;;  %v2512_v9 = vunpack.i.l.bf16 %v2511_v53  ;;  %v1129_v60 = vsel %vm681_vm11, %v2498_v34, %v2478_v39 }
 0x329   : > { %v2522_v49 = vunpack.i.l.bf16 %v2521_v35  ;;  %v2523_v21 = vunpack.i.h.bf16 %v2521_v35 }
 0x32a   : > { %v1130_v24 = vsel %vm681_vm11, %v2507_v56, %v2512_v9  ;;  %v870_v2 = vsel %vm681_vm11, %v2902_v29, %v2513_v58 }
 0x32b   : > { %v1132_v45 = vpack.c.bf16 %v1130_v24, %v1129_v60  ;;  %v872_v43 = vpack.c.bf16 %v870_v2, %v870_v2  ;;  %v2668_v24 = vmov -1e+30  }
 0x32c   : > { %910 = vmatpush.bf16.xpose.msrb.mxu3 %v898_v14 }
 0x32d   : > { %v2501_v16 = vpop.permute.xlu0 %2500 }
 0x32e   : > { %v2502_v38 = vunpack.i.l.bf16 %v2501_v16  ;;  %v2503_v22 = vunpack.i.h.bf16 %v2501_v16 }
 0x32f   : > { %v1362_v5 = vpop.permute.xlu2 %1361 }
 0x330   : > { %v1148_v32 = vsel %vm681_vm11, %v2502_v38, %v3218_v30  ;;  %v1146_v50 = vsel %vm681_vm11, %v2503_v22, %v3220_v3 }
 0x331   : > { %v1150_v23 = vpack.c.bf16 %v1148_v32, %v1148_v32  ;;  %v1149_v28 = vpack.c.bf16 %v1147_v59, %v1146_v50 }
 0x333   : > { %2256 = vmatmul.msk.bf16.vlgmr.msrb.gmra.mxu3 %vm890_vm8, %v871_v54  ;;  %v1161_v26 = vsel %vm890_vm8, %v1150_v23, 0  ;;  %v1158_v40 = vsel %vm890_vm8, %v1149_v28, 0 }
 0x334   : > { %1169 = vmatpush.bf16.xpose.msrb.mxu0 %v1161_v26 }
 0x335   : > { %v1507_v27 = vpop.permute.xlu0 %1506 }
 0x336   : > { %v1513_v4 = vmul.f32 %v1507_v27, %v2902_v29 }
 0x337   : > { %v1340_v32 = vpop.permute.xlu2 %1339 }
 0x338   : > { %v1540_v12 = vsub.f32 %v1513_v4, %v1534_v1 }
 0x33a   : > { %1587 = vrot.lane.b32.xlu1 %v1540_v12, %s2658_s30 }
 0x33c   : > { %1170 = vmatpush.bf16.xpose.msrb.mxu0 %v1158_v40 }
 0x33d   : > { %v1573_v37 = vpop.permute.xlu0 %1572 }
 0x33e   : > { %v1579_v31 = vadd.f32 %v1573_v37, %v1552_v8 }
 0x340   : > { %1599 = vrot.lane.b32.xlu0 %v1579_v31, %s2655_s25 }
 0x343   : > { %2257 = vmatmul.msk.bf16.gmra.mxu3 %vm890_vm8, %v872_v43  ;;  %2260 = vmatmul.msk.bf16.vlgmr.msrb.gmra.mxu0 %vm890_vm8, %v1132_v45 }
 0x345   : > { %v2516_v48 = vpop.permute.xlu0 %2515 }
 0x346   : > { %v2517_v52 = vunpack.i.l.bf16 %v2516_v48  ;;  %v2518_v44 = vunpack.i.h.bf16 %v2516_v48 }
 0x347   : > { %v2526_v47 = vpop.permute.xlu1 %2525 }
 0x348   : > { %1611 = vrot.lane.b32.xlu0 %v2902_v29, %s2667_s13  ;;  %v1396_v19 = vsel %vm681_vm11, %v2517_v52, %v3218_v30  ;;  %v2527_v46 = vunpack.i.l.bf16 %v2526_v47  ;;  %v1394_v63 = vsel %vm681_vm11, %v2518_v44, %v3220_v3  ;;  %v1395_v29 = vsel %vm681_vm11, %v2522_v49, %v3225_v6 }
 0x349   : > { %v1398_v18 = vpack.c.bf16 %v1396_v19, %v1396_v19  ;;  %v1397_v0 = vpack.c.bf16 %v1395_v29, %v1394_v63  ;;  %v2528_v55 = vunpack.i.h.bf16 %v2526_v47 }
 0x34a   : > { %v1131_v61 = vsel %vm681_vm11, %v2508_v62, %v2527_v46 }
 0x34b   : > { %v1409_v11 = vsel %vm890_vm8, %v1398_v18, 0  ;;  %v1133_v10 = vpack.c.bf16 %v1131_v61, %v1131_v61  ;;  %v1406_v14 = vsel %vm890_vm8, %v1397_v0, 0 }
 0x34c   : > { %1417 = vmatpush.bf16.xpose.msra.mxu3 %v1409_v11 }
 0x34d   : > { %v2531_v57 = vpop.permute.xlu0 %2530 }
 0x34e   : > { %v2532_v7 = vunpack.i.l.bf16 %v2531_v57  ;;  %v2533_v17 = vunpack.i.h.bf16 %v2531_v57 }
 0x34f   : > { %v1374_v20 = vpop.permute.xlu1 %1373 }
 0x350   : > { %v1644_v36 = vsel %vm681_vm11, %v2532_v7, %v3218_v30  ;;  %v1381_v1 = vsel %vm681_vm11, %v1362_v5, %v1374_v20  ;;  %v1380_v30 = vsel %vm681_vm11, %v2523_v21, %v2528_v55  ;;  %v1642_v25 = vsel %vm681_vm11, %v2533_v17, %v3220_v3 }
 0x351   : > { %v1646_v13 = vpack.c.bf16 %v1644_v36, %v1644_v36  ;;  %v1383_v50 = vpack.c.bf16 %v1381_v1, %v1380_v30  ;;  %v3315_v55 = vpack.c.bf16 %v3170_v51, %v3162_v41  ;;  %v3332_v51 = vpack.c.bf16 %v3176_v15, %v3176_v15 }
 0x353   : > { %2261 = vmatmul.msk.bf16.gmra.mxu0 %vm890_vm8, %v1133_v10  ;;  %v1657_v16 = vsel %vm890_vm8, %v1646_v13, 0 }
 0x354   : > { %1418 = vmatpush.bf16.xpose.msra.mxu3 %v1406_v14  ;;  %1665 = vmatpush.bf16.xpose.msra.mxu0 %v1657_v16 }
 0x355   : > { %v2536_v38 = vpop.permute.xlu0 %2535 }
 0x356   : > { %v2537_v22 = vunpack.i.l.bf16 %v2536_v38  ;;  %v2538_v53 = vunpack.i.h.bf16 %v2536_v38 }
 0x357   : > { %v1352_v54 = vpop.permute.xlu1 %1351 }
 0x358   : > { %v1358_v23 = vsel %vm674_vm7, %v1340_v32, %v1352_v54  ;;  %v1643_v26 = vsel %vm681_vm11, %v2537_v22, %v3225_v6  ;;  %v775_v6 = vlaneseq }
 0x359   : > { %1375 = vrot.lane.b32.xlu1 %v1358_v23, %s2658_s30  ;;  %v1645_v27 = vpack.c.bf16 %v1643_v26, %v1642_v25 }
 0x35a   : > { %v776_v40 = vshrl.u32 %v775_v6, 7  ;;  %v780_v8 = vand.u32 127, %v775_v6 }
 0x35b   : > { %2264 = vmatmul.msk.bf16.vlgmr.msra.gmra.mxu3 %vm890_vm8, %v1383_v50  ;;  %v1654_v4 = vsel %vm890_vm8, %v1645_v27, 0 }
 0x35c   : > { %1666 = vmatpush.bf16.xpose.msra.mxu0 %v1654_v4  ;;  %vm781_vm9 = vcmp.le.s32.totalorder %v780_v8, %v776_v40  ;;  %v777_v60 = vadd.s32 8, %v776_v40  ;;  %v778_v47 = vadd.s32 16, %v776_v40 }
 0x35d   : > { %v1610_v33 = vpop.permute.xlu0 %1609  ;;  %v3291_v31 = vsel %vm781_vm9, 0.0, %v2668_v24 }
 0x35e   : > { %vm782_vm12 = vcmp.le.s32.totalorder %v780_v8, %v777_v60  ;;  %vm783_vm13 = vcmp.le.s32.totalorder %v780_v8, %v778_v47 }
 0x35f   : > { %v785_v48 = vsel %vm782_vm12, 0.0, %v2668_v24  ;;  %v3302_v46 = vsel %vm783_vm13, 0.0, %v2668_v24 }
 0x374   : > { %v2541_v59 = vpop.permute.xlu2 %2540 }
 0x375   : > { %v2543_v28 = vunpack.i.h.bf16 %v2541_v59  ;;  %v2542_v12 = vunpack.i.l.bf16 %v2541_v59 }
 0x377   : > { %v1628_v58 = vsel %vm681_vm11, %v2538_v53, %v2542_v12  ;;  %v1629_v3 = vsel %vm681_vm11, %v1610_v33, %v2543_v28 }
 0x378   : > { %v1631_v9 = vpack.c.bf16 %v1629_v3, %v1628_v58 }
 0x37a   : > { %2268 = vmatmul.msk.bf16.vlgmr.msra.gmra.mxu0 %vm890_vm8, %v1631_v9 }
 0x37c   : > { %v1364_v5 = vpop.permute.xlu2 %1363 }
 0x3ac   : > { %v1588_v56 = vpop.permute.xlu1 %1587 }
 0x3b2   : > { %v1600_v34 = vpop.permute.xlu0 %1599 }
 0x3b3   : > { %v1606_v37 = vsel %vm674_vm7, %v1588_v56, %v1600_v34 }
 0x3b4   : > { %1623 = vrot.lane.b32.xlu2 %v1606_v37, %s2658_s30 }
 0x3b6   : > { %v912_v39 = vpop.f32.mrf.mxu3 }
 0x3b7   : > { %v921_v2 = vmul.f32 0.33125377, %v912_v39 }
 0x3b9   : > { %v3294_v45 = vadd.f32 %v921_v2, %v3291_v31 }
 0x3ba   : > { %v1612_v23 = vpop.permute.xlu0 %1611 }
 0x3bb   : > { %v928_v43 = vsel %vm927_vm10, %v3294_v45, -inf }
 0x3bc   : > { %929 = vmax.xlane.f32.xlu1 %v928_v43 }
 0x3be   : > { %v914_v35 = vpop.f32.mrf.mxu3 }
 0x3bf   : > { %v922_v52 = vmul.f32 0.33125377, %v914_v35 }
 0x3c0   : > { %v1172_v44 = vpop.f32.mrf.mxu0 }
 0x3c1   : > { %v3298_v19 = vadd.f32 %v922_v52, %v785_v48  ;;  %v1181_v36 = vmul.f32 0.33125377, %v1172_v44 }
 0x3c3   : > { %v931_v18 = vsel %vm927_vm10, %v3298_v19, -inf  ;;  %v1184_v13 = vadd.f32 %v1181_v36, %v3291_v31 }
 0x3c4   : > { %932 = vmax.xlane.f32.xlu0 %v931_v18 }
 0x3c5   : > { %v1187_v14 = vsel %vm927_vm10, %v1184_v13, -inf }
 0x3c6   : > { %v917_v49 = vpop.f32.mrf.mxu3 }
 0x3c7   : > { %v923_v11 = vmul.f32 0.33125377, %v917_v49 }
 0x3c8   : > { %v1174_v62 = vpop.f32.mrf.mxu0 }
 0x3c9   : > { %v3305_v63 = vadd.f32 %v923_v11, %v3302_v46  ;;  %v1182_v21 = vmul.f32 0.33125377, %v1174_v62 }
 0x3cb   : > { %v1376_v57 = vpop.permute.xlu1 %1375  ;;  %v934_v7 = vsel %vm927_vm10, %v3305_v63, -inf  ;;  %v3324_v22 = vadd.f32 %v1182_v21, %v785_v48 }
 0x3cc   : > { %v1382_v61 = vsel %vm681_vm11, %v1364_v5, %v1376_v57  ;;  %935 = vmax.xlane.f32.xlu0 %v934_v7 }
 0x3cd   : > { %v1384_v29 = vpack.c.bf16 %v1382_v61, %v1382_v61  ;;  %v1190_v41 = vsel %vm927_vm10, %v3324_v22, -inf }
 0x3ce   : > { %v919_v20 = vpop.f32.mrf.mxu3 }
 0x3cf   : > { %2265 = vmatmul.msk.bf16.gmra.mxu3 %vm890_vm8, %v1384_v29 }
 0x3d0   : > { %v1177_v0 = vpop.f32.mrf.mxu0 }
 0x3d1   : > { %v1183_v15 = vmul.f32 0.33125377, %v1177_v0 }
 0x3d3   : > { %v3345_v59 = vadd.f32 %v1183_v15, %v3302_v46 }
 0x3d5   : > { %v1193_v53 = vsel %vm927_vm10, %v3345_v59, -inf }
 0x3d8   : > { %v1179_v10 = vpop.f32.mrf.mxu0 }
 0x3dd   : > { %1188 = vmax.xlane.f32.xlu2 %v1187_v14 }
 0x3de   : > { %v1420_v16 = vpop.f32.mrf.mxu3 }
 0x3df   : > { %v1429_v17 = vmul.f32 0.33125377, %v1420_v16 }
 0x3e0   : > { %967 = vrot.lane.b32.xlu0 %v3315_v55, %s2663_s21 }
 0x3e1   : > { %v3320_v38 = vadd.f32 %v1429_v17, %v3291_v31 }
 0x3e3   : > { %v1435_v1 = vsel %vm927_vm10, %v3320_v38, -inf }
 0x3e4   : > { %1436 = vmax.xlane.f32.xlu1 %v1435_v1 }
 0x3e6   : > { %v1422_v32 = vpop.f32.mrf.mxu3 }
 0x3e7   : > { %v1430_v54 = vmul.f32 0.33125377, %v1422_v32 }
 0x3e8   : > { %1222 = vrot.lane.b32.xlu0 %v3315_v55, %s2662_s20 }
 0x3e9   : > { %v3338_v30 = vadd.f32 %v1430_v54, %v785_v48 }
 0x3eb   : > { %v1438_v27 = vsel %vm927_vm10, %v3338_v30, -inf }
 0x3ec   : > { %1191 = vmax.xlane.f32.xlu1 %v1190_v41 }
 0x3f5   : > { %1224 = vrot.lane.b32.xlu2 %v3332_v51, %s2662_s20 }
 0x3f7   : > { %v1668_v4 = vpop.f32.mrf.mxu0 }
 0x3ff   : > { %v1670_v28 = vpop.f32.mrf.mxu0 }
 0x400   : > { %v1678_v12 = vmul.f32 0.33125377, %v1670_v28 }
 0x402   : > { %v3351_v33 = vadd.f32 %v1678_v12, %v785_v48  ;;  %v1677_v48 = vmul.f32 0.33125377, %v1668_v4 }
 0x404   : > { %v1686_v58 = vsel %vm927_vm10, %v3351_v33, -inf  ;;  %v3370_v5 = vadd.f32 %v1677_v48, %v3291_v31 }
 0x405   : > { %969 = vrot.lane.b32.xlu1 %v3332_v51, %s2663_s21 }
 0x406   : > { %v1683_v61 = vsel %vm927_vm10, %v3370_v5, -inf }
 0x40e   : > { %v1624_v25 = vpop.permute.xlu2 %1623 }
 0x40f   : > { %v1630_v26 = vsel %vm681_vm11, %v1612_v23, %v1624_v25 }
 0x410   : > { %v1632_v50 = vpack.c.bf16 %v1630_v26, %v1630_v26 }
 0x412   : > { %2269 = vmatmul.msk.bf16.gmra.mxu0 %vm890_vm8, %v1632_v50  ;;  %1439 = vmax.xlane.f32.xlu0 %v1438_v27 }
 0x41e   : > { %1194 = vmax.xlane.f32.xlu2 %v1193_v53 }
 0x426   : > { %1472 = vrot.lane.b32.xlu0 %v3332_v51, %s2661_s16 }
 0x42f   : > { %1687 = vmax.xlane.f32.xlu1 %v1686_v58  ;;  %v930_v3 = vpop.xlane.xlu1 %929 }
 0x430   : > { %v937_v9 = vsub.f32 %v3294_v45, %v930_v3 }
 0x432   : > { %v940_v40 = vmul.f32 1.442695, %v937_v9 }
 0x434   : > { %2578 = vpow2.f32 %v940_v40 }
 0x437   : > { %v933_v6 = vpop.xlane.xlu0 %932 }
 0x438   : > { %v938_v45 = vsub.f32 %v3298_v19, %v933_v6 }
 0x43a   : > { %v3356_v56 = vpop.eup %2578  ;;  %v942_v49 = vmul.f32 1.442695, %v938_v45 }
 0x43b   : > { %v946_v34 = vsel %vm927_vm10, %v3356_v56, 0.0 }
 0x43f   : > { %v936_v8 = vpop.xlane.xlu0 %935 }
 0x440   : > { %v939_v1 = vsub.f32 %v3305_v63, %v936_v8 }
 0x450   : > { %v1189_v37 = vpop.xlane.xlu2 %1188  ;;  %947 = vadd.xlane.f32.xlu0 %v946_v34 }
 0x451   : > { %v1196_v39 = vsub.f32 %v1184_v13, %v1189_v37 }
 0x452   : > { %v1425_v24 = vpop.f32.mrf.mxu3  ;;  %v968_v60 = vpop.permute.xlu0 %967 }
 0x453   : > { %v1199_v2 = vmul.f32 1.442695, %v1196_v39  ;;  %v1431_v43 = vmul.f32 0.33125377, %v1425_v24 }
 0x455   : > { %2580 = vpow2.f32 %v1199_v2  ;;  %v3361_v35 = vadd.f32 %v1431_v43, %v3302_v46 }
 0x456   : > { %2582 = vpow2.f32 %v942_v49 }
 0x457   : > { %v1437_v52 = vpop.xlane.xlu1 %1436  ;;  %v1441_v47 = vsel %vm927_vm10, %v3361_v35, -inf }
 0x458   : > { %v1225_v44 = vpop.permute.xlu2 %1224  ;;  %1442 = vmax.xlane.f32.xlu2 %v1441_v47 }
 0x459   : > { %v1234_v18 = vsel %vm978_vm14, %v1225_v44, 0 }
 0x45a   : > { %1242 = vmatpush.bf16.msrb.mxu1 %v1234_v18  ;;  %v1427_v11 = vpop.f32.mrf.mxu3  ;;  %v1223_v57 = vpop.permute.xlu0 %1222 }
 0x45b   : > { %v3367_v62 = vpop.eup %2580 }
 0x45c   : > { %v1205_v19 = vsel %vm927_vm10, %v3367_v62, 0.0  ;;  %v3377_v0 = vpop.eup %2582 }
 0x45d   : > { %1206 = vadd.xlane.f32.xlu0 %v1205_v19  ;;  %v949_v31 = vsel %vm927_vm10, %v3377_v0, 0.0 }
 0x45e   : > { %1243 = vmatpush.bf16.msrb.mxu1 %v1223_v57 }
 0x45f   : > { %v1192_v7 = vpop.xlane.xlu1 %1191 }
 0x460   : > { %v1197_v29 = vsub.f32 %v3324_v22, %v1192_v7  ;;  %1684 = vmax.xlane.f32.xlu2 %v1683_v61  ;;  %v944_v22 = vmul.f32 1.442695, %v939_v1 }
 0x462   : > { %v1201_v20 = vmul.f32 1.442695, %v1197_v29 }
 0x464   : > { %2584 = vpow2.f32 %v1201_v20 }
 0x468   : > { %950 = vadd.xlane.f32.xlu2 %v949_v31 }
 0x46a   : > { %v3381_v36 = vpop.eup %2584 }
 0x46b   : > { %v1208_v10 = vsel %vm927_vm10, %v3381_v36, 0.0 }
 0x470   : > { %1209 = vadd.xlane.f32.xlu2 %v1208_v10 }
 0x477   : > { %v970_v13 = vpop.permute.xlu1 %969 }
 0x478   : > { %v980_v14 = vsel %vm978_vm14, %v970_v13, 0 }
 0x479   : > { %988 = vmatpush.bf16.msrb.mxu2 %v980_v14 }
 0x47d   : > { %989 = vmatpush.bf16.msrb.mxu2 %v968_v60 }
 0x485   : > { %v1440_v16 = vpop.xlane.xlu0 %1439 }
 0x486   : > { %v1445_v17 = vsub.f32 %v3338_v30, %v1440_v16  ;;  %v1444_v30 = vsub.f32 %v3320_v38, %v1437_v52 }
 0x488   : > { %v1449_v21 = vmul.f32 1.442695, %v1445_v17  ;;  %v1447_v15 = vmul.f32 1.442695, %v1444_v30 }
 0x48a   : > { %2586 = vpow2.f32 %v1449_v21 }
 0x48b   : > { %2588 = vpow2.f32 %v944_v22 }
 0x48f   : > { %v1673_v41 = vpop.f32.mrf.mxu0 }
 0x490   : > { %v3388_v32 = vpop.eup %2586  ;;  %v1679_v54 = vmul.f32 0.33125377, %v1673_v41 }
 0x491   : > { %v1195_v23 = vpop.xlane.xlu2 %1194  ;;  %v1456_v25 = vsel %vm927_vm10, %v3388_v32, 0.0  ;;  %v3399_v28 = vpop.eup %2588 }
 0x492   : > { %v1198_v26 = vsub.f32 %v3345_v59, %v1195_v23  ;;  %1457 = vadd.xlane.f32.xlu2 %v1456_v25  ;;  %v3394_v50 = vadd.f32 %v1679_v54, %v3302_v46  ;;  %v952_v38 = vsel %vm927_vm10, %v3399_v28, 0.0 }
 0x494   : > { %v1203_v27 = vmul.f32 1.442695, %v1198_v26  ;;  %v1689_v63 = vsel %vm927_vm10, %v3394_v50, -inf }
 0x495   : > { %1690 = vmax.xlane.f32.xlu1 %v1689_v63 }
 0x496   : > { %2590 = vpow2.f32 %v1203_v27 }
 0x497   : > { %v1675_v4 = vpop.f32.mrf.mxu0  ;;  %2592 = vpow2.f32 %v1447_v15 }
 0x498   : > { %v1473_v53 = vpop.permute.xlu0 %1472 }
 0x499   : > { %v1482_v59 = vsel %vm978_vm14, %v1473_v53, 0 }
 0x49a   : > { %1490 = vmatpush.bf16.msra.mxu2 %v1482_v59 }
 0x49c   : > { %v3402_v46 = vpop.eup %2590 }
 0x49d   : > { %953 = vadd.xlane.f32.xlu1 %v952_v38  ;;  %v1211_v12 = vsel %vm927_vm10, %v3402_v46, 0.0  ;;  %v3408_v58 = vpop.eup %2592 }
 0x49e   : > { %1212 = vadd.xlane.f32.xlu0 %v1211_v12  ;;  %v1453_v6 = vsel %vm927_vm10, %v3408_v58, 0.0 }
 0x4a2   : > { %v1688_v3 = vpop.xlane.xlu1 %1687 }
 0x4a3   : > { %v1693_v9 = vsub.f32 %v3351_v33, %v1688_v3 }
 0x4a5   : > { %v1697_v40 = vmul.f32 1.442695, %v1693_v9  ;;  %1454 = vadd.xlane.f32.xlu1 %v1453_v6 }
 0x4a7   : > { %2594 = vpow2.f32 %v1697_v40 }
 0x4ad   : > { %v3413_v8 = vpop.eup %2594 }
 0x4ae   : > { %v1704_v34 = vsel %vm927_vm10, %v3413_v8, 0.0 }
 0x4af   : > { %1705 = vadd.xlane.f32.xlu2 %v1704_v34 }
 0x4b2   : > { %1718 = vrot.lane.b32.xlu0 %v3315_v55, %s2658_s30 }
 0x4c3   : > { %v948_v43 = vpop.xlane.xlu0 %947 }
 0x4c7   : > { %1720 = vrot.lane.b32.xlu2 %v3332_v51, %s2658_s30 }
 0x4cb   : > { %v1443_v37 = vpop.xlane.xlu2 %1442 }
 0x4cc   : > { %v1446_v33 = vsub.f32 %v3361_v35, %v1443_v37 }
 0x4ce   : > { %v1451_v39 = vmul.f32 1.442695, %v1446_v33 }
 0x4d0   : > { %2596 = vpow2.f32 %v1451_v39  ;;  %v1207_v47 = vpop.xlane.xlu0 %1206 }
 0x4d3   : > { %v1685_v24 = vpop.xlane.xlu2 %1684 }
 0x4d4   : > { %v1692_v2 = vsub.f32 %v3370_v5, %v1685_v24 }
 0x4d6   : > { %v1695_v60 = vmul.f32 1.442695, %v1692_v2  ;;  %v3423_v45 = vpop.eup %2596 }
 0x4d7   : > { %v1459_v52 = vsel %vm927_vm10, %v3423_v45, 0.0 }
 0x4d8   : > { %2598 = vpow2.f32 %v1695_v60 }
 0x4d9   : > { %2600 = vrcp.f32 %v948_v43 }
 0x4db   : > { %v951_v48 = vpop.xlane.xlu2 %950 }
 0x4dc   : > { %2602 = vrcp.f32 %v951_v48  ;;  %1460 = vadd.xlane.f32.xlu0 %v1459_v52 }
 0x4dd   : > { %2604 = vrcp.f32 %v1207_v47 }
 0x4de   : > { %v2599_v51 = vpop.eup %2598 }
 0x4df   : > { %v1701_v35 = vsel %vm927_vm10, %v2599_v51, 0.0  ;;  %v2601_v44 = vpop.eup %2600 }
 0x4e0   : > { %1702 = vadd.xlane.f32.xlu1 %v1701_v35  ;;  %v958_v49 = vmul.f32 %v2601_v44, %v3356_v56 }
 0x4e2   : > { %v2603_v18 = vpop.eup %2602 }
 0x4e3   : > { %v959_v11 = vmul.f32 %v2603_v18, %v3377_v0  ;;  %v1210_v5 = vpop.xlane.xlu2 %1209  ;;  %v2605_v57 = vpop.eup %2604 }
 0x4e4   : > { %2606 = vrcp.f32 %v1210_v5  ;;  %v1217_v61 = vmul.f32 %v2605_v57, %v3367_v62 }
 0x4e5   : > { %v961_v19 = vpack.c.bf16 %v959_v11, %v958_v49  ;;  %v2375_v11 = vld [vmem:[%s3610_s7 + $0x18] sm:$0xff] }
 0x4e6   : > { %1832 = vmatpush.bf16.msrb.mxu3 %v2375_v11 }
 0x4e7   : > { %2258 = vmatmul.msk.bf16.vlgmr.msrb.gmra.mxu2 %vm927_vm10, %v961_v19 }
 0x4ea   : > { %v2607_v7 = vpop.eup %2606 }
 0x4eb   : > { %v1218_v29 = vmul.f32 %v2607_v7, %v3381_v36  ;;  %v2374_v7 = vld [vmem:[%s3610_s7 + $0x10] sm:$0xff] }
 0x4ec   : > { %1833 = vmatpush.bf16.msrb.mxu3 %v2374_v7  ;;  %v2377_v7 = vld [vmem:[%s3612_s9 + $0x4] sm:$0xf0] }
 0x4ed   : > { %v1220_v20 = vpack.c.bf16 %v1218_v29, %v1217_v61  ;;  %v2373_v61 = vld [vmem:[%s3610_s7 + $0x8] sm:$0xff]  ;;  %v2372_v29 = vld [vmem:[%s3610_s7] sm:$0xff] }
 0x4ef   : > { %2262 = vmatmul.msk.bf16.vlgmr.msrb.gmra.mxu1 %vm927_vm10, %v1220_v20 }
 0x4f0   : > { %1834 = vmatpush.bf16.msrb.mxu3 %v2373_v61  ;;  %v2376_v61 = vld [vmem:[%s3612_s9 + $0x4] sm:$0xf] }
 0x4f4   : > { %1835 = vmatpush.bf16.msrb.mxu3 %v2372_v29 }
 0x4f9   : > { %1470 = vrot.lane.b32.xlu1 %v3315_v55, %s2661_s16 }
 0x505   : > { %v1458_v17 = vpop.xlane.xlu2 %1457 }
 0x508   : > { %v1691_v56 = vpop.xlane.xlu1 %1690 }
 0x509   : > { %v1694_v0 = vsub.f32 %v3394_v50, %v1691_v56 }
 0x50b   : > { %v1699_v13 = vmul.f32 1.442695, %v1694_v0 }
 0x510   : > { %v954_v31 = vpop.xlane.xlu1 %953 }
 0x511   : > { %2608 = vrcp.f32 %v954_v31  ;;  %v1213_v10 = vpop.xlane.xlu0 %1212 }
 0x512   : > { %2610 = vrcp.f32 %v1213_v10 }
 0x513   : > { %2612 = vpow2.f32 %v1699_v13 }
 0x517   : > { %v2609_v14 = vpop.eup %2608 }
 0x518   : > { %v2611_v16 = vpop.eup %2610  ;;  %v960_v62 = vmul.f32 %v2609_v14, %v3399_v28  ;;  %v1455_v26 = vpop.xlane.xlu1 %1454 }
 0x519   : > { %v1219_v36 = vmul.f32 %v2611_v16, %v3402_v46  ;;  %v2613_v55 = vpop.eup %2612 }
 0x51a   : > { %v962_v21 = vpack.c.bf16 %v960_v62, %v960_v62  ;;  %v1707_v41 = vsel %vm927_vm10, %v2613_v55, 0.0 }
 0x51b   : > { %v1221_v1 = vpack.c.bf16 %v1219_v36, %v1219_v36 }
 0x51c   : > { %2259 = vmatmul.msk.bf16.gmra.mxu2 %vm927_vm10, %v962_v21 }
 0x51d   : > { %2263 = vmatmul.msk.bf16.gmra.mxu1 %vm927_vm10, %v1221_v1 }
 0x522   : > { %v1706_v22 = vpop.xlane.xlu2 %1705 }
 0x523   : > { %1708 = vadd.xlane.f32.xlu1 %v1707_v41  ;;  %2614 = vrcp.f32 %v1706_v22 }
 0x524   : > { %v1719_v25 = vpop.permute.xlu0 %1718 }
 0x529   : > { %v2615_v30 = vpop.eup %2614 }
 0x52a   : > { %v1721_v54 = vpop.permute.xlu2 %1720  ;;  %v1714_v63 = vmul.f32 %v2615_v30, %v3413_v8 }
 0x52b   : > { %v1730_v23 = vsel %vm978_vm14, %v1721_v54, 0 }
 0x52c   : > { %1738 = vmatpush.bf16.msra.mxu1 %v1730_v23 }
 0x530   : > { %1739 = vmatpush.bf16.msra.mxu1 %v1719_v25 }
 0x54f   : > { %v1461_v9 = vpop.xlane.xlu0 %1460 }
 0x553   : > { %v1703_v50 = vpop.xlane.xlu1 %1702 }
 0x554   : > { %2616 = vrcp.f32 %v1703_v50 }
 0x555   : > { %2618 = vrcp.f32 %v1455_v26 }
 0x556   : > { %2620 = vrcp.f32 %v1458_v17 }
 0x557   : > { %2622 = vrcp.f32 %v1461_v9 }
 0x55a   : > { %v2617_v27 = vpop.eup %2616 }
 0x55b   : > { %v1713_v15 = vmul.f32 %v2617_v27, %v2599_v51  ;;  %v2619_v53 = vpop.eup %2618 }
 0x55c   : > { %v2621_v28 = vpop.eup %2620  ;;  %v1465_v59 = vmul.f32 %v2619_v53, %v3408_v58 }
 0x55d   : > { %v1716_v4 = vpack.c.bf16 %v1714_v63, %v1713_v15  ;;  %v1466_v46 = vmul.f32 %v2621_v28, %v3388_v32  ;;  %v2623_v8 = vpop.eup %2622  ;;  %v2644_v15 = vld [vmem:[%s2745_s22] sm:$0xff] }
 0x55e   : > { %v1467_v34 = vmul.f32 %v2623_v8, %v3423_v45 }
 0x55f   : > { %2270 = vmatmul.msk.bf16.vlgmr.msra.gmra.mxu1 %vm927_vm10, %v1716_v4  ;;  %v1468_v3 = vpack.c.bf16 %v1466_v46, %v1465_v59  ;;  %v2645_v46 = vld [vmem:[%s2745_s22 + $0x8] sm:$0xff] }
 0x560   : > { %v1469_v37 = vpack.c.bf16 %v1467_v34, %v1467_v34 }
 0x56a   : > { %v991_v58 = vpop.f32.mrf.mxu2 }
 0x56b   : > { %v1471_v38 = vpop.permute.xlu1 %1470 }
 0x56c   : > { %v1245_v12 = vpop.f32.mrf.mxu1  ;;  %1491 = vmatpush.bf16.msra.mxu2 %v1471_v38 }
 0x56f   : > { %2266 = vmatmul.msk.bf16.vlgmr.msra.gmra.mxu2 %vm927_vm10, %v1468_v3 }
 0x572   : > { %v993_v33 = vpop.f32.mrf.mxu2 }
 0x574   : > { %v1247_v6 = vpop.f32.mrf.mxu1 }
 0x575   : > { %v2544_v40 = vpack.i.bf16 %v1247_v6, %v1245_v12  ;;  %v2646_v6 = vld [vmem:[%s2745_s22 + $0x10] sm:$0xff] }
 0x577   : > { %2545 = vrot.lane.b32.xlu2 %v2544_v40, %s2658_s30 }
 0x57f   : > { %2267 = vmatmul.msk.bf16.gmra.mxu2 %vm927_vm10, %v1469_v37 }
 0x596   : > { %v1709_v32 = vpop.xlane.xlu1 %1708 }
 0x597   : > { %2624 = vrcp.f32 %v1709_v32  ;;  %v2383_v32 = vld [vmem:[%s3612_s9 + $0x34] sm:$0xf0] }
 0x59a   : > { %v1250_v39 = vpop.f32.mrf.mxu1 }
 0x59d   : > { %v2625_v24 = vpop.eup %2624 }
 0x59e   : > { %v1715_v2 = vmul.f32 %v2625_v24, %v2613_v55  ;;  %v2318_v24 = vld [vmem:[%s3612_s9 + $0x38] sm:$0xf0] }
 0x59f   : > { %v996_v60 = vpop.f32.mrf.mxu2 }
 0x5a0   : > { %v1717_v43 = vpack.c.bf16 %v1715_v2, %v1715_v2 }
 0x5a2   : > { %v1252_v48 = vpop.f32.mrf.mxu1  ;;  %2271 = vmatmul.msk.bf16.gmra.mxu1 %vm927_vm10, %v1717_v43  ;;  %v2381_v43 = vld [vmem:[%s3612_s9 + $0x24] sm:$0xf0] }
 0x5a3   : > { %v2380_v48 = vld [vmem:[%s3612_s9 + $0x24] sm:$0xf] }
 0x5a7   : > { %v998_v52 = vpop.f32.mrf.mxu2 }
 0x5d1   : > { %v2546_v20 = vpop.permute.xlu2 %2545 }
 0x5d2   : > { %v2548_v31 = vunpack.i.h.bf16 %v2546_v20  ;;  %v2547_v0 = vunpack.i.l.bf16 %v2546_v20 }
 0x5d4   : > { %v1787_v16 = vsel %vm681_vm11, %v993_v33, %v2548_v31  ;;  %v1786_v62 = vsel %vm681_vm11, %v991_v58, %v2547_v0  ;;  %v2316_v58 = vld [vmem:[%s3612_s9 + $0x30] sm:$0xf]  ;;  %v2382_v33 = vld [vmem:[%s3612_s9 + $0x34] sm:$0xf] }
 0x5d5   : > { %v2321_v2 = vor.u32 %v2382_v33, %v2318_v24  ;;  %v2391_v33 = vld [vmem:[%s3613_s10 + $0x38] sm:$0xff]  ;;  %v2389_v24 = vld [vmem:[%s3613_s10 + $0x28] sm:$0xff] }
 0x5d6   : > { %2128 = vmatpush.bf16.msrb.mxu1 %v2391_v33 }
 0x5d7   : > { %1985 = vmatpush.bf16.msrb.mxu0 %v2321_v2  ;;  %v2388_v2 = vld [vmem:[%s3613_s10 + $0x20] sm:$0xff] }
 0x5dc   : > { %v1741_v47 = vpop.f32.mrf.mxu1 }
 0x5e4   : > { %v1743_v44 = vpop.f32.mrf.mxu1 }
 0x5e5   : > { %v2554_v49 = vpack.i.bf16 %v1743_v44, %v1741_v47  ;;  %v2378_v44 = vld [vmem:[%s3612_s9 + $0x14] sm:$0xf] }
 0x5f2   : > { %v1493_v51 = vpop.f32.mrf.mxu2 }
 0x5fa   : > { %v1495_v35 = vpop.f32.mrf.mxu2 }
 0x5fb   : > { %v2549_v45 = vpack.i.bf16 %v1495_v35, %v1493_v51  ;;  %v2310_v51 = vld [vmem:[%s3612_s9 + $0x28] sm:$0xf0]  ;;  %v2300_v35 = vld [vmem:[%s3612_s9 + $0x10] sm:$0xf] }
 0x5fc   : > { %v2313_v47 = vor.u32 %v2380_v48, %v2310_v51  ;;  %v2386_v51 = vld [vmem:[%s3613_s10 + $0x10] sm:$0xff] }
 0x5fd   : > { %2550 = vrot.lane.b32.xlu2 %v2549_v45, %s2667_s13  ;;  %v2379_v45 = vld [vmem:[%s3612_s9 + $0x14] sm:$0xf0] }
 0x5fe   : > { %1986 = vmatpush.bf16.msrb.mxu0 %v2313_v47 }
 0x602   : > { %v1498_v18 = vpop.f32.mrf.mxu2 }
 0x603   : > { %1769 = vrot.lane.b32.xlu0 %v1498_v18, %s2667_s13  ;;  %v2301_v18 = vor.u32 %v2379_v45, %v2300_v35  ;;  %v2385_v35 = vld [vmem:[%s3613_s10 + $0x8] sm:$0xff] }
 0x605   : > { %2555 = vrot.lane.b32.xlu2 %v2554_v49, %s2661_s16  ;;  %v2302_v49 = vld [vmem:[%s3612_s9 + $0x18] sm:$0xf0] }
 0x60a   : > { %v1500_v5 = vpop.f32.mrf.mxu2 }
 0x60b   : > { %v2305_v5 = vor.u32 %v2378_v44, %v2302_v49  ;;  %v2384_v49 = vld [vmem:[%s3613_s10] sm:$0xff] }
 0x60d   : > { %1757 = vrot.lane.b32.xlu2 %v1250_v39, %s2658_s30  ;;  %v2317_v39 = vor.u32 %v2383_v32, %v2316_v58  ;;  %1987 = vmatpush.bf16.msrb.mxu0 %v2305_v5 }
 0x60f   : > { %1967 = vmatpush.bf16.msrb.mxu2 %v2317_v39  ;;  %v2390_v39 = vld [vmem:[%s3613_s10 + $0x30] sm:$0xff] }
 0x610   : > { %2129 = vmatpush.bf16.msrb.mxu1 %v2390_v39 }
 0x614   : > { %2130 = vmatpush.bf16.msrb.mxu1 %v2389_v24 }
 0x618   : > { %2131 = vmatpush.bf16.msrb.mxu1 %v2388_v2 }
 0x61f   : > { %v1746_v19 = vpop.f32.mrf.mxu1 }
 0x620   : > { %1781 = vrot.lane.b32.xlu2 %v1746_v19, %s2661_s16 }
 0x627   : > { %v1748_v57 = vpop.f32.mrf.mxu1 }
 0x628   : > { %v2292_v57 = vld [vmem:[%s3612_s9] sm:$0xf] }
 0x629   : > { %v2293_v20 = vor.u32 %v2377_v7, %v2292_v57 }
 0x657   : > { %v2551_v56 = vpop.permute.xlu2 %2550 }
 0x658   : > { %v2553_v10 = vunpack.i.h.bf16 %v2551_v56  ;;  %v2552_v13 = vunpack.i.l.bf16 %v2551_v56  ;;  %v2294_v56 = vld [vmem:[%s3612_s9 + $0x8] sm:$0xf0] }
 0x659   : > { %v2297_v31 = vor.u32 %v2376_v61, %v2294_v56 }
 0x65a   : > { %v1789_v21 = vsel %vm890_vm8, %v1786_v62, %v2552_v13  ;;  %v1790_v1 = vsel %vm890_vm8, %v1787_v16, %v2553_v10 }
 0x65b   : > { %1988 = vmatpush.bf16.msrb.mxu0 %v2297_v31 }
 0x65f   : > { %v2556_v14 = vpop.permute.xlu2 %2555 }
 0x660   : > { %v2558_v36 = vunpack.i.h.bf16 %v2556_v14  ;;  %v2557_v17 = vunpack.i.l.bf16 %v2556_v14 }
 0x662   : > { %v1793_v55 = vsel %vm1792_vm15, %v1789_v21, %v2557_v17  ;;  %v1794_v22 = vsel %vm1792_vm15, %v1790_v1, %v2558_v36 }
 0x663   : > { %v1796_v41 = vpack.c.bf16 %v1794_v22, %v1793_v55 }
 0x665   : > { %2288 = vmatmul.msk.bf16.vlgmr.msrb.gmra.mxu3 %vm420_vm0, %v1796_v41 }
 0x667   : > { %v1758_v54 = vpop.permute.xlu2 %1757 }
 0x668   : > { %v1788_v25 = vsel %vm681_vm11, %v996_v60, %v1758_v54  ;;  %v2308_v60 = vld [vmem:[%s3612_s9 + $0x20] sm:$0xf] }
 0x669   : > { %v2309_v52 = vor.u32 %v2381_v43, %v2308_v60  ;;  %v2387_v43 = vld [vmem:[%s3613_s10 + $0x18] sm:$0xff] }
 0x66a   : > { %2132 = vmatpush.bf16.msrb.mxu1 %v2387_v43 }
 0x66b   : > { %1968 = vmatpush.bf16.msrb.mxu2 %v2309_v52 }
 0x66e   : > { %2133 = vmatpush.bf16.msrb.mxu1 %v2386_v51 }
 0x66f   : > { %1969 = vmatpush.bf16.msrb.mxu2 %v2301_v18 }
 0x672   : > { %2134 = vmatpush.bf16.msrb.mxu1 %v2385_v35 }
 0x673   : > { %1970 = vmatpush.bf16.msrb.mxu2 %v2293_v20 }
 0x675   : > { %v1770_v23 = vpop.permute.xlu0 %1769 }
 0x676   : > { %v1791_v26 = vsel %vm890_vm8, %v1788_v25, %v1770_v23  ;;  %2135 = vmatpush.bf16.msrb.mxu1 %v2384_v49 }
 0x67a   : > { %v1782_v50 = vpop.permute.xlu2 %1781 }
 0x67b   : > { %v1795_v30 = vsel %vm1792_vm15, %v1791_v26, %v1782_v50 }
 0x67c   : > { %v1797_v27 = vpack.c.bf16 %v1795_v30, %v1795_v30 }
 0x67e   : > { %2289 = vmatmul.msk.bf16.gmra.mxu3 %vm420_vm0, %v1797_v27  ;;  %v2561_v27 = vld [vmem:[%s3611_s8] ss:$0 sm:$0xff] }
 0x6e8   : > { %v1837_v63 = vpop.f32.mrf.mxu3 }
 0x6e9   : > { %v3481_v4 = vadd.f32 %v2644_v15, %v1837_v63 }
 0x6eb   : > { %v1850_v53 = vmul.f32 %v3481_v4, %v3481_v4 }
 0x6ed   : > { %v1853_v28 = vsel %vm420_vm0, %v1850_v53, 0.0 }
 0x6ee   : > { %1854 = vadd.xlane.f32.xlu1 %v1853_v28 }
 0x6f0   : > { %v1839_v59 = vpop.f32.mrf.mxu3 }
 0x6f1   : > { %v3487_v38 = vadd.f32 %v2645_v46, %v1839_v59 }
 0x6f3   : > { %v1851_v12 = vmul.f32 %v3487_v38, %v3487_v38 }
 0x6f5   : > { %v1856_v3 = vsel %vm420_vm0, %v1851_v12, 0.0 }
 0x6f6   : > { %1857 = vadd.xlane.f32.xlu2 %v1856_v3 }
 0x701   : > { %v1842_v9 = vpop.f32.mrf.mxu3 }
 0x702   : > { %v3493_v40 = vadd.f32 %v2646_v6, %v1842_v9 }
 0x704   : > { %v1852_v8 = vmul.f32 %v3493_v40, %v3493_v40 }
 0x706   : > { %v1859_v34 = vsel %vm420_vm0, %v1852_v8, 0.0 }
 0x707   : > { %1860 = vadd.xlane.f32.xlu1 %v1859_v34 }
 0x709   : > { %v1844_v37 = vpop.f32.mrf.mxu3 }
 0x761   : > { %v1855_v11 = vpop.xlane.xlu1 %1854 }
 0x762   : > { %v1862_v19 = vmul.f32 %v1855_v11, %v2853_v42 }
 0x764   : > { %v1865_v29 = vadd.f32 1e-06, %v1862_v19 }
 0x766   : > { %2626 = vrsqrt.f32 %v1865_v29  ;;  %vm1874_vm1 = vweird.f32 %v1865_v29 }
 0x769   : > { %v1858_v0 = vpop.xlane.xlu2 %1857 }
 0x76a   : > { %v1863_v10 = vmul.f32 %v1858_v0, %v2853_v42 }
 0x76c   : > { %v2627_v13 = vpop.eup %2626  ;;  %v1866_v14 = vadd.f32 1e-06, %v1863_v10 }
 0x76d   : > { %v1869_v16 = vmul.f32 %v2627_v13, %v1865_v29  ;;  %vm1875_vm11 = vweird.f32 %v2627_v13 }
 0x76e   : > { %2628 = vrsqrt.f32 %v1866_v14  ;;  %vm1876_vm2 = vmor %vm1874_vm1, %vm1875_vm11  ;;  %vm1884_vm4 = vweird.f32 %v1866_v14 }
 0x76f   : > { %v1870_v62 = vmul.f32 %v2627_v13, %v1869_v16 }
 0x771   : > { %v1871_v36 = vmul.f32 0.5, %v1870_v62 }
 0x773   : > { %v1872_v17 = vsub.f32 1.5, %v1871_v36 }
 0x774   : > { %v2629_v21 = vpop.eup %2628 }
 0x775   : > { %v1879_v1 = vmul.f32 %v2629_v21, %v1866_v14  ;;  %v1873_v55 = vmul.f32 %v2627_v13, %v1872_v17  ;;  %vm1885_vm3 = vweird.f32 %v2629_v21 }
 0x776   : > { %vm1886_vm5 = vmor %vm1884_vm4, %vm1885_vm3 }
 0x777   : > { %v1880_v22 = vmul.f32 %v2629_v21, %v1879_v1  ;;  %v1877_v23 = vsel %vm1876_vm2, %v2627_v13, %v1873_v55 }
 0x778   : > { %v1898_v63 = vmul.f32 %v1877_v23, %v3481_v4 }
 0x779   : > { %v1881_v41 = vmul.f32 0.5, %v1880_v22 }
 0x77a   : > { %v1861_v54 = vpop.xlane.xlu1 %1860  ;;  %v1904_v28 = vmul.f32 %v2561_v27, %v1898_v63 }
 0x77b   : > { %v1882_v25 = vsub.f32 1.5, %v1881_v41  ;;  %v1864_v26 = vmul.f32 %v1861_v54, %v2853_v42 }
 0x77d   : > { %v1883_v50 = vmul.f32 %v2629_v21, %v1882_v25  ;;  %v1867_v30 = vadd.f32 1e-06, %v1864_v26 }
 0x77f   : > { %v1887_v15 = vsel %vm1886_vm5, %v2629_v21, %v1883_v50  ;;  %2630 = vrsqrt.f32 %v1867_v30  ;;  %vm1894_vm7 = vweird.f32 %v1867_v30 }
 0x780   : > { %v1899_v53 = vmul.f32 %v1887_v15, %v3487_v38 }
 0x782   : > { %v1905_v59 = vmul.f32 %v2561_v27, %v1899_v53 }
 0x784   : > { %v1907_v46 = vpack.c.bf16 %v1905_v59, %v1904_v28 }
 0x785   : > { %v2631_v12 = vpop.eup %2630 }
 0x786   : > { %v1889_v3 = vmul.f32 %v2631_v12, %v1867_v30  ;;  %2322 = vmatmul.msk.bf16.vlgmr.msrb.gmra.mxu2 %vm420_vm0, %v1907_v46  ;;  %2324 = vmatmul.msk.bf16.vlgmr.msrb.gmra.mxu0 %vm420_vm0, %v1907_v46  ;;  %vm1895_vm6 = vweird.f32 %v2631_v12 }
 0x787   : > { %vm1896_vm8 = vmor %vm1894_vm7, %vm1895_vm6 }
 0x788   : > { %v1890_v42 = vmul.f32 %v2631_v12, %v1889_v3 }
 0x78a   : > { %v1891_v9 = vmul.f32 0.5, %v1890_v42 }
 0x78c   : > { %v1892_v6 = vsub.f32 1.5, %v1891_v9 }
 0x78e   : > { %v1893_v8 = vmul.f32 %v2631_v12, %v1892_v6 }
 0x790   : > { %v1897_v34 = vsel %vm1896_vm8, %v2631_v12, %v1893_v8 }
 0x791   : > { %v1900_v37 = vmul.f32 %v1897_v34, %v3493_v40 }
 0x793   : > { %v1906_v58 = vmul.f32 %v2561_v27, %v1900_v37 }
 0x795   : > { %v1908_v32 = vpack.c.bf16 %v1906_v58, %v1906_v58 }
 0x797   : > { %2323 = vmatmul.msk.bf16.gmra.mxu2 %vm420_vm0, %v1908_v32  ;;  %2325 = vmatmul.msk.bf16.gmra.mxu0 %vm420_vm0, %v1908_v32 }
 0x803   : > { %v3571_v60 = vpop.f32.mrf.mxu0 }
 0x809   : > { %v1972_v48 = vpop.f32.mrf.mxu2 }
 0x80a   : > { %v2326_v52 = vmul.f32 -1.442695, %v1972_v48 }
 0x80b   : > { %v1992_v47 = vpop.f32.mrf.mxu0 }
 0x80c   : > { %2632 = vpow2.f32 %v2326_v52 }
 0x811   : > { %v1974_v45 = vpop.f32.mrf.mxu2 }
 0x812   : > { %v2633_v44 = vpop.eup %2632  ;;  %v2327_v18 = vmul.f32 -1.442695, %v1974_v45 }
 0x813   : > { %v2008_v11 = vadd.f32 1.0, %v2633_v44 }
 0x814   : > { %2634 = vpow2.f32 %v2327_v18  ;;  %v3585_v5 = vpop.f32.mrf.mxu0 }
 0x815   : > { %2636 = vrcp.f32 %v2008_v11  ;;  %v2022_v16 = vand.u32 2147483648, %v2008_v11  ;;  %vm2016_vm10 = vweird.f32 %v2008_v11  ;;  %v2020_v36 = vand.u32 2147483647, %v2008_v11 }
 0x817   : > { %v2023_v22 = vor.u32 1.1754944e-38, %v2022_v16  ;;  %vm2021_vm13 = vcmp.eq.f32.partialorder %v2020_v36, 8.507059e+37 }
 0x81a   : > { %v2635_v19 = vpop.eup %2634  ;;  %v1977_v57 = vpop.f32.mrf.mxu2 }
 0x81b   : > { %v2637_v7 = vpop.eup %2636  ;;  %v2009_v61 = vadd.f32 1.0, %v2635_v19  ;;  %v2328_v29 = vmul.f32 -1.442695, %v1977_v57 }
 0x81c   : > { %v2012_v20 = vmul.f32 %v2637_v7, %v2008_v11  ;;  %v1997_v56 = vpop.f32.mrf.mxu0  ;;  %vm2017_vm9 = vweird.f32 %v2637_v7 }
 0x81d   : > { %2638 = vrcp.f32 %v2009_v61  ;;  %vm2018_vm12 = vmor %vm2016_vm10, %vm2017_vm9  ;;  %v2037_v41 = vand.u32 2147483648, %v2009_v61  ;;  %v2035_v23 = vand.u32 2147483647, %v2009_v61  ;;  %vm2031_vm15 = vweird.f32 %v2009_v61 }
 0x81e   : > { %v2013_v31 = vsub.f32 1.0, %v2012_v20  ;;  %2640 = vpow2.f32 %v2328_v29 }
 0x81f   : > { %v2038_v50 = vor.u32 1.1754944e-38, %v2037_v41  ;;  %vm2036_vm1 = vcmp.eq.f32.partialorder %v2035_v23, 8.507059e+37 }
 0x820   : > { %v2014_v0 = vmul.f32 %v2637_v7, %v2013_v31 }
 0x822   : > { %v2015_v10 = vadd.f32 %v2637_v7, %v2014_v0  ;;  %v1979_v13 = vpop.f32.mrf.mxu2 }
 0x823   : > { %v2639_v14 = vpop.eup %2638 }
 0x824   : > { %v2641_v62 = vpop.eup %2640  ;;  %v2027_v17 = vmul.f32 %v2639_v14, %v2009_v61  ;;  %v2019_v1 = vsel %vm2018_vm12, %v2637_v7, %v2015_v10  ;;  %vm2032_vm14 = vweird.f32 %v2639_v14 }
 0x825   : > { %v2010_v21 = vadd.f32 1.0, %v2641_v62  ;;  %v2024_v25 = vsel %vm2021_vm13, %v2023_v22, %v2019_v1  ;;  %vm2033_vm11 = vmor %vm2031_vm15, %vm2032_vm14 }
 0x826   : > { %v2028_v55 = vsub.f32 1.0, %v2027_v17  ;;  %v2056_v30 = vmul.f32 %v2024_v25, %v1972_v48 }
 0x827   : > { %2642 = vrcp.f32 %v2010_v21  ;;  %v2052_v3 = vand.u32 2147483648, %v2010_v21  ;;  %v2050_v6 = vand.u32 2147483647, %v2010_v21  ;;  %vm2046_vm3 = vweird.f32 %v2010_v21 }
 0x828   : > { %v2029_v54 = vmul.f32 %v2639_v14, %v2028_v55  ;;  %v2059_v59 = vmul.f32 %v2056_v30, %v3571_v60 }
 0x829   : > { %v2053_v34 = vor.u32 1.1754944e-38, %v2052_v3  ;;  %vm2051_vm5 = vcmp.eq.f32.partialorder %v2050_v6, 8.507059e+37 }
 0x82a   : > { %v2030_v26 = vadd.f32 %v2639_v14, %v2029_v54 }
 0x82c   : > { %v2034_v27 = vsel %vm2033_vm11, %v2639_v14, %v2030_v26 }
 0x82d   : > { %v2643_v63 = vpop.eup %2642  ;;  %v2039_v15 = vsel %vm2036_vm1, %v2038_v50, %v2034_v27 }
 0x82e   : > { %v2057_v53 = vmul.f32 %v2039_v15, %v1974_v45  ;;  %v2042_v28 = vmul.f32 %v2643_v63, %v2010_v21  ;;  %vm2047_vm2 = vweird.f32 %v2643_v63 }
 0x82f   : > { %vm2048_vm4 = vmor %vm2046_vm3, %vm2047_vm2 }
 0x830   : > { %v2060_v46 = vmul.f32 %v2057_v53, %v1992_v47  ;;  %v2043_v12 = vsub.f32 1.0, %v2042_v28 }
 0x832   : > { %v2062_v42 = vpack.c.bf16 %v2060_v46, %v2059_v59  ;;  %v2044_v9 = vmul.f32 %v2643_v63, %v2043_v12 }
 0x834   : > { %v2045_v8 = vadd.f32 %v2643_v63, %v2044_v9  ;;  %2136 = vmatmul.bf16.vlgmr.msrb.gmra.mxu1 %v2062_v42 }
 0x836   : > { %v2049_v37 = vsel %vm2048_vm4, %v2643_v63, %v2045_v8 }
 0x837   : > { %v2054_v58 = vsel %vm2051_vm5, %v2053_v34, %v2049_v37 }
 0x838   : > { %v2058_v32 = vmul.f32 %v2054_v58, %v1977_v57 }
 0x83a   : > { %v2061_v33 = vmul.f32 %v2058_v32, %v3585_v5 }
 0x83c   : > { %v2063_v39 = vpack.c.bf16 %v2061_v33, %v2061_v33 }
 0x844   : > { %2141 = vmatmul.bf16.gmra.mxu1 %v2063_v39 }
 0x8b1   : > { %v2137_v24 = vpop.f32.mrf.mxu1 }
 0x8b2   : > { %v2146_v2 = vadd.f32 %v2137_v24, %v3481_v4 }
 0x8b4   : > { %2149 = vst.msk [vmem:[%s386_s29] sm:$0xff] %vm420_vm0, %v2146_v2 }
 0x8b9   : > { %v2139_v60 = vpop.f32.mrf.mxu1 }
 0x8ba   : > { %v2147_v43 = vadd.f32 %v2139_v60, %v3487_v38 }
 0x8bc   : > { %2150 = vst.msk [vmem:[%s386_s29 + $0x8] sm:$0xff] %vm420_vm0, %v2147_v43 }
 0x8c1   : > { %v2142_v48 = vpop.f32.mrf.mxu1 }
 0x8c2   : > { %v2148_v52 = vadd.f32 %v2142_v48, %v3493_v40 }
 0x8c4   : > { %2151 = vst.msk [vmem:[%s386_s29 + $0x10] sm:$0xff] %vm420_vm0, %v2148_v52 }
 0x8c9   : > { %v2144_v51 = vpop.f32.mrf.mxu1 }
 0x8ca PF: > { %s21_s17 = sadd.s32 1, %s2653_s17  }
 0x8cb   : > { %p18_p4 = scmp.ge.s32.totalorder %s21_s17, 4  }
 0x8cd   :  { %20 = sbr.rel (!%p18_p4) target bundleno = 1 (0x1), region = 94 }

// kernel: vit_moe_forward.6
= control target key start
LH: loop header
LB: loop body
LE: loop exit
PB: predicated region body
PF: predicated region fallthrough
CT: control target
= control target key end

     0   :  { %s4498_s21 = smov 0   ;;  %s6099_s0 = inlined_call_operand.vmem [shape: f32[2,24,64], index: 0, kind: input, shape index: {}]   ;;  %s6100_s1 = inlined_call_operand.vmem [shape: f32[24,8], index: 1, kind: input, shape index: {}]   ;;  %s6101_s2 = inlined_call_operand.vmem [shape: f32[24,8], index: 2, kind: input, shape index: {}]   ;;  %s6102_s3 = inlined_call_operand.vmem [shape: f32[1,64], index: 3, kind: input, shape index: {}]   ;;  %s6103_s4 = inlined_call_operand.vmem [shape: bf16[64,160], index: 4, kind: input, shape index: {}]   ;;  %s6104_s5 = inlined_call_operand.vmem [shape: f32[1,16], index: 5, kind: input, shape index: {}]   ;;  %s6105_s6 = inlined_call_operand.vmem [shape: bf16[16,128], index: 6, kind: input, shape index: {}]   ;;  %s6106_s7 = inlined_call_operand.vmem [shape: bf16[64,64], index: 7, kind: input, shape index: {}]   ;;  %s6107_s8 = inlined_call_operand.vmem [shape: f32[1,64], index: 8, kind: input, shape index: {}]   ;;  %s6108_s9 = inlined_call_operand.vmem [shape: bf16[64,4], index: 9, kind: input, shape index: {}]   ;;  %s6109_s10 = inlined_call_operand.vmem [shape: bf16[64,1280], index: 10, kind: input, shape index: {}]   ;;  %s6110_s11 = inlined_call_operand.vmem [shape: bf16[640,64], index: 11, kind: input, shape index: {}]   ;;  %s6111_s12 = inlined_call_operand.vmem [shape: f32[2,24,64], index: 12, kind: output, shape index: {}]  }
   0x1 LB: > { %s3498_s22 = sadd.s32 4294967295, %s4412_s21   ;;  %p3502_p0 = scmp.ge.s32.totalorder %s4412_s21, 1  ;;  %s4412_s21 = sphi %s4498_s21, %s22_s21  }
   0x2   : > { %p362_p1 = scmp.lt.s32.totalorder %s4412_s21, 3 }
   0x4   : > { %p363_p2 = pnand %p3502_p0, %p362_p1 }
   0x5   : > { %p404_p3 = scmp.lt.s32.totalorder (!%p363_p2), %s3498_s22, 1  ;;  %s4414_s29 = smov (!%p363_p2), 24  }
   0x6   : > { %366 = sbr.rel (%p363_p2) target bundleno = 2849 (0xb21), region = 68  ;;  %s4416_s20 = smov (!%p363_p2), 56  }
   0x7   : > { %s4417_s27 = smov (!%p363_p2), 16   ;;  %s4418_s24 = smov (!%p363_p2), 88  }
   0x8   : > { %s4419_s30 = smov (!%p363_p2), 120   ;;  %s4420_s13 = smov (!%p363_p2), 48  }
   0x9   : > { %s4421_s14 = smov (!%p363_p2), 80   ;;  %s4422_s15 = smov (!%p363_p2), 112  }
   0xa   : > { %s4425_s25 = smov (!%p363_p2), 64   ;;  %s4426_s28 = smov (!%p363_p2), 32  }
   0xb   : > { %s6129_s22 = smov (!%p404_p3, %s3498_s22), 1  ;;  %vm6112_vm0 = vcmask 523264   ;;  %v4537_v9 = vld [vmem:[%s6100_s1 + $0x10] sm:$0xff]  ;;  %v4415_v10 = vmov 64.0   ;;  %v4544_v11 = vld [vmem:[%s6100_s1 + $0x8] sm:$0xff]  ;;  %v4558_v15 = vld [vmem:[%s6100_s1] sm:$0xff] }
   0xc   : > { %s4068_s23 = smul.u32 24, %s6129_s22  ;;  %4261 = vrcp.f32 %v4415_v10  ;;  %v4549_v12 = vld [vmem:[%s6101_s2 + $0x10] sm:$0xff]  ;;  %v4563_v16 = vld [vmem:[%s6101_s2 + $0x8] sm:$0xff]  ;;  %v3978_v19 = vld [vmem:[%s6103_s4 + $0x34] sm:$0xf0]  ;;  %vm708_vm11 = vcmask 130048  }
   0xd   : > { %v3531_v18 = vld [vmem:[%s6103_s4 + $0x30] sm:$0xf]  ;;  %v3977_v20 = vld [vmem:[%s6103_s4 + $0x34] sm:$0xf]  ;;  %v3533_v22 = vld [vmem:[%s6103_s4 + $0x38] sm:$0xf0] }
   0xe   : > { %s4514_s26 = scalar_lea.vmem %s6099_s0, %s4068_s23  ;;  %v3532_v21 = vor.u32 %v3978_v19, %v3531_v18  ;;  %v3536_v23 = vor.u32 %v3977_v20, %v3533_v22  ;;  %v4584_v25 = vld [vmem:[%s6101_s2] sm:$0xff]  ;;  %v3976_v27 = vld [vmem:[%s6103_s4 + $0x24] sm:$0xf0]  ;;  %v3525_v30 = vld [vmem:[%s6103_s4 + $0x28] sm:$0xf0]  ;;  %s413_s16 = scalar_lea.vmem %s6111_s12, %s4068_s23 }
   0xf   : > { %v4517_v0 = vld [vmem:[%s4514_s26] sm:$0xff]  ;;  %v4520_v1 = vld [vmem:[%s4514_s26 + $0x10] sm:$0xff]  ;;  %v4527_v4 = vld [vmem:[%s4514_s26 + $0x8] sm:$0xff]  ;;  %611 = vrot.lane.b32.xlu2 %v4584_v25, %s4414_s29 }
  0x10   : > { %v444_v2 = vmul.f32 %v4517_v0, %v4517_v0  ;;  %v446_v3 = vmul.f32 %v4520_v1, %v4520_v1  ;;  %v445_v7 = vmul.f32 %v4527_v4, %v4527_v4  ;;  %561 = vmatpush.bf16.msra.mxu0 %v3532_v21  ;;  %579 = vmatpush.bf16.msra.mxu1 %v3536_v23  ;;  %v3523_v26 = vld [vmem:[%s6103_s4 + $0x20] sm:$0xf]  ;;  %v3975_v29 = vld [vmem:[%s6103_s4 + $0x24] sm:$0xf]  ;;  %v3515_v33 = vld [vmem:[%s6103_s4 + $0x10] sm:$0xf] }
  0x11   : > { %v3524_v28 = vor.u32 %v3976_v27, %v3523_v26  ;;  %v3528_v31 = vor.u32 %v3975_v29, %v3525_v30  ;;  %v3974_v34 = vld [vmem:[%s6103_s4 + $0x14] sm:$0xf0]  ;;  %v3973_v35 = vld [vmem:[%s6103_s4 + $0x14] sm:$0xf]  ;;  %v3517_v37 = vld [vmem:[%s6103_s4 + $0x18] sm:$0xf0] }
  0x12   : > { %v448_v5 = vsel %vm6112_vm0, %v444_v2, 0.0  ;;  %v454_v6 = vsel %vm6112_vm0, %v446_v3, 0.0  ;;  %v451_v8 = vsel %vm6112_vm0, %v445_v7, 0.0  ;;  %v4262_v13 = vpop.eup %4261  ;;  %v3516_v36 = vor.u32 %v3974_v34, %v3515_v33  ;;  %v3507_v38 = vld [vmem:[%s6103_s4] sm:$0xf] }
  0x13   : > { %449 = vadd.xlane.f32.xlu0 %v448_v5  ;;  %455 = vadd.xlane.f32.xlu1 %v454_v6  ;;  %v458_v14 = vmul.f32 64.0, %v4262_v13  ;;  %vm462_vm1 = vweird.f32 %v4262_v13  ;;  %v3972_v39 = vld [vmem:[%s6103_s4 + $0x4] sm:$0xf0]  ;;  %v3520_v40 = vor.u32 %v3973_v35, %v3517_v37  ;;  %v3971_v41 = vld [vmem:[%s6103_s4 + $0x4] sm:$0xf] }
  0x14   : > { %562 = vmatpush.bf16.msra.mxu0 %v3524_v28  ;;  %580 = vmatpush.bf16.msra.mxu1 %v3528_v31  ;;  %v3509_v42 = vld [vmem:[%s6103_s4 + $0x8] sm:$0xf0]  ;;  %v3508_v44 = vor.u32 %v3972_v39, %v3507_v38 }
  0x15   : > { %v459_v17 = vsub.f32 1.0, %v458_v14  ;;  %v3512_v45 = vor.u32 %v3971_v41, %v3509_v42 }
  0x17   : > { %v460_v24 = vmul.f32 %v4262_v13, %v459_v17  ;;  %650 = vrot.lane.b32.xlu2 %v4558_v15, %s4414_s29  ;;  %v4258_v17 = vld [vmem:[%s6102_s3] ss:$0 sm:$0xff] }
  0x18   : > { %563 = vmatpush.bf16.msra.mxu0 %v3516_v36  ;;  %581 = vmatpush.bf16.msra.mxu1 %v3520_v40 }
  0x19   : > { %v461_v32 = vadd.f32 %v4262_v13, %v460_v24 }
  0x1b   : > { %452 = vadd.xlane.f32.xlu0 %v451_v8  ;;  %v4628_v43 = vsel %vm462_vm1, %v4262_v13, %v461_v32 }
  0x1c   : > { %564 = vmatpush.bf16.msra.mxu0 %v3508_v44  ;;  %582 = vmatpush.bf16.msra.mxu1 %v3512_v45 }
  0x1f   : > { %1041 = vrot.lane.b32.xlu2 %v4563_v16, %s4416_s20 }
  0x27   : > { %600 = vrot.lane.b32.xlu2 %v4537_v9, %s4417_s27 }
  0x2c   : > { %654 = vrot.lane.b32.xlu1 %v4537_v9, %s4414_s29 }
  0x2f   : > { %615 = vrot.lane.b32.xlu0 %v4549_v12, %s4414_s29  ;;  %596 = vrot.lane.b32.xlu2 %v4558_v15, %s4417_s27 }
  0x34   : > { %652 = vrot.lane.b32.xlu1 %v4544_v11, %s4414_s29 }
  0x37   : > { %613 = vrot.lane.b32.xlu0 %v4563_v16, %s4414_s29  ;;  %640 = vrot.lane.b32.xlu2 %v4563_v16, %s4417_s27 }
  0x3c   : > { %1078 = vrot.lane.b32.xlu1 %v4558_v15, %s4416_s20 }
  0x3f   : > { %1039 = vrot.lane.b32.xlu0 %v4584_v25, %s4416_s20  ;;  %1332 = vrot.lane.b32.xlu2 %v4558_v15, %s4418_s24 }
  0x44   : > { %642 = vrot.lane.b32.xlu1 %v4549_v12, %s4417_s27 }
  0x47   : > { %1080 = vrot.lane.b32.xlu0 %v4544_v11, %s4416_s20 }
  0x4c   : > { %1043 = vrot.lane.b32.xlu1 %v4549_v12, %s4416_s20 }
  0x4f   : > { %1082 = vrot.lane.b32.xlu0 %v4537_v9, %s4416_s20 }
  0x54   : > { %598 = vrot.lane.b32.xlu1 %v4544_v11, %s4417_s27 }
  0x57   : > { %638 = vrot.lane.b32.xlu0 %v4584_v25, %s4417_s27 }
  0x5c   : > { %1293 = vrot.lane.b32.xlu1 %v4584_v25, %s4418_s24 }
  0x5f   : > { %1295 = vrot.lane.b32.xlu0 %v4563_v16, %s4418_s24 }
  0x64   : > { %1334 = vrot.lane.b32.xlu1 %v4544_v11, %s4418_s24 }
  0x69   : > { %v612_v28 = vpop.permute.xlu2 %611 }
  0x71   : > { %v651_v36 = vpop.permute.xlu2 %650 }
  0x86   : > { %v450_v46 = vpop.xlane.xlu0 %449  ;;  %v456_v47 = vpop.xlane.xlu1 %455 }
  0x87   : > { %v464_v48 = vmul.f32 %v4628_v43, %v450_v46  ;;  %v466_v49 = vmul.f32 %v4628_v43, %v456_v47 }
  0x89   : > { %v467_v50 = vadd.f32 1e-06, %v464_v48  ;;  %v469_v51 = vadd.f32 1e-06, %v466_v49 }
  0x8b   : > { %4263 = vrsqrt.f32 %v467_v50  ;;  %vm476_vm3 = vweird.f32 %v467_v50  ;;  %vm496_vm8 = vweird.f32 %v469_v51 }
  0x8c   : > { %4265 = vrsqrt.f32 %v469_v51 }
  0x8e   : > { %v453_v52 = vpop.xlane.xlu0 %452 }
  0x8f   : > { %v465_v53 = vmul.f32 %v4628_v43, %v453_v52 }
  0x91   : > { %v4264_v54 = vpop.eup %4263  ;;  %v468_v55 = vadd.f32 1e-06, %v465_v53 }
  0x92   : > { %v471_v56 = vmul.f32 %v4264_v54, %v467_v50  ;;  %v4266_v58 = vpop.eup %4265  ;;  %vm477_vm2 = vweird.f32 %v4264_v54 }
  0x93   : > { %4267 = vrsqrt.f32 %v468_v55  ;;  %v491_v61 = vmul.f32 %v4266_v58, %v469_v51  ;;  %vm478_vm4 = vmor %vm476_vm3, %vm477_vm2  ;;  %vm486_vm6 = vweird.f32 %v468_v55  ;;  %vm497_vm9 = vweird.f32 %v4266_v58 }
  0x94   : > { %v472_v57 = vmul.f32 %v4264_v54, %v471_v56  ;;  %vm498_vm10 = vmor %vm496_vm8, %vm497_vm9  ;;  %vm917_vm8 = vcmask 261120  }
  0x95   : > { %v492_v5 = vmul.f32 %v4266_v58, %v491_v61 }
  0x96   : > { %v473_v59 = vmul.f32 0.5, %v472_v57 }
  0x97   : > { %v493_v8 = vmul.f32 0.5, %v492_v5 }
  0x98   : > { %v474_v60 = vsub.f32 1.5, %v473_v59 }
  0x99   : > { %v4268_v62 = vpop.eup %4267  ;;  %v494_v18 = vsub.f32 1.5, %v493_v8 }
  0x9a   : > { %v481_v63 = vmul.f32 %v4268_v62, %v468_v55  ;;  %v475_v2 = vmul.f32 %v4264_v54, %v474_v60  ;;  %vm487_vm5 = vweird.f32 %v4268_v62  ;;  %v1042_v60 = vpop.permute.xlu2 %1041 }
  0x9b   : > { %vm488_vm7 = vmor %vm486_vm6, %vm487_vm5  ;;  %v495_v23 = vmul.f32 %v4266_v58, %v494_v18 }
  0x9c   : > { %v482_v3 = vmul.f32 %v4268_v62, %v481_v63  ;;  %v479_v10 = vsel %vm478_vm4, %v4264_v54, %v475_v2 }
  0x9d   : > { %v500_v14 = vmul.f32 %v479_v10, %v4517_v0  ;;  %v499_v0 = vsel %vm498_vm10, %v4266_v58, %v495_v23  ;;  %vm954_vm10 = vcmask 195584  }
  0x9e   : > { %v483_v6 = vmul.f32 0.5, %v482_v3  ;;  %v655_v35 = vpop.permute.xlu1 %654 }
  0x9f   : > { %v506_v21 = vmul.f32 %v4258_v17, %v500_v14 }
  0xa0   : > { %v484_v7 = vsub.f32 1.5, %v483_v6 }
  0xa1   : > { %v616_v29 = vpop.permute.xlu0 %615 }
  0xa2   : > { %v485_v13 = vmul.f32 %v4268_v62, %v484_v7 }
  0xa4   : > { %v489_v19 = vsel %vm488_vm7, %v4268_v62, %v485_v13  ;;  %vm701_vm7 = vcmask 64512  }
  0xa5   : > { %v501_v20 = vmul.f32 %v489_v19, %v4527_v4  ;;  %v502_v4 = vmul.f32 %v499_v0, %v4520_v1 }
  0xa6   : > { %v4690_v42 = vpop.permute.xlu1 %652 }
  0xa7   : > { %v507_v22 = vmul.f32 %v4258_v17, %v501_v20  ;;  %v508_v26 = vmul.f32 %v4258_v17, %v502_v4  ;;  %v4758_v20 = vpop.permute.xlu2 %600 }
  0xa9   : > { %v509_v24 = vpack.c.bf16 %v507_v22, %v506_v21  ;;  %v510_v27 = vpack.c.bf16 %v508_v26, %v508_v26  ;;  %v614_v37 = vpop.permute.xlu0 %613 }
  0xab   : > { %3537 = vmatmul.msk.bf16.vlgmr.msra.gmra.mxu0 %vm6112_vm0, %v509_v24  ;;  %3539 = vmatmul.msk.bf16.vlgmr.msra.gmra.mxu1 %vm6112_vm0, %v509_v24  ;;  %v4423_v24 = vmov 16.0  }
  0xac   : > { %4269 = vrcp.f32 %v4423_v24 }
  0xae   : > { %v1079_v54 = vpop.permute.xlu1 %1078 }
  0xaf   : > { %v4769_v0 = vpop.permute.xlu2 %596 }
  0xb1   : > { %v4718_v55 = vpop.permute.xlu0 %1039 }
  0xb2   : > { %v4270_v26 = vpop.eup %4269 }
  0xb3   : > { %vm723_vm12 = vweird.f32 %v4270_v26 }
  0xb6   : > { %v4724_v57 = vpop.permute.xlu1 %642 }
  0xb9   : > { %v4726_v58 = vpop.permute.xlu0 %1080 }
  0xbb   : > { %3538 = vmatmul.msk.bf16.gmra.mxu0 %vm6112_vm0, %v510_v27  ;;  %3540 = vmatmul.msk.bf16.gmra.mxu1 %vm6112_vm0, %v510_v27  ;;  %v719_v27 = vmul.f32 16.0, %v4270_v26 }
  0xbe   : > { %v1044_v62 = vpop.permute.xlu1 %1043 }
  0xc1   : > { %v1083_v63 = vpop.permute.xlu0 %1082 }
  0xc6   : > { %v4741_v7 = vpop.permute.xlu1 %598 }
  0xc9   : > { %v4743_v8 = vpop.permute.xlu0 %638 }
  0xce   : > { %v1294_v10 = vpop.permute.xlu1 %1293 }
  0xd1   : > { %v1296_v13 = vpop.permute.xlu0 %1295 }
  0xd6   : > { %v1335_v18 = vpop.permute.xlu1 %1334 }
 0x128   : > { %v4671_v30 = vpop.f32.mrf.mxu0  ;;  %v4673_v31 = vpop.f32.mrf.mxu1 }
 0x129   : > { %v620_v32 = vmul.f32 %v612_v28, %v4673_v31  ;;  %v817_v33 = vmul.f32 %v612_v28, %v4671_v30  ;;  %v705_v1 = vmul.f32 %v4673_v31, %v4673_v31  ;;  %v838_v40 = vmul.f32 %v651_v36, %v4671_v30  ;;  %v4775_v28 = vpop.permute.xlu2 %640 }
 0x12a   : > { %v659_v50 = vmul.f32 %v651_v36, %v4673_v31  ;;  %v1087_v56 = vmul.f32 %v1079_v54, %v4671_v30  ;;  %v1302_v17 = vmul.f32 %v1294_v10, %v4671_v30 }
 0x12b   : > { %626 = vrot.lane.b32.xlu0 %v620_v32, %s4419_s30  ;;  %823 = vrot.lane.b32.xlu2 %v817_v33, %s4419_s30  ;;  %v709_v34 = vsel %vm708_vm11, %v705_v1, 0.0  ;;  %v720_v33 = vsub.f32 1.0, %v719_v27 }
 0x12c   : > { %710 = vadd.xlane.f32.xlu1 %v709_v34 }
 0x12d   : > { %v721_v36 = vmul.f32 %v4270_v26, %v720_v33 }
 0x130   : > { %v4682_v38 = vpop.f32.mrf.mxu0  ;;  %v4684_v39 = vpop.f32.mrf.mxu1 }
 0x131   : > { %v621_v41 = vmul.f32 %v614_v37, %v4684_v39  ;;  %v660_v46 = vmul.f32 %v4690_v42, %v4684_v39  ;;  %v818_v51 = vmul.f32 %v614_v37, %v4682_v38  ;;  %v706_v52 = vmul.f32 %v4684_v39, %v4684_v39 }
 0x132   : > { %v1049_v61 = vmul.f32 %v1042_v60, %v4682_v38  ;;  %v1303_v14 = vmul.f32 %v1296_v13, %v4682_v38  ;;  %v1342_v19 = vmul.f32 %v1335_v18, %v4682_v38  ;;  %v648_v32 = vmul.f32 %v4775_v28, %v4684_v39 }
 0x133   : > { %844 = vrot.lane.b32.xlu0 %v838_v40, %s4419_s30  ;;  %628 = vrot.lane.b32.xlu2 %v621_v41, %s4419_s30  ;;  %v712_v53 = vsel %vm708_vm11, %v706_v52, 0.0  ;;  %v839_v37 = vmul.f32 %v4690_v42, %v4682_v38  ;;  %v4789_v40 = vpop.permute.xlu2 %1332  ;;  %v722_v41 = vadd.f32 %v4270_v26, %v721_v36  ;;  %v1048_v60 = vmul.f32 %v4718_v55, %v4671_v30 }
 0x134   : > { %v647_v55 = vmul.f32 %v4743_v8, %v4673_v31 }
 0x138   : > { %v4692_v44 = vpop.f32.mrf.mxu0  ;;  %v4694_v45 = vpop.f32.mrf.mxu1 }
 0x139   : > { %v622_v49 = vmul.f32 %v616_v29, %v4694_v45  ;;  %v840_v59 = vmul.f32 %v655_v35, %v4692_v44  ;;  %v661_v2 = vmul.f32 %v655_v35, %v4694_v45  ;;  %v819_v3 = vmul.f32 %v616_v29, %v4692_v44 }
 0x13a   : > { %v1089_v5 = vmul.f32 %v1083_v63, %v4692_v44  ;;  %v1050_v6 = vmul.f32 %v1044_v62, %v4692_v44  ;;  %v707_v21 = vmul.f32 %v4694_v45, %v4694_v45  ;;  %v835_v29 = vmul.f32 %v4743_v8, %v4671_v30 }
 0x13b   : > { %667 = vrot.lane.b32.xlu0 %v660_v46, %s4419_s30  ;;  %v649_v13 = vmul.f32 %v4724_v57, %v4694_v45 }
 0x13c   : > { %v715_v22 = vsel %vm708_vm11, %v707_v21, 0.0 }
 0x140   : > { %v573_v47 = vpop.f32.mrf.mxu0  ;;  %v591_v48 = vpop.f32.mrf.mxu1 }
 0x141   : > { %v4794_v47 = vsel %vm723_vm12, %v4270_v26, %v722_v41 }
 0x143   : > { %630 = vrot.lane.b32.xlu0 %v622_v49, %s4419_s30 }
 0x145   : > { %665 = vrot.lane.b32.xlu1 %v659_v50, %s4419_s30 }
 0x14b   : > { %1543 = vrot.lane.b32.xlu0 %v4563_v16, %s4419_s30 }
 0x14d   : > { %825 = vrot.lane.b32.xlu1 %v818_v51, %s4419_s30 }
 0x153   : > { %1027 = vrot.lane.b32.xlu0 %v4558_v15, %s4420_s13 }
 0x155   : > { %1541 = vrot.lane.b32.xlu1 %v4584_v25, %s4419_s30 }
 0x15b   : > { %1068 = vrot.lane.b32.xlu0 %v4563_v16, %s4420_s13 }
 0x15c   : > { %713 = vadd.xlane.f32.xlu2 %v712_v53 }
 0x15d   : > { %1582 = vrot.lane.b32.xlu1 %v4544_v11, %s4419_s30 }
 0x163   : > { %1093 = vrot.lane.b32.xlu0 %v1087_v56, %s4419_s30 }
 0x165   : > { %1066 = vrot.lane.b32.xlu1 %v4584_v25, %s4420_s13 }
 0x16b   : > { %848 = vrot.lane.b32.xlu0 %v840_v59, %s4419_s30  ;;  %v3979_v59 = vld [vmem:[%s6105_s6] sm:$0xff] }
 0x16c   : > { %791 = vmatpush.bf16.msra.mxu2 %v3979_v59 }
 0x16d   : > { %1056 = vrot.lane.b32.xlu1 %v1049_v61, %s4419_s30 }
 0x173   : > { %1031 = vrot.lane.b32.xlu0 %v4537_v9, %s4420_s13 }
 0x174   : > { %669 = vrot.lane.b32.xlu2 %v661_v2, %s4419_s30 }
 0x175   : > { %827 = vrot.lane.b32.xlu1 %v819_v3, %s4419_s30 }
 0x17b   : > { %1097 = vrot.lane.b32.xlu0 %v1089_v5, %s4419_s30 }
 0x17d   : > { %1058 = vrot.lane.b32.xlu1 %v1050_v6, %s4419_s30  ;;  %v1088_v6 = vmul.f32 %v4726_v58, %v4682_v38 }
 0x183   : > { %1320 = vrot.lane.b32.xlu0 %v4584_v25, %s4421_s14 }
 0x185   : > { %1283 = vrot.lane.b32.xlu1 %v4544_v11, %s4421_s14  ;;  %v4797_v50 = vpop.permute.xlu2 %823 }
 0x18b   : > { %1310 = vrot.lane.b32.xlu0 %v1303_v14, %s4419_s30 }
 0x18d   : > { %1308 = vrot.lane.b32.xlu1 %v1302_v17, %s4419_s30  ;;  %v4805_v53 = vpop.permute.xlu2 %628 }
 0x193   : > { %1336 = vrot.lane.b32.xlu0 %v4537_v9, %s4418_s24 }
 0x195   : > { %1349 = vrot.lane.b32.xlu1 %v1342_v19, %s4419_s30 }
 0x19b   : > { %1529 = vrot.lane.b32.xlu0 %v4558_v15, %s4422_s15 }
 0x19d   : > { %1297 = vrot.lane.b32.xlu1 %v4549_v12, %s4418_s24  ;;  %716 = vadd.xlane.f32.xlu2 %v715_v22  ;;  %v4767_v23 = vpop.permute.xlu0 %626 }
 0x19f   : > { %v711_v48 = vpop.xlane.xlu1 %710 }
 0x1a0   : > { %v725_v49 = vmul.f32 %v4794_v47, %v711_v48 }
 0x1a2   : > { %v728_v52 = vadd.f32 1e-06, %v725_v49 }
 0x1a3   : > { %1570 = vrot.lane.b32.xlu0 %v4563_v16, %s4422_s15 }
 0x1a4   : > { %4271 = vrsqrt.f32 %v728_v52  ;;  %vm737_vm14 = vweird.f32 %v728_v52 }
 0x1a5   : > { %1568 = vrot.lane.b32.xlu1 %v4584_v25, %s4422_s15  ;;  %v845_v4 = vpop.permute.xlu0 %844 }
 0x1a6   : > { %v4781_v34 = vadd.f32 %v845_v4, %v835_v29 }
 0x1aa   : > { %v4272_v56 = vpop.eup %4271 }
 0x1ab   : > { %v732_v61 = vmul.f32 %v4272_v56, %v728_v52  ;;  %vm738_vm13 = vweird.f32 %v4272_v56  ;;  %v1341_v52 = vmul.f32 %v4789_v40, %v4671_v30 }
 0x1ac   : > { %vm739_vm15 = vmor %vm737_vm14, %vm738_vm13  ;;  %vm1005_vm14 = vcmask 1043456  }
 0x1ad   : > { %v668_v1 = vpop.permute.xlu0 %667  ;;  %v733_v2 = vmul.f32 %v4272_v56, %v732_v61 }
 0x1ae   : > { %v4783_v35 = vadd.f32 %v668_v1, %v648_v32  ;;  %v4259_v1 = vld [vmem:[%s6104_s5] ss:$0 sm:$0xff] }
 0x1af   : > { %v734_v10 = vmul.f32 0.5, %v733_v2 }
 0x1b0   : > { %v4101_v25 = vpack.i.bf16 %v4781_v34, %v4783_v35 }
 0x1b1   : > { %v735_v19 = vsub.f32 1.5, %v734_v10 }
 0x1b3   : > { %v736_v58 = vmul.f32 %v4272_v56, %v735_v19 }
 0x1b5   : > { %846 = vrot.lane.b32.xlu2 %v839_v37, %s4419_s30  ;;  %v4792_v46 = vpop.permute.xlu0 %630  ;;  %v740_v29 = vsel %vm739_vm15, %v4272_v56, %v736_v58  ;;  %vm1819_vm15 = vcmask 392192  }
 0x1b6   : > { %v761_v33 = vmul.f32 %v740_v29, %v4673_v31  ;;  %v814_v29 = vmul.f32 %v4769_v0, %v4671_v30 }
 0x1b7   : > { %v666_v54 = vpop.permute.xlu1 %665 }
 0x1b8   : > { %v674_v17 = vadd.f32 %v666_v54, %v647_v55  ;;  %v767_v48 = vmul.f32 %v4259_v1, %v761_v33 }
 0x1bd   : > { %1580 = vrot.lane.b32.xlu2 %v4558_v15, %s4419_s30  ;;  %v1544_v51 = vpop.permute.xlu0 %1543 }
 0x1be   : > { %v1551_v42 = vmul.f32 %v1544_v51, %v4682_v38 }
 0x1bf   : > { %v4816_v3 = vpop.permute.xlu1 %825 }
 0x1c0   : > { %1558 = vrot.lane.b32.xlu1 %v1551_v42, %s4419_s30 }
 0x1c5   : > { %1029 = vrot.lane.b32.xlu2 %v4544_v11, %s4420_s13  ;;  %v1028_v54 = vpop.permute.xlu0 %1027 }
 0x1c7   : > { %v1542_v4 = vpop.permute.xlu1 %1541 }
 0x1c8   : > { %1545 = vrot.lane.b32.xlu1 %v4549_v12, %s4419_s30  ;;  %v1550_v56 = vmul.f32 %v1542_v4, %v4671_v30 }
 0x1cd   : > { %1054 = vrot.lane.b32.xlu2 %v1048_v60, %s4419_s30  ;;  %v1069_v60 = vpop.permute.xlu0 %1068 }
 0x1cf   : > { %v714_v62 = vpop.xlane.xlu2 %713  ;;  %v1583_v37 = vpop.permute.xlu1 %1582 }
 0x1d0   : > { %v726_v63 = vmul.f32 %v4794_v47, %v714_v62 }
 0x1d2   : > { %v729_v5 = vadd.f32 1e-06, %v726_v63 }
 0x1d4   : > { %4273 = vrsqrt.f32 %v729_v5  ;;  %vm747_vm2 = vweird.f32 %v729_v5 }
 0x1d5   : > { %1095 = vrot.lane.b32.xlu2 %v1088_v6, %s4419_s30  ;;  %v1094_v2 = vpop.permute.xlu0 %1093 }
 0x1d7   : > { %v670_v14 = vpop.permute.xlu2 %669  ;;  %v4838_v42 = vpop.permute.xlu1 %1066 }
 0x1d8   : > { %v676_v18 = vadd.f32 %v670_v14, %v649_v13 }
 0x1da   : > { %v4274_v21 = vpop.eup %4273  ;;  %v4116_v22 = vpack.i.bf16 %v674_v17, %v676_v18 }
 0x1db   : > { %v742_v24 = vmul.f32 %v4274_v21, %v729_v5  ;;  %vm748_vm1 = vweird.f32 %v4274_v21  ;;  %v605_v5 = vmul.f32 %v4769_v0, %v4673_v31  ;;  %v1075_v0 = vmul.f32 %v4838_v42, %v4671_v30 }
 0x1dc   : > { %4117 = vrot.lane.b32.xlu1 %v4116_v22, %s4419_s30  ;;  %vm749_vm3 = vmor %vm747_vm2, %vm748_vm1 }
 0x1dd   : > { %v743_v26 = vmul.f32 %v4274_v21, %v742_v24  ;;  %1070 = vrot.lane.b32.xlu2 %v4549_v12, %s4420_s13  ;;  %v849_v19 = vpop.permute.xlu0 %848 }
 0x1df   : > { %v744_v8 = vmul.f32 0.5, %v743_v26  ;;  %v606_v26 = vmul.f32 %v4741_v7, %v4684_v39 }
 0x1e1   : > { %v745_v27 = vsub.f32 1.5, %v744_v8 }
 0x1e3   : > { %v746_v32 = vmul.f32 %v4274_v21, %v745_v27 }
 0x1e5   : > { %1281 = vrot.lane.b32.xlu2 %v4558_v15, %s4421_s14  ;;  %v750_v36 = vsel %vm749_vm3, %v4274_v21, %v746_v32  ;;  %v1057_v15 = vpop.permute.xlu1 %1056  ;;  %v4870_v58 = vpop.permute.xlu0 %1031  ;;  %v636_v32 = vsub.f32 %v606_v26, %v4805_v53  ;;  %v816_v53 = vmul.f32 %v4758_v20, %v4692_v44 }
 0x1e6   : > { %v762_v41 = vmul.f32 %v750_v36, %v4684_v39 }
 0x1e8   : > { %v768_v49 = vmul.f32 %v4259_v1, %v762_v41 }
 0x1ea   : > { %v770_v51 = vpack.c.bf16 %v768_v49, %v767_v48 }
 0x1ec   : > { %3545 = vmatmul.msk.bf16.vlgmr.msra.gmra.mxu2 %vm708_vm11, %v770_v51  ;;  %v815_v51 = vmul.f32 %v4741_v7, %v4682_v38 }
 0x1ed   : > { %1322 = vrot.lane.b32.xlu2 %v4563_v16, %s4421_s14  ;;  %v4846_v59 = vpop.permute.xlu1 %827  ;;  %v1590_v16 = vmul.f32 %v1583_v37, %v4682_v38  ;;  %v4884_v49 = vpop.permute.xlu0 %1097 }
 0x1f5   : > { %1347 = vrot.lane.b32.xlu2 %v1341_v52, %s4419_s30  ;;  %v4851_v61 = vpop.permute.xlu1 %1058  ;;  %v1076_v52 = vmul.f32 %v1069_v60, %v4682_v38  ;;  %v1321_v7 = vpop.permute.xlu0 %1320 }
 0x1fd   : > { %1531 = vrot.lane.b32.xlu2 %v4544_v11, %s4422_s15  ;;  %v607_v11 = vmul.f32 %v4758_v20, %v4694_v45  ;;  %v4863_v10 = vpop.permute.xlu1 %1283  ;;  %v836_v20 = vmul.f32 %v4775_v28, %v4682_v38 }
 0x1ff   : > { %v637_v6 = vsub.f32 %v607_v11, %v4792_v46 }
 0x205   : > { %1556 = vrot.lane.b32.xlu2 %v1550_v56, %s4419_s30  ;;  %v1309_v21 = vpop.permute.xlu1 %1308  ;;  %v833_v56 = vsub.f32 %v815_v51, %v4816_v3 }
 0x20d   : > { %1597 = vrot.lane.b32.xlu2 %v1590_v16, %s4419_s30  ;;  %v1350_v27 = vpop.permute.xlu1 %1349  ;;  %v1102_v16 = vadd.f32 %v1094_v2, %v1075_v0 }
 0x210   : > { %v717_v40 = vpop.xlane.xlu2 %716 }
 0x211   : > { %v727_v62 = vmul.f32 %v4794_v47, %v717_v40  ;;  %v635_v47 = vsub.f32 %v605_v5, %v4767_v23  ;;  %v1311_v5 = vpop.permute.xlu0 %1310 }
 0x213   : > { %v730_v63 = vadd.f32 1e-06, %v727_v62  ;;  %v4106_v14 = vpack.i.bf16 %v635_v47, %v637_v6  ;;  %v1291_v47 = vmul.f32 %v4863_v10, %v4682_v38 }
 0x215   : > { %4275 = vrsqrt.f32 %v730_v63  ;;  %4102 = vrot.lane.b32.xlu2 %v4101_v25, %s4419_s30  ;;  %vm757_vm5 = vweird.f32 %v730_v63 }
 0x218   : > { %v847_v55 = vpop.permute.xlu2 %846 }
 0x219   : > { %v854_v3 = vadd.f32 %v847_v55, %v836_v20  ;;  %v1329_v55 = vmul.f32 %v1321_v7, %v4671_v30 }
 0x21b   : > { %v4276_v13 = vpop.eup %4275 }
 0x21c   : > { %v752_v17 = vmul.f32 %v4276_v13, %v730_v63  ;;  %vm758_vm4 = vweird.f32 %v4276_v13 }
 0x21d   : > { %4107 = vrot.lane.b32.xlu2 %v4106_v14, %s4422_s15  ;;  %vm759_vm6 = vmor %vm757_vm5, %vm758_vm4 }
 0x21e   : > { %v753_v18 = vmul.f32 %v4276_v13, %v752_v17 }
 0x220   : > { %v754_v34 = vmul.f32 0.5, %v753_v18  ;;  %v1581_v35 = vpop.permute.xlu2 %1580 }
 0x221   : > { %v1589_v25 = vmul.f32 %v1581_v35, %v4671_v30 }
 0x222   : > { %v755_v31 = vsub.f32 1.5, %v754_v34 }
 0x223   : > { %1595 = vrot.lane.b32.xlu0 %v1589_v25, %s4419_s30  ;;  %v1337_v25 = vpop.permute.xlu0 %1336 }
 0x224   : > { %v756_v46 = vmul.f32 %v4276_v13, %v755_v31  ;;  %v1343_v31 = vmul.f32 %v1337_v25, %v4692_v44 }
 0x226   : > { %v760_v23 = vsel %vm759_vm6, %v4276_v13, %v756_v46  ;;  %v1318_v13 = vsub.f32 %v1291_v47, %v1311_v5 }
 0x227   : > { %v763_v22 = vmul.f32 %v760_v23, %v4694_v45  ;;  %v832_v45 = vsub.f32 %v814_v29, %v4797_v50  ;;  %v1298_v50 = vpop.permute.xlu1 %1297 }
 0x228   : > { %v1030_v24 = vpop.permute.xlu2 %1029  ;;  %v1304_v40 = vmul.f32 %v1298_v50, %v4692_v44 }
 0x229   : > { %v769_v4 = vmul.f32 %v4259_v1, %v763_v22  ;;  %v1037_v33 = vmul.f32 %v1030_v24, %v4682_v38  ;;  %v1036_v1 = vmul.f32 %v1028_v54, %v4671_v30  ;;  %v4096_v39 = vpack.i.bf16 %v832_v45, %v636_v32 }
 0x22b   : > { %1584 = vrot.lane.b32.xlu0 %v4537_v9, %s4419_s30  ;;  %v771_v8 = vpack.c.bf16 %v769_v4, %v769_v4  ;;  %v1064_v37 = vsub.f32 %v1037_v33, %v1057_v15  ;;  %v834_v15 = vsub.f32 %v816_v53, %v4846_v59  ;;  %v837_v59 = vmul.f32 %v4724_v57, %v4692_v44  ;;  %v1530_v22 = vpop.permute.xlu0 %1529 }
 0x22d   : > { %3546 = vmatmul.msk.bf16.gmra.mxu2 %vm708_vm11, %v771_v8  ;;  %v4126_v62 = vpack.i.bf16 %v834_v15, %v833_v56  ;;  %v855_v11 = vadd.f32 %v849_v19, %v837_v59 }
 0x22f   : > { %v4136_v2 = vpack.i.bf16 %v855_v11, %v854_v3  ;;  %v1569_v26 = vpop.permute.xlu1 %1568 }
 0x230   : > { %v1055_v36 = vpop.permute.xlu2 %1054  ;;  %v1577_v29 = vmul.f32 %v1569_v26, %v4671_v30 }
 0x231   : > { %v1063_v41 = vsub.f32 %v1036_v1, %v1055_v36 }
 0x233   : > { %v4111_v48 = vpack.i.bf16 %v1064_v37, %v1063_v41  ;;  %4097 = vrot.lane.b32.xlu0 %v4096_v39, %s4422_s15  ;;  %v1571_v4 = vpop.permute.xlu0 %1570 }
 0x235   : > { %4112 = vrot.lane.b32.xlu2 %v4111_v48, %s4421_s14 }
 0x237   : > { %v1559_v32 = vpop.permute.xlu1 %1558 }
 0x238   : > { %v1096_v54 = vpop.permute.xlu2 %1095 }
 0x239   : > { %v1103_v42 = vadd.f32 %v1096_v54, %v1076_v52 }
 0x23b   : > { %v4121_v63 = vpack.i.bf16 %v1103_v42, %v1102_v16  ;;  %1312 = vrot.lane.b32.xlu0 %v1304_v40, %s4419_s30 }
 0x23d   : > { %4127 = vrot.lane.b32.xlu2 %v4126_v62, %s4422_s15  ;;  %4122 = vrot.lane.b32.xlu1 %v4121_v63, %s4418_s24 }
 0x23f   : > { %v1546_v41 = vpop.permute.xlu1 %1545 }
 0x240   : > { %v1071_v60 = vpop.permute.xlu2 %1070 }
 0x241   : > { %v1077_v36 = vmul.f32 %v1071_v60, %v4692_v44 }
 0x243   : > { %v1104_v48 = vadd.f32 %v4884_v49, %v1077_v36 }
 0x245   : > { %4137 = vrot.lane.b32.xlu1 %v4136_v2, %s4419_s30 }
 0x248   : > { %v1282_v6 = vpop.permute.xlu2 %1281 }
 0x249   : > { %v1290_v28 = vmul.f32 %v1282_v6, %v4671_v30 }
 0x24b   : > { %v1317_v14 = vsub.f32 %v1290_v28, %v1309_v21  ;;  %v1038_v21 = vmul.f32 %v4870_v58, %v4692_v44 }
 0x24d   : > { %v4131_v17 = vpack.i.bf16 %v1318_v13, %v1317_v14  ;;  %v1065_v46 = vsub.f32 %v1038_v21, %v4851_v61 }
 0x24e   : > { %v4118_v54 = vpop.permute.xlu1 %4117 }
 0x24f   : > { %4132 = vrot.lane.b32.xlu2 %v4131_v17, %s4420_s13  ;;  %v4120_v20 = vunpack.i.h.bf16 %v4118_v54  ;;  %v4119_v7 = vunpack.i.l.bf16 %v4118_v54 }
 0x250   : > { %v1323_v18 = vpop.permute.xlu2 %1322 }
 0x251   : > { %v1330_v57 = vmul.f32 %v1323_v18, %v4682_v38  ;;  %v1538_v18 = vmul.f32 %v1530_v22, %v4671_v30 }
 0x253   : > { %v1357_v34 = vadd.f32 %v1350_v27, %v1330_v57  ;;  %v1578_v27 = vmul.f32 %v1571_v4, %v4682_v38 }
 0x257   : > { %1285 = vrot.lane.b32.xlu2 %v4537_v9, %s4421_s14 }
 0x258   : > { %v1348_v19 = vpop.permute.xlu2 %1347 }
 0x259   : > { %v1356_v35 = vadd.f32 %v1348_v19, %v1329_v55 }
 0x25b   : > { %v4141_v10 = vpack.i.bf16 %v1357_v34, %v1356_v35 }
 0x25d   : > { %4142 = vrot.lane.b32.xlu1 %v4141_v10, %s4416_s20 }
 0x25f   : > { %1351 = vrot.lane.b32.xlu2 %v1343_v31, %s4419_s30 }
 0x260   : > { %v1532_v23 = vpop.permute.xlu2 %1531 }
 0x261   : > { %v1539_v59 = vmul.f32 %v1532_v23, %v4682_v38  ;;  %v4181_v23 = vpack.i.bf16 %v4692_v44, %v4682_v38 }
 0x263   : > { %v1566_v47 = vsub.f32 %v1539_v59, %v1559_v32 }
 0x265   : > { %1324 = vrot.lane.b32.xlu1 %v4549_v12, %s4421_s14 }
 0x267   : > { %1112 = vrot.lane.b32.xlu2 %v1065_v46, %s4421_s14  ;;  %v1552_v46 = vmul.f32 %v1546_v41, %v4692_v44 }
 0x268   : > { %v1557_v24 = vpop.permute.xlu2 %1556 }
 0x269   : > { %v1565_v35 = vsub.f32 %v1538_v18, %v1557_v24 }
 0x26f   : > { %v4928_v37 = vpop.f32.mrf.mxu2 }
 0x270   : > { %v1598_v8 = vpop.permute.xlu2 %1597 }
 0x271   : > { %v1605_v58 = vadd.f32 %v1598_v8, %v1578_v27 }
 0x277   : > { %v4932_v56 = vpop.f32.mrf.mxu2 }
 0x278   : > { %v4103_v1 = vpop.permute.xlu2 %4102  ;;  %v4171_v25 = vpack.i.bf16 %v4671_v30, %v4932_v56 }
 0x279   : > { %v4105_v50 = vunpack.i.h.bf16 %v4103_v1  ;;  %v4104_v51 = vunpack.i.l.bf16 %v4103_v1 }
 0x280   : > { %v4108_v0 = vpop.permute.xlu2 %4107 }
 0x281   : > { %v4110_v62 = vunpack.i.h.bf16 %v4108_v0  ;;  %v4109_v63 = vunpack.i.l.bf16 %v4108_v0 }
 0x283   : > { %v702_v3 = vsel %vm701_vm7, %v4110_v62, %v4120_v20  ;;  %v704_v60 = vsel %vm701_vm7, %v4109_v63, %v4119_v7 }
 0x284   : > { %v4166_v28 = vpack.i.bf16 %v702_v3, %v704_v60 }
 0x28f   : > { %v4113_v49 = vpop.permute.xlu2 %4112 }
 0x290   : > { %v4114_v2 = vunpack.i.l.bf16 %v4113_v49  ;;  %v4115_v26 = vunpack.i.h.bf16 %v4113_v49 }
 0x295   : > { %v1596_v33 = vpop.permute.xlu0 %1595 }
 0x296   : > { %v1604_v45 = vadd.f32 %v1596_v33, %v1577_v29 }
 0x297   : > { %v4128_v17 = vpop.permute.xlu2 %4127 }
 0x298   : > { %v4146_v61 = vpack.i.bf16 %v1605_v58, %v1604_v45  ;;  %v4129_v55 = vunpack.i.l.bf16 %v4128_v17  ;;  %v4130_v24 = vunpack.i.h.bf16 %v4128_v17 }
 0x29a   : > { %4147 = vrot.lane.b32.xlu1 %v4146_v61, %s4414_s29 }
 0x29d   : > { %v4926_v39 = vpop.permute.xlu0 %1584 }
 0x29e   : > { %v1591_v32 = vmul.f32 %v4926_v39, %v4692_v44 }
 0x2a2   : > { %1124 = vrot.lane.b32.xlu1 %v1104_v48, %s4418_s24  ;;  %s4424_s24 = smov 96  }
 0x2a5   : > { %v4098_v53 = vpop.permute.xlu0 %4097 }
 0x2a6   : > { %v4100_v52 = vunpack.i.h.bf16 %v4098_v53  ;;  %v4099_v15 = vunpack.i.l.bf16 %v4098_v53 }
 0x2a8   : > { %v703_v16 = vsel %vm701_vm7, %v4099_v15, %v4104_v51  ;;  %v880_v40 = vsel %vm701_vm7, %v4100_v52, %v4105_v50 }
 0x2a9   : > { %v4156_v42 = vpack.i.bf16 %v880_v40, %v703_v16  ;;  %v4133_v8 = vpop.permute.xlu2 %4132 }
 0x2aa   : > { %v4134_v48 = vunpack.i.l.bf16 %v4133_v8  ;;  %v4135_v54 = vunpack.i.h.bf16 %v4133_v8 }
 0x2ab   : > { %4157 = vrot.lane.b32.xlu0 %v4156_v42, %s4417_s27 }
 0x2ad   : > { %v1313_v45 = vpop.permute.xlu0 %1312 }
 0x2af   : > { %v4123_v11 = vpop.permute.xlu1 %4122 }
 0x2b0   : > { %v4124_v5 = vunpack.i.l.bf16 %v4123_v11  ;;  %v4940_v6 = vpop.f32.mrf.mxu2  ;;  %v4125_v4 = vunpack.i.h.bf16 %v4123_v11 }
 0x2b1   : > { %v4176_v21 = vpack.i.bf16 %v4928_v37, %v4940_v6  ;;  %v1286_v33 = vpop.permute.xlu2 %1285 }
 0x2b2   : > { %v1129_v13 = vsel %vm701_vm7, %v4114_v2, %v4124_v5  ;;  %v1130_v27 = vsel %vm701_vm7, %v4115_v26, %v4125_v4  ;;  %v1292_v58 = vmul.f32 %v1286_v33, %v4692_v44 }
 0x2b3   : > { %4167 = vrot.lane.b32.xlu0 %v4166_v28, %s4417_s27  ;;  %v4151_v14 = vpack.i.bf16 %v1129_v13, %v1566_v47 }
 0x2b4   : > { %v1319_v61 = vsub.f32 %v1292_v58, %v1313_v45 }
 0x2b5   : > { %4152 = vrot.lane.b32.xlu2 %v4151_v14, %s4417_s27 }
 0x2b7   : > { %v4138_v57 = vpop.permute.xlu1 %4137 }
 0x2b8   : > { %v4139_v19 = vunpack.i.l.bf16 %v4138_v57  ;;  %v800_v34 = vpop.f32.mrf.mxu2  ;;  %v4140_v22 = vunpack.i.h.bf16 %v4138_v57 }
 0x2b9   : > { %v1352_v36 = vpop.permute.xlu2 %1351 }
 0x2ba   : > { %v881_v10 = vsel %vm701_vm7, %v4129_v55, %v4139_v19 }
 0x2bb   : > { %4172 = vrot.lane.b32.xlu0 %v4171_v25, %s4424_s24  ;;  %v4161_v31 = vpack.i.bf16 %v1565_v35, %v881_v10 }
 0x2bd   : > { %1572 = vrot.lane.b32.xlu2 %v4549_v12, %s4422_s15  ;;  %4162 = vrot.lane.b32.xlu1 %v4161_v31, %s4417_s27  ;;  %v882_v12 = vsel %vm701_vm7, %v4130_v24, %v4140_v22 }
 0x2be   : > { %v4186_v29 = vpack.i.bf16 %v882_v12, %v1130_v27 }
 0x2c1   : > { %v1113_v0 = vpop.permute.xlu2 %1112 }
 0x2c3   : > { %4177 = vrot.lane.b32.xlu0 %v4176_v21, %s4424_s24 }
 0x2c5   : > { %4182 = vrot.lane.b32.xlu2 %v4181_v23, %s4424_s24  ;;  %1560 = vrot.lane.b32.xlu1 %v1552_v46, %s4419_s30 }
 0x2cb   : > { %1533 = vrot.lane.b32.xlu0 %v4537_v9, %s4422_s15 }
 0x2cd   : > { %4197 = vrot.lane.b32.xlu2 %v4171_v25, %s4425_s25  ;;  %4187 = vrot.lane.b32.xlu1 %v4186_v29, %s4417_s27 }
 0x2cf   : > { %v4143_v9 = vpop.permute.xlu1 %4142 }
 0x2d0   : > { %v4144_v41 = vunpack.i.l.bf16 %v4143_v9  ;;  %v4145_v15 = vunpack.i.h.bf16 %v4143_v9 }
 0x2d2   : > { %v1383_v50 = vsel %vm701_vm7, %v4134_v48, %v4144_v41  ;;  %v1384_v40 = vsel %vm701_vm7, %v4135_v54, %v4145_v15 }
 0x2d3   : > { %1599 = vrot.lane.b32.xlu0 %v1591_v32, %s4419_s30 }
 0x2d5   : > { %1388 = vrot.lane.b32.xlu2 %v4682_v38, %s4425_s25 }
 0x2d7   : > { %v1325_v1 = vpop.permute.xlu1 %1324 }
 0x2d8   : > { %v1331_v42 = vmul.f32 %v1325_v1, %v4692_v44 }
 0x2da   : > { %v1358_v63 = vadd.f32 %v1352_v36, %v1331_v42 }
 0x2db   : > { %4192 = vrot.lane.b32.xlu0 %v4176_v21, %s4425_s25 }
 0x2dd   : > { %1366 = vrot.lane.b32.xlu2 %v1319_v61, %s4420_s13 }
 0x2e3   : > { %4207 = vrot.lane.b32.xlu0 %v4176_v21, %s4426_s28 }
 0x2eb   : > { %4212 = vrot.lane.b32.xlu0 %v4171_v25, %s4426_s28 }
 0x2f3   : > { %1636 = vrot.lane.b32.xlu0 %v4682_v38, %s4426_s28 }
 0x30c   : > { %v4148_v39 = vpop.permute.xlu1 %4147 }
 0x30d   : > { %v4150_v17 = vunpack.i.h.bf16 %v4148_v39  ;;  %v4149_v18 = vunpack.i.l.bf16 %v4148_v39 }
 0x30f   : > { %v4153_v60 = vpop.permute.xlu2 %4152 }
 0x310   : > { %v4154_v47 = vunpack.i.l.bf16 %v4153_v60 }
 0x312   : > { %v1632_v34 = vsel %vm701_vm7, %v4154_v47, %v4150_v17 }
 0x314   : > { %v1125_v53 = vpop.permute.xlu1 %1124 }
 0x315   : > { %v1131_v51 = vsel %vm701_vm7, %v1113_v0, %v1125_v53 }
 0x316   : > { %v4201_v52 = vpack.i.bf16 %v1383_v50, %v1131_v51  ;;  %v4155_v50 = vunpack.i.h.bf16 %v4153_v60 }
 0x317   : > { %v1573_v23 = vpop.permute.xlu2 %1572 }
 0x318   : > { %4202 = vrot.lane.b32.xlu1 %v4201_v52, %s4417_s27  ;;  %v1579_v41 = vmul.f32 %v1573_v23, %v4692_v44 }
 0x31d   : > { %v4158_v16 = vpop.permute.xlu0 %4157 }
 0x31e   : > { %v4990_v3 = vunpack.i.l.bf16 %v4158_v16  ;;  %v4160_v10 = vunpack.i.h.bf16 %v4158_v16 }
 0x31f   : > { %v4183_v9 = vpop.permute.xlu2 %4182 }
 0x320   : > { %1400 = vrot.lane.b32.xlu1 %v1384_v40, %s4417_s27  ;;  %v913_v28 = vsel %vm708_vm11, %v4932_v56, %v4990_v3  ;;  %v895_v4 = vsel %vm708_vm11, %v4671_v30, %v4160_v10  ;;  %v4184_v48 = vunpack.i.l.bf16 %v4183_v9 }
 0x325   : > { %v4168_v62 = vpop.permute.xlu0 %4167 }
 0x326   : > { %v4982_v49 = vunpack.i.l.bf16 %v4168_v62  ;;  %v4984_v20 = vunpack.i.h.bf16 %v4168_v62 }
 0x328   : > { %1378 = vrot.lane.b32.xlu1 %v1358_v63, %s4416_s20  ;;  %v914_v7 = vsel %vm708_vm11, %v4940_v6, %v4982_v49  ;;  %v912_v2 = vsel %vm708_vm11, %v4928_v37, %v4984_v20  ;;  %v4198_v63 = vpop.permute.xlu2 %4197 }
 0x329   : > { %v916_v59 = vpack.c.bf16 %v914_v7, %v914_v7  ;;  %v915_v14 = vpack.c.bf16 %v913_v28, %v912_v2 }
 0x32b   : > { %v928_v11 = vsel %vm917_vm8, %v916_v59, 0  ;;  %v925_v35 = vsel %vm917_vm8, %v915_v14, 0 }
 0x32c   : > { %936 = vmatpush.bf16.xpose.msra.mxu3 %v928_v11  ;;  %v4199_v11 = vunpack.i.l.bf16 %v4198_v63 }
 0x32d   : > { %v4173_v5 = vpop.permute.xlu0 %4172 }
 0x32e   : > { %v4174_v27 = vunpack.i.l.bf16 %v4173_v5  ;;  %v4175_v0 = vunpack.i.h.bf16 %v4173_v5 }
 0x32f   : > { %v4163_v13 = vpop.permute.xlu1 %4162 }
 0x330   : > { %v4165_v57 = vunpack.i.h.bf16 %v4163_v13  ;;  %v4164_v55 = vunpack.i.l.bf16 %v4163_v13  ;;  %v1174_v33 = vsel %vm708_vm11, %v4174_v27, %v4990_v3  ;;  %v1156_v54 = vsel %vm708_vm11, %v4175_v0, %v4155_v50 }
 0x331   : > { %v1422_v13 = vsel %vm708_vm11, %v4199_v11, %v4990_v3 }
 0x332   : > { %v1631_v19 = vsel %vm701_vm7, %v4165_v57, %v4149_v18  ;;  %v896_v46 = vsel %vm708_vm11, %v4682_v38, %v4164_v55 }
 0x333   : > { %v4216_v25 = vpack.i.bf16 %v1632_v34, %v1631_v19  ;;  %v898_v12 = vpack.c.bf16 %v896_v46, %v895_v4  ;;  %v4185_v46 = vunpack.i.h.bf16 %v4183_v9 }
 0x334   : > { %937 = vmatpush.bf16.xpose.msra.mxu3 %v925_v35 }
 0x335   : > { %4217 = vrot.lane.b32.xlu2 %v4216_v25, %s4417_s27  ;;  %v4178_v31 = vpop.permute.xlu0 %4177 }
 0x336   : > { %v4179_v21 = vunpack.i.l.bf16 %v4178_v31  ;;  %v4180_v24 = vunpack.i.h.bf16 %v4178_v31 }
 0x337   : > { %v1561_v22 = vpop.permute.xlu1 %1560 }
 0x338   : > { %v1175_v26 = vsel %vm708_vm11, %v4179_v21, %v4982_v49  ;;  %v1173_v38 = vsel %vm708_vm11, %v4180_v24, %v4984_v20 }
 0x339   : > { %v1177_v8 = vpack.c.bf16 %v1175_v26, %v1175_v26  ;;  %v1176_v45 = vpack.c.bf16 %v1174_v33, %v1173_v38 }
 0x33b   : > { %3547 = vmatmul.msk.bf16.vlgmr.msra.gmra.mxu3 %vm917_vm8, %v898_v12  ;;  %v1188_v29 = vsel %vm917_vm8, %v1177_v8, 0  ;;  %v1185_v39 = vsel %vm917_vm8, %v1176_v45, 0  ;;  %v4200_v12 = vunpack.i.h.bf16 %v4198_v63 }
 0x33c   : > { %1196 = vmatpush.bf16.xpose.msrb.mxu0 %v1188_v29 }
 0x33d   : > { %1390 = vrot.lane.b32.xlu2 %v4692_v44, %s4425_s25  ;;  %v1534_v32 = vpop.permute.xlu0 %1533 }
 0x33e   : > { %v1540_v30 = vmul.f32 %v1534_v32, %v4692_v44 }
 0x33f   : > { %v4188_v58 = vpop.permute.xlu1 %4187 }
 0x340   : > { %v1567_v61 = vsub.f32 %v1540_v30, %v1561_v22  ;;  %v4190_v1 = vunpack.i.h.bf16 %v4188_v58  ;;  %v4189_v36 = vunpack.i.l.bf16 %v4188_v58 }
 0x342   : > { %1614 = vrot.lane.b32.xlu1 %v1567_v61, %s4417_s27  ;;  %v1157_v51 = vsel %vm708_vm11, %v4184_v48, %v4189_v36  ;;  %v897_v15 = vsel %vm708_vm11, %v4692_v44, %v4190_v1  ;;  %v802_v36 = vlaneseq }
 0x343   : > { %v1159_v16 = vpack.c.bf16 %v1157_v51, %v1156_v54  ;;  %v899_v40 = vpack.c.bf16 %v897_v15, %v897_v15  ;;  %v4427_v51 = vmov -1e+30  }
 0x344   : > { %1197 = vmatpush.bf16.xpose.msrb.mxu0 %v1185_v39  ;;  %v803_v39 = vshrl.u32 %v802_v36, 7 }
 0x345   : > { %v1600_v53 = vpop.permute.xlu0 %1599 }
 0x346   : > { %v1606_v52 = vadd.f32 %v1600_v53, %v1579_v41  ;;  %v5056_v41 = vand.u32 127, %v802_v36  ;;  %v804_v54 = vadd.s32 8, %v803_v39 }
 0x348   : > { %1626 = vrot.lane.b32.xlu0 %v1606_v52, %s4414_s29  ;;  %vm808_vm9 = vcmp.le.s32.totalorder %v5056_v41, %v803_v39  ;;  %vm809_vm12 = vcmp.le.s32.totalorder %v5056_v41, %v804_v54 }
 0x349   : > { %v5061_v52 = vsel %vm808_vm9, 0.0, %v4427_v51  ;;  %vm1992_vm9 = vcmask 31744  }
 0x34b   : > { %3548 = vmatmul.msk.bf16.gmra.mxu3 %vm917_vm8, %v899_v40  ;;  %3551 = vmatmul.msk.bf16.vlgmr.msrb.gmra.mxu0 %vm917_vm8, %v1159_v16 }
 0x34d   : > { %v4193_v42 = vpop.permute.xlu0 %4192 }
 0x34e   : > { %v4194_v62 = vunpack.i.l.bf16 %v4193_v42  ;;  %v4195_v7 = vunpack.i.h.bf16 %v4193_v42 }
 0x350   : > { %1638 = vrot.lane.b32.xlu0 %v4692_v44, %s4426_s28  ;;  %v1423_v59 = vsel %vm708_vm11, %v4194_v62, %v4982_v49  ;;  %v1421_v5 = vsel %vm708_vm11, %v4195_v7, %v4984_v20  ;;  %v5069_v62 = vsel %vm809_vm12, 0.0, %v4427_v51  ;;  %v805_v7 = vadd.s32 16, %v803_v39 }
 0x351   : > { %v1425_v60 = vpack.c.bf16 %v1423_v59, %v1423_v59  ;;  %v1424_v14 = vpack.c.bf16 %v1422_v13, %v1421_v5 }
 0x352   : > { %vm810_vm13 = vcmp.le.s32.totalorder %v5056_v41, %v805_v7 }
 0x353   : > { %v1436_v2 = vsel %vm917_vm8, %v1425_v60, 0  ;;  %v1433_v18 = vsel %vm917_vm8, %v1424_v14, 0 }
 0x354   : > { %1444 = vmatpush.bf16.xpose.msrb.mxu3 %v1436_v2  ;;  %v5077_v2 = vsel %vm810_vm13, 0.0, %v4427_v51 }
 0x355   : > { %v4208_v47 = vpop.permute.xlu0 %4207 }
 0x356   : > { %v4209_v28 = vunpack.i.l.bf16 %v4208_v47  ;;  %v4210_v55 = vunpack.i.h.bf16 %v4208_v47 }
 0x358   : > { %v1671_v44 = vsel %vm708_vm11, %v4209_v28, %v4982_v49  ;;  %v1669_v35 = vsel %vm708_vm11, %v4210_v55, %v4984_v20  ;;  %v1389_v49 = vpop.permute.xlu2 %1388  ;;  %v5096_v55 = vpack.c.bf16 %v4940_v6, %v4940_v6 }
 0x359   : > { %v1673_v17 = vpack.c.bf16 %v1671_v44, %v1671_v44 }
 0x35b   : > { %v1684_v57 = vsel %vm917_vm8, %v1673_v17, 0 }
 0x35c   : > { %1445 = vmatpush.bf16.xpose.msrb.mxu3 %v1433_v18  ;;  %1692 = vmatpush.bf16.xpose.msra.mxu0 %v1684_v57  ;;  %v5088_v57 = vpack.c.bf16 %v4932_v56, %v4928_v37 }
 0x35d   : > { %v4213_v19 = vpop.permute.xlu0 %4212 }
 0x35e   : > { %v4214_v34 = vunpack.i.l.bf16 %v4213_v19  ;;  %v4215_v30 = vunpack.i.h.bf16 %v4213_v19 }
 0x360   : > { %v1670_v25 = vsel %vm708_vm11, %v4214_v34, %v4990_v3  ;;  %v1367_v22 = vpop.permute.xlu2 %1366 }
 0x361   : > { %v1672_v10 = vpack.c.bf16 %v1670_v25, %v1669_v35 }
 0x363   : > { %v1681_v31 = vsel %vm917_vm8, %v1672_v10, 0 }
 0x364   : > { %1693 = vmatpush.bf16.xpose.msra.mxu0 %v1681_v31 }
 0x365   : > { %v1637_v33 = vpop.permute.xlu0 %1636 }
 0x38a   : > { %v4203_v21 = vpop.permute.xlu1 %4202 }
 0x38b   : > { %v4204_v23 = vunpack.i.l.bf16 %v4203_v21  ;;  %v4205_v26 = vunpack.i.h.bf16 %v4203_v21 }
 0x38d   : > { %v1158_v24 = vsel %vm708_vm11, %v4185_v46, %v4204_v23  ;;  %v1407_v8 = vsel %vm708_vm11, %v4200_v12, %v4205_v26 }
 0x38e   : > { %v1160_v4 = vpack.c.bf16 %v1158_v24, %v1158_v24 }
 0x38f   : > { %v4218_v27 = vpop.permute.xlu2 %4217 }
 0x390   : > { %3552 = vmatmul.msk.bf16.gmra.mxu0 %vm917_vm8, %v1160_v4  ;;  %v4220_v38 = vunpack.i.h.bf16 %v4218_v27  ;;  %v4219_v32 = vunpack.i.l.bf16 %v4218_v27 }
 0x392   : > { %v1401_v20 = vpop.permute.xlu1 %1400  ;;  %v1655_v45 = vsel %vm708_vm11, %v4215_v30, %v4219_v32  ;;  %v1656_v61 = vsel %vm708_vm11, %v1637_v33, %v4220_v38 }
 0x393   : > { %v1408_v3 = vsel %vm708_vm11, %v1389_v49, %v1401_v20  ;;  %v1658_v1 = vpack.c.bf16 %v1656_v61, %v1655_v45 }
 0x394   : > { %v1410_v29 = vpack.c.bf16 %v1408_v3, %v1407_v8 }
 0x396   : > { %3555 = vmatmul.msk.bf16.vlgmr.msrb.gmra.mxu3 %vm917_vm8, %v1410_v29 }
 0x397   : > { %v1391_v35 = vpop.permute.xlu2 %1390 }
 0x39a   : > { %v1379_v58 = vpop.permute.xlu1 %1378 }
 0x39b   : > { %v1385_v9 = vsel %vm701_vm7, %v1367_v22, %v1379_v58 }
 0x39c   : > { %1402 = vrot.lane.b32.xlu1 %v1385_v9, %s4417_s27 }
 0x3a0   : > { %3559 = vmatmul.msk.bf16.vlgmr.msra.gmra.mxu0 %vm917_vm8, %v1658_v1 }
 0x3b4   : > { %v1615_v48 = vpop.permute.xlu1 %1614 }
 0x3ba   : > { %v1627_v0 = vpop.permute.xlu0 %1626 }
 0x3bb   : > { %v1633_v53 = vsel %vm701_vm7, %v1615_v48, %v1627_v0 }
 0x3bc   : > { %1650 = vrot.lane.b32.xlu2 %v1633_v53, %s4417_s27 }
 0x3be   : > { %v939_v50 = vpop.f32.mrf.mxu3 }
 0x3bf   : > { %v948_v15 = vmul.f32 0.33125377, %v939_v50 }
 0x3c1   : > { %v5064_v16 = vadd.f32 %v948_v15, %v5061_v52 }
 0x3c2   : > { %v1639_v31 = vpop.permute.xlu0 %1638 }
 0x3c3   : > { %v955_v40 = vsel %vm954_vm10, %v5064_v16, -inf }
 0x3c6   : > { %956 = vmax.xlane.f32.xlu1 %v955_v40  ;;  %v941_v42 = vpop.f32.mrf.mxu3 }
 0x3c7   : > { %v949_v63 = vmul.f32 0.33125377, %v941_v42 }
 0x3c8   : > { %v1199_v14 = vpop.f32.mrf.mxu0 }
 0x3c9   : > { %v5072_v59 = vadd.f32 %v949_v63, %v5069_v62  ;;  %v1208_v44 = vmul.f32 0.33125377, %v1199_v14 }
 0x3cb   : > { %v958_v60 = vsel %vm954_vm10, %v5072_v59, -inf  ;;  %v1211_v17 = vadd.f32 %v1208_v44, %v5061_v52 }
 0x3cc   : > { %959 = vmax.xlane.f32.xlu0 %v958_v60 }
 0x3cd   : > { %v1214_v18 = vsel %vm954_vm10, %v1211_v17, -inf }
 0x3ce   : > { %v944_v11 = vpop.f32.mrf.mxu3 }
 0x3cf   : > { %v950_v5 = vmul.f32 0.33125377, %v944_v11 }
 0x3d0   : > { %v1201_v19 = vpop.f32.mrf.mxu0 }
 0x3d1   : > { %v5080_v47 = vadd.f32 %v950_v5, %v5077_v2  ;;  %v1209_v4 = vmul.f32 0.33125377, %v1201_v19 }
 0x3d3   : > { %v961_v28 = vsel %vm954_vm10, %v5080_v47, -inf  ;;  %v5111_v3 = vadd.f32 %v1209_v4, %v5069_v62 }
 0x3d4   : > { %962 = vmax.xlane.f32.xlu0 %v961_v28 }
 0x3d5   : > { %v1217_v38 = vsel %vm954_vm10, %v5111_v3, -inf }
 0x3d6   : > { %v946_v13 = vpop.f32.mrf.mxu3 }
 0x3e5   : > { %1215 = vmax.xlane.f32.xlu2 %v1214_v18 }
 0x3e8   : > { %994 = vrot.lane.b32.xlu0 %v5088_v57, %s4422_s15 }
 0x3f0   : > { %1249 = vrot.lane.b32.xlu0 %v5088_v57, %s4421_s14 }
 0x3fd   : > { %1251 = vrot.lane.b32.xlu2 %v5096_v55, %s4421_s14 }
 0x40d   : > { %v1204_v34 = vpop.f32.mrf.mxu0 }
 0x40e   : > { %v1403_v25 = vpop.permute.xlu1 %1402  ;;  %v1210_v24 = vmul.f32 0.33125377, %v1204_v34 }
 0x40f   : > { %v1409_v37 = vsel %vm708_vm11, %v1391_v35, %v1403_v25 }
 0x410   : > { %v1411_v56 = vpack.c.bf16 %v1409_v37, %v1409_v37  ;;  %v1213_v20 = vadd.f32 %v1210_v24, %v5077_v2 }
 0x412   : > { %3556 = vmatmul.msk.bf16.gmra.mxu3 %vm917_vm8, %v1411_v56  ;;  %v1220_v29 = vsel %vm954_vm10, %v1213_v20, -inf }
 0x415   : > { %v1206_v10 = vpop.f32.mrf.mxu0 }
 0x416   : > { %v1651_v49 = vpop.permute.xlu2 %1650 }
 0x417   : > { %v1657_v21 = vsel %vm708_vm11, %v1639_v31, %v1651_v49 }
 0x418   : > { %v1659_v46 = vpack.c.bf16 %v1657_v21, %v1657_v21 }
 0x419   : > { %v1447_v6 = vpop.f32.mrf.mxu3 }
 0x41a   : > { %v1456_v23 = vmul.f32 0.33125377, %v1447_v6  ;;  %3560 = vmatmul.msk.bf16.gmra.mxu0 %vm917_vm8, %v1659_v46 }
 0x41c   : > { %v5105_v22 = vadd.f32 %v1456_v23, %v5061_v52 }
 0x41d   : > { %v1695_v61 = vpop.f32.mrf.mxu0 }
 0x41e   : > { %v1462_v26 = vsel %vm954_vm10, %v5105_v22, -inf  ;;  %v1704_v19 = vmul.f32 0.33125377, %v1695_v61 }
 0x41f   : > { %1463 = vmax.xlane.f32.xlu1 %v1462_v26 }
 0x420   : > { %v1707_v49 = vadd.f32 %v1704_v19, %v5061_v52 }
 0x421   : > { %v1449_v12 = vpop.f32.mrf.mxu3 }
 0x422   : > { %v1457_v8 = vmul.f32 0.33125377, %v1449_v12  ;;  %v1710_v23 = vsel %vm954_vm10, %v1707_v49, -inf }
 0x424   : > { %v5114_v27 = vadd.f32 %v1457_v8, %v5069_v62 }
 0x425   : > { %v1697_v48 = vpop.f32.mrf.mxu0 }
 0x426   : > { %1221 = vmax.xlane.f32.xlu2 %v1220_v29  ;;  %v1465_v32 = vsel %vm954_vm10, %v5114_v27, -inf  ;;  %v1705_v51 = vmul.f32 0.33125377, %v1697_v48 }
 0x427   : > { %1218 = vmax.xlane.f32.xlu1 %v1217_v38  ;;  %1466 = vmax.xlane.f32.xlu0 %v1465_v32 }
 0x428   : > { %v5134_v40 = vadd.f32 %v1705_v51, %v5069_v62 }
 0x42a   : > { %v1713_v63 = vsel %vm954_vm10, %v5134_v40, -inf }
 0x439   : > { %v957_v33 = vpop.xlane.xlu1 %956 }
 0x43a   : > { %v964_v58 = vsub.f32 %v5064_v16, %v957_v33 }
 0x43b   : > { %1499 = vrot.lane.b32.xlu0 %v5096_v55, %s4420_s13 }
 0x43c   : > { %v967_v9 = vmul.f32 1.442695, %v964_v58 }
 0x43e   : > { %4277 = vpow2.f32 %v967_v9 }
 0x43f   : > { %v960_v30 = vpop.xlane.xlu0 %959 }
 0x440   : > { %996 = vrot.lane.b32.xlu1 %v5096_v55, %s4422_s15 }
 0x444   : > { %v5128_v50 = vpop.eup %4277 }
 0x445   : > { %v973_v54 = vsel %vm954_vm10, %v5128_v50, 0.0 }
 0x447   : > { %v963_v45 = vpop.xlane.xlu0 %962 }
 0x448   : > { %v966_v60 = vsub.f32 %v5080_v47, %v963_v45 }
 0x44a   : > { %v971_v13 = vmul.f32 1.442695, %v966_v60 }
 0x458   : > { %v1216_v1 = vpop.xlane.xlu2 %1215 }
 0x459   : > { %v1223_v36 = vsub.f32 %v1211_v17, %v1216_v1  ;;  %v965_v17 = vsub.f32 %v5072_v59, %v960_v30 }
 0x45a   : > { %v5126_v39 = vpop.permute.xlu0 %994 }
 0x45b   : > { %v1226_v0 = vmul.f32 1.442695, %v1223_v36  ;;  %v969_v10 = vmul.f32 1.442695, %v965_v17 }
 0x45d   : > { %4279 = vpow2.f32 %v1226_v0 }
 0x45e   : > { %4281 = vpow2.f32 %v971_v13 }
 0x460   : > { %v1252_v53 = vpop.permute.xlu2 %1251 }
 0x461   : > { %v1261_v15 = vsel %vm1005_vm14, %v1252_v53, 0 }
 0x462   : > { %1269 = vmatpush.bf16.msrb.mxu1 %v1261_v15  ;;  %v1250_v16 = vpop.permute.xlu0 %1249 }
 0x463   : > { %v5136_v42 = vpop.eup %4279 }
 0x464   : > { %v1232_v7 = vsel %vm954_vm10, %v5136_v42, 0.0  ;;  %v5156_v6 = vpop.eup %4281 }
 0x465   : > { %974 = vadd.xlane.f32.xlu0 %v973_v54  ;;  %v979_v24 = vsel %vm954_vm10, %v5156_v6, 0.0 }
 0x466   : > { %1270 = vmatpush.bf16.msrb.mxu1 %v1250_v16 }
 0x46a   : > { %1714 = vmax.xlane.f32.xlu1 %v1713_v63 }
 0x46d   : > { %1233 = vadd.xlane.f32.xlu0 %v1232_v7 }
 0x492   : > { %v1464_v11 = vpop.xlane.xlu1 %1463 }
 0x493   : > { %v1471_v47 = vsub.f32 %v5105_v22, %v1464_v11 }
 0x495   : > { %v1452_v5 = vpop.f32.mrf.mxu3  ;;  %v1474_v21 = vmul.f32 1.442695, %v1471_v47 }
 0x496   : > { %v1458_v28 = vmul.f32 0.33125377, %v1452_v5 }
 0x497   : > { %v1700_v14 = vpop.f32.mrf.mxu0 }
 0x498   : > { %v1706_v62 = vmul.f32 0.33125377, %v1700_v14  ;;  %v5144_v44 = vadd.f32 %v1458_v28, %v5077_v2 }
 0x499   : > { %v1222_v18 = vpop.xlane.xlu2 %1221 }
 0x49a   : > { %v1225_v34 = vsub.f32 %v1213_v20, %v1222_v18  ;;  %v1468_v35 = vsel %vm954_vm10, %v5144_v44, -inf  ;;  %v5150_v25 = vadd.f32 %v1706_v62, %v5077_v2  ;;  %v1219_v31 = vpop.xlane.xlu1 %1218  ;;  %v1467_v26 = vpop.xlane.xlu0 %1466 }
 0x49b   : > { %1469 = vmax.xlane.f32.xlu2 %v1468_v35  ;;  %v1224_v2 = vsub.f32 %v5111_v3, %v1219_v31  ;;  %v1472_v8 = vsub.f32 %v5114_v27, %v1467_v26 }
 0x49c   : > { %v1230_v37 = vmul.f32 1.442695, %v1225_v34  ;;  %v1716_v56 = vsel %vm954_vm10, %v5150_v25, -inf }
 0x49d   : > { %1717 = vmax.xlane.f32.xlu1 %v1716_v56  ;;  %v1454_v59 = vpop.f32.mrf.mxu3  ;;  %v1228_v4 = vmul.f32 1.442695, %v1224_v2  ;;  %v1476_v38 = vmul.f32 1.442695, %v1472_v8 }
 0x49e   : > { %4283 = vpow2.f32 %v1230_v37 }
 0x49f   : > { %v1702_v46 = vpop.f32.mrf.mxu0  ;;  %4285 = vpow2.f32 %v969_v10 }
 0x4a0   : > { %4287 = vpow2.f32 %v1474_v21 }
 0x4a1   : > { %4289 = vpow2.f32 %v1228_v4 }
 0x4a2   : > { %4291 = vpow2.f32 %v1476_v38 }
 0x4a3   : > { %1711 = vmax.xlane.f32.xlu2 %v1710_v23 }
 0x4a4   : > { %v5160_v22 = vpop.eup %4283 }
 0x4a5   : > { %980 = vadd.xlane.f32.xlu1 %v979_v24  ;;  %v1238_v52 = vsel %vm954_vm10, %v5160_v22, 0.0  ;;  %v4286_v12 = vpop.eup %4285 }
 0x4a6   : > { %1239 = vadd.xlane.f32.xlu0 %v1238_v52  ;;  %v5166_v20 = vpop.eup %4287  ;;  %v976_v3 = vsel %vm954_vm10, %v4286_v12, 0.0 }
 0x4a7   : > { %v1480_v29 = vsel %vm954_vm10, %v5166_v20, 0.0  ;;  %v4290_v32 = vpop.eup %4289 }
 0x4a8   : > { %v1235_v33 = vsel %vm954_vm10, %v4290_v32, 0.0  ;;  %v5174_v61 = vpop.eup %4291 }
 0x4a9   : > { %v1483_v9 = vsel %vm954_vm10, %v5174_v61, 0.0 }
 0x4ab   : > { %977 = vadd.xlane.f32.xlu2 %v976_v3 }
 0x4ad   : > { %1481 = vadd.xlane.f32.xlu1 %v1480_v29  ;;  %v1500_v45 = vpop.permute.xlu0 %1499 }
 0x4ae   : > { %v1509_v27 = vsel %vm1005_vm14, %v1500_v45, 0 }
 0x4b2   : > { %v997_v30 = vpop.permute.xlu1 %996 }
 0x4b3   : > { %1236 = vadd.xlane.f32.xlu2 %v1235_v33  ;;  %v1007_v58 = vsel %vm1005_vm14, %v997_v30, 0 }
 0x4b4   : > { %1015 = vmatpush.bf16.msrb.mxu2 %v1007_v58 }
 0x4b8   : > { %1016 = vmatpush.bf16.msrb.mxu2 %v5126_v39 }
 0x4ba   : > { %1745 = vrot.lane.b32.xlu0 %v5088_v57, %s4417_s27 }
 0x4bb   : > { %1484 = vadd.xlane.f32.xlu2 %v1483_v9 }
 0x4bc   : > { %1517 = vmatpush.bf16.msra.mxu2 %v1509_v27 }
 0x4d8   : > { %v975_v63 = vpop.xlane.xlu0 %974 }
 0x4dd   : > { %v1715_v1 = vpop.xlane.xlu1 %1714 }
 0x4de   : > { %v1720_v36 = vsub.f32 %v5134_v40, %v1715_v1 }
 0x4e0   : > { %v1724_v48 = vmul.f32 1.442695, %v1720_v36  ;;  %v1234_v28 = vpop.xlane.xlu0 %1233 }
 0x4e2   : > { %4293 = vpow2.f32 %v1724_v48 }
 0x4e8   : > { %v5183_v0 = vpop.eup %4293 }
 0x4e9   : > { %v1731_v53 = vsel %vm954_vm10, %v5183_v0, 0.0 }
 0x4ea   : > { %1732 = vadd.xlane.f32.xlu2 %v1731_v53 }
 0x502   : > { %1747 = vrot.lane.b32.xlu2 %v5096_v55, %s4417_s27 }
 0x50e   : > { %v1470_v39 = vpop.xlane.xlu2 %1469 }
 0x50f   : > { %v1473_v51 = vsub.f32 %v5144_v44, %v1470_v39 }
 0x510   : > { %v1718_v11 = vpop.xlane.xlu1 %1717 }
 0x511   : > { %v1478_v15 = vmul.f32 1.442695, %v1473_v51 }
 0x513   : > { %4295 = vpow2.f32 %v1478_v15 }
 0x516   : > { %v1712_v54 = vpop.xlane.xlu2 %1711 }
 0x517   : > { %v1719_v16 = vsub.f32 %v1707_v49, %v1712_v54 }
 0x518   : > { %v981_v19 = vpop.xlane.xlu1 %980 }
 0x519   : > { %v5190_v40 = vpop.eup %4295  ;;  %v1722_v7 = vmul.f32 1.442695, %v1719_v16  ;;  %v1240_v10 = vpop.xlane.xlu0 %1239 }
 0x51a   : > { %v1486_v60 = vsel %vm954_vm10, %v5190_v40, 0.0 }
 0x51b   : > { %4297 = vpow2.f32 %v1722_v7  ;;  %1487 = vadd.xlane.f32.xlu0 %v1486_v60 }
 0x51c   : > { %4299 = vrcp.f32 %v975_v63 }
 0x51e   : > { %v978_v5 = vpop.xlane.xlu2 %977 }
 0x51f   : > { %4301 = vrcp.f32 %v978_v5 }
 0x520   : > { %4303 = vrcp.f32 %v1234_v28 }
 0x521   : > { %v4298_v55 = vpop.eup %4297 }
 0x522   : > { %v1728_v13 = vsel %vm954_vm10, %v4298_v55, 0.0  ;;  %v4300_v14 = vpop.eup %4299 }
 0x523   : > { %1729 = vadd.xlane.f32.xlu1 %v1728_v13  ;;  %v985_v44 = vmul.f32 %v4300_v14, %v5128_v50 }
 0x525   : > { %v4302_v62 = vpop.eup %4301 }
 0x526   : > { %v986_v17 = vmul.f32 %v4302_v62, %v4286_v12  ;;  %v1237_v18 = vpop.xlane.xlu2 %1236  ;;  %v4304_v35 = vpop.eup %4303 }
 0x527   : > { %4305 = vrcp.f32 %v1237_v18  ;;  %v1244_v37 = vmul.f32 %v4304_v35, %v5136_v42  ;;  %v1721_v42 = vsub.f32 %v5150_v25, %v1718_v11  ;;  %v3982_v35 = vld [vmem:[%s6106_s7 + $0x10] sm:$0xff] }
 0x528   : > { %v988_v34 = vpack.c.bf16 %v986_v17, %v985_v44  ;;  %4307 = vrcp.f32 %v981_v19  ;;  %v3983_v17 = vld [vmem:[%s6106_s7 + $0x18] sm:$0xff] }
 0x529   : > { %4309 = vrcp.f32 %v1240_v10  ;;  %v1726_v24 = vmul.f32 1.442695, %v1721_v42  ;;  %1859 = vmatpush.bf16.msra.mxu3 %v3983_v17  ;;  %v3704_v17 = vld [vmem:[%s6109_s10 + $0xa8] sm:$0xf] }
 0x52a   : > { %3549 = vmatmul.msk.bf16.vlgmr.msrb.gmra.mxu2 %vm954_vm10, %v988_v34 }
 0x52b   : > { %4311 = vpow2.f32 %v1726_v24 }
 0x52d   : > { %v4306_v47 = vpop.eup %4305  ;;  %1860 = vmatpush.bf16.msra.mxu3 %v3982_v35  ;;  %v3656_v35 = vld [vmem:[%s6109_s10 + $0x50] sm:$0xf] }
 0x52e   : > { %v1245_v56 = vmul.f32 %v4306_v47, %v4290_v32  ;;  %v4308_v31 = vpop.eup %4307  ;;  %v1485_v23 = vpop.xlane.xlu2 %1484  ;;  %v3981_v47 = vld [vmem:[%s6106_s7 + $0x8] sm:$0xff] }
 0x52f   : > { %v987_v50 = vmul.f32 %v4308_v31, %v5156_v6  ;;  %v4310_v21 = vpop.eup %4309 }
 0x530   : > { %v1247_v59 = vpack.c.bf16 %v1245_v56, %v1244_v37  ;;  %v1246_v46 = vmul.f32 %v4310_v21, %v5160_v22  ;;  %v1482_v22 = vpop.xlane.xlu1 %1481  ;;  %v3980_v37 = vld [vmem:[%s6106_s7] sm:$0xff] }
 0x531   : > { %v989_v49 = vpack.c.bf16 %v987_v50, %v987_v50  ;;  %v4312_v52 = vpop.eup %4311  ;;  %1861 = vmatpush.bf16.msra.mxu3 %v3981_v47  ;;  %v4003_v47 = vld [vmem:[%s6109_s10 + $0x74] sm:$0xf0] }
 0x532   : > { %3553 = vmatmul.msk.bf16.vlgmr.msrb.gmra.mxu1 %vm954_vm10, %v1247_v59  ;;  %v1248_v2 = vpack.c.bf16 %v1246_v46, %v1246_v46  ;;  %v1734_v26 = vsel %vm954_vm10, %v4312_v52, 0.0 }
 0x535   : > { %1862 = vmatpush.bf16.msra.mxu3 %v3980_v37  ;;  %v3998_v37 = vld [vmem:[%s6109_s10 + $0x54] sm:$0xf] }
 0x53a   : > { %3550 = vmatmul.msk.bf16.gmra.mxu2 %vm954_vm10, %v989_v49 }
 0x53c   : > { %1497 = vrot.lane.b32.xlu1 %v5088_v57, %s4420_s13  ;;  %v1746_v57 = vpop.permute.xlu0 %1745 }
 0x542   : > { %3554 = vmatmul.msk.bf16.gmra.mxu1 %vm954_vm10, %v1248_v2 }
 0x55d   : > { %v1733_v4 = vpop.xlane.xlu2 %1732 }
 0x55e   : > { %4313 = vrcp.f32 %v1733_v4 }
 0x564   : > { %v4314_v3 = vpop.eup %4313 }
 0x565   : > { %v1748_v6 = vpop.permute.xlu2 %1747  ;;  %v1741_v29 = vmul.f32 %v4314_v3, %v5183_v0 }
 0x566   : > { %v1757_v12 = vsel %vm1005_vm14, %v1748_v6, 0  ;;  %1735 = vadd.xlane.f32.xlu1 %v1734_v26 }
 0x567   : > { %1765 = vmatpush.bf16.msra.mxu1 %v1757_v12 }
 0x56b   : > { %1766 = vmatpush.bf16.msra.mxu1 %v1746_v57 }
 0x58e   : > { %v1488_v48 = vpop.xlane.xlu0 %1487 }
 0x596   : > { %v1730_v8 = vpop.xlane.xlu1 %1729 }
 0x597   : > { %4315 = vrcp.f32 %v1730_v8 }
 0x598   : > { %4317 = vrcp.f32 %v1485_v23 }
 0x599   : > { %4319 = vrcp.f32 %v1482_v22 }
 0x59a   : > { %4321 = vrcp.f32 %v1488_v48 }
 0x59d   : > { %v4316_v25 = vpop.eup %4315 }
 0x59e   : > { %v1740_v38 = vmul.f32 %v4316_v25, %v4298_v55  ;;  %v4318_v30 = vpop.eup %4317 }
 0x59f   : > { %v4320_v33 = vpop.eup %4319  ;;  %v1493_v58 = vmul.f32 %v4318_v30, %v5174_v61 }
 0x5a0   : > { %v1743_v32 = vpack.c.bf16 %v1741_v29, %v1740_v38  ;;  %v1492_v27 = vmul.f32 %v4320_v33, %v5166_v20  ;;  %v4322_v51 = vpop.eup %4321 }
 0x5a1   : > { %v1494_v15 = vmul.f32 %v4322_v51, %v5190_v40 }
 0x5a2   : > { %3561 = vmatmul.msk.bf16.vlgmr.msra.gmra.mxu1 %vm954_vm10, %v1743_v32  ;;  %v1495_v36 = vpack.c.bf16 %v1493_v58, %v1492_v27  ;;  %v4403_v32 = vld [vmem:[%s4514_s26] sm:$0xff]  ;;  %v4404_v27 = vld [vmem:[%s4514_s26 + $0x8] sm:$0xff] }
 0x5a3   : > { %v1496_v16 = vpack.c.bf16 %v1494_v15, %v1494_v15 }
 0x5ad   : > { %v1018_v45 = vpop.f32.mrf.mxu2 }
 0x5ae   : > { %v1498_v9 = vpop.permute.xlu1 %1497 }
 0x5af   : > { %v1272_v1 = vpop.f32.mrf.mxu1  ;;  %1518 = vmatpush.bf16.msra.mxu2 %v1498_v9 }
 0x5b2   : > { %3557 = vmatmul.msk.bf16.vlgmr.msra.gmra.mxu2 %vm954_vm10, %v1495_v36 }
 0x5b5   : > { %v1020_v0 = vpop.f32.mrf.mxu2 }
 0x5b7   : > { %v1274_v53 = vpop.f32.mrf.mxu1 }
 0x5b8   : > { %v4221_v39 = vpack.i.bf16 %v1274_v53, %v1272_v1 }
 0x5ba   : > { %4222 = vrot.lane.b32.xlu2 %v4221_v39, %s4417_s27 }
 0x5bd   : > { %v1023_v61 = vpop.f32.mrf.mxu2 }
 0x5bf   : > { %v1277_v54 = vpop.f32.mrf.mxu1 }
 0x5c2   : > { %3558 = vmatmul.msk.bf16.gmra.mxu2 %vm954_vm10, %v1496_v16  ;;  %v4018_v16 = vld [vmem:[%s6109_s10 + $0xf4] sm:$0xf] }
 0x5c5   : > { %v1025_v20 = vpop.f32.mrf.mxu2 }
 0x5c6   : > { %v3987_v20 = vld [vmem:[%s6108_s9 + $0x18] sm:$0xff] }
 0x5c7   : > { %v1279_v63 = vpop.f32.mrf.mxu1  ;;  %1978 = vmatpush.bf16.msrb.mxu2 %v3987_v20  ;;  %v4020_v20 = vld [vmem:[%s6109_s10 + $0x104] sm:$0xf] }
 0x5d9   : > { %v1736_v7 = vpop.xlane.xlu1 %1735 }
 0x5da   : > { %4323 = vrcp.f32 %v1736_v7  ;;  %v3738_v7 = vld [vmem:[%s6109_s10 + $0x118] sm:$0xf0] }
 0x5e0   : > { %v4324_v60 = vpop.eup %4323 }
 0x5e1   : > { %v1742_v11 = vmul.f32 %v4324_v60, %v4312_v52  ;;  %v3744_v60 = vld [vmem:[%s6109_s10 + $0xf8] sm:$0xf] }
 0x5e3   : > { %v1744_v5 = vpack.c.bf16 %v1742_v11, %v1742_v11  ;;  %v3741_v11 = vor.u32 %v4018_v16, %v3738_v7  ;;  %v4025_v16 = vld [vmem:[%s6109_s10 + $0x124] sm:$0xf0] }
 0x5e5   : > { %3562 = vmatmul.msk.bf16.gmra.mxu1 %vm954_vm10, %v1744_v5  ;;  %v4024_v5 = vld [vmem:[%s6109_s10 + $0x11c] sm:$0xf0] }
 0x5e6   : > { %2478 = vmatpush.bf16.msrb.mxu1 %v3741_v11  ;;  %v3754_v11 = vld [vmem:[%s6109_s10 + $0x128] sm:$0xf0] }
 0x614   : > { %v4223_v56 = vpop.permute.xlu2 %4222 }
 0x615   : > { %v4225_v59 = vunpack.i.h.bf16 %v4223_v56  ;;  %v4224_v31 = vunpack.i.l.bf16 %v4223_v56  ;;  %v3985_v56 = vld [vmem:[%s6108_s9 + $0x8] sm:$0xff] }
 0x617   : > { %v1814_v46 = vsel %vm708_vm11, %v1020_v0, %v4225_v59  ;;  %v1813_v2 = vsel %vm708_vm11, %v1018_v45, %v4224_v31  ;;  %v4405_v0 = vld [vmem:[%s4514_s26 + $0x10] sm:$0xff]  ;;  %v3658_v59 = vld [vmem:[%s6109_s10 + $0x78] sm:$0xf0]  ;;  %v3664_v31 = vld [vmem:[%s6109_s10 + $0x58] sm:$0xf] }
 0x61f   : > { %v1768_v28 = vpop.f32.mrf.mxu1 }
 0x627   : > { %v1770_v40 = vpop.f32.mrf.mxu1 }
 0x628   : > { %v4231_v44 = vpack.i.bf16 %v1770_v40, %v1768_v28  ;;  %v3696_v28 = vld [vmem:[%s6109_s10 + $0xa0] sm:$0xf]  ;;  %v3986_v40 = vld [vmem:[%s6108_s9 + $0x10] sm:$0xff] }
 0x629   : > { %1979 = vmatpush.bf16.msrb.mxu2 %v3986_v40 }
 0x62d   : > { %1980 = vmatpush.bf16.msrb.mxu2 %v3985_v56 }
 0x635   : > { %v1520_v55 = vpop.f32.mrf.mxu2 }
 0x63d   : > { %v1522_v13 = vpop.f32.mrf.mxu2 }
 0x63e   : > { %v4226_v14 = vpack.i.bf16 %v1522_v13, %v1520_v55  ;;  %v3745_v55 = vor.u32 %v4024_v5, %v3744_v60  ;;  %v4013_v13 = vld [vmem:[%s6109_s10 + $0xc4] sm:$0xf0] }
 0x63f   : > { %v3760_v5 = vld [vmem:[%s6109_s10 + $0x108] sm:$0xf] }
 0x640   : > { %4227 = vrot.lane.b32.xlu2 %v4226_v14, %s4426_s28  ;;  %v4008_v14 = vld [vmem:[%s6109_s10 + $0xa4] sm:$0xf]  ;;  %2496 = vmatpush.bf16.msrb.mxu3 %v3745_v55  ;;  %v4026_v55 = vld [vmem:[%s6109_s10 + $0x12c] sm:$0xf0] }
 0x641   : > { %v3761_v40 = vor.u32 %v4026_v55, %v3760_v5 }
 0x645   : > { %v1525_v62 = vpop.f32.mrf.mxu2 }
 0x646   : > { %1796 = vrot.lane.b32.xlu0 %v1525_v62, %s4426_s28  ;;  %v3697_v62 = vor.u32 %v4013_v13, %v3696_v28 }
 0x648   : > { %4232 = vrot.lane.b32.xlu2 %v4231_v44, %s4420_s13  ;;  %v3698_v44 = vld [vmem:[%s6109_s10 + $0xc8] sm:$0xf0] }
 0x64d   : > { %v1527_v18 = vpop.f32.mrf.mxu2 }
 0x64e   : > { %v3701_v18 = vor.u32 %v4008_v14, %v3698_v44  ;;  %v3757_v14 = vor.u32 %v4020_v20, %v3754_v11  ;;  %v3706_v44 = vld [vmem:[%s6109_s10 + $0xd0] sm:$0xf0] }
 0x650   : > { %1784 = vrot.lane.b32.xlu2 %v1277_v54, %s4417_s27  ;;  %v4023_v54 = vld [vmem:[%s6109_s10 + $0x114] sm:$0xf0]  ;;  %2479 = vmatpush.bf16.msrb.mxu1 %v3701_v18 }
 0x662   : > { %v1773_v19 = vpop.f32.mrf.mxu1 }
 0x663   : > { %1808 = vrot.lane.b32.xlu2 %v1773_v19, %s4420_s13  ;;  %v4014_v19 = vld [vmem:[%s6109_s10 + $0xcc] sm:$0xf0] }
 0x66a   : > { %v1775_v34 = vpop.f32.mrf.mxu1 }
 0x66b   : > { %v3705_v34 = vor.u32 %v4014_v19, %v3704_v17  ;;  %v5389_v17 = vld [vmem:[%s6107_s8] ss:$0 sm:$0xff]  ;;  %v4015_v19 = vld [vmem:[%s6109_s10 + $0xd4] sm:$0xf0] }
 0x66d   : > { %2497 = vmatpush.bf16.msrb.mxu3 %v3705_v34  ;;  %v4010_v34 = vld [vmem:[%s6109_s10 + $0xb4] sm:$0xf] }
 0x69a   : > { %v4228_v10 = vpop.permute.xlu2 %4227 }
 0x69b   : > { %v4230_v50 = vunpack.i.h.bf16 %v4228_v10  ;;  %v4229_v49 = vunpack.i.l.bf16 %v4228_v10  ;;  %v3657_v10 = vor.u32 %v4003_v47, %v3656_v35 }
 0x69d   : > { %v1816_v24 = vsel %vm917_vm8, %v1813_v2, %v4229_v49  ;;  %v1817_v4 = vsel %vm917_vm8, %v1814_v46, %v4230_v50  ;;  %v3661_v49 = vor.u32 %v3998_v37, %v3658_v59  ;;  %v3720_v59 = vld [vmem:[%s6109_s10 + $0xb8] sm:$0xf] }
 0x69f   : > { %2480 = vmatpush.bf16.msrb.mxu1 %v3661_v49  ;;  %v4016_v49 = vld [vmem:[%s6109_s10 + $0xdc] sm:$0xf0] }
 0x6a2   : > { %v4233_v21 = vpop.permute.xlu2 %4232 }
 0x6a3   : > { %v4235_v42 = vunpack.i.h.bf16 %v4233_v21  ;;  %v4234_v23 = vunpack.i.l.bf16 %v4233_v21  ;;  %v4004_v21 = vld [vmem:[%s6109_s10 + $0x7c] sm:$0xf0] }
 0x6a4   : > { %v3665_v2 = vor.u32 %v4004_v21, %v3664_v31  ;;  %v3999_v21 = vld [vmem:[%s6109_s10 + $0x5c] sm:$0xf] }
 0x6a5   : > { %v1820_v52 = vsel %vm1819_vm15, %v1816_v24, %v4234_v23  ;;  %v1821_v6 = vsel %vm1819_vm15, %v1817_v4, %v4235_v42  ;;  %v3616_v42 = vld [vmem:[%s6109_s10] sm:$0xf]  ;;  %v3993_v23 = vld [vmem:[%s6109_s10 + $0x24] sm:$0xf0]  ;;  %v3988_v24 = vld [vmem:[%s6109_s10 + $0x4] sm:$0xf] }
 0x6a6   : > { %v1823_v26 = vpack.c.bf16 %v1821_v6, %v1820_v52  ;;  %2498 = vmatpush.bf16.msrb.mxu3 %v3665_v2  ;;  %v3984_v52 = vld [vmem:[%s6108_s9] sm:$0xff]  ;;  %v3617_v6 = vor.u32 %v3993_v23, %v3616_v42  ;;  %v3721_v42 = vor.u32 %v4016_v49, %v3720_v59  ;;  %v3682_v49 = vld [vmem:[%s6109_s10 + $0x90] sm:$0xf0] }
 0x6a7   : > { %1981 = vmatpush.bf16.msrb.mxu2 %v3984_v52  ;;  %v3672_v23 = vld [vmem:[%s6109_s10 + $0x60] sm:$0xf] }
 0x6a8   : > { %3579 = vmatmul.msk.bf16.vlgmr.msra.gmra.mxu3 %vm6112_vm0, %v1823_v26  ;;  %v3618_v26 = vld [vmem:[%s6109_s10 + $0x28] sm:$0xf0] }
 0x6aa   : > { %v1785_v12 = vpop.permute.xlu2 %1784 }
 0x6ab   : > { %v1815_v22 = vsel %vm708_vm11, %v1023_v61, %v1785_v12  ;;  %v3736_v61 = vld [vmem:[%s6109_s10 + $0xf0] sm:$0xf]  ;;  %v3621_v12 = vor.u32 %v3988_v24, %v3618_v26  ;;  %v4005_v24 = vld [vmem:[%s6109_s10 + $0x84] sm:$0xf0] }
 0x6ac   : > { %v3737_v63 = vor.u32 %v4023_v54, %v3736_v61  ;;  %v3673_v26 = vor.u32 %v4005_v24, %v3672_v23 }
 0x6ad   : > { %2481 = vmatpush.bf16.msrb.mxu1 %v3621_v12  ;;  %v3674_v12 = vld [vmem:[%s6109_s10 + $0x88] sm:$0xf0] }
 0x6ae   : > { %2460 = vmatpush.bf16.msrb.mxu0 %v3737_v63 }
 0x6b1   : > { %2550 = vmatpush.bf16.msra.mxu1 %v3757_v14  ;;  %v3768_v14 = vld [vmem:[%s6109_s10 + $0x110] sm:$0xf] }
 0x6b2   : > { %2461 = vmatpush.bf16.msrb.mxu0 %v3697_v62  ;;  %v4009_v62 = vld [vmem:[%s6109_s10 + $0xac] sm:$0xf] }
 0x6b3   : > { %v3709_v18 = vor.u32 %v4009_v62, %v3706_v44  ;;  %v4027_v62 = vld [vmem:[%s6109_s10 + $0x134] sm:$0xf0]  ;;  %v4022_v44 = vld [vmem:[%s6109_s10 + $0x114] sm:$0xf] }
 0x6b6   : > { %2462 = vmatpush.bf16.msrb.mxu0 %v3657_v10  ;;  %v3714_v10 = vld [vmem:[%s6109_s10 + $0xd8] sm:$0xf0] }
 0x6b8   : > { %v1797_v57 = vpop.permute.xlu0 %1796 }
 0x6b9   : > { %v1818_v8 = vsel %vm917_vm8, %v1815_v22, %v1797_v57  ;;  %v3624_v57 = vld [vmem:[%s6109_s10 + $0x8] sm:$0xf]  ;;  %v3994_v22 = vld [vmem:[%s6109_s10 + $0x2c] sm:$0xf0] }
 0x6ba   : > { %2463 = vmatpush.bf16.msrb.mxu0 %v3617_v6 }
 0x6bd   : > { %v1809_v3 = vpop.permute.xlu2 %1808 }
 0x6be   : > { %v1822_v25 = vsel %vm1819_vm15, %v1818_v8, %v1809_v3  ;;  %v3625_v8 = vor.u32 %v3994_v22, %v3624_v57  ;;  %v3680_v57 = vld [vmem:[%s6109_s10 + $0x68] sm:$0xf]  ;;  %v4006_v22 = vld [vmem:[%s6109_s10 + $0x8c] sm:$0xf0] }
 0x6bf   : > { %v1824_v29 = vpack.c.bf16 %v1822_v25, %v1822_v25 }
 0x6c0   : > { %2499 = vmatpush.bf16.msrb.mxu3 %v3625_v8 }
 0x6c1   : > { %3580 = vmatmul.msk.bf16.gmra.mxu3 %vm6112_vm0, %v1824_v29 }
 0x6c4   : > { %2568 = vmatpush.bf16.msra.mxu3 %v3761_v40 }
 0x6c8   : > { %2569 = vmatpush.bf16.msra.mxu3 %v3721_v42  ;;  %v3690_v42 = vld [vmem:[%s6109_s10 + $0x98] sm:$0xf0] }
 0x72b   : > { %v1864_v38 = vpop.f32.mrf.mxu3 }
 0x72c   : > { %v5246_v30 = vadd.f32 %v4403_v32, %v1864_v38 }
 0x72e   : > { %v1877_v33 = vmul.f32 %v5246_v30, %v5246_v30 }
 0x730   : > { %v1880_v58 = vsel %vm6112_vm0, %v1877_v33, 0.0 }
 0x731   : > { %1881 = vadd.xlane.f32.xlu1 %v1880_v58 }
 0x733   : > { %v1866_v45 = vpop.f32.mrf.mxu3 }
 0x734   : > { %v5252_v9 = vadd.f32 %v4404_v27, %v1866_v45 }
 0x736   : > { %v1878_v1 = vmul.f32 %v5252_v9, %v5252_v9 }
 0x738   : > { %v1883_v36 = vsel %vm6112_vm0, %v1878_v1, 0.0 }
 0x739   : > { %1884 = vadd.xlane.f32.xlu2 %v1883_v36 }
 0x744   : > { %v1869_v48 = vpop.f32.mrf.mxu3 }
 0x745   : > { %v5258_v53 = vadd.f32 %v4405_v0, %v1869_v48  ;;  %v4019_v0 = vld [vmem:[%s6109_s10 + $0xfc] sm:$0xf] }
 0x747   : > { %v1879_v39 = vmul.f32 %v5258_v53, %v5258_v53 }
 0x749   : > { %v1886_v51 = vsel %vm6112_vm0, %v1879_v39, 0.0  ;;  %v3746_v39 = vld [vmem:[%s6109_s10 + $0x120] sm:$0xf0] }
 0x74a   : > { %1887 = vadd.xlane.f32.xlu1 %v1886_v51  ;;  %v3752_v51 = vld [vmem:[%s6109_s10 + $0x100] sm:$0xf]  ;;  %v3749_v54 = vor.u32 %v4019_v0, %v3746_v39 }
 0x74b   : > { %v3753_v60 = vor.u32 %v4025_v16, %v3752_v51 }
 0x74c   : > { %v1871_v15 = vpop.f32.mrf.mxu3  ;;  %2514 = vmatpush.bf16.msra.mxu2 %v3749_v54 }
 0x74d   : > { %2532 = vmatpush.bf16.msra.mxu0 %v3753_v60 }
 0x750   : > { %2515 = vmatpush.bf16.msra.mxu2 %v3709_v18  ;;  %v3769_v18 = vor.u32 %v4027_v62, %v3768_v14 }
 0x7a4   : > { %v1882_v50 = vpop.xlane.xlu1 %1881 }
 0x7a5   : > { %v1889_v46 = vmul.f32 %v1882_v50, %v4628_v43  ;;  %v3717_v50 = vor.u32 %v4010_v34, %v3714_v10  ;;  %v3722_v34 = vld [vmem:[%s6109_s10 + $0xe0] sm:$0xf0]  ;;  %v3730_v10 = vld [vmem:[%s6109_s10 + $0xe8] sm:$0xf0] }
 0x7a7   : > { %v1892_v4 = vadd.f32 1e-06, %v1889_v46  ;;  %v3666_v46 = vld [vmem:[%s6109_s10 + $0x80] sm:$0xf0]  ;;  %2551 = vmatpush.bf16.msra.mxu1 %v3717_v50  ;;  %v4001_v50 = vld [vmem:[%s6109_s10 + $0x6c] sm:$0xf] }
 0x7a8   : > { %v3669_v6 = vor.u32 %v3999_v21, %v3666_v46  ;;  %v3688_v21 = vld [vmem:[%s6109_s10 + $0x70] sm:$0xf]  ;;  %v4007_v46 = vld [vmem:[%s6109_s10 + $0x94] sm:$0xf0]  ;;  %v3685_v23 = vor.u32 %v4001_v50, %v3682_v49 }
 0x7a9   : > { %4325 = vrsqrt.f32 %v1892_v4  ;;  %vm1901_vm1 = vweird.f32 %v1892_v4  ;;  %v3689_v24 = vor.u32 %v4007_v46, %v3688_v21 }
 0x7aa   : > { %2516 = vmatpush.bf16.msra.mxu2 %v3669_v6  ;;  %v3642_v6 = vld [vmem:[%s6109_s10 + $0x40] sm:$0xf0] }
 0x7ac   : > { %v1885_v3 = vpop.xlane.xlu2 %1884 }
 0x7ad   : > { %v1890_v25 = vmul.f32 %v1885_v3, %v4628_v43  ;;  %v3681_v3 = vor.u32 %v4006_v22, %v3680_v57  ;;  %v3992_v57 = vld [vmem:[%s6109_s10 + $0x24] sm:$0xf]  ;;  %v3650_v22 = vld [vmem:[%s6109_s10 + $0x48] sm:$0xf0] }
 0x7af   : > { %v4326_v29 = vpop.eup %4325  ;;  %v1893_v38 = vadd.f32 1e-06, %v1890_v25  ;;  %v3989_v25 = vld [vmem:[%s6109_s10 + $0xc] sm:$0xf]  ;;  %2570 = vmatpush.bf16.msra.mxu3 %v3681_v3 }
 0x7b0   : > { %v1896_v32 = vmul.f32 %v4326_v29, %v1892_v4  ;;  %vm1902_vm11 = vweird.f32 %v4326_v29  ;;  %v4000_v4 = vld [vmem:[%s6109_s10 + $0x64] sm:$0xf] }
 0x7b1   : > { %4327 = vrsqrt.f32 %v1893_v38  ;;  %vm5358_vm2 = vmor %vm1901_vm1, %vm1902_vm11  ;;  %vm1911_vm4 = vweird.f32 %v1893_v38  ;;  %v3677_v8 = vor.u32 %v4000_v4, %v3674_v12  ;;  %v3997_v12 = vld [vmem:[%s6109_s10 + $0x44] sm:$0xf0] }
 0x7b2   : > { %v1897_v33 = vmul.f32 %v4326_v29, %v1896_v32 }
 0x7b3   : > { %2552 = vmatpush.bf16.msra.mxu1 %v3677_v8 }
 0x7b4   : > { %v1898_v58 = vmul.f32 0.5, %v1897_v33 }
 0x7b6   : > { %v1899_v45 = vsub.f32 1.5, %v1898_v58  ;;  %v3995_v58 = vld [vmem:[%s6109_s10 + $0x34] sm:$0xf0] }
 0x7b7   : > { %v4328_v27 = vpop.eup %4327 }
 0x7b8   : > { %v1906_v1 = vmul.f32 %v4328_v27, %v1893_v38  ;;  %v1900_v36 = vmul.f32 %v4326_v29, %v1899_v45  ;;  %vm1912_vm3 = vweird.f32 %v4328_v27  ;;  %v3632_v38 = vld [vmem:[%s6109_s10 + $0x10] sm:$0xf]  ;;  %v3990_v45 = vld [vmem:[%s6109_s10 + $0x14] sm:$0xf] }
 0x7b9   : > { %vm5401_vm5 = vmor %vm1911_vm4, %vm1912_vm3  ;;  %v3633_v39 = vor.u32 %v3995_v58, %v3632_v38 }
 0x7ba   : > { %v1907_v48 = vmul.f32 %v4328_v27, %v1906_v1  ;;  %v1904_v63 = vsel %vm5358_vm2, %v4326_v29, %v1900_v36  ;;  %v3626_v29 = vld [vmem:[%s6109_s10 + $0x30] sm:$0xf0]  ;;  %v3640_v1 = vld [vmem:[%s6109_s10 + $0x18] sm:$0xf]  ;;  %v3996_v36 = vld [vmem:[%s6109_s10 + $0x3c] sm:$0xf0] }
 0x7bb   : > { %v1925_v31 = vmul.f32 %v1904_v63, %v5246_v30  ;;  %v3629_v0 = vor.u32 %v3989_v25, %v3626_v29  ;;  %v3653_v25 = vor.u32 %v3992_v57, %v3650_v22 }
 0x7bc   : > { %v1908_v61 = vmul.f32 0.5, %v1907_v48 }
 0x7bd   : > { %v1888_v7 = vpop.xlane.xlu1 %1887  ;;  %v1931_v32 = vmul.f32 %v5389_v17, %v1925_v31  ;;  %2517 = vmatpush.bf16.msra.mxu2 %v3629_v0 }
 0x7be   : > { %v1909_v28 = vsub.f32 1.5, %v1908_v61  ;;  %v1891_v13 = vmul.f32 %v1888_v7, %v4628_v43  ;;  %v3712_v43 = vld [vmem:[%s6109_s10 + $0xb0] sm:$0xf]  ;;  %v3641_v61 = vor.u32 %v3996_v36, %v3640_v1 }
 0x7bf   : > { %v3713_v56 = vor.u32 %v4015_v19, %v3712_v43  ;;  %v4011_v19 = vld [vmem:[%s6109_s10 + $0xbc] sm:$0xf] }
 0x7c0   : > { %v1910_v35 = vmul.f32 %v4328_v27, %v1909_v28  ;;  %v5405_v37 = vadd.f32 1e-06, %v1891_v13  ;;  %2571 = vmatpush.bf16.msra.mxu3 %v3641_v61  ;;  %v4021_v28 = vld [vmem:[%s6109_s10 + $0x10c] sm:$0xf]  ;;  %v3762_v13 = vld [vmem:[%s6109_s10 + $0x130] sm:$0xf0]  ;;  %v3725_v47 = vor.u32 %v4011_v19, %v3722_v34 }
 0x7c1   : > { %2533 = vmatpush.bf16.msra.mxu0 %v3713_v56  ;;  %v3765_v40 = vor.u32 %v4021_v28, %v3762_v13  ;;  %v4012_v56 = vld [vmem:[%s6109_s10 + $0xc4] sm:$0xf] }
 0x7c2   : > { %v1914_v2 = vsel %vm5401_vm5, %v4328_v27, %v1910_v35  ;;  %4329 = vrsqrt.f32 %v5405_v37  ;;  %v3634_v27 = vld [vmem:[%s6109_s10 + $0x38] sm:$0xf0]  ;;  %vm1921_vm7 = vweird.f32 %v5405_v37  ;;  %v3728_v35 = vld [vmem:[%s6109_s10 + $0xc0] sm:$0xf]  ;;  %v3733_v31 = vor.u32 %v4012_v56, %v3730_v10 }
 0x7c3   : > { %v1926_v52 = vmul.f32 %v1914_v2, %v5252_v9  ;;  %v3637_v15 = vor.u32 %v3990_v45, %v3634_v27  ;;  %v4002_v2 = vld [vmem:[%s6109_s10 + $0x74] sm:$0xf] }
 0x7c4   : > { %v3693_v4 = vor.u32 %v4002_v2, %v3690_v42 }
 0x7c5   : > { %v1932_v33 = vmul.f32 %v5389_v17, %v1926_v52  ;;  %2534 = vmatpush.bf16.msra.mxu0 %v3673_v26  ;;  %2553 = vmatpush.bf16.msra.mxu1 %v3637_v15  ;;  %v3991_v52 = vld [vmem:[%s6109_s10 + $0x1c] sm:$0xf]  ;;  %v3648_v26 = vld [vmem:[%s6109_s10 + $0x20] sm:$0xf] }
 0x7c6   : > { %v3645_v8 = vor.u32 %v3991_v52, %v3642_v6  ;;  %v3649_v3 = vor.u32 %v3997_v12, %v3648_v26 }
 0x7c7   : > { %v5471_v48 = vpack.c.bf16 %v1932_v33, %v1931_v32 }
 0x7c8   : > { %v4330_v51 = vpop.eup %4329 }
 0x7c9   : > { %v1916_v54 = vmul.f32 %v4330_v51, %v5405_v37  ;;  %3597 = vmatmul.msk.bf16.vlgmr.msrb.gmra.mxu2 %vm6112_vm0, %v5471_v48  ;;  %3774 = vmatmul.msk.bf16.vlgmr.msrb.gmra.mxu0 %vm6112_vm0, %v5471_v48  ;;  %vm1922_vm6 = vweird.f32 %v4330_v51  ;;  %v4017_v37 = vld [vmem:[%s6109_s10 + $0xe4] sm:$0xf0] }
 0x7ca   : > { %3776 = vmatmul.msk.bf16.vlgmr.msrb.gmra.mxu1 %vm6112_vm0, %v5471_v48  ;;  %3778 = vmatmul.msk.bf16.vlgmr.msrb.gmra.mxu3 %vm6112_vm0, %v5471_v48  ;;  %vm1923_vm8 = vmor %vm1921_vm7, %vm1922_vm6  ;;  %v3729_v59 = vor.u32 %v4017_v37, %v3728_v35 }
 0x7cb   : > { %v1917_v16 = vmul.f32 %v4330_v51, %v1916_v54  ;;  %2535 = vmatpush.bf16.msra.mxu0 %v3633_v39  ;;  %2586 = vmatpush.bf16.msrb.mxu2 %v3765_v40 }
 0x7cd   : > { %v1918_v20 = vmul.f32 0.5, %v1917_v16 }
 0x7cf   : > { %v1919_v63 = vsub.f32 1.5, %v1918_v20  ;;  %2604 = vmatpush.bf16.msrb.mxu0 %v3769_v18  ;;  %2587 = vmatpush.bf16.msrb.mxu2 %v3725_v47 }
 0x7d1   : > { %v1920_v7 = vmul.f32 %v4330_v51, %v1919_v63 }
 0x7d3   : > { %v1924_v60 = vsel %vm1923_vm8, %v4330_v51, %v1920_v7  ;;  %2605 = vmatpush.bf16.msrb.mxu0 %v3729_v59  ;;  %2588 = vmatpush.bf16.msrb.mxu2 %v3685_v23 }
 0x7d4   : > { %v1927_v11 = vmul.f32 %v1924_v60, %v5258_v53 }
 0x7d6   : > { %v1933_v5 = vmul.f32 %v5389_v17, %v1927_v11  ;;  %v3770_v17 = vld [vmem:[%s6109_s10 + $0x138] sm:$0xf0] }
 0x7d7   : > { %v3773_v43 = vor.u32 %v4022_v44, %v3770_v17  ;;  %2606 = vmatpush.bf16.msrb.mxu0 %v3689_v24  ;;  %2589 = vmatpush.bf16.msrb.mxu2 %v3645_v8 }
 0x7d8   : > { %v5485_v55 = vpack.c.bf16 %v1933_v5, %v1933_v5 }
 0x7d9   : > { %2622 = vmatpush.bf16.msrb.mxu1 %v3773_v43 }
 0x7da   : > { %3598 = vmatmul.msk.bf16.gmra.mxu2 %vm6112_vm0, %v5485_v55  ;;  %3775 = vmatmul.msk.bf16.gmra.mxu0 %vm6112_vm0, %v5485_v55 }
 0x7db   : > { %3777 = vmatmul.msk.bf16.gmra.mxu1 %vm6112_vm0, %v5485_v55  ;;  %3779 = vmatmul.msk.bf16.gmra.mxu3 %vm6112_vm0, %v5485_v55 }
 0x7dc   : > { %2607 = vmatpush.bf16.msrb.mxu0 %v3649_v3 }
 0x7dd   : > { %2623 = vmatpush.bf16.msrb.mxu1 %v3733_v31 }
 0x7e1   : > { %2624 = vmatpush.bf16.msrb.mxu1 %v3693_v4 }
 0x7e5   : > { %2625 = vmatpush.bf16.msrb.mxu1 %v3653_v25 }
 0x7ea   : > { %3780 = vmatmul.msk.bf16.vlgmr.msra.gmra.mxu2 %vm6112_vm0, %v5471_v48  ;;  %3782 = vmatmul.msk.bf16.vlgmr.msra.gmra.mxu0 %vm6112_vm0, %v5471_v48 }
 0x7eb   : > { %3784 = vmatmul.msk.bf16.vlgmr.msra.gmra.mxu1 %vm6112_vm0, %v5471_v48  ;;  %3786 = vmatmul.msk.bf16.vlgmr.msra.gmra.mxu3 %vm6112_vm0, %v5471_v48 }
 0x7fa   : > { %3781 = vmatmul.msk.bf16.gmra.mxu2 %vm6112_vm0, %v5485_v55  ;;  %3783 = vmatmul.msk.bf16.gmra.mxu0 %vm6112_vm0, %v5485_v55 }
 0x7fb   : > { %3785 = vmatmul.msk.bf16.gmra.mxu1 %vm6112_vm0, %v5485_v55  ;;  %3787 = vmatmul.msk.bf16.gmra.mxu3 %vm6112_vm0, %v5485_v55 }
 0x80a   : > { %3788 = vmatmul.msk.bf16.vlgmr.msrb.gmra.mxu2 %vm6112_vm0, %v5471_v48  ;;  %3790 = vmatmul.msk.bf16.vlgmr.msrb.gmra.mxu0 %vm6112_vm0, %v5471_v48 }
 0x80b   : > { %3792 = vmatmul.msk.bf16.vlgmr.msrb.gmra.mxu1 %vm6112_vm0, %v5471_v48 }
 0x81a   : > { %3789 = vmatmul.msk.bf16.gmra.mxu2 %vm6112_vm0, %v5485_v55  ;;  %3791 = vmatmul.msk.bf16.gmra.mxu0 %vm6112_vm0, %v5485_v55 }
 0x81b   : > { %3793 = vmatmul.msk.bf16.gmra.mxu1 %vm6112_vm0, %v5485_v55 }
 0x846   : > { %v5595_v29 = vpop.f32.mrf.mxu0 }
 0x847   : > { %v3794_v38 = vmul.f32 -1.442695, %v5595_v29  ;;  %v5598_v32 = vpop.f32.mrf.mxu1 }
 0x849   : > { %4331 = vpow2.f32 %v3794_v38 }
 0x84c   : > { %v5600_v33 = vpop.f32.mrf.mxu2 }
 0x84d   : > { %v5602_v58 = vpop.f32.mrf.mxu3  ;;  %v1993_v45 = vsel %vm1992_vm9, %v5600_v33, -inf }
 0x84e   : > { %v3797_v27 = vmul.f32 -1.442695, %v5602_v58  ;;  %v5607_v1 = vpop.f32.mrf.mxu0  ;;  %1994 = vmax.xlane.f32.xlu0 %v1993_v45 }
 0x84f   : > { %v4332_v36 = vpop.eup %4331  ;;  %v3795_v48 = vmul.f32 -1.442695, %v5607_v1  ;;  %v5610_v0 = vpop.f32.mrf.mxu1 }
 0x850   : > { %v2645_v39 = vadd.f32 1.0, %v4332_v36  ;;  %4333 = vpow2.f32 %v3797_v27 }
 0x851   : > { %4335 = vpow2.f32 %v3795_v48 }
 0x852   : > { %4337 = vrcp.f32 %v2645_v39  ;;  %v2659_v14 = vand.u32 2147483648, %v2645_v39  ;;  %v2657_v62 = vand.u32 2147483647, %v2645_v39  ;;  %vm2653_vm12 = vweird.f32 %v2645_v39 }
 0x854   : > { %v5612_v51 = vpop.f32.mrf.mxu2  ;;  %v2660_v56 = vor.u32 1.1754944e-38, %v2659_v14  ;;  %vm2658_vm14 = vcmp.eq.f32.partialorder %v2657_v62, 8.507059e+37 }
 0x855   : > { %v5614_v15 = vpop.f32.mrf.mxu3  ;;  %v1996_v61 = vsel %vm1992_vm9, %v5612_v51, -inf }
 0x856   : > { %v4334_v54 = vpop.eup %4333  ;;  %v3798_v16 = vmul.f32 -1.442695, %v5614_v15  ;;  %1997 = vmax.xlane.f32.xlu1 %v1996_v61 }
 0x857   : > { %v4336_v20 = vpop.eup %4335  ;;  %v5619_v63 = vadd.f32 1.0, %v4334_v54  ;;  %v5621_v7 = vpop.f32.mrf.mxu0 }
 0x858   : > { %v4338_v60 = vpop.eup %4337  ;;  %v5623_v11 = vadd.f32 1.0, %v4336_v20  ;;  %4339 = vpow2.f32 %v3798_v16  ;;  %v3796_v5 = vmul.f32 -1.442695, %v5621_v7  ;;  %v5626_v55 = vpop.f32.mrf.mxu1 }
 0x859   : > { %v2649_v28 = vmul.f32 %v4338_v60, %v2645_v39  ;;  %4341 = vrcp.f32 %v5619_v63  ;;  %vm2654_vm10 = vweird.f32 %v4338_v60  ;;  %v2738_v42 = vand.u32 2147483647, %v5619_v63 }
 0x85a   : > { %4343 = vrcp.f32 %v5623_v11  ;;  %vm2655_vm13 = vmor %vm2653_vm12, %vm2654_vm10  ;;  %v2740_v23 = vand.u32 2147483648, %v5619_v63  ;;  %v2672_v52 = vand.u32 2147483647, %v5623_v11  ;;  %v2674_v12 = vand.u32 2147483648, %v5623_v11 }
 0x85b   : > { %v2650_v13 = vsub.f32 1.0, %v2649_v28  ;;  %4345 = vpow2.f32 %v3796_v5  ;;  %vm2734_vm1 = vweird.f32 %v5619_v63  ;;  %vm2668_vm3 = vweird.f32 %v5623_v11 }
 0x85c   : > { %v2741_v38 = vor.u32 1.1754944e-38, %v2740_v23  ;;  %vm2739_vm4 = vcmp.eq.f32.partialorder %v2738_v42, 8.507059e+37  ;;  %vm2673_vm6 = vcmp.eq.f32.partialorder %v2672_v52, 8.507059e+37 }
 0x85d   : > { %v2651_v40 = vmul.f32 %v4338_v60, %v2650_v13  ;;  %v5630_v44 = vpop.f32.mrf.mxu2 }
 0x85e   : > { %v4340_v17 = vpop.eup %4339  ;;  %v5632_v18 = vpop.f32.mrf.mxu3  ;;  %v1999_v43 = vsel %vm1992_vm9, %v5630_v44, -inf }
 0x85f   : > { %v4342_v19 = vpop.eup %4341  ;;  %v2652_v34 = vadd.f32 %v4338_v60, %v2651_v40  ;;  %v5636_v35 = vadd.f32 1.0, %v4340_v17  ;;  %v2472_v47 = vpop.f32.mrf.mxu0  ;;  %2000 = vmax.xlane.f32.xlu1 %v1999_v43  ;;  %v3799_v59 = vmul.f32 -1.442695, %v5632_v18 }
 0x860   : > { %v4344_v37 = vpop.eup %4343  ;;  %v2730_v10 = vmul.f32 %v4342_v19, %v5619_v63  ;;  %v2490_v31 = vpop.f32.mrf.mxu1  ;;  %vm2735_vm15 = vweird.f32 %v4342_v19 }
 0x861   : > { %v4346_v50 = vpop.eup %4345  ;;  %v2656_v49 = vsel %vm2655_vm13, %v4338_v60, %v2652_v34  ;;  %v2664_v21 = vmul.f32 %v4344_v37, %v5623_v11  ;;  %4347 = vrcp.f32 %v5636_v35  ;;  %vm2669_vm11 = vweird.f32 %v4344_v37  ;;  %vm2736_vm2 = vmor %vm2734_vm1, %vm2735_vm15 }
 0x862   : > { %v2661_v46 = vsel %vm2658_vm14, %v2660_v56, %v2656_v49  ;;  %v2731_v2 = vsub.f32 1.0, %v2730_v10  ;;  %v5646_v6 = vadd.f32 1.0, %v4346_v50  ;;  %4349 = vpow2.f32 %v3799_v59  ;;  %vm2670_vm5 = vmor %vm2668_vm3, %vm2669_vm11 }
 0x863   : > { %v2693_v24 = vmul.f32 %v2661_v46, %v5595_v29  ;;  %v2665_v4 = vsub.f32 1.0, %v2664_v21  ;;  %v2753_v11 = vand.u32 2147483647, %v5636_v35  ;;  %v2755_v13 = vand.u32 2147483648, %v5636_v35 }
 0x864   : > { %v2732_v26 = vmul.f32 %v4342_v19, %v2731_v2  ;;  %4351 = vrcp.f32 %v5646_v6  ;;  %vm2749_vm8 = vweird.f32 %v5636_v35  ;;  %v2689_v10 = vand.u32 2147483648, %v5646_v6 }
 0x865   : > { %v5650_v57 = vmul.f32 %v2693_v24, %v5598_v32  ;;  %v2666_v22 = vmul.f32 %v4344_v37, %v2665_v4  ;;  %v1990_v8 = vpop.f32.mrf.mxu2  ;;  %v2675_v32 = vor.u32 1.1754944e-38, %v2674_v12  ;;  %vm5673_vm10 = vcmp.eq.f32.partialorder %v2753_v11, 8.507059e+37 }
 0x866   : > { %v2733_v3 = vadd.f32 %v4342_v19, %v2732_v26  ;;  %v2508_v25 = vpop.f32.mrf.mxu3  ;;  %v2756_v56 = vor.u32 1.1754944e-38, %v2755_v13  ;;  %vm2683_vm14 = vweird.f32 %v5646_v6  ;;  %v2690_v4 = vor.u32 1.1754944e-38, %v2689_v10 }
 0x867   : > { %v4348_v29 = vpop.eup %4347  ;;  %v2667_v45 = vadd.f32 %v4344_v37, %v2666_v22  ;;  %v5655_v27 = vpop.f32.mrf.mxu0 }
 0x868   : > { %v2737_v36 = vsel %vm2736_vm2, %v4342_v19, %v2733_v3  ;;  %v2745_v48 = vmul.f32 %v4348_v29, %v5636_v35  ;;  %v5658_v39 = vpop.f32.mrf.mxu1  ;;  %v3800_v16 = vmul.f32 -1.442695, %v5655_v27  ;;  %v4350_v20 = vpop.eup %4349  ;;  %vm2750_vm7 = vweird.f32 %v4348_v29 }
 0x869   : > { %v2742_v61 = vsel %vm2739_vm4, %v2741_v38, %v2737_v36  ;;  %v2671_v54 = vsel %vm2670_vm5, %v4344_v37, %v2667_v45  ;;  %v5664_v14 = vadd.f32 1.0, %v4350_v20  ;;  %vm2751_vm12 = vmor %vm2749_vm8, %vm2750_vm7 }
 0x86a   : > { %v2676_v63 = vsel %vm2673_vm6, %v2675_v32, %v2671_v54  ;;  %v2746_v60 = vsub.f32 1.0, %v2745_v48  ;;  %v4352_v5 = vpop.eup %4351  ;;  %4353 = vpow2.f32 %v3800_v16  ;;  %v2774_v40 = vmul.f32 %v2742_v61, %v5602_v58 }
 0x86b   : > { %v2694_v28 = vmul.f32 %v2676_v63, %v5607_v1  ;;  %v2679_v17 = vmul.f32 %v4352_v5, %v5646_v6  ;;  %4355 = vrcp.f32 %v5664_v14  ;;  %vm2684_vm13 = vweird.f32 %v4352_v5 }
 0x86c   : > { %v2747_v62 = vmul.f32 %v4348_v29, %v2746_v60  ;;  %vm2685_vm15 = vmor %vm2683_vm14, %vm2684_vm13  ;;  %v2768_v45 = vand.u32 2147483647, %v5664_v14  ;;  %v2770_v36 = vand.u32 2147483648, %v5664_v14  ;;  %vm2764_vm2 = vweird.f32 %v5664_v14 }
 0x86d   : > { %v5669_v43 = vmul.f32 %v2694_v28, %v5610_v0  ;;  %v2519_v19 = vpop.f32.mrf.mxu2  ;;  %v2680_v47 = vsub.f32 1.0, %v2679_v17  ;;  %v2687_v0 = vand.u32 2147483647, %v5646_v6 }
 0x86e   : > { %v2748_v1 = vadd.f32 %v4348_v29, %v2747_v62  ;;  %v5677_v37 = vmul.f32 %v2774_v40, %v2519_v19  ;;  %v5679_v58 = vpop.f32.mrf.mxu3  ;;  %vm2769_vm4 = vcmp.eq.f32.partialorder %v2768_v45, 8.507059e+37 }
 0x86f   : > { %v3803_v35 = vmul.f32 -1.442695, %v5679_v58  ;;  %v5684_v59 = vpop.f32.mrf.mxu0  ;;  %v2681_v50 = vmul.f32 %v4352_v5, %v2680_v47  ;;  %vm2688_vm11 = vcmp.eq.f32.partialorder %v2687_v0, 8.507059e+37 }
 0x870   : > { %v2752_v31 = vsel %vm2751_vm12, %v4348_v29, %v2748_v1  ;;  %v3801_v49 = vmul.f32 -1.442695, %v5684_v59  ;;  %v5687_v21 = vpop.f32.mrf.mxu1  ;;  %v4354_v46 = vpop.eup %4353 }
 0x871   : > { %v2757_v2 = vsel %vm5673_vm10, %v2756_v56, %v2752_v31  ;;  %4357 = vpow2.f32 %v3803_v35  ;;  %v2682_v42 = vadd.f32 %v4352_v5, %v2681_v50  ;;  %v5692_v23 = vadd.f32 1.0, %v4354_v46  ;;  %v4356_v24 = vpop.eup %4355 }
 0x872   : > { %4359 = vpow2.f32 %v3801_v49  ;;  %v2775_v52 = vmul.f32 %v2757_v2, %v5614_v15  ;;  %v2760_v12 = vmul.f32 %v4356_v24, %v5664_v14  ;;  %vm2765_vm1 = vweird.f32 %v4356_v24 }
 0x873   : > { %v2686_v26 = vsel %vm2685_vm15, %v4352_v5, %v2682_v42  ;;  %4361 = vrcp.f32 %v5692_v23  ;;  %vm2766_vm3 = vmor %vm2764_vm2, %vm2765_vm1  ;;  %v2818_v19 = vand.u32 2147483648, %v5692_v23  ;;  %v2816_v47 = vand.u32 2147483647, %v5692_v23 }
 0x874   : > { %v2691_v22 = vsel %vm2688_vm11, %v2690_v4, %v2686_v26  ;;  %v2761_v25 = vsub.f32 1.0, %v2760_v12  ;;  %vm2812_vm6 = vweird.f32 %v5692_v23 }
 0x875   : > { %v2521_v8 = vpop.f32.mrf.mxu2  ;;  %v2695_v3 = vmul.f32 %v2691_v22, %v5621_v7  ;;  %v2819_v2 = vor.u32 1.1754944e-38, %v2818_v19  ;;  %vm2817_vm8 = vcmp.eq.f32.partialorder %v2816_v47, 8.507059e+37 }
 0x876   : > { %v5698_v6 = vmul.f32 %v2775_v52, %v2521_v8  ;;  %v5700_v29 = vpop.f32.mrf.mxu3  ;;  %v2762_v54 = vmul.f32 %v4356_v24, %v2761_v25 }
 0x877   : > { %v4358_v38 = vpop.eup %4357  ;;  %v3804_v15 = vmul.f32 -1.442695, %v5700_v29  ;;  %v5705_v32 = vpop.f32.mrf.mxu0  ;;  %v5708_v61 = vmul.f32 %v2695_v3, %v5626_v55  ;;  %v2771_v55 = vor.u32 1.1754944e-38, %v2770_v36 }
 0x878   : > { %v4360_v48 = vpop.eup %4359  ;;  %v5710_v7 = vadd.f32 1.0, %v4358_v38  ;;  %v5712_v16 = vpop.f32.mrf.mxu1  ;;  %v2763_v60 = vadd.f32 %v4356_v24, %v2762_v54  ;;  %v3802_v11 = vmul.f32 -1.442695, %v5705_v32 }
 0x879   : > { %v5714_v20 = vadd.f32 1.0, %v4360_v48  ;;  %4363 = vpow2.f32 %v3804_v15  ;;  %v4362_v63 = vpop.eup %4361 }
 0x87a   : > { %4365 = vrcp.f32 %v5710_v7  ;;  %v2808_v5 = vmul.f32 %v4362_v63, %v5692_v23  ;;  %v2767_v28 = vsel %vm2766_vm3, %v4356_v24, %v2763_v60  ;;  %vm2813_vm5 = vweird.f32 %v4362_v63 }
 0x87b   : > { %4367 = vrcp.f32 %v5714_v20  ;;  %v2772_v13 = vsel %vm2769_vm4, %v2771_v55, %v2767_v28  ;;  %vm2814_vm7 = vmor %vm2812_vm6, %vm2813_vm5  ;;  %v2894_v12 = vand.u32 2147483647, %v5710_v7  ;;  %v2896_v22 = vand.u32 2147483648, %v5710_v7 }
 0x87c   : > { %v2809_v40 = vsub.f32 1.0, %v2808_v5  ;;  %v2776_v17 = vmul.f32 %v2772_v13, %v5632_v18  ;;  %4369 = vpow2.f32 %v3802_v11  ;;  %v2833_v25 = vand.u32 2147483648, %v5714_v20 }
 0x87d   : > { %v2524_v62 = vpop.f32.mrf.mxu2  ;;  %v2831_v36 = vand.u32 2147483647, %v5714_v20  ;;  %vm2890_vm13 = vweird.f32 %v5710_v7  ;;  %v2897_v55 = vor.u32 1.1754944e-38, %v2896_v22  ;;  %vm2827_vm15 = vweird.f32 %v5714_v20 }
 0x87e   : > { %v5723_v14 = vpop.f32.mrf.mxu3  ;;  %v2810_v34 = vmul.f32 %v4362_v63, %v2809_v40  ;;  %v5729_v31 = vmul.f32 %v2776_v17, %v2524_v62  ;;  %vm2895_vm11 = vcmp.eq.f32.partialorder %v2894_v12, 8.507059e+37 }
 0x87f   : > { %v4364_v1 = vpop.eup %4363  ;;  %v3805_v56 = vmul.f32 -1.442695, %v5723_v14  ;;  %v2544_v0 = vpop.f32.mrf.mxu0  ;;  %vm2832_vm2 = vcmp.eq.f32.partialorder %v2831_v36, 8.507059e+37 }
 0x880   : > { %v4366_v10 = vpop.eup %4365  ;;  %v5727_v35 = vadd.f32 1.0, %v4364_v1  ;;  %v2562_v50 = vpop.f32.mrf.mxu1  ;;  %v2811_v49 = vadd.f32 %v4362_v63, %v2810_v34 }
 0x881   : > { %v4368_v18 = vpop.eup %4367  ;;  %v2886_v46 = vmul.f32 %v4366_v10, %v5710_v7  ;;  %4371 = vpow2.f32 %v3805_v56  ;;  %vm2891_vm10 = vweird.f32 %v4366_v10 }
 0x882   : > { %v2823_v42 = vmul.f32 %v4368_v18, %v5714_v20  ;;  %4373 = vrcp.f32 %v5727_v35  ;;  %v2815_v24 = vsel %vm2814_vm7, %v4362_v63, %v2811_v49  ;;  %v4370_v52 = vpop.eup %4369  ;;  %vm2828_vm12 = vweird.f32 %v4368_v18  ;;  %vm2892_vm14 = vmor %vm2890_vm13, %vm2891_vm10 }
 0x883   : > { %v2887_v4 = vsub.f32 1.0, %v2886_v46  ;;  %v2820_v26 = vsel %vm2817_vm8, %v2819_v2, %v2815_v24  ;;  %v5740_v15 = vadd.f32 1.0, %v4370_v52  ;;  %vm2829_vm1 = vmor %vm2827_vm15, %vm2828_vm12  ;;  %v2911_v47 = vand.u32 2147483648, %v5727_v35 }
 0x884   : > { %v2824_v8 = vsub.f32 1.0, %v2823_v42  ;;  %v2852_v23 = vmul.f32 %v2820_v26, %v5655_v27  ;;  %v2909_v0 = vand.u32 2147483647, %v5727_v35  ;;  %vm2905_vm4 = vweird.f32 %v5727_v35 }
 0x885   : > { %v2888_v3 = vmul.f32 %v4366_v10, %v2887_v4  ;;  %v2526_v38 = vpop.f32.mrf.mxu2  ;;  %4375 = vrcp.f32 %v5740_v15  ;;  %v2912_v42 = vor.u32 1.1754944e-38, %v2911_v47  ;;  %v2846_v26 = vand.u32 2147483647, %v5740_v15 }
 0x886   : > { %v2825_v45 = vmul.f32 %v4368_v18, %v2824_v8  ;;  %v2580_v48 = vpop.f32.mrf.mxu3  ;;  %v5743_v63 = vmul.f32 %v2852_v23, %v5658_v39  ;;  %v2834_v39 = vor.u32 1.1754944e-38, %v2833_v25  ;;  %vm2910_vm6 = vcmp.eq.f32.partialorder %v2909_v0, 8.507059e+37 }
 0x887   : > { %v4372_v54 = vpop.eup %4371  ;;  %v2889_v60 = vadd.f32 %v4366_v10, %v2888_v3  ;;  %v5746_v27 = vpop.f32.mrf.mxu0  ;;  %vm2842_vm8 = vweird.f32 %v5740_v15  ;;  %vm2847_vm10 = vcmp.eq.f32.partialorder %v2846_v26, 8.507059e+37 }
 0x888   : > { %v4374_v11 = vpop.eup %4373  ;;  %v2826_v5 = vadd.f32 %v4368_v18, %v2825_v45  ;;  %v5750_v28 = vpop.f32.mrf.mxu1  ;;  %v5754_v17 = vadd.f32 1.0, %v4372_v54 }
 0x889   : > { %v2893_v13 = vsel %vm2892_vm14, %v4366_v10, %v2889_v60  ;;  %v2901_v40 = vmul.f32 %v4374_v11, %v5727_v35  ;;  %vm2906_vm3 = vweird.f32 %v4374_v11  ;;  %v3806_v10 = vmul.f32 -1.442695, %v5746_v27 }
 0x88a   : > { %v2898_v7 = vsel %vm2895_vm11, %v2897_v55, %v2893_v13  ;;  %v2830_v62 = vsel %vm2829_vm1, %v4368_v18, %v2826_v5  ;;  %4377 = vrcp.f32 %v5754_v17  ;;  %vm2907_vm5 = vmor %vm2905_vm4, %vm2906_vm3  ;;  %v2848_v35 = vand.u32 2147483648, %v5740_v15 }
 0x88b   : > { %v2835_v19 = vsel %vm2832_vm2, %v2834_v39, %v2830_v62  ;;  %v2902_v1 = vsub.f32 1.0, %v2901_v40  ;;  %v2930_v20 = vmul.f32 %v2898_v7, %v5679_v58  ;;  %v4376_v18 = vpop.eup %4375  ;;  %4379 = vpow2.f32 %v3806_v10 }
 0x88c   : > { %v2853_v34 = vmul.f32 %v2835_v19, %v5684_v59  ;;  %v2838_v59 = vmul.f32 %v4376_v18, %v5740_v15  ;;  %vm2843_vm7 = vweird.f32 %v4376_v18  ;;  %v2849_v48 = vor.u32 1.1754944e-38, %v2848_v35 }
 0x88d   : > { %v2903_v56 = vmul.f32 %v4374_v11, %v2902_v1  ;;  %v2591_v50 = vpop.f32.mrf.mxu2  ;;  %vm2844_vm12 = vmor %vm2842_vm8, %vm2843_vm7  ;;  %v2924_v54 = vand.u32 2147483647, %v5754_v17  ;;  %v2926_v60 = vand.u32 2147483648, %v5754_v17  ;;  %vm2920_vm14 = vweird.f32 %v5754_v17 }
 0x88e   : > { %v5763_v49 = vmul.f32 %v2853_v34, %v5687_v21  ;;  %v5765_v46 = vmul.f32 %v2930_v20, %v2591_v50  ;;  %v2839_v21 = vsub.f32 1.0, %v2838_v59 }
 0x88f   : > { %v2904_v58 = vadd.f32 %v4374_v11, %v2903_v56  ;;  %v5769_v2 = vpop.f32.mrf.mxu0  ;;  %v2927_v1 = vor.u32 1.1754944e-38, %v2926_v60  ;;  %vm2925_vm11 = vcmp.eq.f32.partialorder %v2924_v54, 8.507059e+37 }
 0x890   : > { %v3807_v24 = vmul.f32 -1.442695, %v5769_v2  ;;  %v5772_v4 = vpop.f32.mrf.mxu1  ;;  %v4378_v12 = vpop.eup %4377  ;;  %v2840_v8 = vmul.f32 %v4376_v18, %v2839_v21 }
 0x891   : > { %v2908_v52 = vsel %vm2907_vm5, %v4374_v11, %v2904_v58  ;;  %v2916_v23 = vmul.f32 %v4378_v12, %v5754_v17  ;;  %v4380_v36 = vpop.eup %4379  ;;  %vm2921_vm13 = vweird.f32 %v4378_v12 }
 0x892   : > { %v2913_v22 = vsel %vm2910_vm6, %v2912_v42, %v2908_v52  ;;  %4381 = vpow2.f32 %v3807_v24  ;;  %v2841_v25 = vadd.f32 %v4376_v18, %v2840_v8  ;;  %v2960_v13 = vadd.f32 1.0, %v4380_v36  ;;  %vm2922_vm15 = vmor %vm2920_vm14, %vm2921_vm13 }
 0x893   : > { %v2931_v3 = vmul.f32 %v2913_v22, %v5700_v29  ;;  %v2917_v38 = vsub.f32 1.0, %v2916_v23 }
 0x894   : > { %v2845_v55 = vsel %vm2844_vm12, %v4376_v18, %v2841_v25  ;;  %4383 = vrcp.f32 %v2960_v13  ;;  %v2974_v21 = vand.u32 2147483648, %v2960_v13  ;;  %vm2968_vm2 = vweird.f32 %v2960_v13 }
 0x895   : > { %v2593_v45 = vpop.f32.mrf.mxu2  ;;  %v2918_v5 = vmul.f32 %v4378_v12, %v2917_v38  ;;  %v2850_v15 = vsel %vm2847_vm10, %v2849_v48, %v2845_v55 }
 0x896   : > { %v5781_v11 = vmul.f32 %v2931_v3, %v2593_v45  ;;  %v2854_v62 = vmul.f32 %v2850_v15, %v5705_v32  ;;  %v2975_v23 = vor.u32 1.1754944e-38, %v2974_v21 }
 0x897   : > { %v5783_v29 = vpop.f32.mrf.mxu0  ;;  %v2919_v19 = vadd.f32 %v4378_v12, %v2918_v5 }
 0x898   : > { %v4382_v39 = vpop.eup %4381  ;;  %v3808_v40 = vmul.f32 -1.442695, %v5783_v29  ;;  %v5786_v7 = vpop.f32.mrf.mxu1  ;;  %v5791_v34 = vmul.f32 %v2854_v62, %v5712_v16 }
 0x899   : > { %v2961_v20 = vadd.f32 1.0, %v4382_v39  ;;  %v2923_v47 = vsel %vm2922_vm15, %v4378_v12, %v2919_v19  ;;  %v2972_v12 = vand.u32 2147483647, %v2960_v13 }
 0x89a   : > { %4385 = vpow2.f32 %v3808_v40  ;;  %v2928_v56 = vsel %vm2925_vm11, %v2927_v1, %v2923_v47  ;;  %v4384_v50 = vpop.eup %4383 }
 0x89b   : > { %4387 = vrcp.f32 %v2961_v20  ;;  %v2932_v0 = vmul.f32 %v2928_v56, %v5723_v14  ;;  %v2964_v58 = vmul.f32 %v4384_v50, %v2960_v13  ;;  %vm2969_vm1 = vweird.f32 %v4384_v50 }
 0x89c   : > { %v2989_v8 = vand.u32 2147483648, %v2961_v20  ;;  %vm2970_vm3 = vmor %vm2968_vm2, %vm2969_vm1  ;;  %v2987_v25 = vand.u32 2147483647, %v2961_v20  ;;  %vm2973_vm5 = vcmp.eq.f32.partialorder %v2972_v12, 8.507059e+37  ;;  %vm2983_vm6 = vweird.f32 %v2961_v20 }
 0x89d   : > { %v2596_v10 = vpop.f32.mrf.mxu2  ;;  %v2965_v52 = vsub.f32 1.0, %v2964_v58  ;;  %v4429_v12 = vmov 1  }
 0x89e   : > { %v5794_v32 = vmul.f32 %v2932_v0, %v2596_v10  ;;  %v2990_v60 = vor.u32 1.1754944e-38, %v2989_v8  ;;  %vm2988_vm8 = vcmp.eq.f32.partialorder %v2987_v25, 8.507059e+37  ;;  %4237 = vset.pattern.permute.xlu0 %v4429_v12 }
 0x89f   : > { %v2616_v18 = vpop.f32.mrf.mxu0  ;;  %v2966_v26 = vmul.f32 %v4384_v50, %v2965_v52 }
 0x8a0   : > { %v4386_v17 = vpop.eup %4385  ;;  %v2634_v59 = vpop.f32.mrf.mxu1 }
 0x8a1   : > { %v2962_v42 = vadd.f32 1.0, %v4386_v17  ;;  %v4388_v24 = vpop.eup %4387  ;;  %v2967_v14 = vadd.f32 %v4384_v50, %v2966_v26  ;;  %v4428_v26 = vmov 2  }
 0x8a2   : > { %v2979_v16 = vmul.f32 %v4388_v24, %v2961_v20  ;;  %vm2984_vm4 = vweird.f32 %v4388_v24  ;;  %4238 = vset.pattern.permute.xlu2 %v4428_v26 }
 0x8a3   : > { %4389 = vrcp.f32 %v2962_v42  ;;  %v2971_v38 = vsel %vm2970_vm3, %v4384_v50, %v2967_v14  ;;  %vm2985_vm7 = vmor %vm2983_vm6, %vm2984_vm4  ;;  %v3004_v62 = vand.u32 2147483648, %v2962_v42  ;;  %v3002_v1 = vand.u32 2147483647, %v2962_v42 }
 0x8a4   : > { %v2980_v22 = vsub.f32 1.0, %v2979_v16  ;;  %v2976_v36 = vsel %vm2973_vm5, %v2975_v23, %v2971_v38  ;;  %vm2998_vm12 = vweird.f32 %v2962_v42 }
 0x8a5   : > { %v2598_v35 = vpop.f32.mrf.mxu2  ;;  %v3008_v54 = vmul.f32 %v2976_v36, %v5746_v27  ;;  %v3005_v56 = vor.u32 1.1754944e-38, %v3004_v62  ;;  %vm3003_vm14 = vcmp.eq.f32.partialorder %v3002_v1, 8.507059e+37 }
 0x8a6   : > { %v2981_v3 = vmul.f32 %v4388_v24, %v2980_v22  ;;  %v4430_v22 = vmov 0  }
 0x8a7   : > { %v5798_v13 = vmul.f32 %v3008_v54, %v5750_v28  ;;  %4236 = vset.pattern.permute.xlu1 %v4430_v22 }
 0x8a8   : > { %v2982_v48 = vadd.f32 %v4388_v24, %v2981_v3 }
 0x8a9   : > { %v4390_v45 = vpop.eup %4389 }
 0x8aa   : > { %v2994_v55 = vmul.f32 %v4390_v45, %v2962_v42  ;;  %v2986_v5 = vsel %vm2985_vm7, %v4388_v24, %v2982_v48  ;;  %vm2999_vm10 = vweird.f32 %v4390_v45 }
 0x8ab   : > { %v2991_v39 = vsel %vm2988_vm8, %v2990_v60, %v2986_v5  ;;  %vm3000_vm13 = vmor %vm2998_vm12, %vm2999_vm10  ;;  %vm6113_vm12 = vcmp.gt.s32.totalorder %v5056_v41, 2 }
 0x8ac   : > { %v2995_v15 = vsub.f32 1.0, %v2994_v55  ;;  %v3009_v40 = vmul.f32 %v2991_v39, %v5769_v2 }
 0x8ae   : > { %v2996_v19 = vmul.f32 %v4390_v45, %v2995_v15  ;;  %v5802_v20 = vmul.f32 %v3009_v40, %v5772_v4 }
 0x8b0   : > { %v2997_v27 = vadd.f32 %v4390_v45, %v2996_v19  ;;  %v3018_v47 = vpack.c.bf16 %v5802_v20, %v5798_v13 }
 0x8b2   : > { %v3001_v28 = vsel %vm3000_vm13, %v4390_v45, %v2997_v27 }
 0x8b3   : > { %v3006_v0 = vsel %vm3003_vm14, %v3005_v56, %v3001_v28 }
 0x8b4   : > { %v3010_v10 = vmul.f32 %v3006_v0, %v5783_v29 }
 0x8b6   : > { %v5808_v2 = vmul.f32 %v3010_v10, %v5786_v7 }
 0x8c1   : > { %v1995_v50 = vpop.xlane.xlu0 %1994 }
 0x8c2   : > { %v2002_v18 = vsub.f32 %v5600_v33, %v1995_v50 }
 0x8c4   : > { %v2005_v4 = vmul.f32 1.442695, %v2002_v18 }
 0x8c6   : > { %4391 = vpow2.f32 %v2005_v4 }
 0x8c9   : > { %v1998_v17 = vpop.xlane.xlu1 %1997 }
 0x8ca   : > { %v2003_v58 = vsub.f32 %v5612_v51, %v1998_v17 }
 0x8cc   : > { %v4392_v59 = vpop.eup %4391  ;;  %v2007_v42 = vmul.f32 1.442695, %v2003_v58 }
 0x8cd   : > { %v2011_v24 = vsel %vm1992_vm9, %v4392_v59, 0.0 }
 0x8ce   : > { %4393 = vpow2.f32 %v2007_v42  ;;  %2012 = vadd.xlane.f32.xlu1 %v2011_v24 }
 0x8d2   : > { %v2001_v52 = vpop.xlane.xlu1 %2000 }
 0x8d3   : > { %v2004_v29 = vsub.f32 %v5630_v44, %v2001_v52 }
 0x8d4   : > { %v4394_v21 = vpop.eup %4393 }
 0x8d5   : > { %v2009_v7 = vmul.f32 1.442695, %v2004_v29  ;;  %v2014_v16 = vsel %vm1992_vm9, %v4394_v21, 0.0 }
 0x8d6   : > { %2015 = vadd.xlane.f32.xlu1 %v2014_v16 }
 0x8d7   : > { %4395 = vpow2.f32 %v2009_v7 }
 0x8dd   : > { %v5815_v33 = vpop.eup %4395 }
 0x8de   : > { %v2017_v51 = vsel %vm1992_vm9, %v5815_v33, 0.0 }
 0x8df   : > { %2018 = vadd.xlane.f32.xlu2 %v2017_v51  ;;  %v4031_v51 = vld [vmem:[%s6110_s11 + $0x18] sm:$0xff] }
 0x941   : > { %v2013_v44 = vpop.xlane.xlu1 %2012 }
 0x942   : > { %4397 = vrcp.f32 %v2013_v44  ;;  %v2031_v3 = vand.u32 2147483648, %v2013_v44  ;;  %v2029_v38 = vand.u32 2147483647, %v2013_v44  ;;  %vm2025_vm15 = vweird.f32 %v2013_v44 }
 0x944   : > { %v2032_v48 = vor.u32 1.1754944e-38, %v2031_v3  ;;  %vm2030_vm1 = vcmp.eq.f32.partialorder %v2029_v38, 8.507059e+37 }
 0x948   : > { %v4398_v35 = vpop.eup %4397 }
 0x949   : > { %v2021_v14 = vmul.f32 %v4398_v35, %v2013_v44  ;;  %v2016_v8 = vpop.xlane.xlu1 %2015  ;;  %vm2026_vm9 = vweird.f32 %v4398_v35  ;;  %v4051_v44 = vld [vmem:[%s6110_s11 + $0xb8] sm:$0xff] }
 0x94a   : > { %4399 = vrcp.f32 %v2016_v8  ;;  %vm2027_vm11 = vmor %vm2025_vm15, %vm2026_vm9  ;;  %v2046_v40 = vand.u32 2147483648, %v2016_v8  ;;  %v2044_v19 = vand.u32 2147483647, %v2016_v8  ;;  %vm2040_vm3 = vweird.f32 %v2016_v8  ;;  %3380 = vmatpush.bf16.msra.mxu0 %v4051_v44 }
 0x94b   : > { %v2022_v23 = vsub.f32 1.0, %v2021_v14  ;;  %vm2188_vm15 = vcmp.gt.s32.totalorder %v5056_v41, 3  ;;  %v4432_v14 = vmov 0.0  }
 0x94c   : > { %v2047_v27 = vor.u32 1.1754944e-38, %v2046_v40  ;;  %vm2045_vm5 = vcmp.eq.f32.partialorder %v2044_v19, 8.507059e+37 }
 0x94d   : > { %v2023_v25 = vmul.f32 %v4398_v35, %v2022_v23 }
 0x94f   : > { %v2024_v45 = vadd.f32 %v4398_v35, %v2023_v25 }
 0x950   : > { %v4400_v36 = vpop.eup %4399 }
 0x951   : > { %v2028_v54 = vsel %vm2027_vm11, %v4398_v35, %v2024_v45  ;;  %v2036_v60 = vmul.f32 %v4400_v36, %v2016_v8  ;;  %vm2041_vm2 = vweird.f32 %v4400_v36 }
 0x952   : > { %v2033_v55 = vsel %vm2030_vm1, %v2032_v48, %v2028_v54  ;;  %v2019_v5 = vpop.xlane.xlu2 %2018  ;;  %vm2042_vm4 = vmor %vm2040_vm3, %vm2041_vm2  ;;  %vm2120_vm1 = vcmp.gt.s32.totalorder %v5056_v41, 1 }
 0x953   : > { %v5822_v39 = vmul.f32 %v4392_v59, %v2033_v55  ;;  %v2037_v15 = vsub.f32 1.0, %v2036_v60  ;;  %4401 = vrcp.f32 %v2019_v5  ;;  %v2061_v4 = vand.u32 2147483648, %v2019_v5 }
 0x954   : > { %v2059_v58 = vand.u32 2147483647, %v2019_v5  ;;  %vm2055_vm7 = vweird.f32 %v2019_v5 }
 0x955   : > { %v2038_v62 = vmul.f32 %v4400_v36, %v2037_v15  ;;  %2137 = vperm.xlu2 %4238, %v5822_v39   ;;  %2103 = vperm.xlu0 %4237, %v5822_v39   ;;  %v2062_v42 = vor.u32 1.1754944e-38, %v2061_v4 }
 0x956   : > { %2067 = vperm.xlu1 %4236, %v5822_v39   ;;  %vm2060_vm10 = vcmp.eq.f32.partialorder %v2059_v58, 8.507059e+37 }
 0x957   : > { %v2039_v1 = vadd.f32 %v4400_v36, %v2038_v62 }
 0x959   : > { %v4402_v56 = vpop.eup %4401  ;;  %v2043_v28 = vsel %vm2042_vm4, %v4400_v36, %v2039_v1 }
 0x95a   : > { %v2048_v0 = vsel %vm2045_vm5, %v2047_v27, %v2043_v28  ;;  %v2051_v10 = vmul.f32 %v4402_v56, %v2019_v5  ;;  %vm2056_vm6 = vweird.f32 %v4402_v56 }
 0x95b   : > { %v5827_v50 = vmul.f32 %v4394_v21, %v2048_v0  ;;  %vm2057_vm8 = vmor %vm2055_vm7, %vm2056_vm6  ;;  %v4431_v21 = vmov 3  }
 0x95c   : > { %v2052_v18 = vsub.f32 1.0, %v2051_v10 }
 0x95d   : > { %4239 = vset.pattern.permute.xlu2 %v4430_v22 }
 0x95e   : > { %v2053_v17 = vmul.f32 %v4402_v56, %v2052_v18  ;;  %4241 = vset.pattern.permute.xlu1 %v4429_v12  ;;  %2072 = vperm.xlu2 %4239, %v5827_v50  }
 0x95f   : > { %2107 = vperm.xlu1 %4241, %v5827_v50  }
 0x960   : > { %v2054_v59 = vadd.f32 %v4402_v56, %v2053_v17 }
 0x962   : > { %v2058_v24 = vsel %vm2057_vm8, %v4402_v56, %v2054_v59 }
 0x963   : > { %v2063_v52 = vsel %vm2060_vm10, %v2062_v42, %v2058_v24  ;;  %vm2086_vm10 = vcmp.gt.s32.totalorder %v5056_v41, 0 }
 0x964   : > { %v5834_v29 = vmul.f32 %v5815_v33, %v2063_v52 }
 0x966   : > { %2111 = vperm.xlu0 %4237, %v5834_v29   ;;  %4240 = vset.pattern.permute.xlu2 %v4431_v21 }
 0x967   : > { %4242 = vset.pattern.permute.xlu1 %v4428_v26  ;;  %2171 = vperm.xlu2 %4240, %v5822_v39  }
 0x968   : > { %2141 = vperm.xlu1 %4242, %v5827_v50  }
 0x96e   : > { %4247 = vset.pattern.permute.xlu0 %v4430_v22 }
 0x96f   : > { %4244 = vset.pattern.permute.xlu2 %v4430_v22 }
 0x970   : > { %4243 = vset.pattern.permute.xlu1 %v4431_v21  ;;  %2077 = vperm.xlu2 %4244, %v5834_v29  }
 0x971   : > { %2175 = vperm.xlu1 %4243, %v5827_v50  }
 0x978   : > { %4246 = vset.pattern.permute.xlu2 %v4431_v21 }
 0x979   : > { %4245 = vset.pattern.permute.xlu1 %v4428_v26  ;;  %2179 = vperm.xlu2 %4246, %v5834_v29  }
 0x97a   : > { %2145 = vperm.xlu1 %4245, %v5834_v29  }
 0x981   : > { %4249 = vset.pattern.permute.xlu2 %v4430_v22 }
 0x982   : > { %4248 = vset.pattern.permute.xlu1 %v4430_v22 }
 0x9af   : > { %v2138_v7 = vpop.permute.xlu2 %2137 }
 0x9b0   : > { %vm2151_vm13 = vcmp.eq.f32.partialorder %v2138_v7, %v5822_v39  ;;  %vm2148_vm14 = vcmp.gt.f32.partialorder %v2138_v7, %v5822_v39  ;;  %v4035_v7 = vld [vmem:[%s6110_s11 + $0x38] sm:$0xff] }
 0x9b1   : > { %vm2155_vm9 = vmand %vm2151_vm13, %vm6113_vm12  ;;  %3344 = vmatpush.bf16.msrb.mxu3 %v4035_v7 }
 0x9b2   : > { %vm5860_vm2 = vmor %vm2148_vm14, %vm2155_vm9 }
 0x9b3   : > { %v3605_v25 = vsel %vm5860_vm2, 1.0, %v4432_v14 }
 0x9b8   : > { %v2073_v16 = vpop.permute.xlu2 %2072 }
 0x9c1   : > { %v2172_v33 = vpop.permute.xlu2 %2171 }
 0x9c2   : > { %vm2185_vm11 = vcmp.eq.f32.partialorder %v2172_v33, %v5822_v39  ;;  %vm2182_vm14 = vcmp.gt.f32.partialorder %v2172_v33, %v5822_v39  ;;  %v4033_v33 = vld [vmem:[%s6110_s11 + $0x28] sm:$0xff] }
 0x9c3   : > { %vm5866_vm3 = vmand %vm2185_vm11, %vm2188_vm15 }
 0x9c7   : > { %v2104_v22 = vpop.permute.xlu0 %2103 }
 0x9c8   : > { %vm2114_vm4 = vcmp.gt.f32.partialorder %v2104_v22, %v5822_v39  ;;  %vm2117_vm5 = vcmp.eq.f32.partialorder %v2104_v22, %v5822_v39  ;;  %v2068_v35 = vpop.permute.xlu1 %2067  ;;  %v4041_v22 = vld [vmem:[%s6110_s11 + $0x68] sm:$0xff] }
 0x9c9   : > { %vm2121_vm6 = vmand %vm2117_vm5, %vm2120_vm1  ;;  %vm2080_vm7 = vcmp.gt.f32.partialorder %v2068_v35, %v5822_v39  ;;  %vm2083_vm8 = vcmp.eq.f32.partialorder %v2068_v35, %v5822_v39  ;;  %v4050_v35 = vld [vmem:[%s6110_s11 + $0xb0] sm:$0xff] }
 0x9ca   : > { %vm2124_vm13 = vmor %vm2114_vm4, %vm2121_vm6  ;;  %v2078_v55 = vpop.permute.xlu2 %2077  ;;  %3381 = vmatpush.bf16.msra.mxu0 %v4050_v35 }
 0x9cb   : > { %v3602_v8 = vsel %vm2124_vm13, 1.0, %v4432_v14  ;;  %vm2087_vm9 = vmand %vm2083_vm8, %vm2086_vm10  ;;  %vm2081_vm13 = vcmp.gt.f32.partialorder %v2073_v16, %v5827_v50 }
 0x9cc   : > { %vm2090_vm11 = vmor %vm2080_vm7, %vm2087_vm9 }
 0x9cd   : > { %v3599_v23 = vsel %vm2090_vm11, 1.0, %v4432_v14  ;;  %vm2192_vm5 = vmor %vm2182_vm14, %vm5866_vm3  ;;  %vm2084_vm3 = vcmp.eq.f32.partialorder %v2073_v16, %v5827_v50 }
 0x9ce   : > { %v2133_v3 = vadd.f32 %v3602_v8, %v3599_v23  ;;  %v3608_v45 = vsel %vm2192_vm5, 1.0, %v4432_v14  ;;  %vm2088_vm14 = vmand %vm2084_vm3, %vm2086_vm10  ;;  %v4040_v8 = vld [vmem:[%s6110_s11 + $0x60] sm:$0xff]  ;;  %v4029_v23 = vld [vmem:[%s6110_s11 + $0x8] sm:$0xff] }
 0x9d0   : > { %v2167_v38 = vadd.f32 %v3605_v25, %v2133_v3  ;;  %v4049_v3 = vld [vmem:[%s6110_s11 + $0xa8] sm:$0xff]  ;;  %v4039_v25 = vld [vmem:[%s6110_s11 + $0x58] sm:$0xff] }
 0x9d1   : > { %v2108_v36 = vpop.permute.xlu1 %2107  ;;  %3382 = vmatpush.bf16.msra.mxu0 %v4049_v3 }
 0x9d2   : > { %v2201_v48 = vadd.f32 %v3608_v45, %v2167_v38  ;;  %vm2118_vm6 = vcmp.eq.f32.partialorder %v2108_v36, %v5827_v50  ;;  %vm2115_vm2 = vcmp.gt.f32.partialorder %v2108_v36, %v5827_v50  ;;  %v4059_v38 = vld [vmem:[%s6110_s11 + $0xf8] sm:$0xff]  ;;  %v4028_v45 = vld [vmem:[%s6110_s11] sm:$0xff]  ;;  %v4038_v36 = vld [vmem:[%s6110_s11 + $0x50] sm:$0xff] }
 0x9d3   : > { %vm2122_vm7 = vmand %vm2118_vm6, %vm2120_vm1  ;;  %v2180_v27 = vpop.permute.xlu2 %2179  ;;  %3398 = vmatpush.bf16.msra.mxu1 %v4059_v38 }
 0x9d4   : > { %vm2204_vm4 = vcmp.lt.f32.partialorder %v2201_v48, 2.0  ;;  %vm2125_vm5 = vmor %vm2115_vm2, %vm2122_vm7  ;;  %v4048_v48 = vld [vmem:[%s6110_s11 + $0xa0] sm:$0xff] }
 0x9d5   : > { %v3611_v54 = vsel %vm2204_vm4, 1.0, %v4432_v14  ;;  %vm2091_vm4 = vmor %vm2081_vm13, %vm2088_vm14  ;;  %v3603_v15 = vsel %vm2125_vm5, 1.0, %v4432_v14  ;;  %3383 = vmatpush.bf16.msra.mxu0 %v4048_v48 }
 0x9d6   : > { %v5890_v60 = vmul.f32 %v3611_v54, %v5822_v39  ;;  %v3600_v40 = vsel %vm2091_vm4, 1.0, %v4432_v14  ;;  %vm2184_vm4 = vcmp.gt.f32.partialorder %v2180_v27, %v5834_v29  ;;  %v4058_v54 = vld [vmem:[%s6110_s11 + $0xf0] sm:$0xff] }
 0x9d7   : > { %v2134_v1 = vadd.f32 %v3603_v15, %v3600_v40  ;;  %3399 = vmatpush.bf16.msra.mxu1 %v4058_v54  ;;  %v4066_v15 = vld [vmem:[%s6110_s11 + $0x130] sm:$0xff]  ;;  %v4036_v40 = vld [vmem:[%s6110_s11 + $0x40] sm:$0xff] }
 0x9d8   : > { %2701 = vperm.xlu0 %4247, %v5890_v60   ;;  %v2112_v39 = vpop.permute.xlu0 %2111 }
 0x9d9   : > { %vm2119_vm6 = vcmp.eq.f32.partialorder %v2112_v39, %v5834_v29  ;;  %vm2116_vm14 = vcmp.gt.f32.partialorder %v2112_v39, %v5834_v29  ;;  %v4057_v39 = vld [vmem:[%s6110_s11 + $0xe8] sm:$0xff] }
 0x9da   : > { %v2142_v5 = vpop.permute.xlu1 %2141  ;;  %vm2123_vm3 = vmand %vm2119_vm6, %vm2120_vm1 }
 0x9db   : > { %vm2152_vm8 = vcmp.eq.f32.partialorder %v2142_v5, %v5827_v50  ;;  %vm2149_vm9 = vcmp.gt.f32.partialorder %v2142_v5, %v5827_v50  ;;  %vm2126_vm5 = vmor %vm2116_vm14, %vm2123_vm3  ;;  %vm6124_vm3 = vcmp.gt.s32.totalorder %v5056_v41, 2  ;;  %v4047_v5 = vld [vmem:[%s6110_s11 + $0x98] sm:$0xff]  ;;  %3400 = vmatpush.bf16.msra.mxu1 %v4057_v39 }
 0x9dc   : > { %vm2156_vm11 = vmand %vm2152_vm8, %vm6113_vm12  ;;  %vm2085_vm8 = vcmp.eq.f32.partialorder %v2078_v55, %v5834_v29  ;;  %v3604_v18 = vsel %vm2126_vm5, 1.0, %v4432_v14  ;;  %3384 = vmatpush.bf16.msra.mxu0 %v4047_v5 }
 0x9dd   : > { %vm2159_vm0 = vmor %vm2149_vm9, %vm2156_vm11  ;;  %vm2082_vm11 = vcmp.gt.f32.partialorder %v2078_v55, %v5834_v29  ;;  %v4037_v55 = vld [vmem:[%s6110_s11 + $0x48] sm:$0xff] }
 0x9de   : > { %v3606_v62 = vsel %vm2159_vm0, 1.0, %v4432_v14  ;;  %vm2187_vm0 = vcmp.eq.f32.partialorder %v2180_v27, %v5834_v29  ;;  %vm2089_vm1 = vmand %vm2085_vm8, %vm2086_vm10  ;;  %v4045_v27 = vld [vmem:[%s6110_s11 + $0x88] sm:$0xff] }
 0x9df   : > { %v2168_v56 = vadd.f32 %v3606_v62, %v2134_v1  ;;  %vm2191_vm6 = vmand %vm2187_vm0, %vm2188_vm15  ;;  %v4046_v62 = vld [vmem:[%s6110_s11 + $0x90] sm:$0xff]  ;;  %v4065_v1 = vld [vmem:[%s6110_s11 + $0x128] sm:$0xff] }
 0x9e0   : > { %4252 = vset.pattern.permute.xlu0 %v4428_v26  ;;  %vm2092_vm12 = vmor %vm2082_vm11, %vm2089_vm1  ;;  %3385 = vmatpush.bf16.msra.mxu0 %v4046_v62 }
 0x9e1   : > { %2859 = vperm.xlu0 %4252, %v5890_v60   ;;  %v3601_v58 = vsel %vm2092_vm12, 1.0, %v4432_v14  ;;  %vm6125_vm12 = vcmask 523264  }
 0x9e2   : > { %v2135_v59 = vadd.f32 %v3604_v18, %v3601_v58  ;;  %v4063_v18 = vld [vmem:[%s6110_s11 + $0x118] sm:$0xff]  ;;  %v4062_v58 = vld [vmem:[%s6110_s11 + $0x110] sm:$0xff] }
 0x9e3   : > { %v2176_v19 = vpop.permute.xlu1 %2175 }
 0x9e4   : > { %vm2183_vm2 = vcmp.gt.f32.partialorder %v2176_v19, %v5827_v50  ;;  %vm2186_vm7 = vcmp.eq.f32.partialorder %v2176_v19, %v5827_v50  ;;  %v4056_v19 = vld [vmem:[%s6110_s11 + $0xe0] sm:$0xff]  ;;  %3386 = vmatpush.bf16.msra.mxu0 %v4045_v27 }
 0x9e5   : > { %vm2190_vm13 = vmand %vm2186_vm7, %vm2188_vm15  ;;  %3401 = vmatpush.bf16.msra.mxu1 %v4056_v19 }
 0x9e6   : > { %vm2193_vm9 = vmor %vm2183_vm2, %vm2190_vm13 }
 0x9e7   : > { %v3609_v28 = vsel %vm2193_vm9, 1.0, %v4432_v14  ;;  %vm2194_vm2 = vmor %vm2184_vm4, %vm2191_vm6 }
 0x9e8   : > { %v2202_v0 = vadd.f32 %v3609_v28, %v2168_v56  ;;  %v3610_v52 = vsel %vm2194_vm2, 1.0, %v4432_v14  ;;  %v4055_v56 = vld [vmem:[%s6110_s11 + $0xd8] sm:$0xff]  ;;  %v4064_v28 = vld [vmem:[%s6110_s11 + $0x120] sm:$0xff]  ;;  %vm6126_vm9 = vmmov %vm6125_vm12 }
 0x9e9   : > { %3402 = vmatpush.bf16.msra.mxu1 %v4055_v56  ;;  %vm6127_vm0 = vmmov %vm6126_vm9 }
 0x9ea   : > { %vm2205_vm7 = vcmp.lt.f32.partialorder %v2202_v0, 2.0  ;;  %v4044_v0 = vld [vmem:[%s6110_s11 + $0x80] sm:$0xff] }
 0x9eb   : > { %v3612_v10 = vsel %vm2205_vm7, 1.0, %v4432_v14  ;;  %3387 = vmatpush.bf16.msra.mxu0 %v4044_v0 }
 0x9ec   : > { %v2214_v4 = vmul.f32 %v3612_v10, %v5827_v50  ;;  %v2146_v17 = vpop.permute.xlu1 %2145  ;;  %v4054_v10 = vld [vmem:[%s6110_s11 + $0xd0] sm:$0xff] }
 0x9ed   : > { %vm2150_vm13 = vcmp.gt.f32.partialorder %v2146_v17, %v5834_v29  ;;  %vm2153_vm10 = vcmp.eq.f32.partialorder %v2146_v17, %v5834_v29  ;;  %3403 = vmatpush.bf16.msra.mxu1 %v4054_v10  ;;  %v4053_v17 = vld [vmem:[%s6110_s11 + $0xc8] sm:$0xff] }
 0x9ee   : > { %vm2157_vm8 = vmand %vm2153_vm10, %vm6124_vm3  ;;  %2706 = vperm.xlu1 %4248, %v2214_v4  }
 0x9ef   : > { %vm2160_vm15 = vmor %vm2150_vm13, %vm2157_vm8 }
 0x9f0   : > { %v3607_v42 = vsel %vm2160_vm15, 1.0, %v4432_v14 }
 0x9f1   : > { %v2169_v24 = vadd.f32 %v3607_v42, %v2135_v59  ;;  %3404 = vmatpush.bf16.msra.mxu1 %v4053_v17  ;;  %v4052_v42 = vld [vmem:[%s6110_s11 + $0xc0] sm:$0xff] }
 0x9f3   : > { %v2203_v50 = vadd.f32 %v3610_v52, %v2169_v24  ;;  %v4061_v24 = vld [vmem:[%s6110_s11 + $0x108] sm:$0xff] }
 0x9f5   : > { %vm2206_vm14 = vcmp.lt.f32.partialorder %v2203_v50, 2.0  ;;  %3405 = vmatpush.bf16.msra.mxu1 %v4052_v42 }
 0x9f6   : > { %v3613_v16 = vsel %vm2206_vm14, 1.0, %v4432_v14  ;;  %4250 = vset.pattern.permute.xlu1 %v4429_v12  ;;  %v4030_v14 = vld [vmem:[%s6110_s11 + $0x10] sm:$0xff] }
 0x9f7   : > { %2781 = vperm.xlu1 %4250, %v5890_v60   ;;  %v2215_v41 = vmul.f32 %v3613_v16, %v5834_v29  ;;  %v4043_v29 = vld [vmem:[%s6110_s11 + $0x78] sm:$0xff] }
 0x9f8   : > { %3362 = vmatpush.bf16.msra.mxu2 %v4043_v29 }
 0x9f9   : > { %2867 = vperm.xlu0 %4252, %v2215_v41   ;;  %2711 = vperm.xlu2 %4249, %v2215_v41  }
 0x9ff   : > { %4253 = vset.pattern.permute.xlu1 %v4428_v26  ;;  %v4034_v26 = vld [vmem:[%s6110_s11 + $0x30] sm:$0xff] }
 0xa00   : > { %2863 = vperm.xlu1 %4253, %v2214_v4   ;;  %3345 = vmatpush.bf16.msrb.mxu3 %v4034_v26 }
 0xa01   : > { %4251 = vset.pattern.permute.xlu2 %v4429_v12  ;;  %4257 = vset.pattern.permute.xlu0 %v4431_v21 }
 0xa02   : > { %2785 = vperm.xlu2 %4251, %v2214_v4  }
 0xa04   : > { %3346 = vmatpush.bf16.msrb.mxu3 %v4033_v33 }
 0xa08   : > { %4255 = vset.pattern.permute.xlu1 %v4431_v21 }
 0xa09   : > { %2941 = vperm.xlu1 %4255, %v2214_v4  }
 0xa0a   : > { %4254 = vset.pattern.permute.xlu2 %v4431_v21  ;;  %v4042_v21 = vld [vmem:[%s6110_s11 + $0x70] sm:$0xff] }
 0xa0b   : > { %2937 = vperm.xlu2 %4254, %v5890_v60   ;;  %3363 = vmatpush.bf16.msra.mxu2 %v4042_v21  ;;  %v4067_v60 = vld [vmem:[%s6110_s11 + $0x138] sm:$0xff] }
 0xa0f   : > { %3364 = vmatpush.bf16.msra.mxu2 %v4041_v22 }
 0xa11   : > { %2945 = vperm.xlu1 %4255, %v2215_v41  }
 0xa13   : > { %4256 = vset.pattern.permute.xlu2 %v4429_v12  ;;  %v4032_v12 = vld [vmem:[%s6110_s11 + $0x20] sm:$0xff]  ;;  %3365 = vmatpush.bf16.msra.mxu2 %v4040_v8 }
 0xa14   : > { %2789 = vperm.xlu2 %4256, %v2215_v41   ;;  %3347 = vmatpush.bf16.msrb.mxu3 %v4032_v12  ;;  %v4060_v41 = vld [vmem:[%s6110_s11 + $0x100] sm:$0xff] }
 0xa17   : > { %3366 = vmatpush.bf16.msra.mxu2 %v4039_v25 }
 0xa18   : > { %3348 = vmatpush.bf16.msrb.mxu3 %v4031_v51 }
 0xa1b   : > { %3367 = vmatpush.bf16.msra.mxu2 %v4038_v36 }
 0xa1c   : > { %3349 = vmatpush.bf16.msrb.mxu3 %v4030_v14 }
 0xa1f   : > { %3368 = vmatpush.bf16.msra.mxu2 %v4037_v55 }
 0xa20   : > { %3350 = vmatpush.bf16.msrb.mxu3 %v4029_v23 }
 0xa23   : > { %3369 = vmatpush.bf16.msra.mxu2 %v4036_v40 }
 0xa24   : > { %3351 = vmatpush.bf16.msrb.mxu3 %v4028_v45 }
 0xa28   : > { %3416 = vmatpush.bf16.msra.mxu3 %v4067_v60 }
 0xa2c   : > { %3417 = vmatpush.bf16.msra.mxu3 %v4066_v15 }
 0xa30   : > { %3418 = vmatpush.bf16.msra.mxu3 %v4065_v1 }
 0xa34   : > { %3419 = vmatpush.bf16.msra.mxu3 %v4064_v28 }
 0xa38   : > { %3420 = vmatpush.bf16.msra.mxu3 %v4063_v18 }
 0xa3c   : > { %3421 = vmatpush.bf16.msra.mxu3 %v4062_v58 }
 0xa40   : > { %3422 = vmatpush.bf16.msra.mxu3 %v4061_v24 }
 0xa44   : > { %3423 = vmatpush.bf16.msra.mxu3 %v4060_v41 }
 0xa4a   : > { %v2702_v59 = vpop.permute.xlu0 %2701 }
 0xa4b   : > { %v2714_v50 = vmul.f32 %v2702_v59, %v5650_v57 }
 0xa53   : > { %v2712_v4 = vpop.permute.xlu2 %2711 }
 0xa54   : > { %v2716_v57 = vmul.f32 %v2712_v4, %v5708_v61 }
 0xa56   : > { %v3019_v35 = vpack.c.bf16 %v2716_v57, %v2716_v57 }
 0xa5c   : > { %v2786_v7 = vpop.permute.xlu2 %2785 }
 0xa5d   : > { %v2793_v33 = vmul.f32 %v2786_v7, %v5698_v6 }
 0xa60   : > { %v2707_v52 = vpop.permute.xlu1 %2706 }
 0xa61   : > { %v2715_v16 = vmul.f32 %v2707_v52, %v5669_v43  ;;  %v2860_v43 = vpop.permute.xlu0 %2859 }
 0xa62   : > { %v2870_v44 = vmul.f32 %v2860_v43, %v5743_v63 }
 0xa63   : > { %v3014_v26 = vpack.c.bf16 %v2715_v16, %v2714_v50 }
 0xa65   : > { %3352 = vmatmul.bf16.vlgmr.msrb.gmra.mxu3 %v3014_v26  ;;  %v2938_v21 = vpop.permute.xlu2 %2937 }
 0xa69   : > { %v2782_v29 = vpop.permute.xlu1 %2781 }
 0xa6a   : > { %v2792_v12 = vmul.f32 %v2782_v29, %v5677_v37  ;;  %v2948_v37 = vmul.f32 %v2938_v21, %v5765_v46  ;;  %v3023_v46 = vpack.c.bf16 %v5808_v2, %v5808_v2 }
 0xa6b   : > { %v2868_v61 = vpop.permute.xlu0 %2867 }
 0xa6c   : > { %v3015_v51 = vpack.c.bf16 %v2793_v33, %v2792_v12  ;;  %v2872_v63 = vmul.f32 %v2868_v61, %v5791_v34 }
 0xa6e   : > { %3370 = vmatmul.bf16.vlgmr.msra.gmra.mxu2 %v3015_v51  ;;  %v2790_v8 = vpop.permute.xlu2 %2789  ;;  %v3021_v36 = vpack.c.bf16 %v2872_v63, %v2872_v63 }
 0xa6f   : > { %v2794_v6 = vmul.f32 %v2790_v8, %v5729_v31 }
 0xa71   : > { %v3020_v25 = vpack.c.bf16 %v2794_v6, %v2794_v6 }
 0xa72   : > { %v2864_v22 = vpop.permute.xlu1 %2863 }
 0xa73   : > { %v2871_v14 = vmul.f32 %v2864_v22, %v5763_v49 }
 0xa75   : > { %v3016_v23 = vpack.c.bf16 %v2871_v14, %v2870_v44  ;;  %3357 = vmatmul.bf16.gmra.mxu3 %v3019_v35 }
 0xa77   : > { %3388 = vmatmul.bf16.vlgmr.msra.gmra.mxu0 %v3016_v23 }
 0xa7b   : > { %v2942_v3 = vpop.permute.xlu1 %2941 }
 0xa7c   : > { %v2949_v38 = vmul.f32 %v2942_v3, %v5781_v11 }
 0xa7e   : > { %v3017_v45 = vpack.c.bf16 %v2949_v38, %v2948_v37  ;;  %3375 = vmatmul.bf16.gmra.mxu2 %v3020_v25 }
 0xa80   : > { %3406 = vmatmul.bf16.vlgmr.msra.gmra.mxu1 %v3017_v45 }
 0xa83   : > { %v2946_v49 = vpop.permute.xlu1 %2945 }
 0xa84   : > { %v2950_v31 = vmul.f32 %v2946_v49, %v5794_v32 }
 0xa85   : > { %3424 = vmatmul.bf16.vlgmr.msra.gmra.mxu3 %v3018_v47 }
 0xa86   : > { %v3022_v48 = vpack.c.bf16 %v2950_v31, %v2950_v31 }
 0xa87   : > { %3393 = vmatmul.bf16.gmra.mxu0 %v3021_v36 }
 0xa90   : > { %3411 = vmatmul.bf16.gmra.mxu1 %v3022_v48 }
 0xa95   : > { %3429 = vmatmul.bf16.gmra.mxu3 %v3023_v46 }
 0xae8   : > { %v3353_v11 = vpop.f32.mrf.mxu3 }
 0xaf0   : > { %v3355_v54 = vpop.f32.mrf.mxu3 }
 0xaf1   : > { %v3371_v60 = vpop.f32.mrf.mxu2 }
 0xaf2   : > { %v3372_v47 = vadd.f32 %v3371_v60, %v3353_v11 }
 0xaf4   : > { %v3389_v55 = vpop.f32.mrf.mxu0 }
 0xaf5   : > { %v3390_v32 = vadd.f32 %v3389_v55, %v3372_v47 }
 0xaf8   : > { %v3358_v34 = vpop.f32.mrf.mxu3 }
 0xaf9   : > { %v3373_v5 = vpop.f32.mrf.mxu2 }
 0xafa   : > { %v3374_v27 = vadd.f32 %v3373_v5, %v3355_v54 }
 0xafc   : > { %v3391_v39 = vpop.f32.mrf.mxu0 }
 0xafd   : > { %v3407_v13 = vpop.f32.mrf.mxu1  ;;  %v3392_v10 = vadd.f32 %v3391_v39, %v3374_v27 }
 0xafe   : > { %v3408_v19 = vadd.f32 %v3407_v13, %v3390_v32 }
 0xb00   : > { %v3360_v20 = vpop.f32.mrf.mxu3 }
 0xb01   : > { %v3376_v15 = vpop.f32.mrf.mxu2 }
 0xb02   : > { %v3377_v58 = vadd.f32 %v3376_v15, %v3358_v34 }
 0xb04   : > { %v3394_v40 = vpop.f32.mrf.mxu0 }
 0xb05   : > { %v3409_v62 = vpop.f32.mrf.mxu1  ;;  %v3395_v24 = vadd.f32 %v3394_v40, %v3377_v58 }
 0xb06   : > { %v3410_v4 = vadd.f32 %v3409_v62, %v3392_v10 }
 0xb08   : > { %v3425_v1 = vpop.f32.mrf.mxu3 }
 0xb09   : > { %v3426_v2 = vadd.f32 %v3425_v1, %v3408_v19  ;;  %v3378_v56 = vpop.f32.mrf.mxu2 }
 0xb0b   : > { %v3434_v28 = vadd.f32 %v3426_v2, %v5246_v30 }
 0xb0c   : > { %v3396_v0 = vpop.f32.mrf.mxu0 }
 0xb0d   : > { %3440 = vst.msk [vmem:[%s413_s16] sm:$0xff] %vm6125_vm12, %v3434_v28  ;;  %v3412_v18 = vpop.f32.mrf.mxu1 }
 0xb0e   : > { %v3413_v50 = vadd.f32 %v3412_v18, %v3395_v24 }
 0xb10   : > { %v3427_v17 = vpop.f32.mrf.mxu3 }
 0xb11   : > { %v3428_v59 = vadd.f32 %v3427_v17, %v3410_v4 }
 0xb13   : > { %v3435_v42 = vadd.f32 %v3428_v59, %v5252_v9 }
 0xb15   : > { %3441 = vst.msk [vmem:[%s413_s16 + $0x8] sm:$0xff] %vm6126_vm9, %v3435_v42  ;;  %v3414_v52 = vpop.f32.mrf.mxu1 }
 0xb18   : > { %v3430_v7 = vpop.f32.mrf.mxu3 }
 0xb19   : > { %v3431_v16 = vadd.f32 %v3430_v7, %v3413_v50 }
 0xb1b   : > { %v3436_v30 = vadd.f32 %v3431_v16, %v5258_v53 }
 0xb1d   : > { %3442 = vst.msk [vmem:[%s413_s16 + $0x10] sm:$0xff] %vm6127_vm0, %v3436_v30 }
 0xb20   : > { %v3432_v41 = vpop.f32.mrf.mxu3 }
 0xb21 PF: > { %s22_s21 = sadd.s32 1, %s4412_s21  }
 0xb22   : > { %p19_p4 = scmp.ge.s32.totalorder %s22_s21, 4  }
 0xb24   :  { %21 = sbr.rel (!%p19_p4) target bundleno = 1 (0x1), region = 98 }

</bundles_post_ra>
